<compile_context>
chip_gen: v5e
topology: v5e:2x2
jax: 0.10.0
libtpu: 0.0.40
codegen_flags: <defaults>
</compile_context>

<pallas_src>
import math
import functools

import jax
import jax.numpy as jnp
from jax.experimental import pallas as pl
from jax.experimental.pallas import tpu as pltpu


# ---------------------------------------------------------------------------
# Hardware-derived knobs (safe fallbacks if the query is unavailable).
# ---------------------------------------------------------------------------
def _vmem_capacity_bytes():
    try:
        return int(pltpu.get_tpu_info().vmem_capacity_bytes)
    except Exception:
        return 64 * 1024 * 1024  # assume the smallest (v7x) part


def _vmem_limit_bytes():
    # 3/4 of the part, capped at 96 MiB: 48 MiB on v7x, 96 MiB on v5e/v6e.
    return min(_vmem_capacity_bytes() * 3 // 4, 96 * 1024 * 1024)


def _default_q_tile(seq_len):
    # Bigger query tiles on 128-MiB-VMEM parts; 128 on v7x.
    tq = 256 if _vmem_capacity_bytes() >= 96 * 1024 * 1024 else 128
    if seq_len <= tq or seq_len % tq != 0:
        return seq_len
    return tq


# ---------------------------------------------------------------------------
# Fused EncoderLayer kernel:
#   out = LN2( y + FFN(y) ),  y = LN1( x + MHA(x, x, x) )
# Grid: (batch, query_tile).  x is the full (S, D) row of the batch (constant
# over the query-tile axis); the query/residual tile is sliced inside.
# K/V (head-major, bf16) live in a persistent VMEM scratch computed at t == 0.
# ---------------------------------------------------------------------------
def encoder_layer_kernel(x_ref, wq_ref, bq_ref, wkv_ref, bkv_ref,
                         wo_ref, bo_ref, ln1_g_ref, ln1_b_ref,
                         w1_ref, b1_ref, w2_ref, b2_ref,
                         ln2_g_ref, ln2_b_ref,
                         o_ref, kv_ref,
                         *, num_heads, d_k, q_tile, ff_chunk):
    H, TQ = num_heads, q_tile
    D = H * d_k
    S = x_ref.shape[0]
    t = pl.program_id(1)

    # ---- K/V projection: once per batch row, reused across query tiles ----
    @pl.when(t == 0)
    def _():
        xs = x_ref[...].astype(jnp.bfloat16)                        # (S, D)
        kv = jnp.dot(xs, wkv_ref[...],
                     preferred_element_type=jnp.float32) + bkv_ref[...]  # (S, 2D) f32
        k_b = kv[:, :D].astype(jnp.bfloat16)
        v_b = kv[:, D:].astype(jnp.bfloat16)
        kv_ref[0] = jnp.transpose(k_b.reshape(S, H, d_k), (1, 0, 2))  # (H, S, dk)
        kv_ref[1] = jnp.transpose(v_b.reshape(S, H, d_k), (1, 0, 2))

    # ---- query / residual tile (f32 residual path) ----
    q0 = pl.multiple_of(t * TQ, TQ)
    xq = x_ref[pl.ds(q0, TQ), :].astype(jnp.float32)                 # (TQ, D)

    # Q projection: 1/sqrt(d_k) already folded into wq/bq at init.
    q = jnp.dot(xq.astype(jnp.bfloat16), wq_ref[...],
                preferred_element_type=jnp.float32) + bq_ref[...]    # (TQ, D)
    q_h = jnp.transpose(q.astype(jnp.bfloat16).reshape(TQ, H, d_k), (1, 0, 2))

    k_h = kv_ref[0]                                                  # (H, S, dk) bf16
    v_h = kv_ref[1]

    # ---- batched-head attention (heads on a leading, non-lane axis) ----
    s = jnp.einsum('hqd,hkd->hqk', q_h, k_h,
                   preferred_element_type=jnp.float32)               # (H, TQ, S)
    s = s - jnp.max(s, axis=-1, keepdims=True)
    p = jnp.exp(s)
    p = p * pl.reciprocal(jnp.sum(p, axis=-1, keepdims=True), approx=True)
    o_h = jnp.einsum('hqk,hkd->hqd', p.astype(jnp.bfloat16), v_h,
                     preferred_element_type=jnp.float32)             # (H, TQ, dk)

    # ---- output projection without the (H,TQ,dk)->(TQ,D) relayout ----
    # W_O stored as (H, d_k, D): per-head matmul, then reduce over heads.
    attn_h = jnp.einsum('hqd,hdn->hqn', o_h.astype(jnp.bfloat16), wo_ref[...],
                        preferred_element_type=jnp.float32)          # (H, TQ, D)
    attn = jnp.sum(attn_h, axis=0) + bo_ref[...]                     # (TQ, D)

    # ---- residual + LayerNorm 1 (f32) ----
    y = xq + attn
    mu = jnp.mean(y, axis=-1, keepdims=True)
    var = jnp.mean((y - mu) ** 2, axis=-1, keepdims=True)
    y = (y - mu) * jax.lax.rsqrt(var + 1e-5) * ln1_g_ref[...] + ln1_b_ref[...]

    # ---- position-wise FFN, hidden dim chunked ----
    y_b = y.astype(jnp.bfloat16)
    d_ff = w1_ref.shape[1]
    f = jnp.zeros((TQ, D), jnp.float32)
    for c0 in range(0, d_ff, ff_chunk):
        h = jnp.dot(y_b, w1_ref[:, c0:c0 + ff_chunk],
                    preferred_element_type=jnp.float32) + b1_ref[:, c0:c0 + ff_chunk]
        h = jnp.maximum(h, 0.0)
        f = f + jnp.dot(h.astype(jnp.bfloat16), w2_ref[c0:c0 + ff_chunk, :],
                        preferred_element_type=jnp.float32)
    f = f + b2_ref[...]

    # ---- residual + LayerNorm 2 (f32) ----
    z = y + f
    mu2 = jnp.mean(z, axis=-1, keepdims=True)
    var2 = jnp.mean((z - mu2) ** 2, axis=-1, keepdims=True)
    o_ref[...] = ((z - mu2) * jax.lax.rsqrt(var2 + 1e-5)
                  * ln2_g_ref[...] + ln2_b_ref[...]).astype(o_ref.dtype)


# ---------------------------------------------------------------------------
# Wrappers
# ---------------------------------------------------------------------------
def _w_spec(shape):
    # weights / biases / LN params: same block at every grid step
    return pl.BlockSpec(shape, lambda b, t, _s=shape: (0,) * len(_s))


def encoder_layer(x, p, num_heads, q_tile=None):
    B, S, D = x.shape
    d_k = D // num_heads
    d_ff = p["w1"].shape[1]
    if q_tile is None:
        q_tile = _default_q_tile(S)
    assert S % q_tile == 0 and (q_tile == S or q_tile % 8 == 0), \
        "q_tile must divide S and be a multiple of 8 (sublane alignment)"
    n_q = S // q_tile
    ff_chunk = next((c for c in (1024, 512, 256, 128) if d_ff % c == 0), d_ff)
    ff_chunk = min(ff_chunk, d_ff)

    kernel = functools.partial(encoder_layer_kernel, num_heads=num_heads,
                               d_k=d_k, q_tile=q_tile, ff_chunk=ff_chunk)
    return pl.pallas_call(
        kernel,
        out_shape=jax.ShapeDtypeStruct((B, S, D), x.dtype),
        grid=(B, n_q),
        in_specs=[
            # full sequence row of x, constant over the query-tile axis
            pl.BlockSpec((None, S, D), lambda b, t: (b, 0, 0)),
            _w_spec((D, D)), _w_spec((1, D)),                  # W_Q (scale-folded), b_Q
            _w_spec((D, 2 * D)), _w_spec((1, 2 * D)),          # fused W_KV, b_KV
            _w_spec((num_heads, d_k, D)), _w_spec((1, D)),     # W_O (H,dk,D), b_O
            _w_spec((1, D)), _w_spec((1, D)),                  # LN1 gamma, beta
            _w_spec((D, d_ff)), _w_spec((1, d_ff)),            # W1, b1
            _w_spec((d_ff, D)), _w_spec((1, D)),               # W2, b2
            _w_spec((1, D)), _w_spec((1, D)),                  # LN2 gamma, beta
        ],
        out_specs=pl.BlockSpec((None, q_tile, D), lambda b, t: (b, t, 0)),
        scratch_shapes=[pltpu.VMEM((2, num_heads, S, d_k), jnp.bfloat16)],  # K/V
        compiler_params=pltpu.CompilerParams(
            # t axis carries the K/V scratch across query tiles -> "arbitrary"
            dimension_semantics=("parallel", "arbitrary"),
            vmem_limit_bytes=_vmem_limit_bytes()),
    )(x,
      p["wq"], p["bq"], p["wkv"], p["bkv"], p["wo"], p["bo"],
      p["ln1_g"], p["ln1_b"],
      p["w1"], p["b1"], p["w2"], p["b2"],
      p["ln2_g"], p["ln2_b"])


def positional_encoding_table(seq_len, d_model):
    pos = jnp.arange(seq_len, dtype=jnp.float32)[:, None]
    div = jnp.exp(jnp.arange(0, d_model, 2, dtype=jnp.float32)
                  * (-math.log(10000.0) / d_model))
    ang = pos * div
    pe = jnp.zeros((seq_len, d_model), jnp.float32)
    pe = pe.at[:, 0::2].set(jnp.sin(ang))
    pe = pe.at[:, 1::2].set(jnp.cos(ang))
    return pe


def encoder_forward(src, params, num_heads, q_tile=None):
    # TODO(synk): src_mask is not applied (reference forward default is None).
    # Embedding gather + positional-encoding table are plain JAX (tiny ops).
    d_model = params["embedding"].shape[1]
    x = jnp.take(params["embedding"], src, axis=0)                 # (B, S, D) f32
    x = x + positional_encoding_table(src.shape[1], d_model)[None]
    # dropout: identity (eval mode)
    x = x.astype(jnp.bfloat16)        # bf16 inter-layer activations (HBM traffic /2)
    for layer_p in params["layers"]:
        x = encoder_layer(x, layer_p, num_heads, q_tile=q_tile)
    return x.astype(jnp.float32)


# ---------------------------------------------------------------------------
# Deterministic parameter init (matches nn.Linear/LayerNorm/Embedding defaults;
# linear weights stored transposed as (D_in, D_out); 1/sqrt(d_k) folded into
# W_Q/b_Q; W_K/W_V fused as (D, 2D); W_O stored head-major as (H, d_k, D);
# matmul weights stored bf16, biases/LN params f32).
# ---------------------------------------------------------------------------
def init_encoder_params(key, vocab, d_model, num_heads, d_ff, num_layers):
    assert d_model % num_heads == 0
    d_k = d_model // num_heads

    def lin(k, din, dout):
        kw, kb = jax.random.split(k)
        bound = 1.0 / math.sqrt(din)
        w = jax.random.uniform(kw, (din, dout), jnp.float32, -bound, bound)
        b = jax.random.uniform(kb, (1, dout), jnp.float32, -bound, bound)
        return w, b

    keys = jax.random.split(key, 1 + num_layers)
    emb = jax.random.normal(keys[0], (vocab, d_model), jnp.float32)

    scale = 1.0 / math.sqrt(d_k)
    layers = []
    for i in range(num_layers):
        ks = jax.random.split(keys[1 + i], 6)
        wq, bq = lin(ks[0], d_model, d_model)
        wk, bk = lin(ks[1], d_model, d_model)
        wv, bv = lin(ks[2], d_model, d_model)
        wo, bo = lin(ks[3], d_model, d_model)
        w1, b1 = lin(ks[4], d_model, d_ff)
        w2, b2 = lin(ks[5], d_ff, d_model)
        layers.append(dict(
            wq=(wq * scale).astype(jnp.bfloat16),                    # scale folded
            bq=bq * scale,
            wkv=jnp.concatenate([wk, wv], axis=1).astype(jnp.bfloat16),
            bkv=jnp.concatenate([bk, bv], axis=1),
            wo=wo.reshape(num_heads, d_k, d_model).astype(jnp.bfloat16),
            bo=bo,
            ln1_g=jnp.ones((1, d_model), jnp.float32),
            ln1_b=jnp.zeros((1, d_model), jnp.float32),
            w1=w1.astype(jnp.bfloat16), b1=b1,
            w2=w2.astype(jnp.bfloat16), b2=b2,
            ln2_g=jnp.ones((1, d_model), jnp.float32),
            ln2_b=jnp.zeros((1, d_model), jnp.float32),
        ))
    return dict(embedding=emb, layers=layers)


if __name__ == "__main__":
    B, S = 2, 16
    vocab, d_model, num_heads, d_ff, num_layers = 16, 256, 2, 512, 2

    key = jax.random.PRNGKey(0)
    k_tok, k_par = jax.random.split(key)
    src = jax.random.randint(k_tok, (B, S), 0, vocab, dtype=jnp.int32)
    params = init_encoder_params(k_par, vocab, d_model, num_heads, d_ff, num_layers)

    run_encoder = jax.jit(encoder_forward, static_argnums=(2, 3))

    # Full-sequence query tile (grid=(B, 1)).
    out_full = jax.block_until_ready(run_encoder(src, params, num_heads, None))
    # Sequence-tiled path (grid=(B, 2)) -> exercises the hoisted-KV scratch reuse.
    out_tiled = jax.block_until_ready(run_encoder(src, params, num_heads, 8))

    assert out_full.shape == (B, S, d_model)
    assert bool(jnp.allclose(out_full, out_tiled, atol=5e-2, rtol=5e-2))
    print("KERNEL_OK")
</pallas_src>

<mosaic_0001>
module attributes {stable_mosaic.version = 11 : i64} {
  func.func @encoder_layer_kernel(%arg0: i32, %arg1: i32, %arg2: memref<1x16x256xbf16, #tpu.memory_space<vmem>>, %arg3: memref<256x256xbf16, #tpu.memory_space<vmem>>, %arg4: memref<1x256xf32, #tpu.memory_space<vmem>>, %arg5: memref<256x512xbf16, #tpu.memory_space<vmem>>, %arg6: memref<1x512xf32, #tpu.memory_space<vmem>>, %arg7: memref<2x128x256xbf16, #tpu.memory_space<vmem>>, %arg8: memref<1x256xf32, #tpu.memory_space<vmem>>, %arg9: memref<1x256xf32, #tpu.memory_space<vmem>>, %arg10: memref<1x256xf32, #tpu.memory_space<vmem>>, %arg11: memref<256x512xbf16, #tpu.memory_space<vmem>>, %arg12: memref<1x512xf32, #tpu.memory_space<vmem>>, %arg13: memref<512x256xbf16, #tpu.memory_space<vmem>>, %arg14: memref<1x256xf32, #tpu.memory_space<vmem>>, %arg15: memref<1x256xf32, #tpu.memory_space<vmem>>, %arg16: memref<1x256xf32, #tpu.memory_space<vmem>>, %arg17: memref<1x16x256xbf16, #tpu.memory_space<vmem>>, %arg18: memref<2x2x16x128xbf16, #tpu.memory_space<vmem>>) attributes {dimension_semantics = [#tpu.dimension_semantics<parallel>, #tpu.dimension_semantics<arbitrary>], iteration_bounds = array<i64: 2, 1>, scalar_prefetch = 0 : i64, scratch_operands = 1 : i64, tpu.core_type = #tpu.core_type<tc>, window_params = [{transform_indices = @transform_0, window_bounds = array<i64: 1, 16, 256>}, {pipeline_mode = #tpu.pipeline_mode<synchronous>, transform_indices = @transform_1, window_bounds = array<i64: 256, 256>}, {pipeline_mode = #tpu.pipeline_mode<synchronous>, transform_indices = @transform_2, window_bounds = array<i64: 1, 256>}, {pipeline_mode = #tpu.pipeline_mode<synchronous>, transform_indices = @transform_3, window_bounds = array<i64: 256, 512>}, {pipeline_mode = #tpu.pipeline_mode<synchronous>, transform_indices = @transform_4, window_bounds = array<i64: 1, 512>}, {pipeline_mode = #tpu.pipeline_mode<synchronous>, transform_indices = @transform_5, window_bounds = array<i64: 2, 128, 256>}, {pipeline_mode = #tpu.pipeline_mode<synchronous>, transform_indices = @transform_6, window_bounds = array<i64: 1, 256>}, {pipeline_mode = #tpu.pipeline_mode<synchronous>, transform_indices = @transform_7, window_bounds = array<i64: 1, 256>}, {pipeline_mode = #tpu.pipeline_mode<synchronous>, transform_indices = @transform_8, window_bounds = array<i64: 1, 256>}, {pipeline_mode = #tpu.pipeline_mode<synchronous>, transform_indices = @transform_9, window_bounds = array<i64: 256, 512>}, {pipeline_mode = #tpu.pipeline_mode<synchronous>, transform_indices = @transform_10, window_bounds = array<i64: 1, 512>}, {pipeline_mode = #tpu.pipeline_mode<synchronous>, transform_indices = @transform_11, window_bounds = array<i64: 512, 256>}, {pipeline_mode = #tpu.pipeline_mode<synchronous>, transform_indices = @transform_12, window_bounds = array<i64: 1, 256>}, {pipeline_mode = #tpu.pipeline_mode<synchronous>, transform_indices = @transform_13, window_bounds = array<i64: 1, 256>}, {pipeline_mode = #tpu.pipeline_mode<synchronous>, transform_indices = @transform_14, window_bounds = array<i64: 1, 256>}, {transform_indices = @transform_15, window_bounds = array<i64: 1, 16, 256>}]} {
    %c0_i32 = arith.constant 0 : i32
    %0 = arith.cmpi eq, %arg1, %c0_i32 : i32
    %1 = arith.extui %0 : i1 to i32
    %c0_i32_0 = arith.constant 0 : i32
    %2 = arith.cmpi ne, %1, %c0_i32_0 : i32
    scf.if %2 {
      %c0_57 = arith.constant 0 : index
      %c0_58 = arith.constant 0 : index
      %c0_59 = arith.constant 0 : index
      %112 = vector.load %arg2[%c0_57, %c0_58, %c0_59] : memref<1x16x256xbf16, #tpu.memory_space<vmem>>, vector<1x16x256xbf16>
      %113 = vector.shape_cast %112 : vector<1x16x256xbf16> to vector<16x256xbf16>
      %c0_60 = arith.constant 0 : index
      %c0_61 = arith.constant 0 : index
      %114 = vector.load %arg5[%c0_60, %c0_61] : memref<256x512xbf16, #tpu.memory_space<vmem>>, vector<256x512xbf16>
      %cst_62 = arith.constant dense<0.000000e+00> : vector<16x512xf32>
      %115 = tpu.matmul %113, %114, %cst_62 {dimension_numbers = #tpu.dot_dimension_numbers<[1], [0], [0], [1], [0, 0, 1, 1], [], []>} : vector<16x256xbf16>, vector<256x512xbf16>, vector<16x512xf32> -> vector<16x512xf32>
      %c0_63 = arith.constant 0 : index
      %c0_64 = arith.constant 0 : index
      %116 = vector.load %arg6[%c0_63, %c0_64] : memref<1x512xf32, #tpu.memory_space<vmem>>, vector<1x512xf32>
      %117 = vector.broadcast %116 : vector<1x512xf32> to vector<16x512xf32>
      %118 = arith.addf %115, %117 : vector<16x512xf32>
      %119 = vector.extract_strided_slice %118 {offsets = [0, 0], sizes = [16, 256], strides = [1, 1]} : vector<16x512xf32> to vector<16x256xf32>
      %120 = arith.truncf %119 : vector<16x256xf32> to vector<16x256xbf16>
      %121 = vector.extract_strided_slice %118 {offsets = [0, 256], sizes = [16, 256], strides = [1, 1]} : vector<16x512xf32> to vector<16x256xf32>
      %122 = arith.truncf %121 : vector<16x256xf32> to vector<16x256xbf16>
      %123 = vector.shape_cast %120 : vector<16x256xbf16> to vector<16x2x128xbf16>
      %124 = tpu.transpose %123, [1, 0, 2] : vector<16x2x128xbf16> -> vector<2x16x128xbf16>
      %c0_65 = arith.constant 0 : index
      %c0_66 = arith.constant 0 : index
      %c0_67 = arith.constant 0 : index
      %c0_68 = arith.constant 0 : index
      %125 = vector.load %arg18[%c0_65, %c0_66, %c0_67, %c0_68] : memref<2x2x16x128xbf16, #tpu.memory_space<vmem>>, vector<1x2x16x128xbf16>
      %126 = vector.shape_cast %125 : vector<1x2x16x128xbf16> to vector<2x16x128xbf16>
      %127 = vector.shape_cast %124 : vector<2x16x128xbf16> to vector<1x2x16x128xbf16>
      tpu.vector_store %arg18[%c0_65, %c0_66, %c0_67, %c0_68], %127 {strides = array<i32>} : memref<2x2x16x128xbf16, #tpu.memory_space<vmem>>, vector<1x2x16x128xbf16>,
      %128 = vector.shape_cast %122 : vector<16x256xbf16> to vector<16x2x128xbf16>
      %129 = tpu.transpose %128, [1, 0, 2] : vector<16x2x128xbf16> -> vector<2x16x128xbf16>
      %c1_69 = arith.constant 1 : index
      %c0_70 = arith.constant 0 : index
      %c0_71 = arith.constant 0 : index
      %c0_72 = arith.constant 0 : index
      %130 = vector.load %arg18[%c1_69, %c0_70, %c0_71, %c0_72] : memref<2x2x16x128xbf16, #tpu.memory_space<vmem>>, vector<1x2x16x128xbf16>
      %131 = vector.shape_cast %130 : vector<1x2x16x128xbf16> to vector<2x16x128xbf16>
      %132 = vector.shape_cast %129 : vector<2x16x128xbf16> to vector<1x2x16x128xbf16>
      tpu.vector_store %arg18[%c1_69, %c0_70, %c0_71, %c0_72], %132 {strides = array<i32>} : memref<2x2x16x128xbf16, #tpu.memory_space<vmem>>, vector<1x2x16x128xbf16>,
    } else {
    }
    %c16_i32 = arith.constant 16 : i32
    %3 = arith.muli %arg1, %c16_i32 : i32
    %4 = tpu.assume_multiple %3, 16 : i32
    %c0 = arith.constant 0 : index
    %5 = arith.index_cast %4 : i32 to index
    %c0_1 = arith.constant 0 : index
    %6 = vector.load %arg2[%c0, %5, %c0_1] : memref<1x16x256xbf16, #tpu.memory_space<vmem>>, vector<1x16x256xbf16>
    %7 = vector.shape_cast %6 : vector<1x16x256xbf16> to vector<16x256xbf16>
    %8 = arith.extf %7 : vector<16x256xbf16> to vector<16x256xf32>
    %9 = arith.truncf %8 : vector<16x256xf32> to vector<16x256xbf16>
    %c0_2 = arith.constant 0 : index
    %c0_3 = arith.constant 0 : index
    %10 = vector.load %arg3[%c0_2, %c0_3] : memref<256x256xbf16, #tpu.memory_space<vmem>>, vector<256x256xbf16>
    %cst = arith.constant dense<0.000000e+00> : vector<16x256xf32>
    %11 = tpu.matmul %9, %10, %cst {dimension_numbers = #tpu.dot_dimension_numbers<[1], [0], [0], [1], [0, 0, 1, 1], [], []>} : vector<16x256xbf16>, vector<256x256xbf16>, vector<16x256xf32> -> vector<16x256xf32>
    %c0_4 = arith.constant 0 : index
    %c0_5 = arith.constant 0 : index
    %12 = vector.load %arg4[%c0_4, %c0_5] : memref<1x256xf32, #tpu.memory_space<vmem>>, vector<1x256xf32>
    %13 = vector.broadcast %12 : vector<1x256xf32> to vector<16x256xf32>
    %14 = arith.addf %11, %13 : vector<16x256xf32>
    %15 = arith.truncf %14 : vector<16x256xf32> to vector<16x256xbf16>
    %16 = vector.shape_cast %15 : vector<16x256xbf16> to vector<16x2x128xbf16>
    %17 = tpu.transpose %16, [1, 0, 2] : vector<16x2x128xbf16> -> vector<2x16x128xbf16>
    %c0_6 = arith.constant 0 : index
    %c0_7 = arith.constant 0 : index
    %c0_8 = arith.constant 0 : index
    %c0_9 = arith.constant 0 : index
    %18 = vector.load %arg18[%c0_6, %c0_7, %c0_8, %c0_9] : memref<2x2x16x128xbf16, #tpu.memory_space<vmem>>, vector<1x2x16x128xbf16>
    %19 = vector.shape_cast %18 : vector<1x2x16x128xbf16> to vector<2x16x128xbf16>
    %c1 = arith.constant 1 : index
    %c0_10 = arith.constant 0 : index
    %c0_11 = arith.constant 0 : index
    %c0_12 = arith.constant 0 : index
    %20 = vector.load %arg18[%c1, %c0_10, %c0_11, %c0_12] : memref<2x2x16x128xbf16, #tpu.memory_space<vmem>>, vector<1x2x16x128xbf16>
    %21 = vector.shape_cast %20 : vector<1x2x16x128xbf16> to vector<2x16x128xbf16>
    "tpu.trace_start"() <{level = 10 : i32, message = "hqd,hkd->hqk"}> : () -> ()
    %cst_13 = arith.constant dense<0.000000e+00> : vector<2x16x16xf32>
    %22 = tpu.matmul %17, %19, %cst_13 {dimension_numbers = #tpu.dot_dimension_numbers<[2], [2], [1], [1], [0, 0, 0, 1, 1, 1], [0], [0]>} : vector<2x16x128xbf16>, vector<2x16x128xbf16>, vector<2x16x16xf32> -> vector<2x16x16xf32>
    "tpu.trace_stop"() : () -> ()
    %cst_14 = arith.constant dense<0xFF800000> : vector<2x16xf32>
    %23 = vector.multi_reduction <maximumf>, %22, %cst_14 [2] : vector<2x16x16xf32> to vector<2x16xf32>
    %24 = vector.shape_cast %23 : vector<2x16xf32> to vector<2x16x1xf32>
    %25 = vector.broadcast %24 : vector<2x16x1xf32> to vector<2x16x16xf32>
    %26 = arith.subf %22, %25 : vector<2x16x16xf32>
    %27 = math.exp %26 : vector<2x16x16xf32>
    %cst_15 = arith.constant dense<0.000000e+00> : vector<2x16xf32>
    %28 = vector.multi_reduction <add>, %27, %cst_15 [2] : vector<2x16x16xf32> to vector<2x16xf32>
    %29 = vector.shape_cast %28 : vector<2x16xf32> to vector<2x16x1xf32>
    %30 = tpu.reciprocal %29 {approx = true} : vector<2x16x1xf32> -> vector<2x16x1xf32>
    %31 = vector.broadcast %30 : vector<2x16x1xf32> to vector<2x16x16xf32>
    %32 = arith.mulf %27, %31 : vector<2x16x16xf32>
    %33 = arith.truncf %32 : vector<2x16x16xf32> to vector<2x16x16xbf16>
    "tpu.trace_start"() <{level = 10 : i32, message = "hqk,hkd->hqd"}> : () -> ()
    %cst_16 = arith.constant dense<0.000000e+00> : vector<2x16x128xf32>
    %34 = tpu.matmul %33, %21, %cst_16 {dimension_numbers = #tpu.dot_dimension_numbers<[2], [1], [1], [2], [0, 0, 0, 1, 1, 2], [0], [0]>} : vector<2x16x16xbf16>, vector<2x16x128xbf16>, vector<2x16x128xf32> -> vector<2x16x128xf32>
    "tpu.trace_stop"() : () -> ()
    %35 = arith.truncf %34 : vector<2x16x128xf32> to vector<2x16x128xbf16>
    %c0_17 = arith.constant 0 : index
    %c0_18 = arith.constant 0 : index
    %c0_19 = arith.constant 0 : index
    %36 = vector.load %arg7[%c0_17, %c0_18, %c0_19] : memref<2x128x256xbf16, #tpu.memory_space<vmem>>, vector<2x128x256xbf16>
    "tpu.trace_start"() <{level = 10 : i32, message = "hqd,hdn->hqn"}> : () -> ()
    %cst_20 = arith.constant dense<0.000000e+00> : vector<2x16x256xf32>
    %37 = tpu.matmul %35, %36, %cst_20 {dimension_numbers = #tpu.dot_dimension_numbers<[2], [1], [1], [2], [0, 0, 0, 1, 1, 2], [0], [0]>} : vector<2x16x128xbf16>, vector<2x128x256xbf16>, vector<2x16x256xf32> -> vector<2x16x256xf32>
    "tpu.trace_stop"() : () -> ()
    %cst_21 = arith.constant dense<0.000000e+00> : vector<16x256xf32>
    %38 = vector.multi_reduction <add>, %37, %cst_21 [0] : vector<2x16x256xf32> to vector<16x256xf32>
    %c0_22 = arith.constant 0 : index
    %c0_23 = arith.constant 0 : index
    %39 = vector.load %arg8[%c0_22, %c0_23] : memref<1x256xf32, #tpu.memory_space<vmem>>, vector<1x256xf32>
    %40 = vector.broadcast %39 : vector<1x256xf32> to vector<16x256xf32>
    %41 = arith.addf %38, %40 : vector<16x256xf32>
    %42 = arith.addf %8, %41 : vector<16x256xf32>
    %cst_24 = arith.constant dense<0.000000e+00> : vector<16xf32>
    %43 = vector.multi_reduction <add>, %42, %cst_24 [1] : vector<16x256xf32> to vector<16xf32>
    %44 = vector.shape_cast %43 : vector<16xf32> to vector<16x1xf32>
    %cst_25 = arith.constant 2.560000e+02 : f32
    %45 = vector.broadcast %cst_25 : f32 to vector<16x1xf32>
    %46 = arith.divf %44, %45 : vector<16x1xf32>
    %47 = vector.broadcast %46 : vector<16x1xf32> to vector<16x256xf32>
    %48 = arith.subf %42, %47 : vector<16x256xf32>
    %49 = arith.mulf %48, %48 : vector<16x256xf32>
    %cst_26 = arith.constant dense<0.000000e+00> : vector<16xf32>
    %50 = vector.multi_reduction <add>, %49, %cst_26 [1] : vector<16x256xf32> to vector<16xf32>
    %51 = vector.shape_cast %50 : vector<16xf32> to vector<16x1xf32>
    %cst_27 = arith.constant 2.560000e+02 : f32
    %52 = vector.broadcast %cst_27 : f32 to vector<16x1xf32>
    %53 = arith.divf %51, %52 : vector<16x1xf32>
    %54 = vector.broadcast %46 : vector<16x1xf32> to vector<16x256xf32>
    %55 = arith.subf %42, %54 : vector<16x256xf32>
    %cst_28 = arith.constant 9.99999974E-6 : f32
    %56 = vector.broadcast %cst_28 : f32 to vector<16x1xf32>
    %57 = arith.addf %53, %56 : vector<16x1xf32>
    %58 = math.rsqrt %57 : vector<16x1xf32>
    %59 = vector.broadcast %58 : vector<16x1xf32> to vector<16x256xf32>
    %60 = arith.mulf %55, %59 : vector<16x256xf32>
    %c0_29 = arith.constant 0 : index
    %c0_30 = arith.constant 0 : index
    %61 = vector.load %arg9[%c0_29, %c0_30] : memref<1x256xf32, #tpu.memory_space<vmem>>, vector<1x256xf32>
    %62 = vector.broadcast %61 : vector<1x256xf32> to vector<16x256xf32>
    %63 = arith.mulf %60, %62 : vector<16x256xf32>
    %c0_31 = arith.constant 0 : index
    %c0_32 = arith.constant 0 : index
    %64 = vector.load %arg10[%c0_31, %c0_32] : memref<1x256xf32, #tpu.memory_space<vmem>>, vector<1x256xf32>
    %65 = vector.broadcast %64 : vector<1x256xf32> to vector<16x256xf32>
    %66 = arith.addf %63, %65 : vector<16x256xf32>
    %67 = arith.truncf %66 : vector<16x256xf32> to vector<16x256xbf16>
    %cst_33 = arith.constant 0.000000e+00 : f32
    %68 = vector.broadcast %cst_33 : f32 to vector<16x256xf32>
    %c0_34 = arith.constant 0 : index
    %c0_35 = arith.constant 0 : index
    %69 = vector.load %arg11[%c0_34, %c0_35] : memref<256x512xbf16, #tpu.memory_space<vmem>>, vector<256x512xbf16>
    %cst_36 = arith.constant dense<0.000000e+00> : vector<16x512xf32>
    %70 = tpu.matmul %67, %69, %cst_36 {dimension_numbers = #tpu.dot_dimension_numbers<[1], [0], [0], [1], [0, 0, 1, 1], [], []>} : vector<16x256xbf16>, vector<256x512xbf16>, vector<16x512xf32> -> vector<16x512xf32>
    %c0_37 = arith.constant 0 : index
    %c0_38 = arith.constant 0 : index
    %71 = vector.load %arg12[%c0_37, %c0_38] : memref<1x512xf32, #tpu.memory_space<vmem>>, vector<1x512xf32>
    %72 = vector.broadcast %71 : vector<1x512xf32> to vector<16x512xf32>
    %73 = arith.addf %70, %72 : vector<16x512xf32>
    %cst_39 = arith.constant 0.000000e+00 : f32
    %74 = vector.broadcast %cst_39 : f32 to vector<16x512xf32>
    %75 = arith.maximumf %73, %74 : vector<16x512xf32>
    %76 = arith.truncf %75 : vector<16x512xf32> to vector<16x512xbf16>
    %c0_40 = arith.constant 0 : index
    %c0_41 = arith.constant 0 : index
    %77 = vector.load %arg13[%c0_40, %c0_41] : memref<512x256xbf16, #tpu.memory_space<vmem>>, vector<512x256xbf16>
    %cst_42 = arith.constant dense<0.000000e+00> : vector<16x256xf32>
    %78 = tpu.matmul %76, %77, %cst_42 {dimension_numbers = #tpu.dot_dimension_numbers<[1], [0], [0], [1], [0, 0, 1, 1], [], []>} : vector<16x512xbf16>, vector<512x256xbf16>, vector<16x256xf32> -> vector<16x256xf32>
    %79 = arith.addf %68, %78 : vector<16x256xf32>
    %c0_43 = arith.constant 0 : index
    %c0_44 = arith.constant 0 : index
    %80 = vector.load %arg14[%c0_43, %c0_44] : memref<1x256xf32, #tpu.memory_space<vmem>>, vector<1x256xf32>
    %81 = vector.broadcast %80 : vector<1x256xf32> to vector<16x256xf32>
    %82 = arith.addf %79, %81 : vector<16x256xf32>
    %83 = arith.addf %66, %82 : vector<16x256xf32>
    %cst_45 = arith.constant dense<0.000000e+00> : vector<16xf32>
    %84 = vector.multi_reduction <add>, %83, %cst_45 [1] : vector<16x256xf32> to vector<16xf32>
    %85 = vector.shape_cast %84 : vector<16xf32> to vector<16x1xf32>
    %cst_46 = arith.constant 2.560000e+02 : f32
    %86 = vector.broadcast %cst_46 : f32 to vector<16x1xf32>
    %87 = arith.divf %85, %86 : vector<16x1xf32>
    %88 = vector.broadcast %87 : vector<16x1xf32> to vector<16x256xf32>
    %89 = arith.subf %83, %88 : vector<16x256xf32>
    %90 = arith.mulf %89, %89 : vector<16x256xf32>
    %cst_47 = arith.constant dense<0.000000e+00> : vector<16xf32>
    %91 = vector.multi_reduction <add>, %90, %cst_47 [1] : vector<16x256xf32> to vector<16xf32>
    %92 = vector.shape_cast %91 : vector<16xf32> to vector<16x1xf32>
    %cst_48 = arith.constant 2.560000e+02 : f32
    %93 = vector.broadcast %cst_48 : f32 to vector<16x1xf32>
    %94 = arith.divf %92, %93 : vector<16x1xf32>
    %95 = vector.broadcast %87 : vector<16x1xf32> to vector<16x256xf32>
    %96 = arith.subf %83, %95 : vector<16x256xf32>
    %cst_49 = arith.constant 9.99999974E-6 : f32
    %97 = vector.broadcast %cst_49 : f32 to vector<16x1xf32>
    %98 = arith.addf %94, %97 : vector<16x1xf32>
    %99 = math.rsqrt %98 : vector<16x1xf32>
    %100 = vector.broadcast %99 : vector<16x1xf32> to vector<16x256xf32>
    %101 = arith.mulf %96, %100 : vector<16x256xf32>
    %c0_50 = arith.constant 0 : index
    %c0_51 = arith.constant 0 : index
    %102 = vector.load %arg15[%c0_50, %c0_51] : memref<1x256xf32, #tpu.memory_space<vmem>>, vector<1x256xf32>
    %103 = vector.broadcast %102 : vector<1x256xf32> to vector<16x256xf32>
    %104 = arith.mulf %101, %103 : vector<16x256xf32>
    %c0_52 = arith.constant 0 : index
    %c0_53 = arith.constant 0 : index
    %105 = vector.load %arg16[%c0_52, %c0_53] : memref<1x256xf32, #tpu.memory_space<vmem>>, vector<1x256xf32>
    %106 = vector.broadcast %105 : vector<1x256xf32> to vector<16x256xf32>
    %107 = arith.addf %104, %106 : vector<16x256xf32>
    %108 = arith.truncf %107 : vector<16x256xf32> to vector<16x256xbf16>
    %c0_54 = arith.constant 0 : index
    %c0_55 = arith.constant 0 : index
    %c0_56 = arith.constant 0 : index
    %109 = vector.load %arg17[%c0_54, %c0_55, %c0_56] : memref<1x16x256xbf16, #tpu.memory_space<vmem>>, vector<1x16x256xbf16>
    %110 = vector.shape_cast %109 : vector<1x16x256xbf16> to vector<16x256xbf16>
    %111 = vector.shape_cast %108 : vector<16x256xbf16> to vector<1x16x256xbf16>
    tpu.vector_store %arg17[%c0_54, %c0_55, %c0_56], %111 {strides = array<i32>} : memref<1x16x256xbf16, #tpu.memory_space<vmem>>, vector<1x16x256xbf16>,
    return
  }
  func.func @transform_0(%arg0: i32, %arg1: i32) -> (i32, i32, i32) {
    %c0_i32 = arith.constant 0 : i32
    %c0_i32_0 = arith.constant 0 : i32
    %c0_i32_1 = arith.constant 0 : i32
    return %arg0, %c0_i32, %c0_i32_0 : i32, i32, i32
  }
  func.func @transform_1(%arg0: i32, %arg1: i32) -> (i32, i32) {
    %c0_i32 = arith.constant 0 : i32
    %c0_i32_0 = arith.constant 0 : i32
    %c0_i32_1 = arith.constant 0 : i32
    return %c0_i32, %c0_i32_0 : i32, i32
  }
  func.func @transform_2(%arg0: i32, %arg1: i32) -> (i32, i32) {
    %c0_i32 = arith.constant 0 : i32
    %c0_i32_0 = arith.constant 0 : i32
    %c0_i32_1 = arith.constant 0 : i32
    return %c0_i32, %c0_i32_0 : i32, i32
  }
  func.func @transform_3(%arg0: i32, %arg1: i32) -> (i32, i32) {
    %c0_i32 = arith.constant 0 : i32
    %c0_i32_0 = arith.constant 0 : i32
    %c0_i32_1 = arith.constant 0 : i32
    return %c0_i32, %c0_i32_0 : i32, i32
  }
  func.func @transform_4(%arg0: i32, %arg1: i32) -> (i32, i32) {
    %c0_i32 = arith.constant 0 : i32
    %c0_i32_0 = arith.constant 0 : i32
    %c0_i32_1 = arith.constant 0 : i32
    return %c0_i32, %c0_i32_0 : i32, i32
  }
  func.func @transform_5(%arg0: i32, %arg1: i32) -> (i32, i32, i32) {
    %c0_i32 = arith.constant 0 : i32
    %c0_i32_0 = arith.constant 0 : i32
    %c0_i32_1 = arith.constant 0 : i32
    %c0_i32_2 = arith.constant 0 : i32
    return %c0_i32, %c0_i32_0, %c0_i32_1 : i32, i32, i32
  }
  func.func @transform_6(%arg0: i32, %arg1: i32) -> (i32, i32) {
    %c0_i32 = arith.constant 0 : i32
    %c0_i32_0 = arith.constant 0 : i32
    %c0_i32_1 = arith.constant 0 : i32
    return %c0_i32, %c0_i32_0 : i32, i32
  }
  func.func @transform_7(%arg0: i32, %arg1: i32) -> (i32, i32) {
    %c0_i32 = arith.constant 0 : i32
    %c0_i32_0 = arith.constant 0 : i32
    %c0_i32_1 = arith.constant 0 : i32
    return %c0_i32, %c0_i32_0 : i32, i32
  }
  func.func @transform_8(%arg0: i32, %arg1: i32) -> (i32, i32) {
    %c0_i32 = arith.constant 0 : i32
    %c0_i32_0 = arith.constant 0 : i32
    %c0_i32_1 = arith.constant 0 : i32
    return %c0_i32, %c0_i32_0 : i32, i32
  }
  func.func @transform_9(%arg0: i32, %arg1: i32) -> (i32, i32) {
    %c0_i32 = arith.constant 0 : i32
    %c0_i32_0 = arith.constant 0 : i32
    %c0_i32_1 = arith.constant 0 : i32
    return %c0_i32, %c0_i32_0 : i32, i32
  }
  func.func @transform_10(%arg0: i32, %arg1: i32) -> (i32, i32) {
    %c0_i32 = arith.constant 0 : i32
    %c0_i32_0 = arith.constant 0 : i32
    %c0_i32_1 = arith.constant 0 : i32
    return %c0_i32, %c0_i32_0 : i32, i32
  }
  func.func @transform_11(%arg0: i32, %arg1: i32) -> (i32, i32) {
    %c0_i32 = arith.constant 0 : i32
    %c0_i32_0 = arith.constant 0 : i32
    %c0_i32_1 = arith.constant 0 : i32
    return %c0_i32, %c0_i32_0 : i32, i32
  }
  func.func @transform_12(%arg0: i32, %arg1: i32) -> (i32, i32) {
    %c0_i32 = arith.constant 0 : i32
    %c0_i32_0 = arith.constant 0 : i32
    %c0_i32_1 = arith.constant 0 : i32
    return %c0_i32, %c0_i32_0 : i32, i32
  }
  func.func @transform_13(%arg0: i32, %arg1: i32) -> (i32, i32) {
    %c0_i32 = arith.constant 0 : i32
    %c0_i32_0 = arith.constant 0 : i32
    %c0_i32_1 = arith.constant 0 : i32
    return %c0_i32, %c0_i32_0 : i32, i32
  }
  func.func @transform_14(%arg0: i32, %arg1: i32) -> (i32, i32) {
    %c0_i32 = arith.constant 0 : i32
    %c0_i32_0 = arith.constant 0 : i32
    %c0_i32_1 = arith.constant 0 : i32
    return %c0_i32, %c0_i32_0 : i32, i32
  }
  func.func @transform_15(%arg0: i32, %arg1: i32) -> (i32, i32, i32) {
    %c0_i32 = arith.constant 0 : i32
    %c0_i32_0 = arith.constant 0 : i32
    return %arg0, %arg1, %c0_i32 : i32, i32, i32
  }
}

module attributes {stable_mosaic.version = 11 : i64} {
  func.func @encoder_layer_kernel(%arg0: i32, %arg1: i32, %arg2: memref<1x16x256xbf16, #tpu.memory_space<vmem>>, %arg3: memref<256x256xbf16, #tpu.memory_space<vmem>>, %arg4: memref<1x256xf32, #tpu.memory_space<vmem>>, %arg5: memref<256x512xbf16, #tpu.memory_space<vmem>>, %arg6: memref<1x512xf32, #tpu.memory_space<vmem>>, %arg7: memref<2x128x256xbf16, #tpu.memory_space<vmem>>, %arg8: memref<1x256xf32, #tpu.memory_space<vmem>>, %arg9: memref<1x256xf32, #tpu.memory_space<vmem>>, %arg10: memref<1x256xf32, #tpu.memory_space<vmem>>, %arg11: memref<256x512xbf16, #tpu.memory_space<vmem>>, %arg12: memref<1x512xf32, #tpu.memory_space<vmem>>, %arg13: memref<512x256xbf16, #tpu.memory_space<vmem>>, %arg14: memref<1x256xf32, #tpu.memory_space<vmem>>, %arg15: memref<1x256xf32, #tpu.memory_space<vmem>>, %arg16: memref<1x256xf32, #tpu.memory_space<vmem>>, %arg17: memref<1x16x256xbf16, #tpu.memory_space<vmem>>, %arg18: memref<2x2x16x128xbf16, #tpu.memory_space<vmem>>) attributes {dimension_semantics = [#tpu.dimension_semantics<parallel>, #tpu.dimension_semantics<arbitrary>], iteration_bounds = array<i64: 2, 1>, scalar_prefetch = 0 : i64, scratch_operands = 1 : i64, tpu.core_type = #tpu.core_type<tc>, window_params = [{transform_indices = @transform_0, window_bounds = array<i64: 1, 16, 256>}, {pipeline_mode = #tpu.pipeline_mode<synchronous>, transform_indices = @transform_1, window_bounds = array<i64: 256, 256>}, {pipeline_mode = #tpu.pipeline_mode<synchronous>, transform_indices = @transform_2, window_bounds = array<i64: 1, 256>}, {pipeline_mode = #tpu.pipeline_mode<synchronous>, transform_indices = @transform_3, window_bounds = array<i64: 256, 512>}, {pipeline_mode = #tpu.pipeline_mode<synchronous>, transform_indices = @transform_4, window_bounds = array<i64: 1, 512>}, {pipeline_mode = #tpu.pipeline_mode<synchronous>, transform_indices = @transform_5, window_bounds = array<i64: 2, 128, 256>}, {pipeline_mode = #tpu.pipeline_mode<synchronous>, transform_indices = @transform_6, window_bounds = array<i64: 1, 256>}, {pipeline_mode = #tpu.pipeline_mode<synchronous>, transform_indices = @transform_7, window_bounds = array<i64: 1, 256>}, {pipeline_mode = #tpu.pipeline_mode<synchronous>, transform_indices = @transform_8, window_bounds = array<i64: 1, 256>}, {pipeline_mode = #tpu.pipeline_mode<synchronous>, transform_indices = @transform_9, window_bounds = array<i64: 256, 512>}, {pipeline_mode = #tpu.pipeline_mode<synchronous>, transform_indices = @transform_10, window_bounds = array<i64: 1, 512>}, {pipeline_mode = #tpu.pipeline_mode<synchronous>, transform_indices = @transform_11, window_bounds = array<i64: 512, 256>}, {pipeline_mode = #tpu.pipeline_mode<synchronous>, transform_indices = @transform_12, window_bounds = array<i64: 1, 256>}, {pipeline_mode = #tpu.pipeline_mode<synchronous>, transform_indices = @transform_13, window_bounds = array<i64: 1, 256>}, {pipeline_mode = #tpu.pipeline_mode<synchronous>, transform_indices = @transform_14, window_bounds = array<i64: 1, 256>}, {transform_indices = @transform_15, window_bounds = array<i64: 1, 16, 256>}]} {
    %c0_i32 = arith.constant 0 : i32
    %0 = arith.cmpi eq, %arg1, %c0_i32 : i32
    %1 = arith.extui %0 : i1 to i32
    %c0_i32_0 = arith.constant 0 : i32
    %2 = arith.cmpi ne, %1, %c0_i32_0 : i32
    scf.if %2 {
      %c0_57 = arith.constant 0 : index
      %c0_58 = arith.constant 0 : index
      %c0_59 = arith.constant 0 : index
      %112 = vector.load %arg2[%c0_57, %c0_58, %c0_59] : memref<1x16x256xbf16, #tpu.memory_space<vmem>>, vector<1x16x256xbf16>
      %113 = vector.shape_cast %112 : vector<1x16x256xbf16> to vector<16x256xbf16>
      %c0_60 = arith.constant 0 : index
      %c0_61 = arith.constant 0 : index
      %114 = vector.load %arg5[%c0_60, %c0_61] : memref<256x512xbf16, #tpu.memory_space<vmem>>, vector<256x512xbf16>
      %cst_62 = arith.constant dense<0.000000e+00> : vector<16x512xf32>
      %115 = tpu.matmul %113, %114, %cst_62 {dimension_numbers = #tpu.dot_dimension_numbers<[1], [0], [0], [1], [0, 0, 1, 1], [], []>} : vector<16x256xbf16>, vector<256x512xbf16>, vector<16x512xf32> -> vector<16x512xf32>
      %c0_63 = arith.constant 0 : index
      %c0_64 = arith.constant 0 : index
      %116 = vector.load %arg6[%c0_63, %c0_64] : memref<1x512xf32, #tpu.memory_space<vmem>>, vector<1x512xf32>
      %117 = vector.broadcast %116 : vector<1x512xf32> to vector<16x512xf32>
      %118 = arith.addf %115, %117 : vector<16x512xf32>
      %119 = vector.extract_strided_slice %118 {offsets = [0, 0], sizes = [16, 256], strides = [1, 1]} : vector<16x512xf32> to vector<16x256xf32>
      %120 = arith.truncf %119 : vector<16x256xf32> to vector<16x256xbf16>
      %121 = vector.extract_strided_slice %118 {offsets = [0, 256], sizes = [16, 256], strides = [1, 1]} : vector<16x512xf32> to vector<16x256xf32>
      %122 = arith.truncf %121 : vector<16x256xf32> to vector<16x256xbf16>
      %123 = vector.shape_cast %120 : vector<16x256xbf16> to vector<16x2x128xbf16>
      %124 = tpu.transpose %123, [1, 0, 2] : vector<16x2x128xbf16> -> vector<2x16x128xbf16>
      %c0_65 = arith.constant 0 : index
      %c0_66 = arith.constant 0 : index
      %c0_67 = arith.constant 0 : index
      %c0_68 = arith.constant 0 : index
      %125 = vector.load %arg18[%c0_65, %c0_66, %c0_67, %c0_68] : memref<2x2x16x128xbf16, #tpu.memory_space<vmem>>, vector<1x2x16x128xbf16>
      %126 = vector.shape_cast %125 : vector<1x2x16x128xbf16> to vector<2x16x128xbf16>
      %127 = vector.shape_cast %124 : vector<2x16x128xbf16> to vector<1x2x16x128xbf16>
      tpu.vector_store %arg18[%c0_65, %c0_66, %c0_67, %c0_68], %127 {strides = array<i32>} : memref<2x2x16x128xbf16, #tpu.memory_space<vmem>>, vector<1x2x16x128xbf16>,
      %128 = vector.shape_cast %122 : vector<16x256xbf16> to vector<16x2x128xbf16>
      %129 = tpu.transpose %128, [1, 0, 2] : vector<16x2x128xbf16> -> vector<2x16x128xbf16>
      %c1_69 = arith.constant 1 : index
      %c0_70 = arith.constant 0 : index
      %c0_71 = arith.constant 0 : index
      %c0_72 = arith.constant 0 : index
      %130 = vector.load %arg18[%c1_69, %c0_70, %c0_71, %c0_72] : memref<2x2x16x128xbf16, #tpu.memory_space<vmem>>, vector<1x2x16x128xbf16>
      %131 = vector.shape_cast %130 : vector<1x2x16x128xbf16> to vector<2x16x128xbf16>
      %132 = vector.shape_cast %129 : vector<2x16x128xbf16> to vector<1x2x16x128xbf16>
      tpu.vector_store %arg18[%c1_69, %c0_70, %c0_71, %c0_72], %132 {strides = array<i32>} : memref<2x2x16x128xbf16, #tpu.memory_space<vmem>>, vector<1x2x16x128xbf16>,
    } else {
    }
    %c16_i32 = arith.constant 16 : i32
    %3 = arith.muli %arg1, %c16_i32 : i32
    %4 = tpu.assume_multiple %3, 16 : i32
    %c0 = arith.constant 0 : index
    %5 = arith.index_cast %4 : i32 to index
    %c0_1 = arith.constant 0 : index
    %6 = vector.load %arg2[%c0, %5, %c0_1] : memref<1x16x256xbf16, #tpu.memory_space<vmem>>, vector<1x16x256xbf16>
    %7 = vector.shape_cast %6 : vector<1x16x256xbf16> to vector<16x256xbf16>
    %8 = arith.extf %7 : vector<16x256xbf16> to vector<16x256xf32>
    %9 = arith.truncf %8 : vector<16x256xf32> to vector<16x256xbf16>
    %c0_2 = arith.constant 0 : index
    %c0_3 = arith.constant 0 : index
    %10 = vector.load %arg3[%c0_2, %c0_3] : memref<256x256xbf16, #tpu.memory_space<vmem>>, vector<256x256xbf16>
    %cst = arith.constant dense<0.000000e+00> : vector<16x256xf32>
    %11 = tpu.matmul %9, %10, %cst {dimension_numbers = #tpu.dot_dimension_numbers<[1], [0], [0], [1], [0, 0, 1, 1], [], []>} : vector<16x256xbf16>, vector<256x256xbf16>, vector<16x256xf32> -> vector<16x256xf32>
    %c0_4 = arith.constant 0 : index
    %c0_5 = arith.constant 0 : index
    %12 = vector.load %arg4[%c0_4, %c0_5] : memref<1x256xf32, #tpu.memory_space<vmem>>, vector<1x256xf32>
    %13 = vector.broadcast %12 : vector<1x256xf32> to vector<16x256xf32>
    %14 = arith.addf %11, %13 : vector<16x256xf32>
    %15 = arith.truncf %14 : vector<16x256xf32> to vector<16x256xbf16>
    %16 = vector.shape_cast %15 : vector<16x256xbf16> to vector<16x2x128xbf16>
    %17 = tpu.transpose %16, [1, 0, 2] : vector<16x2x128xbf16> -> vector<2x16x128xbf16>
    %c0_6 = arith.constant 0 : index
    %c0_7 = arith.constant 0 : index
    %c0_8 = arith.constant 0 : index
    %c0_9 = arith.constant 0 : index
    %18 = vector.load %arg18[%c0_6, %c0_7, %c0_8, %c0_9] : memref<2x2x16x128xbf16, #tpu.memory_space<vmem>>, vector<1x2x16x128xbf16>
    %19 = vector.shape_cast %18 : vector<1x2x16x128xbf16> to vector<2x16x128xbf16>
    %c1 = arith.constant 1 : index
    %c0_10 = arith.constant 0 : index
    %c0_11 = arith.constant 0 : index
    %c0_12 = arith.constant 0 : index
    %20 = vector.load %arg18[%c1, %c0_10, %c0_11, %c0_12] : memref<2x2x16x128xbf16, #tpu.memory_space<vmem>>, vector<1x2x16x128xbf16>
    %21 = vector.shape_cast %20 : vector<1x2x16x128xbf16> to vector<2x16x128xbf16>
    "tpu.trace_start"() <{level = 10 : i32, message = "hqd,hkd->hqk"}> : () -> ()
    %cst_13 = arith.constant dense<0.000000e+00> : vector<2x16x16xf32>
    %22 = tpu.matmul %17, %19, %cst_13 {dimension_numbers = #tpu.dot_dimension_numbers<[2], [2], [1], [1], [0, 0, 0, 1, 1, 1], [0], [0]>} : vector<2x16x128xbf16>, vector<2x16x128xbf16>, vector<2x16x16xf32> -> vector<2x16x16xf32>
    "tpu.trace_stop"() : () -> ()
    %cst_14 = arith.constant dense<0xFF800000> : vector<2x16xf32>
    %23 = vector.multi_reduction <maximumf>, %22, %cst_14 [2] : vector<2x16x16xf32> to vector<2x16xf32>
    %24 = vector.shape_cast %23 : vector<2x16xf32> to vector<2x16x1xf32>
    %25 = vector.broadcast %24 : vector<2x16x1xf32> to vector<2x16x16xf32>
    %26 = arith.subf %22, %25 : vector<2x16x16xf32>
    %27 = math.exp %26 : vector<2x16x16xf32>
    %cst_15 = arith.constant dense<0.000000e+00> : vector<2x16xf32>
    %28 = vector.multi_reduction <add>, %27, %cst_15 [2] : vector<2x16x16xf32> to vector<2x16xf32>
    %29 = vector.shape_cast %28 : vector<2x16xf32> to vector<2x16x1xf32>
    %30 = tpu.reciprocal %29 {approx = true} : vector<2x16x1xf32> -> vector<2x16x1xf32>
    %31 = vector.broadcast %30 : vector<2x16x1xf32> to vector<2x16x16xf32>
    %32 = arith.mulf %27, %31 : vector<2x16x16xf32>
    %33 = arith.truncf %32 : vector<2x16x16xf32> to vector<2x16x16xbf16>
    "tpu.trace_start"() <{level = 10 : i32, message = "hqk,hkd->hqd"}> : () -> ()
    %cst_16 = arith.constant dense<0.000000e+00> : vector<2x16x128xf32>
    %34 = tpu.matmul %33, %21, %cst_16 {dimension_numbers = #tpu.dot_dimension_numbers<[2], [1], [1], [2], [0, 0, 0, 1, 1, 2], [0], [0]>} : vector<2x16x16xbf16>, vector<2x16x128xbf16>, vector<2x16x128xf32> -> vector<2x16x128xf32>
    "tpu.trace_stop"() : () -> ()
    %35 = arith.truncf %34 : vector<2x16x128xf32> to vector<2x16x128xbf16>
    %c0_17 = arith.constant 0 : index
    %c0_18 = arith.constant 0 : index
    %c0_19 = arith.constant 0 : index
    %36 = vector.load %arg7[%c0_17, %c0_18, %c0_19] : memref<2x128x256xbf16, #tpu.memory_space<vmem>>, vector<2x128x256xbf16>
    "tpu.trace_start"() <{level = 10 : i32, message = "hqd,hdn->hqn"}> : () -> ()
    %cst_20 = arith.constant dense<0.000000e+00> : vector<2x16x256xf32>
    %37 = tpu.matmul %35, %36, %cst_20 {dimension_numbers = #tpu.dot_dimension_numbers<[2], [1], [1], [2], [0, 0, 0, 1, 1, 2], [0], [0]>} : vector<2x16x128xbf16>, vector<2x128x256xbf16>, vector<2x16x256xf32> -> vector<2x16x256xf32>
    "tpu.trace_stop"() : () -> ()
    %cst_21 = arith.constant dense<0.000000e+00> : vector<16x256xf32>
    %38 = vector.multi_reduction <add>, %37, %cst_21 [0] : vector<2x16x256xf32> to vector<16x256xf32>
    %c0_22 = arith.constant 0 : index
    %c0_23 = arith.constant 0 : index
    %39 = vector.load %arg8[%c0_22, %c0_23] : memref<1x256xf32, #tpu.memory_space<vmem>>, vector<1x256xf32>
    %40 = vector.broadcast %39 : vector<1x256xf32> to vector<16x256xf32>
    %41 = arith.addf %38, %40 : vector<16x256xf32>
    %42 = arith.addf %8, %41 : vector<16x256xf32>
    %cst_24 = arith.constant dense<0.000000e+00> : vector<16xf32>
    %43 = vector.multi_reduction <add>, %42, %cst_24 [1] : vector<16x256xf32> to vector<16xf32>
    %44 = vector.shape_cast %43 : vector<16xf32> to vector<16x1xf32>
    %cst_25 = arith.constant 2.560000e+02 : f32
    %45 = vector.broadcast %cst_25 : f32 to vector<16x1xf32>
    %46 = arith.divf %44, %45 : vector<16x1xf32>
    %47 = vector.broadcast %46 : vector<16x1xf32> to vector<16x256xf32>
    %48 = arith.subf %42, %47 : vector<16x256xf32>
    %49 = arith.mulf %48, %48 : vector<16x256xf32>
    %cst_26 = arith.constant dense<0.000000e+00> : vector<16xf32>
    %50 = vector.multi_reduction <add>, %49, %cst_26 [1] : vector<16x256xf32> to vector<16xf32>
    %51 = vector.shape_cast %50 : vector<16xf32> to vector<16x1xf32>
    %cst_27 = arith.constant 2.560000e+02 : f32
    %52 = vector.broadcast %cst_27 : f32 to vector<16x1xf32>
    %53 = arith.divf %51, %52 : vector<16x1xf32>
    %54 = vector.broadcast %46 : vector<16x1xf32> to vector<16x256xf32>
    %55 = arith.subf %42, %54 : vector<16x256xf32>
    %cst_28 = arith.constant 9.99999974E-6 : f32
    %56 = vector.broadcast %cst_28 : f32 to vector<16x1xf32>
    %57 = arith.addf %53, %56 : vector<16x1xf32>
    %58 = math.rsqrt %57 : vector<16x1xf32>
    %59 = vector.broadcast %58 : vector<16x1xf32> to vector<16x256xf32>
    %60 = arith.mulf %55, %59 : vector<16x256xf32>
    %c0_29 = arith.constant 0 : index
    %c0_30 = arith.constant 0 : index
    %61 = vector.load %arg9[%c0_29, %c0_30] : memref<1x256xf32, #tpu.memory_space<vmem>>, vector<1x256xf32>
    %62 = vector.broadcast %61 : vector<1x256xf32> to vector<16x256xf32>
    %63 = arith.mulf %60, %62 : vector<16x256xf32>
    %c0_31 = arith.constant 0 : index
    %c0_32 = arith.constant 0 : index
    %64 = vector.load %arg10[%c0_31, %c0_32] : memref<1x256xf32, #tpu.memory_space<vmem>>, vector<1x256xf32>
    %65 = vector.broadcast %64 : vector<1x256xf32> to vector<16x256xf32>
    %66 = arith.addf %63, %65 : vector<16x256xf32>
    %67 = arith.truncf %66 : vector<16x256xf32> to vector<16x256xbf16>
    %cst_33 = arith.constant 0.000000e+00 : f32
    %68 = vector.broadcast %cst_33 : f32 to vector<16x256xf32>
    %c0_34 = arith.constant 0 : index
    %c0_35 = arith.constant 0 : index
    %69 = vector.load %arg11[%c0_34, %c0_35] : memref<256x512xbf16, #tpu.memory_space<vmem>>, vector<256x512xbf16>
    %cst_36 = arith.constant dense<0.000000e+00> : vector<16x512xf32>
    %70 = tpu.matmul %67, %69, %cst_36 {dimension_numbers = #tpu.dot_dimension_numbers<[1], [0], [0], [1], [0, 0, 1, 1], [], []>} : vector<16x256xbf16>, vector<256x512xbf16>, vector<16x512xf32> -> vector<16x512xf32>
    %c0_37 = arith.constant 0 : index
    %c0_38 = arith.constant 0 : index
    %71 = vector.load %arg12[%c0_37, %c0_38] : memref<1x512xf32, #tpu.memory_space<vmem>>, vector<1x512xf32>
    %72 = vector.broadcast %71 : vector<1x512xf32> to vector<16x512xf32>
    %73 = arith.addf %70, %72 : vector<16x512xf32>
    %cst_39 = arith.constant 0.000000e+00 : f32
    %74 = vector.broadcast %cst_39 : f32 to vector<16x512xf32>
    %75 = arith.maximumf %73, %74 : vector<16x512xf32>
    %76 = arith.truncf %75 : vector<16x512xf32> to vector<16x512xbf16>
    %c0_40 = arith.constant 0 : index
    %c0_41 = arith.constant 0 : index
    %77 = vector.load %arg13[%c0_40, %c0_41] : memref<512x256xbf16, #tpu.memory_space<vmem>>, vector<512x256xbf16>
    %cst_42 = arith.constant dense<0.000000e+00> : vector<16x256xf32>
    %78 = tpu.matmul %76, %77, %cst_42 {dimension_numbers = #tpu.dot_dimension_numbers<[1], [0], [0], [1], [0, 0, 1, 1], [], []>} : vector<16x512xbf16>, vector<512x256xbf16>, vector<16x256xf32> -> vector<16x256xf32>
    %79 = arith.addf %68, %78 : vector<16x256xf32>
    %c0_43 = arith.constant 0 : index
    %c0_44 = arith.constant 0 : index
    %80 = vector.load %arg14[%c0_43, %c0_44] : memref<1x256xf32, #tpu.memory_space<vmem>>, vector<1x256xf32>
    %81 = vector.broadcast %80 : vector<1x256xf32> to vector<16x256xf32>
    %82 = arith.addf %79, %81 : vector<16x256xf32>
    %83 = arith.addf %66, %82 : vector<16x256xf32>
    %cst_45 = arith.constant dense<0.000000e+00> : vector<16xf32>
    %84 = vector.multi_reduction <add>, %83, %cst_45 [1] : vector<16x256xf32> to vector<16xf32>
    %85 = vector.shape_cast %84 : vector<16xf32> to vector<16x1xf32>
    %cst_46 = arith.constant 2.560000e+02 : f32
    %86 = vector.broadcast %cst_46 : f32 to vector<16x1xf32>
    %87 = arith.divf %85, %86 : vector<16x1xf32>
    %88 = vector.broadcast %87 : vector<16x1xf32> to vector<16x256xf32>
    %89 = arith.subf %83, %88 : vector<16x256xf32>
    %90 = arith.mulf %89, %89 : vector<16x256xf32>
    %cst_47 = arith.constant dense<0.000000e+00> : vector<16xf32>
    %91 = vector.multi_reduction <add>, %90, %cst_47 [1] : vector<16x256xf32> to vector<16xf32>
    %92 = vector.shape_cast %91 : vector<16xf32> to vector<16x1xf32>
    %cst_48 = arith.constant 2.560000e+02 : f32
    %93 = vector.broadcast %cst_48 : f32 to vector<16x1xf32>
    %94 = arith.divf %92, %93 : vector<16x1xf32>
    %95 = vector.broadcast %87 : vector<16x1xf32> to vector<16x256xf32>
    %96 = arith.subf %83, %95 : vector<16x256xf32>
    %cst_49 = arith.constant 9.99999974E-6 : f32
    %97 = vector.broadcast %cst_49 : f32 to vector<16x1xf32>
    %98 = arith.addf %94, %97 : vector<16x1xf32>
    %99 = math.rsqrt %98 : vector<16x1xf32>
    %100 = vector.broadcast %99 : vector<16x1xf32> to vector<16x256xf32>
    %101 = arith.mulf %96, %100 : vector<16x256xf32>
    %c0_50 = arith.constant 0 : index
    %c0_51 = arith.constant 0 : index
    %102 = vector.load %arg15[%c0_50, %c0_51] : memref<1x256xf32, #tpu.memory_space<vmem>>, vector<1x256xf32>
    %103 = vector.broadcast %102 : vector<1x256xf32> to vector<16x256xf32>
    %104 = arith.mulf %101, %103 : vector<16x256xf32>
    %c0_52 = arith.constant 0 : index
    %c0_53 = arith.constant 0 : index
    %105 = vector.load %arg16[%c0_52, %c0_53] : memref<1x256xf32, #tpu.memory_space<vmem>>, vector<1x256xf32>
    %106 = vector.broadcast %105 : vector<1x256xf32> to vector<16x256xf32>
    %107 = arith.addf %104, %106 : vector<16x256xf32>
    %108 = arith.truncf %107 : vector<16x256xf32> to vector<16x256xbf16>
    %c0_54 = arith.constant 0 : index
    %c0_55 = arith.constant 0 : index
    %c0_56 = arith.constant 0 : index
    %109 = vector.load %arg17[%c0_54, %c0_55, %c0_56] : memref<1x16x256xbf16, #tpu.memory_space<vmem>>, vector<1x16x256xbf16>
    %110 = vector.shape_cast %109 : vector<1x16x256xbf16> to vector<16x256xbf16>
    %111 = vector.shape_cast %108 : vector<16x256xbf16> to vector<1x16x256xbf16>
    tpu.vector_store %arg17[%c0_54, %c0_55, %c0_56], %111 {strides = array<i32>} : memref<1x16x256xbf16, #tpu.memory_space<vmem>>, vector<1x16x256xbf16>,
    return
  }
  func.func @transform_0(%arg0: i32, %arg1: i32) -> (i32, i32, i32) {
    %c0_i32 = arith.constant 0 : i32
    %c0_i32_0 = arith.constant 0 : i32
    %c0_i32_1 = arith.constant 0 : i32
    return %arg0, %c0_i32, %c0_i32_0 : i32, i32, i32
  }
  func.func @transform_1(%arg0: i32, %arg1: i32) -> (i32, i32) {
    %c0_i32 = arith.constant 0 : i32
    %c0_i32_0 = arith.constant 0 : i32
    %c0_i32_1 = arith.constant 0 : i32
    return %c0_i32, %c0_i32_0 : i32, i32
  }
  func.func @transform_2(%arg0: i32, %arg1: i32) -> (i32, i32) {
    %c0_i32 = arith.constant 0 : i32
    %c0_i32_0 = arith.constant 0 : i32
    %c0_i32_1 = arith.constant 0 : i32
    return %c0_i32, %c0_i32_0 : i32, i32
  }
  func.func @transform_3(%arg0: i32, %arg1: i32) -> (i32, i32) {
    %c0_i32 = arith.constant 0 : i32
    %c0_i32_0 = arith.constant 0 : i32
    %c0_i32_1 = arith.constant 0 : i32
    return %c0_i32, %c0_i32_0 : i32, i32
  }
  func.func @transform_4(%arg0: i32, %arg1: i32) -> (i32, i32) {
    %c0_i32 = arith.constant 0 : i32
    %c0_i32_0 = arith.constant 0 : i32
    %c0_i32_1 = arith.constant 0 : i32
    return %c0_i32, %c0_i32_0 : i32, i32
  }
  func.func @transform_5(%arg0: i32, %arg1: i32) -> (i32, i32, i32) {
    %c0_i32 = arith.constant 0 : i32
    %c0_i32_0 = arith.constant 0 : i32
    %c0_i32_1 = arith.constant 0 : i32
    %c0_i32_2 = arith.constant 0 : i32
    return %c0_i32, %c0_i32_0, %c0_i32_1 : i32, i32, i32
  }
  func.func @transform_6(%arg0: i32, %arg1: i32) -> (i32, i32) {
    %c0_i32 = arith.constant 0 : i32
    %c0_i32_0 = arith.constant 0 : i32
    %c0_i32_1 = arith.constant 0 : i32
    return %c0_i32, %c0_i32_0 : i32, i32
  }
  func.func @transform_7(%arg0: i32, %arg1: i32) -> (i32, i32) {
    %c0_i32 = arith.constant 0 : i32
    %c0_i32_0 = arith.constant 0 : i32
    %c0_i32_1 = arith.constant 0 : i32
    return %c0_i32, %c0_i32_0 : i32, i32
  }
  func.func @transform_8(%arg0: i32, %arg1: i32) -> (i32, i32) {
    %c0_i32 = arith.constant 0 : i32
    %c0_i32_0 = arith.constant 0 : i32
    %c0_i32_1 = arith.constant 0 : i32
    return %c0_i32, %c0_i32_0 : i32, i32
  }
  func.func @transform_9(%arg0: i32, %arg1: i32) -> (i32, i32) {
    %c0_i32 = arith.constant 0 : i32
    %c0_i32_0 = arith.constant 0 : i32
    %c0_i32_1 = arith.constant 0 : i32
    return %c0_i32, %c0_i32_0 : i32, i32
  }
  func.func @transform_10(%arg0: i32, %arg1: i32) -> (i32, i32) {
    %c0_i32 = arith.constant 0 : i32
    %c0_i32_0 = arith.constant 0 : i32
    %c0_i32_1 = arith.constant 0 : i32
    return %c0_i32, %c0_i32_0 : i32, i32
  }
  func.func @transform_11(%arg0: i32, %arg1: i32) -> (i32, i32) {
    %c0_i32 = arith.constant 0 : i32
    %c0_i32_0 = arith.constant 0 : i32
    %c0_i32_1 = arith.constant 0 : i32
    return %c0_i32, %c0_i32_0 : i32, i32
  }
  func.func @transform_12(%arg0: i32, %arg1: i32) -> (i32, i32) {
    %c0_i32 = arith.constant 0 : i32
    %c0_i32_0 = arith.constant 0 : i32
    %c0_i32_1 = arith.constant 0 : i32
    return %c0_i32, %c0_i32_0 : i32, i32
  }
  func.func @transform_13(%arg0: i32, %arg1: i32) -> (i32, i32) {
    %c0_i32 = arith.constant 0 : i32
    %c0_i32_0 = arith.constant 0 : i32
    %c0_i32_1 = arith.constant 0 : i32
    return %c0_i32, %c0_i32_0 : i32, i32
  }
  func.func @transform_14(%arg0: i32, %arg1: i32) -> (i32, i32) {
    %c0_i32 = arith.constant 0 : i32
    %c0_i32_0 = arith.constant 0 : i32
    %c0_i32_1 = arith.constant 0 : i32
    return %c0_i32, %c0_i32_0 : i32, i32
  }
  func.func @transform_15(%arg0: i32, %arg1: i32) -> (i32, i32, i32) {
    %c0_i32 = arith.constant 0 : i32
    %c0_i32_0 = arith.constant 0 : i32
    return %arg0, %arg1, %c0_i32 : i32, i32, i32
  }
}

</mosaic_0001>

<bundles_post_ra>
// kernel: encoder_forward.3
= control target key start
LH: loop header
LB: loop body
LE: loop exit
PB: predicated region body
PF: predicated region fallthrough
CT: control target
= control target key end

     0   :  { %s5833_s0 = inlined_call_operand.vmem [shape: bf16[2,16,256], index: 0, kind: input, shape index: {}]   ;;  %s5834_s1 = inlined_call_operand.hbm [shape: bf16[256,256], index: 1, kind: input, shape index: {}]   ;;  %s5835_s2 = inlined_call_operand.vmem [shape: f32[1,256], index: 2, kind: input, shape index: {}]   ;;  %s5836_s3 = inlined_call_operand.hbm [shape: bf16[256,512], index: 3, kind: input, shape index: {}]   ;;  %s5837_s4 = inlined_call_operand.vmem [shape: f32[1,512], index: 4, kind: input, shape index: {}]   ;;  %s5838_s5 = inlined_call_operand.hbm [shape: bf16[2,128,256], index: 5, kind: input, shape index: {}]   ;;  %s5839_s6 = inlined_call_operand.vmem [shape: f32[1,256], index: 6, kind: input, shape index: {}]   ;;  %s5840_s7 = inlined_call_operand.vmem [shape: f32[1,256], index: 7, kind: input, shape index: {}]   ;;  %s5841_s8 = inlined_call_operand.vmem [shape: f32[1,256], index: 8, kind: input, shape index: {}]   ;;  %s5842_s9 = inlined_call_operand.hbm [shape: bf16[256,512], index: 9, kind: input, shape index: {}]   ;;  %s5843_s10 = inlined_call_operand.vmem [shape: f32[1,512], index: 10, kind: input, shape index: {}]   ;;  %s5844_s11 = inlined_call_operand.hbm [shape: bf16[512,256], index: 11, kind: input, shape index: {}]   ;;  %s5845_s12 = inlined_call_operand.vmem [shape: f32[1,256], index: 12, kind: input, shape index: {}]   ;;  %s5846_s13 = inlined_call_operand.vmem [shape: f32[1,256], index: 13, kind: input, shape index: {}]   ;;  %s5847_s14 = inlined_call_operand.vmem [shape: f32[1,256], index: 14, kind: input, shape index: {}]   ;;  %s5848_s15 = inlined_call_operand.vmem [shape: bf16[2,16,256], index: 15, kind: output, shape index: {}]  }
   0x1   :  { %5850 = sst [smem:[#allocation15_spill]] %s5834_s1 }
   0x2   :  { %5851 = sst [smem:[#allocation16_spill]] %s5836_s3 }
   0x3   :  { %5852 = sst [smem:[#allocation17_spill]] %s5842_s9 }
   0x4   :  { %5853 = sst [smem:[#allocation18_spill]] %s5847_s14 }
   0x5   :  { %5854 = sst [smem:[#allocation19_spill]] %s5848_s15 }
   0x6   :  { %20 = vsyncpa [#allocation4], 0 }
   0x7   :  { %21 = vsyncpa [#allocation6], 0 }
   0x8   :  { %22 = vsyncpa [#allocation9], 0  ;;  %s5434_s18 = smov 0   ;;  %s5436_s19 = smov 0  }
   0x9   :  { %s5438_s20 = smov 0  }
   0xa LB: > { %5855 = sst [smem:[#allocation14_spill]] %s5340_s20  ;;  %s3703_s24 = sadd.s32 4294967295, %s5340_s20   ;;  %s5340_s20 = sphi %s5438_s20, %s28_s20   ;;  %s5336_s19 = sphi %s5436_s19, %s5866_s19   ;;  %s5332_s18 = sphi %s5434_s18, %s5865_s18  }
   0xb   : > { %s5856_s3 = sld [smem:[#allocation16_spill]]  ;;  %p3705_p0 = scmp.ge.s32.totalorder %s5340_s20, 1 }
   0xc   : > { %p393_p1 = scmp.lt.s32.totalorder %s5340_s20, 3  ;;  %p5455_p2 = scmp.eq.s32.totalorder %s3703_s24, 0 }
   0xd   : > { %s5342_s27 = smov [#allocation5]   ;;  %s5859_s9 = sld [smem:[#allocation17_spill]] }
   0xe   : > { %p5459_p3 = pnand %p3705_p0, %p393_p1  ;;  %s423_s28 = sshll.u32 %s5342_s27, 4  ;;  %s424_s28 = int_to_ptr.vmem [resolvable:$true] %s423_s28 }
   0xf   : > { %s5343_s21 = smov [#allocation8]   ;;  %s5344_s24 = smov 256  }
  0x10   : > { %p5068_p4 = pneg %p5459_p3  ;;  %s463_s22 = sshll.u32 %s5343_s21, 4  ;;  %s464_s22 = int_to_ptr.vmem [resolvable:$true] %s463_s22 }
  0x11   : > { %s421_s23 = sshll.u32 %s5856_s3, 4  ;;  %s5345_s27 = smov 16   ;;  %s422_s23 = int_to_ptr.hbm [resolvable:$true] %s421_s23 }
  0x12   : > { %p5470_p5 = pnand %p5455_p2, %p5068_p4  ;;  %s5861_s1 = sld [smem:[#allocation15_spill]] }
  0x13   : > { %s461_s16 = sshll.u32 %s5859_s9, 4  ;;  %s40_s9 = sadd.s32 1, %s5336_s19  ;;  %s462_s16 = int_to_ptr.hbm [resolvable:$true] %s461_s16 }
  0x14   : > { %5074 = dma.hbm_to_vmem [thread:$0]  (!%p5470_p5), %s422_s23, 8192, %s424_s28, [#allocation6], %s5344_s24, %s5344_s24, %s5345_s27  }
  0x15   : > { %5080 = dma.hbm_to_vmem [thread:$0]  (!%p5470_p5), %s462_s16, 8192, %s464_s22, [#allocation9], %s5344_s24, %s5344_s24, %s5345_s27  }
  0x16   : > { %p42_p6 = scmp.ge.s32.totalorder %s40_s9, 2  ;;  %s5346_s20 = smov [#allocation3]  }
  0x17   : > { %s406_s15 = sshll.u32 %s5346_s20, 4  ;;  %s5347_s21 = smov 128   ;;  %s407_s15 = int_to_ptr.vmem [resolvable:$true] %s406_s15 }
  0x18   : > { %s404_s3 = sshll.u32 %s5861_s1, 4  ;;  %s5868_s9 = smov (%p42_p6, %s40_s9), 0  ;;  %s405_s3 = int_to_ptr.hbm [resolvable:$true] %s404_s3 }
  0x19   : > { %s5348_s14 = smov 8   ;;  %s438_s16 = sshll.u32 %s5838_s5, 4  ;;  %s439_s16 = int_to_ptr.hbm [resolvable:$true] %s438_s16 }
  0x1a   : > { %5071 = dma.hbm_to_vmem [thread:$0]  (!%p5470_p5), %s405_s3, 4096, %s407_s15, [#allocation4], %s5347_s21, %s5347_s21, %s5348_s14  }
  0x1b   : > { %s5349_s22 = smov [#allocation7]   ;;  %s478_s20 = sshll.u32 %s5844_s11, 4  ;;  %s479_s20 = int_to_ptr.hbm [resolvable:$true] %s478_s20 }
  0x1c   : > { %s440_s24 = sshll.u32 %s5349_s22, 4  ;;  %s5350_s30 = smov [#allocation10]   ;;  %s441_s24 = int_to_ptr.vmem [resolvable:$true] %s440_s24 }
  0x1d   : > { %5077 = dma.hbm_to_vmem [thread:$0]  (!%p5470_p5), %s439_s16, 4096, %s441_s24, [#allocation6], %s5347_s21, %s5347_s21, %s5348_s14  }
  0x1e   : > { %s480_s1 = sshll.u32 %s5350_s30, 4  ;;  %513 = sbr.rel (%p5459_p3) target bundleno = 1876 (0x754), region = 80  ;;  %s481_s1 = int_to_ptr.vmem [resolvable:$true] %s480_s1 }
  0x1f   : > { %5083 = dma.hbm_to_vmem [thread:$0]  (!%p5470_p5), %s479_s20, 8192, %s481_s1, [#allocation9], %s5347_s21, %s5347_s21, %s5348_s14  }
  0x23   : > { %5319 = dma.done.wait (%p5455_p2), [#allocation4], 4096  }
  0x24   : > { %5321 = vsyncadd (%p5455_p2), [#allocation4], 4294963200 }
  0x25   : > { %5323 = dma.done.wait (%p5455_p2), [#allocation6], 12288  }
  0x26   : > { %5325 = vsyncadd (%p5455_p2), [#allocation6], 4294955008 }
  0x27   : > { %5327 = dma.done.wait (%p5455_p2), [#allocation9], 16384  }
  0x28   : > { %5329 = vsyncadd (%p5455_p2), [#allocation9], 4294950912  ;;  %v3844_v0 = vld [vmem:[#allocation5 + $0xe0] sm:$0xf]  ;;  %v4816_v1 = vld [vmem:[#allocation5 + $0xec] sm:$0xf0] }
  0x29   : > { %v3972_v2 = vld [vmem:[#allocation5 + $0x1e0] sm:$0xf]  ;;  %v3845_v3 = vor.u32 %v4816_v1, %v3844_v0  ;;  %v4848_v4 = vld [vmem:[#allocation5 + $0x1ec] sm:$0xf0]  ;;  %v4814_v5 = vld [vmem:[#allocation5 + $0xe4] sm:$0xf] }
  0x2a   : > { %v3846_v6 = vld [vmem:[#allocation5 + $0xf0] sm:$0xf0]  ;;  %v3973_v7 = vor.u32 %v4848_v4, %v3972_v2  ;;  %v4846_v9 = vld [vmem:[#allocation5 + $0x1e4] sm:$0xf]  ;;  %v3828_v11 = vld [vmem:[#allocation5 + $0xc0] sm:$0xf] }
  0x2b   : > { %v3849_v8 = vor.u32 %v4814_v5, %v3846_v6  ;;  %v3974_v10 = vld [vmem:[#allocation5 + $0x1f0] sm:$0xf0]  ;;  %1014 = vmatpush.bf16.msra.mxu0 %v3845_v3  ;;  %v4812_v13 = vld [vmem:[#allocation5 + $0xcc] sm:$0xf0]  ;;  %v3956_v14 = vld [vmem:[#allocation5 + $0x1c0] sm:$0xf] }
  0x2c   : > { %v3977_v12 = vor.u32 %v4846_v9, %v3974_v10  ;;  %v4844_v15 = vld [vmem:[#allocation5 + $0x1cc] sm:$0xf0]  ;;  %1028 = vmatpush.bf16.msra.mxu1 %v3973_v7  ;;  %v3829_v16 = vor.u32 %v4812_v13, %v3828_v11  ;;  %v4810_v18 = vld [vmem:[#allocation5 + $0xc4] sm:$0xf]  ;;  %v3830_v19 = vld [vmem:[#allocation5 + $0xd0] sm:$0xf0] }
  0x2d   : > { %1042 = vmatpush.bf16.msra.mxu2 %v3849_v8  ;;  %v3957_v17 = vor.u32 %v4844_v15, %v3956_v14  ;;  %v4842_v20 = vld [vmem:[#allocation5 + $0x1c4] sm:$0xf]  ;;  %v3833_v21 = vor.u32 %v4810_v18, %v3830_v19  ;;  %v3958_v22 = vld [vmem:[#allocation5 + $0x1d0] sm:$0xf0]  ;;  %v3812_v23 = vld [vmem:[#allocation5 + $0xa0] sm:$0xf] }
  0x2e   : > { %1056 = vmatpush.bf16.msra.mxu3 %v3977_v12  ;;  %v4808_v24 = vld [vmem:[#allocation5 + $0xac] sm:$0xf0]  ;;  %v3961_v25 = vor.u32 %v4842_v20, %v3958_v22  ;;  %v3940_v26 = vld [vmem:[#allocation5 + $0x1a0] sm:$0xf]  ;;  %v4806_v28 = vld [vmem:[#allocation5 + $0xa4] sm:$0xf] }
  0x2f   : > { %v4840_v27 = vld [vmem:[#allocation5 + $0x1ac] sm:$0xf0]  ;;  %1015 = vmatpush.bf16.msra.mxu0 %v3829_v16  ;;  %v3813_v29 = vor.u32 %v4808_v24, %v3812_v23  ;;  %v3814_v30 = vld [vmem:[#allocation5 + $0xb0] sm:$0xf0]  ;;  %v4838_v31 = vld [vmem:[#allocation5 + $0x1a4] sm:$0xf] }
  0x30   : > { %v3942_v32 = vld [vmem:[#allocation5 + $0x1b0] sm:$0xf0]  ;;  %1029 = vmatpush.bf16.msra.mxu1 %v3957_v17  ;;  %v3941_v33 = vor.u32 %v4840_v27, %v3940_v26  ;;  %v3817_v34 = vor.u32 %v4806_v28, %v3814_v30  ;;  %v3796_v35 = vld [vmem:[#allocation5 + $0x80] sm:$0xf]  ;;  %v4804_v36 = vld [vmem:[#allocation5 + $0x8c] sm:$0xf0] }
  0x31   : > { %1043 = vmatpush.bf16.msra.mxu2 %v3833_v21  ;;  %v3924_v37 = vld [vmem:[#allocation5 + $0x180] sm:$0xf]  ;;  %v3945_v38 = vor.u32 %v4838_v31, %v3942_v32  ;;  %v4836_v39 = vld [vmem:[#allocation5 + $0x18c] sm:$0xf0]  ;;  %v4802_v40 = vld [vmem:[#allocation5 + $0x84] sm:$0xf]  ;;  %v3797_v44 = vor.u32 %v4804_v36, %v3796_v35 }
  0x32   : > { %1057 = vmatpush.bf16.msra.mxu3 %v3961_v25  ;;  %v3798_v41 = vld [vmem:[#allocation5 + $0x90] sm:$0xf0]  ;;  %v4834_v42 = vld [vmem:[#allocation5 + $0x184] sm:$0xf]  ;;  %v3925_v45 = vor.u32 %v4836_v39, %v3924_v37  ;;  %v3780_v47 = vld [vmem:[#allocation5 + $0x60] sm:$0xf] }
  0x33   : > { %v3926_v43 = vld [vmem:[#allocation5 + $0x190] sm:$0xf0]  ;;  %1016 = vmatpush.bf16.msra.mxu0 %v3813_v29  ;;  %v3801_v46 = vor.u32 %v4802_v40, %v3798_v41  ;;  %v4800_v48 = vld [vmem:[#allocation5 + $0x6c] sm:$0xf0]  ;;  %v3908_v49 = vld [vmem:[#allocation5 + $0x160] sm:$0xf] }
  0x34   : > { %1030 = vmatpush.bf16.msra.mxu1 %v3941_v33  ;;  %v3929_v50 = vor.u32 %v4834_v42, %v3926_v43  ;;  %v4832_v51 = vld [vmem:[#allocation5 + $0x16c] sm:$0xf0]  ;;  %v4798_v52 = vld [vmem:[#allocation5 + $0x64] sm:$0xf]  ;;  %v3782_v53 = vld [vmem:[#allocation5 + $0x70] sm:$0xf0]  ;;  %v3781_v56 = vor.u32 %v4800_v48, %v3780_v47 }
  0x35   : > { %1044 = vmatpush.bf16.msra.mxu2 %v3817_v34  ;;  %v4830_v54 = vld [vmem:[#allocation5 + $0x164] sm:$0xf]  ;;  %v3910_v55 = vld [vmem:[#allocation5 + $0x170] sm:$0xf0]  ;;  %p587_p7 = scmp.lt.s32.totalorder %s5332_s18, 1  ;;  %v3909_v57 = vor.u32 %v4832_v51, %v3908_v49  ;;  %v3785_v58 = vor.u32 %v4798_v52, %v3782_v53  ;;  %vm1152_vm0 = vcmask 1047556  }
  0x36   : > { %1058 = vmatpush.bf16.msra.mxu3 %v3945_v38  ;;  %v3764_v59 = vld [vmem:[#allocation5 + $0x40] sm:$0xf]  ;;  %v4796_v60 = vld [vmem:[#allocation5 + $0x4c] sm:$0xf0]  ;;  %v3913_v62 = vor.u32 %v4830_v54, %v3910_v55  ;;  %v4794_v0 = vld [vmem:[#allocation5 + $0x44] sm:$0xf] }
  0x37   : > { %1017 = vmatpush.bf16.msra.mxu0 %v3797_v44  ;;  %v3892_v61 = vld [vmem:[#allocation5 + $0x140] sm:$0xf]  ;;  %v4828_v63 = vld [vmem:[#allocation5 + $0x14c] sm:$0xf0]  ;;  %v3766_v1 = vld [vmem:[#allocation5 + $0x50] sm:$0xf0]  ;;  %v3765_v4 = vor.u32 %v4796_v60, %v3764_v59 }
  0x38   : > { %1031 = vmatpush.bf16.msra.mxu1 %v3925_v45  ;;  %v4826_v2 = vld [vmem:[#allocation5 + $0x144] sm:$0xf]  ;;  %v3894_v3 = vld [vmem:[#allocation5 + $0x150] sm:$0xf0]  ;;  %s5870_s18 = smov (!%p587_p7, %s5332_s18), 1  ;;  %v3893_v5 = vor.u32 %v4828_v63, %v3892_v61  ;;  %v3769_v6 = vor.u32 %v4794_v0, %v3766_v1  ;;  %vm2000_vm1 = vcmask 130048  }
  0x39   : > { %1045 = vmatpush.bf16.msra.mxu2 %v3801_v46  ;;  %v3748_v7 = vld [vmem:[#allocation5 + $0x20] sm:$0xf]  ;;  %v4792_v8 = vld [vmem:[#allocation5 + $0x2c] sm:$0xf0]  ;;  %v3897_v10 = vor.u32 %v4826_v2, %v3894_v3  ;;  %v4790_v12 = vld [vmem:[#allocation5 + $0x24] sm:$0xf] }
  0x3a   : > { %1059 = vmatpush.bf16.msra.mxu3 %v3929_v50  ;;  %v3876_v9 = vld [vmem:[#allocation5 + $0x120] sm:$0xf]  ;;  %v4824_v11 = vld [vmem:[#allocation5 + $0x12c] sm:$0xf0]  ;;  %v3750_v13 = vld [vmem:[#allocation5 + $0x30] sm:$0xf0]  ;;  %v3749_v16 = vor.u32 %v4792_v8, %v3748_v7 }
  0x3b   : > { %1018 = vmatpush.bf16.msra.mxu0 %v3781_v56  ;;  %v4822_v14 = vld [vmem:[#allocation5 + $0x124] sm:$0xf]  ;;  %v3878_v15 = vld [vmem:[#allocation5 + $0x130] sm:$0xf0]  ;;  %s4782_s1 = sshll.u32 %s5870_s18, 4  ;;  %v3877_v20 = vor.u32 %v4824_v11, %v3876_v9  ;;  %v3753_v21 = vor.u32 %v4790_v12, %v3750_v13  ;;  %s5862_s17 = sld [smem:[#allocation18_spill]] }
  0x3c   : > { %1032 = vmatpush.bf16.msra.mxu1 %v3909_v57  ;;  %v3732_v17 = vld [vmem:[#allocation5] sm:$0xf]  ;;  %v4788_v18 = vld [vmem:[#allocation5 + $0xc] sm:$0xf0]  ;;  %v4786_v23 = vld [vmem:[#allocation5 + $0x4] sm:$0xf]  ;;  %v3881_v25 = vor.u32 %v4822_v14, %v3878_v15  ;;  %s5522_s15 = scalar_lea.vmem %s5833_s0, %s4782_s1 }
  0x3d   : > { %1046 = vmatpush.bf16.msra.mxu2 %v3785_v58  ;;  %v3860_v19 = vld [vmem:[#allocation5 + $0x100] sm:$0xf]  ;;  %v4820_v22 = vld [vmem:[#allocation5 + $0x10c] sm:$0xf0]  ;;  %v3734_v24 = vld [vmem:[#allocation5 + $0x10] sm:$0xf0]  ;;  %v3733_v32 = vor.u32 %v4788_v18, %v3732_v17 }
  0x3e   : > { %1060 = vmatpush.bf16.msra.mxu3 %v3913_v62  ;;  %v4818_v26 = vld [vmem:[#allocation5 + $0x104] sm:$0xf]  ;;  %v3862_v27 = vld [vmem:[#allocation5 + $0x110] sm:$0xf0]  ;;  %v3852_v28 = vld [vmem:[#allocation5 + $0xe8] sm:$0xf]  ;;  %v3861_v36 = vor.u32 %v4820_v22, %v3860_v19  ;;  %v3737_v37 = vor.u32 %v4786_v23, %v3734_v24 }
  0x3f   : > { %1019 = vmatpush.bf16.msra.mxu0 %v3765_v4  ;;  %v4817_v29 = vld [vmem:[#allocation5 + $0xf4] sm:$0xf0]  ;;  %v3980_v30 = vld [vmem:[#allocation5 + $0x1e8] sm:$0xf]  ;;  %v4815_v33 = vld [vmem:[#allocation5 + $0xec] sm:$0xf]  ;;  %v3865_v41 = vor.u32 %v4818_v26, %v3862_v27 }
  0x40   : > { %1033 = vmatpush.bf16.msra.mxu1 %v3893_v5  ;;  %v4849_v31 = vld [vmem:[#allocation5 + $0x1f4] sm:$0xf0]  ;;  %v3854_v34 = vld [vmem:[#allocation5 + $0xf8] sm:$0xf0]  ;;  %v4847_v35 = vld [vmem:[#allocation5 + $0x1ec] sm:$0xf]  ;;  %v3853_v42 = vor.u32 %v4817_v29, %v3852_v28 }
  0x41   : > { %1047 = vmatpush.bf16.msra.mxu2 %v3769_v6  ;;  %v3982_v38 = vld [vmem:[#allocation5 + $0x1f8] sm:$0xf0]  ;;  %v3724_v39 = vld [vmem:[%s5522_s15] sm:$0xf]  ;;  %v4785_v40 = vld [vmem:[%s5522_s15 + $0x4] sm:$0xf0]  ;;  %v3981_v45 = vor.u32 %v4849_v31, %v3980_v30  ;;  %v3857_v46 = vor.u32 %v4815_v33, %v3854_v34 }
  0x42   : > { %1061 = vmatpush.bf16.msra.mxu3 %v3897_v10  ;;  %v4784_v43 = vld [vmem:[%s5522_s15 + $0x4] sm:$0xf]  ;;  %v3726_v44 = vld [vmem:[%s5522_s15 + $0x8] sm:$0xf0]  ;;  %v3836_v47 = vld [vmem:[#allocation5 + $0xc8] sm:$0xf]  ;;  %v3985_v50 = vor.u32 %v4847_v35, %v3982_v38  ;;  %v5528_v54 = vor.u32 %v4785_v40, %v3724_v39 }
  0x43   : > { %1020 = vmatpush.bf16.msra.mxu0 %v3749_v16  ;;  %v4813_v48 = vld [vmem:[#allocation5 + $0xd4] sm:$0xf0]  ;;  %v3964_v49 = vld [vmem:[#allocation5 + $0x1c8] sm:$0xf]  ;;  %v4811_v52 = vld [vmem:[#allocation5 + $0xcc] sm:$0xf]  ;;  %v5530_v57 = vor.u32 %v4784_v43, %v3726_v44 }
  0x44   : > { %1034 = vmatpush.bf16.msra.mxu1 %v3877_v20  ;;  %v4845_v51 = vld [vmem:[#allocation5 + $0x1d4] sm:$0xf0]  ;;  %v3838_v53 = vld [vmem:[#allocation5 + $0xd8] sm:$0xf0]  ;;  %v4843_v55 = vld [vmem:[#allocation5 + $0x1cc] sm:$0xf]  ;;  %v3837_v58 = vor.u32 %v4813_v48, %v3836_v47 }
  0x45   : > { %1048 = vmatpush.bf16.msra.mxu2 %v3753_v21  ;;  %v3966_v56 = vld [vmem:[#allocation5 + $0x1d8] sm:$0xf0]  ;;  %v3965_v59 = vor.u32 %v4845_v51, %v3964_v49  ;;  %v3841_v60 = vor.u32 %v4811_v52, %v3838_v53  ;;  %v3820_v61 = vld [vmem:[#allocation5 + $0xa8] sm:$0xf]  ;;  %v4809_v62 = vld [vmem:[#allocation5 + $0xb4] sm:$0xf0] }
  0x46   : > { %1062 = vmatpush.bf16.msra.mxu3 %v3881_v25  ;;  %v3948_v63 = vld [vmem:[#allocation5 + $0x1a8] sm:$0xf]  ;;  %v3969_v0 = vor.u32 %v4843_v55, %v3966_v56  ;;  %v4841_v1 = vld [vmem:[#allocation5 + $0x1b4] sm:$0xf0]  ;;  %v4807_v2 = vld [vmem:[#allocation5 + $0xac] sm:$0xf]  ;;  %v3821_v6 = vor.u32 %v4809_v62, %v3820_v61 }
  0x47   : > { %1021 = vmatpush.bf16.msra.mxu0 %v3733_v32  ;;  %v3822_v3 = vld [vmem:[#allocation5 + $0xb8] sm:$0xf0]  ;;  %v4839_v4 = vld [vmem:[#allocation5 + $0x1ac] sm:$0xf]  ;;  %v3949_v7 = vor.u32 %v4841_v1, %v3948_v63  ;;  %v3804_v9 = vld [vmem:[#allocation5 + $0x88] sm:$0xf] }
  0x48   : > { %1035 = vmatpush.bf16.msra.mxu1 %v3861_v36  ;;  %v3950_v5 = vld [vmem:[#allocation5 + $0x1b8] sm:$0xf0]  ;;  %v3825_v8 = vor.u32 %v4807_v2, %v3822_v3  ;;  %v4805_v10 = vld [vmem:[#allocation5 + $0x94] sm:$0xf0]  ;;  %v3932_v11 = vld [vmem:[#allocation5 + $0x188] sm:$0xf] }
  0x49   : > { %1049 = vmatpush.bf16.msra.mxu2 %v3737_v37  ;;  %v3953_v12 = vor.u32 %v4839_v4, %v3950_v5  ;;  %v4837_v13 = vld [vmem:[#allocation5 + $0x194] sm:$0xf0]  ;;  %v4803_v14 = vld [vmem:[#allocation5 + $0x8c] sm:$0xf]  ;;  %v3806_v15 = vld [vmem:[#allocation5 + $0x98] sm:$0xf0]  ;;  %v3805_v18 = vor.u32 %v4805_v10, %v3804_v9 }
  0x4a   : > { %1063 = vmatpush.bf16.msra.mxu3 %v3865_v41  ;;  %1022 = vmatmul.bf16.vlgmr.msra.gmra.mxu0 %v5528_v54  ;;  %v4835_v16 = vld [vmem:[#allocation5 + $0x18c] sm:$0xf]  ;;  %v3934_v17 = vld [vmem:[#allocation5 + $0x198] sm:$0xf0]  ;;  %v3933_v19 = vor.u32 %v4837_v13, %v3932_v11  ;;  %v3809_v20 = vor.u32 %v4803_v14, %v3806_v15  ;;  %v3788_v21 = vld [vmem:[#allocation5 + $0x68] sm:$0xf] }
  0x4b   : > { %1070 = vmatpush.bf16.msrb.mxu0 %v3853_v42  ;;  %1036 = vmatmul.bf16.vlgmr.msra.gmra.mxu1 %v5530_v57  ;;  %v4801_v22 = vld [vmem:[#allocation5 + $0x74] sm:$0xf0]  ;;  %v3916_v23 = vld [vmem:[#allocation5 + $0x168] sm:$0xf]  ;;  %v3937_v24 = vor.u32 %v4835_v16, %v3934_v17  ;;  %v4799_v26 = vld [vmem:[#allocation5 + $0x6c] sm:$0xf] }
  0x4c   : > { %1084 = vmatpush.bf16.msrb.mxu1 %v3981_v45  ;;  %1050 = vmatmul.bf16.vlgmr.msra.gmra.mxu2 %v5528_v54  ;;  %v4833_v25 = vld [vmem:[#allocation5 + $0x174] sm:$0xf0]  ;;  %v3790_v27 = vld [vmem:[#allocation5 + $0x78] sm:$0xf0]  ;;  %v4831_v28 = vld [vmem:[#allocation5 + $0x16c] sm:$0xf]  ;;  %v3789_v30 = vor.u32 %v4801_v22, %v3788_v21 }
  0x4d   : > { %1098 = vmatpush.bf16.msrb.mxu2 %v3857_v46  ;;  %1064 = vmatmul.bf16.vlgmr.msra.gmra.mxu3 %v5530_v57  ;;  %v3918_v29 = vld [vmem:[#allocation5 + $0x178] sm:$0xf0]  ;;  %v3917_v31 = vor.u32 %v4833_v25, %v3916_v23  ;;  %v3793_v32 = vor.u32 %v4799_v26, %v3790_v27  ;;  %v3772_v33 = vld [vmem:[#allocation5 + $0x48] sm:$0xf]  ;;  %v4797_v34 = vld [vmem:[#allocation5 + $0x54] sm:$0xf0] }
  0x4e   : > { %1112 = vmatpush.bf16.msrb.mxu3 %v3985_v50  ;;  %v3900_v35 = vld [vmem:[#allocation5 + $0x148] sm:$0xf]  ;;  %v3921_v36 = vor.u32 %v4831_v28, %v3918_v29  ;;  %v4829_v37 = vld [vmem:[#allocation5 + $0x154] sm:$0xf0]  ;;  %v4795_v38 = vld [vmem:[#allocation5 + $0x4c] sm:$0xf]  ;;  %v3773_v42 = vor.u32 %v4797_v34, %v3772_v33 }
  0x4f   : > { %1071 = vmatpush.bf16.msrb.mxu0 %v3837_v58  ;;  %v3774_v39 = vld [vmem:[#allocation5 + $0x58] sm:$0xf0]  ;;  %v4827_v40 = vld [vmem:[#allocation5 + $0x14c] sm:$0xf]  ;;  %v3901_v43 = vor.u32 %v4829_v37, %v3900_v35  ;;  %v3756_v45 = vld [vmem:[#allocation5 + $0x28] sm:$0xf] }
  0x50   : > { %1085 = vmatpush.bf16.msrb.mxu1 %v3965_v59  ;;  %v3902_v41 = vld [vmem:[#allocation5 + $0x158] sm:$0xf0]  ;;  %v3777_v44 = vor.u32 %v4795_v38, %v3774_v39  ;;  %v4793_v46 = vld [vmem:[#allocation5 + $0x34] sm:$0xf0]  ;;  %v3884_v47 = vld [vmem:[#allocation5 + $0x128] sm:$0xf] }
  0x51   : > { %1099 = vmatpush.bf16.msrb.mxu2 %v3841_v60  ;;  %v3905_v48 = vor.u32 %v4827_v40, %v3902_v41  ;;  %v4825_v49 = vld [vmem:[#allocation5 + $0x134] sm:$0xf0]  ;;  %v4791_v50 = vld [vmem:[#allocation5 + $0x2c] sm:$0xf]  ;;  %v3758_v51 = vld [vmem:[#allocation5 + $0x38] sm:$0xf0]  ;;  %v3757_v55 = vor.u32 %v4793_v46, %v3756_v45 }
  0x52   : > { %1113 = vmatpush.bf16.msrb.mxu3 %v3969_v0  ;;  %v4823_v52 = vld [vmem:[#allocation5 + $0x12c] sm:$0xf]  ;;  %v3886_v53 = vld [vmem:[#allocation5 + $0x138] sm:$0xf0]  ;;  %v3740_v56 = vld [vmem:[#allocation5 + $0x8] sm:$0xf]  ;;  %v3885_v59 = vor.u32 %v4825_v49, %v3884_v47  ;;  %v3761_v60 = vor.u32 %v4791_v50, %v3758_v51 }
  0x53   : > { %1072 = vmatpush.bf16.msrb.mxu0 %v3821_v6  ;;  %v4789_v58 = vld [vmem:[#allocation5 + $0x14] sm:$0xf0]  ;;  %v3868_v61 = vld [vmem:[#allocation5 + $0x108] sm:$0xf]  ;;  %v4787_v63 = vld [vmem:[#allocation5 + $0xc] sm:$0xf]  ;;  %v3889_v0 = vor.u32 %v4823_v52, %v3886_v53 }
  0x54   : > { %1086 = vmatpush.bf16.msrb.mxu1 %v3949_v7  ;;  %v4821_v62 = vld [vmem:[#allocation5 + $0x114] sm:$0xf0]  ;;  %v3742_v1 = vld [vmem:[#allocation5 + $0x18] sm:$0xf0]  ;;  %v4819_v2 = vld [vmem:[#allocation5 + $0x10c] sm:$0xf]  ;;  %v3741_v7 = vor.u32 %v4789_v58, %v3740_v56 }
  0x55   : > { %1100 = vmatpush.bf16.msrb.mxu2 %v3825_v8  ;;  %v3870_v3 = vld [vmem:[#allocation5 + $0x118] sm:$0xf0]  ;;  %v4052_v4 = vld [vmem:[#allocation3 + $0x70] sm:$0xf]  ;;  %v4867_v5 = vld [vmem:[#allocation3 + $0x74] sm:$0xf0]  ;;  %v3869_v11 = vor.u32 %v4821_v62, %v3868_v61 }
  0x56   : > { %1114 = vmatpush.bf16.msrb.mxu3 %v3953_v12  ;;  %v4116_v6 = vld [vmem:[#allocation3 + $0xf0] sm:$0xf]  ;;  %v4883_v8 = vld [vmem:[#allocation3 + $0xf4] sm:$0xf0]  ;;  %v4866_v9 = vld [vmem:[#allocation3 + $0x74] sm:$0xf]  ;;  %v3745_v12 = vor.u32 %v4787_v63, %v3742_v1  ;;  %v3873_v15 = vor.u32 %v4819_v2, %v3870_v3  ;;  %v4053_v16 = vor.u32 %v4867_v5, %v4052_v4 }
  0x57   : > { %1073 = vmatpush.bf16.msrb.mxu0 %v3805_v18  ;;  %v4054_v10 = vld [vmem:[#allocation3 + $0x78] sm:$0xf0]  ;;  %v4882_v13 = vld [vmem:[#allocation3 + $0xf4] sm:$0xf]  ;;  %v4117_v17 = vor.u32 %v4883_v8, %v4116_v6  ;;  %v4108_v21 = vld [vmem:[#allocation3 + $0xe0] sm:$0xf] }
  0x58   : > { %1087 = vmatpush.bf16.msrb.mxu1 %v3933_v19  ;;  %v4118_v14 = vld [vmem:[#allocation3 + $0xf8] sm:$0xf0]  ;;  %v4057_v18 = vor.u32 %v4866_v9, %v4054_v10  ;;  %v4044_v19 = vld [vmem:[#allocation3 + $0x60] sm:$0xf]  ;;  %v4881_v23 = vld [vmem:[#allocation3 + $0xe4] sm:$0xf0] }
  0x59   : > { %1101 = vmatpush.bf16.msrb.mxu2 %v3809_v20  ;;  %v4865_v20 = vld [vmem:[#allocation3 + $0x64] sm:$0xf0]  ;;  %v4121_v22 = vor.u32 %v4882_v13, %v4118_v14  ;;  %v4046_v25 = vld [vmem:[#allocation3 + $0x68] sm:$0xf0]  ;;  %v4880_v26 = vld [vmem:[#allocation3 + $0xe4] sm:$0xf]  ;;  %v4109_v29 = vor.u32 %v4881_v23, %v4108_v21 }
  0x5a   : > { %1115 = vmatpush.bf16.msrb.mxu3 %v3937_v24  ;;  %v4864_v24 = vld [vmem:[#allocation3 + $0x64] sm:$0xf]  ;;  %v4110_v27 = vld [vmem:[#allocation3 + $0xe8] sm:$0xf0]  ;;  %v4045_v28 = vor.u32 %v4865_v20, %v4044_v19  ;;  %v4100_v33 = vld [vmem:[#allocation3 + $0xd0] sm:$0xf] }
  0x5b   : > { %1074 = vmatpush.bf16.msrb.mxu0 %v3789_v30  ;;  %v4049_v30 = vor.u32 %v4864_v24, %v4046_v25  ;;  %v4113_v34 = vor.u32 %v4880_v26, %v4110_v27  ;;  %v4879_v35 = vld [vmem:[#allocation3 + $0xd4] sm:$0xf0]  ;;  %v4038_v37 = vld [vmem:[#allocation3 + $0x58] sm:$0xf0]  ;;  %v4878_v38 = vld [vmem:[#allocation3 + $0xd4] sm:$0xf] }
  0x5c   : > { %1088 = vmatpush.bf16.msrb.mxu1 %v3917_v31  ;;  %v4036_v31 = vld [vmem:[#allocation3 + $0x50] sm:$0xf]  ;;  %v4102_v39 = vld [vmem:[#allocation3 + $0xd8] sm:$0xf0]  ;;  %v4101_v41 = vor.u32 %v4879_v35, %v4100_v33  ;;  %v4092_v45 = vld [vmem:[#allocation3 + $0xc0] sm:$0xf] }
  0x5d   : > { %1102 = vmatpush.bf16.msrb.mxu2 %v3793_v32  ;;  %v4863_v32 = vld [vmem:[#allocation3 + $0x54] sm:$0xf0]  ;;  %v4105_v46 = vor.u32 %v4878_v38, %v4102_v39  ;;  %v4877_v47 = vld [vmem:[#allocation3 + $0xc4] sm:$0xf0]  ;;  %v4030_v49 = vld [vmem:[#allocation3 + $0x48] sm:$0xf0] }
  0x5e   : > { %1116 = vmatpush.bf16.msrb.mxu3 %v3921_v36  ;;  %v4862_v36 = vld [vmem:[#allocation3 + $0x54] sm:$0xf]  ;;  %v4037_v40 = vor.u32 %v4863_v32, %v4036_v31  ;;  %v4876_v50 = vld [vmem:[#allocation3 + $0xc4] sm:$0xf]  ;;  %v4093_v52 = vor.u32 %v4877_v47, %v4092_v45  ;;  %v4020_v53 = vld [vmem:[#allocation3 + $0x30] sm:$0xf] }
  0x5f   : > { %1075 = vmatpush.bf16.msrb.mxu0 %v3773_v42  ;;  %v4041_v42 = vor.u32 %v4862_v36, %v4038_v37  ;;  %v4084_v56 = vld [vmem:[#allocation3 + $0xb0] sm:$0xf]  ;;  %v4022_v61 = vld [vmem:[#allocation3 + $0x38] sm:$0xf0]  ;;  %v4874_v62 = vld [vmem:[#allocation3 + $0xb4] sm:$0xf] }
  0x60   : > { %1089 = vmatpush.bf16.msrb.mxu1 %v3901_v43  ;;  %v4028_v43 = vld [vmem:[#allocation3 + $0x40] sm:$0xf]  ;;  %v4086_v63 = vld [vmem:[#allocation3 + $0xb8] sm:$0xf0]  ;;  %v4857_v4 = vld [vmem:[#allocation3 + $0x24] sm:$0xf0] }
  0x61   : > { %1103 = vmatpush.bf16.msrb.mxu2 %v3777_v44  ;;  %v4861_v44 = vld [vmem:[#allocation3 + $0x44] sm:$0xf0]  ;;  %v4012_v3 = vld [vmem:[#allocation3 + $0x20] sm:$0xf]  ;;  %v4089_v6 = vor.u32 %v4874_v62, %v4086_v63  ;;  %v4856_v8 = vld [vmem:[#allocation3 + $0x24] sm:$0xf] }
  0x62   : > { %1117 = vmatpush.bf16.msrb.mxu3 %v3905_v48  ;;  %v4860_v48 = vld [vmem:[#allocation3 + $0x44] sm:$0xf]  ;;  %v4029_v51 = vor.u32 %v4861_v44, %v4028_v43  ;;  %v4076_v5 = vld [vmem:[#allocation3 + $0xa0] sm:$0xf]  ;;  %v4014_v9 = vld [vmem:[#allocation3 + $0x28] sm:$0xf0] }
  0x63   : > { %1076 = vmatpush.bf16.msrb.mxu0 %v3757_v55  ;;  %v4859_v55 = vld [vmem:[#allocation3 + $0x34] sm:$0xf0]  ;;  %v4872_v10 = vld [vmem:[#allocation3 + $0xa4] sm:$0xf]  ;;  %v4017_v14 = vor.u32 %v4856_v8, %v4014_v9  ;;  %v4854_v20 = vld [vmem:[#allocation3 + $0x14] sm:$0xf] }
  0x64   : > { %1090 = vmatpush.bf16.msrb.mxu1 %v3885_v59  ;;  %v4875_v59 = vld [vmem:[#allocation3 + $0xb4] sm:$0xf0]  ;;  %v4006_v21 = vld [vmem:[#allocation3 + $0x18] sm:$0xf0]  ;;  %v3996_v27 = vld [vmem:[#allocation3] sm:$0xf] }
  0x65   : > { %1104 = vmatpush.bf16.msrb.mxu2 %v3761_v60  ;;  %v4858_v60 = vld [vmem:[#allocation3 + $0x34] sm:$0xf]  ;;  %v4085_v1 = vor.u32 %v4875_v59, %v4084_v56  ;;  %v4871_v19 = vld [vmem:[#allocation3 + $0x94] sm:$0xf0]  ;;  %v4070_v23 = vld [vmem:[#allocation3 + $0x98] sm:$0xf0]  ;;  %v4009_v26 = vor.u32 %v4854_v20, %v4006_v21 }
  0x66   : > { %1118 = vmatpush.bf16.msrb.mxu3 %v3889_v0  ;;  %v4021_v0 = vor.u32 %v4859_v55, %v4020_v53  ;;  %v4025_v2 = vor.u32 %v4858_v60, %v4022_v61  ;;  %v4869_v31 = vld [vmem:[#allocation3 + $0x84] sm:$0xf0]  ;;  %v4852_v32 = vld [vmem:[#allocation3 + $0x4] sm:$0xf]  ;;  %v3998_v33 = vld [vmem:[#allocation3 + $0x8] sm:$0xf0] }
  0x67   : > { %1077 = vmatpush.bf16.msrb.mxu0 %v3741_v7  ;;  %v4873_v7 = vld [vmem:[#allocation3 + $0xa4] sm:$0xf0]  ;;  %v4062_v35 = vld [vmem:[#allocation3 + $0x88] sm:$0xf0]  ;;  %v3988_v37 = vld [vmem:[%s5522_s15] sm:$0xf] }
  0x68   : > { %1091 = vmatpush.bf16.msrb.mxu1 %v3869_v11  ;;  %v4078_v11 = vld [vmem:[#allocation3 + $0xa8] sm:$0xf0]  ;;  %v4077_v13 = vor.u32 %v4873_v7, %v4076_v5  ;;  %v4851_v38 = vld [vmem:[%s5522_s15 + $0x4] sm:$0xf0]  ;;  %v5351_v56 = vmov 1983009808  }
  0x69   : > { %1105 = vmatpush.bf16.msrb.mxu2 %v3745_v12  ;;  %v4013_v12 = vor.u32 %v4857_v4, %v4012_v3  ;;  %v3989_v44 = vor.u32 %v4851_v38, %v3988_v37  ;;  %s5863_s28 = sld [smem:[#allocation19_spill]] }
  0x6a   : > { %1119 = vmatpush.bf16.msrb.mxu3 %v3873_v15  ;;  %1078 = vmatmul.bf16.vlgmr.msrb.gmra.mxu0 %v5528_v54  ;;  %v4004_v15 = vld [vmem:[#allocation3 + $0x10] sm:$0xf] }
  0x6b   : > { %1712 = vmatpush.bf16.msra.mxu0 %v4053_v16  ;;  %1092 = vmatmul.bf16.vlgmr.msrb.gmra.mxu1 %v5530_v57  ;;  %v4855_v16 = vld [vmem:[#allocation3 + $0x14] sm:$0xf0] }
  0x6c   : > { %1726 = vmatpush.bf16.msra.mxu1 %v4117_v17  ;;  %1106 = vmatmul.bf16.vlgmr.msrb.gmra.mxu2 %v5528_v54  ;;  %v4094_v54 = vld [vmem:[#allocation3 + $0xc8] sm:$0xf0]  ;;  %v4068_v17 = vld [vmem:[#allocation3 + $0x90] sm:$0xf]  ;;  %v4005_v24 = vor.u32 %v4855_v16, %v4004_v15 }
  0x6d   : > { %1740 = vmatpush.bf16.msra.mxu2 %v4057_v18  ;;  %1120 = vmatmul.bf16.vlgmr.msrb.gmra.mxu3 %v5530_v57  ;;  %v4033_v57 = vor.u32 %v4860_v48, %v4030_v49  ;;  %v4097_v58 = vor.u32 %v4876_v50, %v4094_v54  ;;  %v4081_v18 = vor.u32 %v4872_v10, %v4078_v11 }
  0x6e   : > { %1754 = vmatpush.bf16.msra.mxu3 %v4121_v22  ;;  %v4870_v22 = vld [vmem:[#allocation3 + $0x94] sm:$0xf]  ;;  %v4069_v25 = vor.u32 %v4871_v19, %v4068_v17 }
  0x6f   : > { %1713 = vmatpush.bf16.msra.mxu0 %v4045_v28  ;;  %v4853_v28 = vld [vmem:[#allocation3 + $0x4] sm:$0xf0]  ;;  %s601_s16 = scalar_lea.vmem %s5863_s28, %s4782_s1 }
  0x70   : > { %1727 = vmatpush.bf16.msra.mxu1 %v4109_v29  ;;  %v4060_v29 = vld [vmem:[#allocation3 + $0x80] sm:$0xf]  ;;  %v3997_v36 = vor.u32 %v4853_v28, %v3996_v27 }
  0x71   : > { %1741 = vmatpush.bf16.msra.mxu2 %v4049_v30  ;;  %v4073_v30 = vor.u32 %v4870_v22, %v4070_v23  ;;  %v4061_v39 = vor.u32 %v4869_v31, %v4060_v29 }
  0x72   : > { %1755 = vmatpush.bf16.msra.mxu3 %v4113_v34  ;;  %v4868_v34 = vld [vmem:[#allocation3 + $0x84] sm:$0xf] }
  0x73   : > { %1714 = vmatpush.bf16.msra.mxu0 %v4037_v40  ;;  %v4001_v40 = vor.u32 %v4852_v32, %v3998_v33  ;;  %v4065_v43 = vor.u32 %v4868_v34, %v4062_v35 }
  0x74   : > { %1728 = vmatpush.bf16.msra.mxu1 %v4101_v41  ;;  %v4850_v41 = vld [vmem:[%s5522_s15 + $0x4] sm:$0xf] }
  0x75   : > { %1742 = vmatpush.bf16.msra.mxu2 %v4041_v42  ;;  %v3990_v42 = vld [vmem:[%s5522_s15 + $0x8] sm:$0xf0] }
  0x76   : > { %1756 = vmatpush.bf16.msra.mxu3 %v4105_v46  ;;  %v3993_v45 = vor.u32 %v4850_v41, %v3990_v42  ;;  %v5547_v46 = vld [vmem:[%s5837_s4] sm:$0xf] }
  0x77   : > { %1715 = vmatpush.bf16.msra.mxu0 %v4029_v51  ;;  %v676_v47 = vperm.slane %v5547_v46, 0  ;;  %v677_v54 = vperm.slane %v5547_v46, 1  ;;  %v678_v41 = vperm.slane %v5547_v46, 2 }
  0x78   : > { %1729 = vmatpush.bf16.msra.mxu1 %v4093_v52 }
  0x79   : > { %1743 = vmatpush.bf16.msra.mxu2 %v4033_v57 }
  0x7a   : > { %1757 = vmatpush.bf16.msra.mxu3 %v4097_v58  ;;  %v1148_v58 = vunpack.c.l.s4 %v5351_v56 }
  0x7b   : > { %1716 = vmatpush.bf16.msra.mxu0 %v4021_v0 }
  0x7c   : > { %1730 = vmatpush.bf16.msra.mxu1 %v4085_v1  ;;  %v5551_v1 = vunpack.c.0.s8 %v1148_v58 }
  0x7d   : > { %1744 = vmatpush.bf16.msra.mxu2 %v4025_v2  ;;  %v5352_v2 = vmov 1934713408  }
  0x7e   : > { %1758 = vmatpush.bf16.msra.mxu3 %v4089_v6  ;;  %v1155_v3 = vunpack.c.l.s4 %v5352_v2 }
  0x7f   : > { %1717 = vmatpush.bf16.msra.mxu0 %v4013_v12 }
  0x80   : > { %1731 = vmatpush.bf16.msra.mxu1 %v4077_v13  ;;  %v5554_v12 = vunpack.c.0.s8 %v1155_v3 }
  0x81   : > { %1745 = vmatpush.bf16.msra.mxu2 %v4017_v14 }
  0x82   : > { %1759 = vmatpush.bf16.msra.mxu3 %v4081_v18 }
  0x83   : > { %1718 = vmatpush.bf16.msra.mxu0 %v4005_v24 }
  0x84   : > { %1732 = vmatpush.bf16.msra.mxu1 %v4069_v25 }
  0x85   : > { %1746 = vmatpush.bf16.msra.mxu2 %v4009_v26 }
  0x86   : > { %1760 = vmatpush.bf16.msra.mxu3 %v4073_v30 }
  0x87   : > { %1719 = vmatpush.bf16.msra.mxu0 %v3997_v36 }
  0x88   : > { %1733 = vmatpush.bf16.msra.mxu1 %v4061_v39 }
  0x89   : > { %1747 = vmatpush.bf16.msra.mxu2 %v4001_v40 }
  0x8a   : > { %1761 = vmatpush.bf16.msra.mxu3 %v4065_v43  ;;  %1720 = vmatmul.bf16.vlgmr.msra.gmra.mxu0 %v3989_v44 }
  0x8b   : > { %1734 = vmatmul.bf16.vlgmr.msra.gmra.mxu1 %v3993_v45 }
  0x8c   : > { %1748 = vmatmul.bf16.vlgmr.msra.gmra.mxu2 %v3989_v44 }
  0x8d   : > { %1762 = vmatmul.bf16.vlgmr.msra.gmra.mxu3 %v3993_v45 }
  0xc7   : > { %v1023_v48 = vpop.f32.mrf.mxu0 }
  0xc8   : > { %v1037_v49 = vpop.f32.mrf.mxu1  ;;  %v1024_v50 = vadd.f32 %v1023_v48, %v676_v47 }
  0xca   : > { %v1038_v57 = vadd.f32 %v1037_v49, %v1024_v50 }
  0xcf   : > { %v1051_v51 = vpop.f32.mrf.mxu2  ;;  %v1025_v59 = vpop.f32.mrf.mxu0 }
  0xd0   : > { %v1052_v52 = vadd.f32 %v1051_v51, %v677_v54  ;;  %v1065_v53 = vpop.f32.mrf.mxu3  ;;  %v1026_v61 = vadd.f32 %v1025_v59, %v676_v47  ;;  %v1039_v62 = vpop.f32.mrf.mxu1 }
  0xd2   : > { %v1066_v55 = vadd.f32 %v1065_v53, %v1052_v52  ;;  %v1040_v8 = vadd.f32 %v1039_v62, %v1026_v61  ;;  %v679_v62 = vperm.slane %v5547_v46, 3 }
  0xd4   : > { %v1126_v60 = vpack.c.bf16 %v1066_v55, %v1038_v57 }
  0xd6   : > { %v1132_v63 = vrot.slane %v1126_v60, 4  ;;  %v1137_v0 = vshrl.u32 %v1126_v60, 16 }
  0xd7   : > { %v1053_v4 = vpop.f32.mrf.mxu2 }
  0xd8   : > { %v1136_v5 = vpack.i.b16 %v1132_v63, %v1126_v60  ;;  %v1138_v6 = vshrl.u32 %v1132_v63, 16  ;;  %v1054_v7 = vadd.f32 %v1053_v4, %v677_v54  ;;  %v1067_v9 = vpop.f32.mrf.mxu3 }
  0xda   : > { %v1139_v10 = vpack.i.b16 %v1138_v6, %v1137_v0  ;;  %v1150_v11 = vperm.slane %v1136_v5, %v5551_v1  ;;  %v1068_v13 = vadd.f32 %v1067_v9, %v1054_v7 }
  0xdc   : > { %v1151_v14 = vrot.slane %v1150_v11, 4  ;;  %v1157_v15 = vperm.slane %v1150_v11, %v5554_v12  ;;  %v1170_v16 = vperm.slane %v1139_v10, %v5551_v1  ;;  %v1127_v17 = vpack.c.bf16 %v1068_v13, %v1040_v8 }
  0xde   : > { %v1153_v18 = vsel %vm1152_vm0, 0, %v1151_v14  ;;  %v1171_v19 = vrot.slane %v1170_v16, 4  ;;  %v1176_v20 = vperm.slane %v1170_v16, %v5554_v12  ;;  %v1162_v22 = vrot.slane %v1157_v15, 4 }
  0xdf   : > { %v1161_v21 = vperm.slane %v1153_v18, %v5554_v12  ;;  %v1133_v23 = vrot.slane %v1127_v17, 4  ;;  %v1143_v24 = vshrl.u32 %v1127_v17, 16 }
  0xe0   : > { %v1172_v25 = vsel %vm1152_vm0, 0, %v1171_v19  ;;  %v1181_v26 = vrot.slane %v1176_v20, 4  ;;  %v1163_v31 = vsel %vm1152_vm0, 0, %v1162_v22 }
  0xe1   : > { %v1164_v27 = vrot.slane %v1161_v21, 4  ;;  %v1180_v28 = vperm.slane %v1172_v25, %v5554_v12  ;;  %v1142_v29 = vpack.i.b16 %v1133_v23, %v1127_v17  ;;  %v1144_v30 = vshrl.u32 %v1133_v23, 16 }
  0xe2   : > { %v1182_v38 = vsel %vm1152_vm0, 0, %v1181_v26 }
  0xe3   : > { %v1165_v32 = vsel %vm1152_vm0, 0, %v1164_v27  ;;  %v1183_v33 = vrot.slane %v1180_v28, 4  ;;  %v1145_v34 = vpack.i.b16 %v1144_v30, %v1143_v24  ;;  %v1223_v35 = vsel %vm1152_vm0, %v1164_v27, %v1157_v15 }
  0xe4   : > { %v1228_v36 = vrot.slane %v1165_v32, 4  ;;  %v1189_v37 = vperm.slane %v1142_v29, %v5551_v1  ;;  %v1227_v47 = vperm.slane %v1223_v35, %v5551_v1 }
  0xe5   : > { %v1184_v39 = vsel %vm1152_vm0, 0, %v1183_v33  ;;  %v1208_v40 = vperm.slane %v1145_v34, %v5551_v1  ;;  %v1240_v43 = vsel %vm1152_vm0, %v1183_v33, %v1176_v20 }
  0xe6   : > { %v1229_v42 = vsel %vm1152_vm0, %v1228_v36, %v1163_v31  ;;  %v1245_v44 = vrot.slane %v1184_v39, 4  ;;  %v1190_v45 = vrot.slane %v1189_v37, 4  ;;  %v1195_v49 = vperm.slane %v1189_v37, %v5554_v12 }
  0xe7   : > { %v1233_v48 = vperm.slane %v1229_v42, %v5551_v1  ;;  %v1209_v50 = vrot.slane %v1208_v40, 4  ;;  %v1214_v52 = vperm.slane %v1208_v40, %v5554_v12  ;;  %v1079_v57 = vpop.f32.mrf.mxu0  ;;  %v1244_v55 = vperm.slane %v1240_v43, %v5551_v1 }
  0xe8   : > { %v1246_v54 = vsel %vm1152_vm0, %v1245_v44, %v1182_v38  ;;  %v1191_v51 = vsel %vm1152_vm0, 0, %v1190_v45  ;;  %v1093_v59 = vpop.f32.mrf.mxu1  ;;  %v1200_v60 = vrot.slane %v1195_v49, 4  ;;  %v1080_v3 = vadd.f32 %v1079_v57, %v678_v41 }
  0xe9   : > { %v1234_v53 = vrot.slane %v1233_v48, 4  ;;  %v1250_v56 = vperm.slane %v1246_v54, %v5551_v1  ;;  %v1199_v58 = vperm.slane %v1191_v51, %v5554_v12  ;;  %v1210_v61 = vsel %vm1152_vm0, 0, %v1209_v50 }
  0xea   : > { %v1218_v5 = vperm.slane %v1210_v61, %v5554_v12  ;;  %v1219_v6 = vrot.slane %v1214_v52, 4  ;;  %v1201_v46 = vsel %vm1152_vm0, 0, %v1200_v60  ;;  %v1094_v18 = vadd.f32 %v1093_v59, %v1080_v3 }
  0xeb   : > { %v1235_v63 = vsel %vm1152_vm0, %v1234_v53, %v1227_v47  ;;  %v1251_v0 = vrot.slane %v1250_v56, 4  ;;  %v1202_v2 = vrot.slane %v1199_v58, 4 }
  0xec   : > { %v1239_v4 = vperm.slane %v1235_v63, %v5554_v12  ;;  %v1221_v13 = vrot.slane %v1218_v5, 4  ;;  %v1220_v21 = vsel %vm1152_vm0, 0, %v1219_v6 }
  0xed   : > { %v1252_v7 = vsel %vm1152_vm0, %v1251_v0, %v1244_v55  ;;  %v1203_v8 = vsel %vm1152_vm0, 0, %v1202_v2  ;;  %v1257_v15 = vsel %vm1152_vm0, %v1202_v2, %v1195_v49 }
  0xee   : > { %v1256_v10 = vperm.slane %v1252_v7, %v5554_v12  ;;  %v1295_v11 = vshrl.u32 %v1239_v4, 16  ;;  %v1262_v16 = vrot.slane %v1203_v8, 4  ;;  %v1222_v22 = vsel %vm1152_vm0, 0, %v1221_v13 }
  0xef   : > { %v1107_v9 = vpop.f32.mrf.mxu2  ;;  %v1081_v23 = vpop.f32.mrf.mxu0  ;;  %v1274_v25 = vsel %vm1152_vm0, %v1221_v13, %v1214_v52  ;;  %v1279_v26 = vrot.slane %v1222_v22, 4  ;;  %v1261_v29 = vperm.slane %v1257_v15, %v5551_v1  ;;  %v5617_v15 = vld [vmem:[%s5835_s2] sm:$0x3] }
  0xf0   : > { %v1121_v14 = vpop.f32.mrf.mxu3  ;;  %v1108_v17 = vadd.f32 %v1107_v9, %v679_v62  ;;  %v1293_v19 = vpack.i.b16 %v1256_v10, %v1239_v4  ;;  %v1296_v20 = vshrl.u32 %v1256_v10, 16  ;;  %v1263_v24 = vsel %vm1152_vm0, %v1262_v16, %v1201_v46  ;;  %v1095_v34 = vpop.f32.mrf.mxu1 }
  0xf1   : > { %v1267_v30 = vperm.slane %v1263_v24, %v5551_v1  ;;  %v1082_v31 = vadd.f32 %v1081_v23, %v678_v41  ;;  %v1280_v32 = vsel %vm1152_vm0, %v1279_v26, %v1220_v21  ;;  %v1278_v36 = vperm.slane %v1274_v25, %v5551_v1 }
  0xf2   : > { %v1122_v27 = vadd.f32 %v1121_v14, %v1108_v17  ;;  %v1297_v28 = vpack.i.b16 %v1296_v20, %v1295_v11  ;;  %1307 = vst [vmem:[#allocation2] sm:$0xf] %v1293_v19  ;;  %v1284_v37 = vperm.slane %v1280_v32, %v5551_v1  ;;  %v1538_v26 = vperm.slane %v5617_v15, 0 }
  0xf3   : > { %v1268_v35 = vrot.slane %v1267_v30, 4  ;;  %v1096_v45 = vadd.f32 %v1095_v34, %v1082_v31 }
  0xf4   : > { %v1128_v33 = vpack.c.bf16 %v1122_v27, %v1094_v18  ;;  %1309 = vst [vmem:[#allocation2 + $0x8] sm:$0xf] %v1297_v28  ;;  %v1285_v43 = vrot.slane %v1284_v37, 4 }
  0xf5   : > { %v1269_v42 = vsel %vm1152_vm0, %v1268_v35, %v1261_v29 }
  0xf6   : > { %v1313_v38 = vrot.slane %v1128_v33, 4  ;;  %v1318_v39 = vshrl.u32 %v1128_v33, 16  ;;  %v1273_v41 = vperm.slane %v1269_v42, %v5554_v12  ;;  %v1286_v50 = vsel %vm1152_vm0, %v1285_v43, %v1278_v36 }
  0xf7   : > { %v1109_v40 = vpop.f32.mrf.mxu2  ;;  %v1290_v51 = vperm.slane %v1286_v50, %v5554_v12 }
  0xf8   : > { %v1110_v44 = vadd.f32 %v1109_v40, %v679_v62  ;;  %v1123_v47 = vpop.f32.mrf.mxu3  ;;  %v1317_v48 = vpack.i.b16 %v1313_v38, %v1128_v33  ;;  %v1319_v49 = vshrl.u32 %v1313_v38, 16  ;;  %v1303_v52 = vshrl.u32 %v1273_v41, 16 }
  0xf9   : > { %v1301_v56 = vpack.i.b16 %v1290_v51, %v1273_v41  ;;  %v1304_v58 = vshrl.u32 %v1290_v51, 16 }
  0xfa   : > { %v1124_v54 = vadd.f32 %v1123_v47, %v1110_v44  ;;  %v1320_v57 = vpack.i.b16 %v1319_v49, %v1318_v39  ;;  %v1331_v53 = vperm.slane %v1317_v48, %v5551_v1 }
  0xfb   : > { %v1305_v63 = vpack.i.b16 %v1304_v58, %v1303_v52  ;;  %1308 = vst [vmem:[#allocation2 + $0x4] sm:$0xf] %v1301_v56 }
  0xfc   : > { %v1129_v55 = vpack.c.bf16 %v1124_v54, %v1096_v45  ;;  %v1332_v59 = vrot.slane %v1331_v53, 4  ;;  %v1337_v60 = vperm.slane %v1331_v53, %v5554_v12  ;;  %v1350_v61 = vperm.slane %v1320_v57, %v5551_v1 }
  0xfd   : > { %1310 = vst [vmem:[#allocation2 + $0xc] sm:$0xf] %v1305_v63  ;;  %v1539_v45 = vperm.slane %v5617_v15, 1 }
  0xfe   : > { %v1314_v62 = vrot.slane %v1129_v55, 4  ;;  %v1333_v0 = vsel %vm1152_vm0, 0, %v1332_v59  ;;  %v1342_v2 = vrot.slane %v1337_v60, 4  ;;  %v1324_v3 = vshrl.u32 %v1129_v55, 16 }
  0xff   : > { %v1341_v4 = vperm.slane %v1333_v0, %v5554_v12  ;;  %v1351_v5 = vrot.slane %v1350_v61, 4  ;;  %v1356_v6 = vperm.slane %v1350_v61, %v5554_v12 }
 0x100   : > { %v1323_v7 = vpack.i.b16 %v1314_v62, %v1129_v55  ;;  %v1325_v8 = vshrl.u32 %v1314_v62, 16  ;;  %v1343_v16 = vsel %vm1152_vm0, 0, %v1342_v2 }
 0x101   : > { %v1344_v9 = vrot.slane %v1341_v4, 4  ;;  %v1352_v10 = vsel %vm1152_vm0, 0, %v1351_v5  ;;  %v1361_v11 = vrot.slane %v1356_v6, 4 }
 0x102   : > { %v1369_v46 = vperm.slane %v1323_v7, %v5551_v1  ;;  %v1360_v13 = vperm.slane %v1352_v10, %v5554_v12  ;;  %v1326_v14 = vpack.i.b16 %v1325_v8, %v1324_v3  ;;  %v4884_v27 = vld [vmem:[#allocation2] sm:$0xff] }
 0x103   : > { %v1345_v17 = vsel %vm1152_vm0, 0, %v1344_v9  ;;  %v1403_v18 = vsel %vm1152_vm0, %v1344_v9, %v1337_v60  ;;  %v1362_v23 = vsel %vm1152_vm0, 0, %v1361_v11  ;;  %1969 = vmatpush.bf16.xpose.msrb.mxu0 %v4884_v27 }
 0x104   : > { %v1370_v19 = vrot.slane %v1369_v46, 4  ;;  %v1363_v20 = vrot.slane %v1360_v13, 4  ;;  %v1408_v21 = vrot.slane %v1345_v17, 4  ;;  %v1375_v22 = vperm.slane %v1369_v46, %v5554_v12  ;;  %v4885_v37 = vld [vmem:[#allocation2 + $0x8] sm:$0xff] }
 0x105   : > { %v1388_v25 = vperm.slane %v1326_v14, %v5551_v1  ;;  %v1407_v29 = vperm.slane %v1403_v18, %v5551_v1  ;;  %1993 = vmatpush.bf16.xpose.msrb.mxu1 %v4885_v37 }
 0x106   : > { %v1371_v24 = vsel %vm1152_vm0, 0, %v1370_v19  ;;  %v1364_v28 = vsel %vm1152_vm0, 0, %v1363_v20  ;;  %v1409_v30 = vsel %vm1152_vm0, %v1408_v21, %v1343_v16  ;;  %v1420_v33 = vsel %vm1152_vm0, %v1363_v20, %v1356_v6 }
 0x107   : > { %v1379_v31 = vperm.slane %v1371_v24, %v5554_v12  ;;  %v1413_v32 = vperm.slane %v1409_v30, %v5551_v1  ;;  %v1425_v34 = vrot.slane %v1364_v28, 4  ;;  %v1380_v35 = vrot.slane %v1375_v22, 4  ;;  %v1721_v36 = vpop.f32.mrf.mxu0 }
 0x108   : > { %v1389_v39 = vrot.slane %v1388_v25, 4  ;;  %v1394_v40 = vperm.slane %v1388_v25, %v5554_v12  ;;  %v1722_v44 = vadd.f32 %v1721_v36, %v1538_v26  ;;  %v1424_v47 = vperm.slane %v1420_v33, %v5551_v1  ;;  %v1735_v58 = vpop.f32.mrf.mxu1 }
 0x109   : > { %v1382_v38 = vrot.slane %v1379_v31, 4  ;;  %v1414_v42 = vrot.slane %v1413_v32, 4  ;;  %v1426_v43 = vsel %vm1152_vm0, %v1425_v34, %v1362_v23  ;;  %v1381_v54 = vsel %vm1152_vm0, 0, %v1380_v35 }
 0x10a   : > { %v1430_v41 = vperm.slane %v1426_v43, %v5551_v1  ;;  %v1390_v49 = vsel %vm1152_vm0, 0, %v1389_v39  ;;  %v1399_v55 = vrot.slane %v1394_v40, 4  ;;  %v1736_v62 = vadd.f32 %v1735_v58, %v1722_v44 }
 0x10b   : > { %v1383_v48 = vsel %vm1152_vm0, 0, %v1382_v38  ;;  %v1415_v50 = vsel %vm1152_vm0, %v1414_v42, %v1407_v29  ;;  %v1398_v51 = vperm.slane %v1390_v49, %v5554_v12  ;;  %v1437_v56 = vsel %vm1152_vm0, %v1382_v38, %v1375_v22 }
 0x10c   : > { %v1442_v52 = vrot.slane %v1383_v48, 4  ;;  %v1419_v57 = vperm.slane %v1415_v50, %v5554_v12  ;;  %v1431_v53 = vrot.slane %v1430_v41, 4  ;;  %v1400_v8 = vsel %vm1152_vm0, 0, %v1399_v55 }
 0x10d   : > { %v1401_v60 = vrot.slane %v1398_v51, 4  ;;  %v1441_v9 = vperm.slane %v1437_v56, %v5551_v1 }
 0x10e   : > { %v1443_v61 = vsel %vm1152_vm0, %v1442_v52, %v1381_v54  ;;  %v1432_v2 = vsel %vm1152_vm0, %v1431_v53, %v1424_v47  ;;  %v1475_v5 = vshrl.u32 %v1419_v57, 16 }
 0x10f   : > { %v1749_v59 = vpop.f32.mrf.mxu2  ;;  %v1447_v3 = vperm.slane %v1443_v61, %v5551_v1  ;;  %v1436_v4 = vperm.slane %v1432_v2, %v5554_v12  ;;  %v1402_v6 = vsel %vm1152_vm0, 0, %v1401_v60  ;;  %v1454_v14 = vsel %vm1152_vm0, %v1401_v60, %v1394_v40  ;;  %v1723_v16 = vpop.f32.mrf.mxu0 }
 0x110   : > { %v1750_v63 = vadd.f32 %v1749_v59, %v1539_v45  ;;  %v1763_v0 = vpop.f32.mrf.mxu3  ;;  %v1459_v11 = vrot.slane %v1402_v6, 4  ;;  %v1458_v22 = vperm.slane %v1454_v14, %v5551_v1  ;;  %v1724_v23 = vadd.f32 %v1723_v16, %v1538_v26  ;;  %v1737_v35 = vpop.f32.mrf.mxu1 }
 0x111   : > { %v1448_v10 = vrot.slane %v1447_v3, 4  ;;  %v1473_v46 = vpack.i.b16 %v1436_v4, %v1419_v57  ;;  %v1476_v13 = vshrl.u32 %v1436_v4, 16 }
 0x112   : > { %v1764_v7 = vadd.f32 %v1763_v0, %v1750_v63  ;;  %v1460_v17 = vsel %vm1152_vm0, %v1459_v11, %v1400_v8  ;;  %v1738_v38 = vadd.f32 %v1737_v35, %v1724_v23 }
 0x113   : > { %v1477_v18 = vpack.i.b16 %v1476_v13, %v1475_v5  ;;  %1488 = vst [vmem:[#allocation2 + $0x10] sm:$0xf] %v1473_v46  ;;  %v1449_v19 = vsel %vm1152_vm0, %v1448_v10, %v1441_v9  ;;  %v1464_v20 = vperm.slane %v1460_v17, %v5551_v1 }
 0x114   : > { %v1768_v15 = vpack.c.bf16 %v1764_v7, %v1736_v62  ;;  %v1453_v30 = vperm.slane %v1449_v19, %v5554_v12 }
 0x115   : > { %1490 = vst [vmem:[#allocation2 + $0x18] sm:$0xf] %v1477_v18  ;;  %v1465_v25 = vrot.slane %v1464_v20, 4 }
 0x116   : > { %v1772_v21 = vrot.slane %v1768_v15, 4  ;;  %v1777_v28 = vshrl.u32 %v1768_v15, 16  ;;  %v1483_v44 = vshrl.u32 %v1453_v30, 16 }
 0x117   : > { %v1751_v24 = vpop.f32.mrf.mxu2  ;;  %v1466_v32 = vsel %vm1152_vm0, %v1465_v25, %v1458_v22 }
 0x118   : > { %v1776_v27 = vpack.i.b16 %v1772_v21, %v1768_v15  ;;  %v1778_v29 = vshrl.u32 %v1772_v21, 16  ;;  %v1752_v31 = vadd.f32 %v1751_v24, %v1539_v45  ;;  %v1765_v36 = vpop.f32.mrf.mxu3  ;;  %v1470_v37 = vperm.slane %v1466_v32, %v5554_v12 }
 0x11a   : > { %v1779_v33 = vpack.i.b16 %v1778_v29, %v1777_v28  ;;  %v1790_v34 = vperm.slane %v1776_v27, %v5551_v1  ;;  %v1766_v26 = vadd.f32 %v1765_v36, %v1752_v31  ;;  %v1481_v43 = vpack.i.b16 %v1470_v37, %v1453_v30 }
 0x11b   : > { %v1484_v47 = vshrl.u32 %v1470_v37, 16 }
 0x11c   : > { %v1791_v39 = vrot.slane %v1790_v34, 4  ;;  %v1797_v40 = vperm.slane %v1790_v34, %v5554_v12  ;;  %v1810_v42 = vperm.slane %v1779_v33, %v5551_v1  ;;  %v1769_v45 = vpack.c.bf16 %v1766_v26, %v1738_v38  ;;  %1489 = vst [vmem:[#allocation2 + $0x14] sm:$0xf] %v1481_v43 }
 0x11d   : > { %v1485_v49 = vpack.i.b16 %v1484_v47, %v1483_v44 }
 0x11e   : > { %v1793_v41 = vsel %vm1152_vm0, 0, %v1791_v39  ;;  %v1811_v48 = vrot.slane %v1810_v42, 4  ;;  %v1816_v54 = vperm.slane %v1810_v42, %v5554_v12  ;;  %v1773_v51 = vrot.slane %v1769_v45, 4 }
 0x11f   : > { %v1801_v50 = vperm.slane %v1793_v41, %v5554_v12  ;;  %v1802_v52 = vrot.slane %v1797_v40, 4  ;;  %v1783_v53 = vshrl.u32 %v1769_v45, 16  ;;  %1491 = vst [vmem:[#allocation2 + $0x1c] sm:$0xf] %v1485_v49 }
 0x120   : > { %v1812_v57 = vsel %vm1152_vm0, 0, %v1811_v48  ;;  %v1782_v58 = vpack.i.b16 %v1773_v51, %v1769_v45  ;;  %v1784_v59 = vshrl.u32 %v1773_v51, 16  ;;  %v1821_v61 = vrot.slane %v1816_v54, 4 }
 0x121   : > { %v1804_v55 = vrot.slane %v1801_v50, 4  ;;  %v1820_v56 = vperm.slane %v1812_v57, %v5554_v12  ;;  %v1803_v3 = vsel %vm1152_vm0, 0, %v1802_v52 }
 0x122   : > { %v1785_v63 = vpack.i.b16 %v1784_v59, %v1783_v53  ;;  %v1829_v2 = vperm.slane %v1782_v58, %v5551_v1  ;;  %v1822_v10 = vsel %vm1152_vm0, 0, %v1821_v61 }
 0x123   : > { %v1805_v60 = vsel %vm1152_vm0, 0, %v1804_v55  ;;  %v1823_v62 = vrot.slane %v1820_v56, 4  ;;  %v4886_v9 = vld [vmem:[#allocation2 + $0x10] sm:$0xff]  ;;  %v1863_v23 = vsel %vm1152_vm0, %v1804_v55, %v1797_v40 }
 0x124   : > { %v1868_v0 = vrot.slane %v1805_v60, 4  ;;  %v1848_v5 = vperm.slane %v1785_v63, %v5551_v1  ;;  %v1830_v8 = vrot.slane %v1829_v2, 4  ;;  %v1835_v11 = vperm.slane %v1829_v2, %v5554_v12  ;;  %2070 = vmatpush.bf16.msrb.mxu2 %v4886_v9 }
 0x125   : > { %v1824_v4 = vsel %vm1152_vm0, 0, %v1823_v62  ;;  %v1880_v20 = vsel %vm1152_vm0, %v1823_v62, %v1816_v54  ;;  %v1867_v33 = vperm.slane %v1863_v23, %v5551_v1 }
 0x126   : > { %v1869_v6 = vsel %vm1152_vm0, %v1868_v0, %v1803_v3  ;;  %v1885_v7 = vrot.slane %v1824_v4, 4  ;;  %v1849_v46 = vrot.slane %v1848_v5, 4  ;;  %v1831_v13 = vsel %vm1152_vm0, 0, %v1830_v8  ;;  %v4887_v15 = vld [vmem:[#allocation2 + $0x18] sm:$0xff] }
 0x127   : > { %v1854_v14 = vperm.slane %v1848_v5, %v5554_v12  ;;  %v1873_v16 = vperm.slane %v1869_v6, %v5551_v1  ;;  %v1839_v18 = vperm.slane %v1831_v13, %v5554_v12  ;;  %2098 = vmatpush.bf16.msrb.mxu3 %v4887_v15  ;;  %v1840_v24 = vrot.slane %v1835_v11, 4 }
 0x128   : > { %v1886_v17 = vsel %vm1152_vm0, %v1885_v7, %v1822_v10  ;;  %v1850_v19 = vsel %vm1152_vm0, 0, %v1849_v46  ;;  %v1884_v32 = vperm.slane %v1880_v20, %v5551_v1 }
 0x129   : > { %v1858_v21 = vperm.slane %v1850_v19, %v5554_v12  ;;  %v1890_v22 = vperm.slane %v1886_v17, %v5551_v1  ;;  %v1842_v25 = vrot.slane %v1839_v18, 4  ;;  %v1859_v27 = vrot.slane %v1854_v14, 4 }
 0x12a   : > { %v1874_v29 = vrot.slane %v1873_v16, 4  ;;  %v1841_v36 = vsel %vm1152_vm0, 0, %v1840_v24 }
 0x12b   : > { %v1861_v28 = vrot.slane %v1858_v21, 4  ;;  %v1891_v30 = vrot.slane %v1890_v22, 4  ;;  %v1843_v31 = vsel %vm1152_vm0, 0, %v1842_v25  ;;  %v1860_v26 = vsel %vm1152_vm0, 0, %v1859_v27 }
 0x12c   : > { %v1902_v35 = vrot.slane %v1843_v31, 4  ;;  %v1897_v39 = vsel %vm1152_vm0, %v1842_v25, %v1835_v11  ;;  %v1875_v42 = vsel %vm1152_vm0, %v1874_v29, %v1867_v33 }
 0x12d   : > { %v1862_v34 = vsel %vm1152_vm0, 0, %v1861_v28  ;;  %v1892_v38 = vsel %vm1152_vm0, %v1891_v30, %v1884_v32  ;;  %v1914_v43 = vsel %vm1152_vm0, %v1861_v28, %v1854_v14  ;;  %v1901_v48 = vperm.slane %v1897_v39, %v5551_v1  ;;  %v4262_v39 = vld [vmem:[#allocation7 + $0xf0] sm:$0xf] }
 0x12e   : > { %v1919_v37 = vrot.slane %v1862_v34, 4  ;;  %v1903_v40 = vsel %vm1152_vm0, %v1902_v35, %v1841_v36  ;;  %v1896_v44 = vperm.slane %v1892_v38, %v5554_v12  ;;  %v1879_v49 = vperm.slane %v1875_v42, %v5554_v12  ;;  %v4198_v35 = vld [vmem:[#allocation7 + $0x70] sm:$0xf]  ;;  %v4903_v36 = vld [vmem:[#allocation7 + $0x74] sm:$0xf0] }
 0x12f   : > { %v1907_v47 = vperm.slane %v1903_v40, %v5551_v1  ;;  %v1918_v54 = vperm.slane %v1914_v43, %v5551_v1  ;;  %v4199_v38 = vor.u32 %v4903_v36, %v4198_v35  ;;  %v4919_v40 = vld [vmem:[#allocation7 + $0xf4] sm:$0xf0] }
 0x130   : > { %v1920_v45 = vsel %vm1152_vm0, %v1919_v37, %v1860_v26  ;;  %v1935_v57 = vshrl.u32 %v1896_v44, 16  ;;  %v1933_v58 = vpack.i.b16 %v1896_v44, %v1879_v49  ;;  %v1934_v59 = vshrl.u32 %v1879_v49, 16  ;;  %v4902_v37 = vld [vmem:[#allocation7 + $0x74] sm:$0xf]  ;;  %v4200_v26 = vld [vmem:[#allocation7 + $0x78] sm:$0xf0] }
 0x131   : > { %v1924_v41 = vperm.slane %v1920_v45, %v5551_v1  ;;  %v1908_v50 = vrot.slane %v1907_v47, 4  ;;  %v4203_v42 = vor.u32 %v4902_v37, %v4200_v26  ;;  %v4263_v43 = vor.u32 %v4919_v40, %v4262_v39  ;;  %v4918_v44 = vld [vmem:[#allocation7 + $0xf4] sm:$0xf]  ;;  %v4264_v47 = vld [vmem:[#allocation7 + $0xf8] sm:$0xf0]  ;;  %2227 = vmatpush.bf16.msra.mxu0 %v4199_v38 }
 0x132   : > { %v1936_v61 = vpack.i.b16 %v1935_v57, %v1934_v59  ;;  %v1952_v0 = vunpack.c.l.b16 %v1933_v58  ;;  %v4190_v45 = vld [vmem:[#allocation7 + $0x60] sm:$0xf]  ;;  %v4900_v49 = vld [vmem:[#allocation7 + $0x64] sm:$0xf]  ;;  %v4917_v57 = vld [vmem:[#allocation7 + $0xe4] sm:$0xf0] }
 0x133   : > { %v1925_v51 = vrot.slane %v1924_v41, 4  ;;  %v1909_v52 = vsel %vm1152_vm0, %v1908_v50, %v1901_v48  ;;  %v4267_v41 = vor.u32 %v4918_v44, %v4264_v47  ;;  %v4901_v48 = vld [vmem:[#allocation7 + $0x64] sm:$0xf0]  ;;  %v4192_v50 = vld [vmem:[#allocation7 + $0x68] sm:$0xf0]  ;;  %2241 = vmatpush.bf16.msra.mxu1 %v4203_v42  ;;  %2341 = vmatpush.bf16.msra.mxu2 %v4263_v43 }
 0x134   : > { %v1913_v53 = vperm.slane %v1909_v52, %v5554_v12  ;;  %v1976_v4 = vunpack.c.l.b16 %v1936_v61  ;;  %v4254_v52 = vld [vmem:[#allocation7 + $0xe0] sm:$0xf]  ;;  %v4182_v58 = vld [vmem:[#allocation7 + $0x50] sm:$0xf]  ;;  %v4899_v59 = vld [vmem:[#allocation7 + $0x54] sm:$0xf0] }
 0x135   : > { %v1926_v55 = vsel %vm1152_vm0, %v1925_v51, %v1918_v54  ;;  %v4191_v54 = vor.u32 %v4901_v48, %v4190_v45  ;;  %v4195_v51 = vor.u32 %v4900_v49, %v4192_v50  ;;  %2355 = vmatpush.bf16.msra.mxu3 %v4267_v41  ;;  %v4894_v47 = vld [vmem:[#allocation7 + $0x34] sm:$0xf]  ;;  %v4168_v45 = vld [vmem:[#allocation7 + $0x38] sm:$0xf0]  ;;  %v4230_v48 = vld [vmem:[#allocation7 + $0xb0] sm:$0xf] }
 0x136   : > { %v1930_v56 = vperm.slane %v1926_v55, %v5554_v12  ;;  %v1940_v62 = vshrl.u32 %v1913_v53, 16  ;;  %v4255_v55 = vor.u32 %v4917_v57, %v4254_v52  ;;  %v4171_v41 = vor.u32 %v4894_v47, %v4168_v45  ;;  %v4911_v49 = vld [vmem:[#allocation7 + $0xb4] sm:$0xf0]  ;;  %v4158_v52 = vld [vmem:[#allocation7 + $0x20] sm:$0xf] }
 0x137   : > { %2228 = vmatpush.bf16.msra.mxu0 %v4191_v54  ;;  %2242 = vmatpush.bf16.msra.mxu1 %v4195_v51  ;;  %v4231_v50 = vor.u32 %v4911_v49, %v4230_v48  ;;  %v4232_v54 = vld [vmem:[#allocation7 + $0xb8] sm:$0xf0]  ;;  %v4893_v57 = vld [vmem:[#allocation7 + $0x24] sm:$0xf0] }
 0x138   : > { %v1939_v60 = vpack.i.b16 %v1930_v56, %v1913_v53  ;;  %v1941_v63 = vshrl.u32 %v1930_v56, 16  ;;  %v4916_v53 = vld [vmem:[#allocation7 + $0xe4] sm:$0xf]  ;;  %v4256_v56 = vld [vmem:[#allocation7 + $0xe8] sm:$0xf0]  ;;  %2342 = vmatpush.bf16.msra.mxu2 %v4255_v55  ;;  %v4159_v55 = vor.u32 %v4893_v57, %v4158_v52 }
 0x139   : > { %v4259_v61 = vor.u32 %v4916_v53, %v4256_v56  ;;  %v4892_v53 = vld [vmem:[#allocation7 + $0x24] sm:$0xf]  ;;  %v4160_v56 = vld [vmem:[#allocation7 + $0x28] sm:$0xf0] }
 0x13a   : > { %v1953_v2 = vunpack.c.l.b16 %v1939_v60  ;;  %v1942_v3 = vpack.i.b16 %v1941_v63, %v1940_v62  ;;  %v4898_v62 = vld [vmem:[#allocation7 + $0x54] sm:$0xf]  ;;  %v4184_v63 = vld [vmem:[#allocation7 + $0x58] sm:$0xf0] }
 0x13b   : > { %2356 = vmatpush.bf16.msra.mxu3 %v4259_v61  ;;  %v4908_v61 = vld [vmem:[#allocation7 + $0xa4] sm:$0xf] }
 0x13c   : > { %v1954_v1 = vpack.c.b16 %v1953_v2, %v1952_v0  ;;  %v1977_v5 = vunpack.c.l.b16 %v1942_v3  ;;  %v4246_v0 = vld [vmem:[#allocation7 + $0xd0] sm:$0xf]  ;;  %v4183_v2 = vor.u32 %v4899_v59, %v4182_v58  ;;  %v4915_v3 = vld [vmem:[#allocation7 + $0xd4] sm:$0xf0]  ;;  %v4163_v58 = vor.u32 %v4892_v53, %v4160_v56  ;;  %v4222_v59 = vld [vmem:[#allocation7 + $0xa0] sm:$0xf] }
 0x13d   : > { %v1499_v53 = vld [vmem:[%s5522_s15 + $0x8] sm:$0xff] }
 0x13e   : > { %1970 = vmatmul.bf16.vlgmr.msrb.gmra.mxu0 %v1954_v1  ;;  %v1978_v6 = vpack.c.b16 %v1977_v5, %v1976_v4  ;;  %v4914_v1 = vld [vmem:[#allocation7 + $0xd4] sm:$0xf]  ;;  %v4248_v4 = vld [vmem:[#allocation7 + $0xd8] sm:$0xf0] }
 0x13f   : > { %2229 = vmatpush.bf16.msra.mxu0 %v4183_v2  ;;  %v4150_v2 = vld [vmem:[#allocation7 + $0x10] sm:$0xf] }
 0x140   : > { %1994 = vmatmul.bf16.vlgmr.msrb.gmra.mxu1 %v1978_v6  ;;  %v4187_v6 = vor.u32 %v4898_v62, %v4184_v63  ;;  %v4224_v63 = vld [vmem:[#allocation7 + $0xa8] sm:$0xf0] }
 0x142   : > { %2243 = vmatpush.bf16.msra.mxu1 %v4187_v6 }
 0x1bb   : > { %v1971_v7 = vpop.f32.mrf.mxu0 }
 0x1bc   : > { %v2001_v8 = vsel %vm2000_vm1, %v1971_v7, -inf }
 0x1bd   : > { %v1995_v12 = vpop.f32.mrf.mxu1  ;;  %2002 = vmax.xlane.f32.xlu1 %v2001_v8  ;;  %v4174_v8 = vld [vmem:[#allocation7 + $0x40] sm:$0xf] }
 0x1be   : > { %v2007_v9 = vsel %vm2000_vm1, %v1995_v12, -inf }
 0x1bf   : > { %2008 = vmax.xlane.f32.xlu0 %v2007_v9  ;;  %v4896_v9 = vld [vmem:[#allocation7 + $0x44] sm:$0xf] }
 0x1c3   : > { %v1973_v10 = vpop.f32.mrf.mxu0 }
 0x1c4   : > { %v2004_v11 = vsel %vm2000_vm1, %v1973_v10, -inf }
 0x1c5   : > { %v1997_v46 = vpop.f32.mrf.mxu1  ;;  %2005 = vmax.xlane.f32.xlu1 %v2004_v11  ;;  %v4176_v11 = vld [vmem:[#allocation7 + $0x48] sm:$0xf0] }
 0x1c6   : > { %v2010_v13 = vsel %vm2000_vm1, %v1997_v46, -inf }
 0x1c7   : > { %2011 = vmax.xlane.f32.xlu0 %v2010_v13  ;;  %v4913_v13 = vld [vmem:[#allocation7 + $0xc4] sm:$0xf0] }
 0x230   : > { %v2003_v14 = vpop.xlane.xlu1 %2002 }
 0x231   : > { %v2013_v15 = vsub.f32 %v1971_v7, %v2003_v14  ;;  %v4247_v7 = vor.u32 %v4915_v3, %v4246_v0  ;;  %v4912_v14 = vld [vmem:[#allocation7 + $0xc4] sm:$0xf]  ;;  %v4227_v0 = vor.u32 %v4908_v61, %v4224_v63  ;;  %v4891_v3 = vld [vmem:[#allocation7 + $0x14] sm:$0xf0]  ;;  %v1502_v63 = vunpack.c.l.bf16 %v1499_v53 }
 0x232   : > { %v2009_v16 = vpop.xlane.xlu0 %2008 }
 0x233   : > { %v2017_v17 = vmul.f32 1.442695, %v2013_v15  ;;  %v2015_v18 = vsub.f32 %v1995_v12, %v2009_v16  ;;  %v4897_v12 = vld [vmem:[#allocation7 + $0x44] sm:$0xf0]  ;;  %v4240_v15 = vld [vmem:[#allocation7 + $0xc8] sm:$0xf0]  ;;  %2343 = vmatpush.bf16.msra.mxu2 %v4247_v7 }
 0x234   : > { %v4175_v16 = vor.u32 %v4897_v12, %v4174_v8  ;;  %v4214_v7 = vld [vmem:[#allocation7 + $0x90] sm:$0xf]  ;;  %v4907_v8 = vld [vmem:[#allocation7 + $0x94] sm:$0xf0]  ;;  %v4906_v12 = vld [vmem:[#allocation7 + $0x94] sm:$0xf] }
 0x235   : > { %5130 = vpow2.f32 %v2017_v17  ;;  %v2021_v19 = vmul.f32 1.442695, %v2015_v18  ;;  %v4179_v17 = vor.u32 %v4896_v9, %v4176_v11  ;;  %v4215_v9 = vor.u32 %v4907_v8, %v4214_v7 }
 0x236   : > { %2230 = vmatpush.bf16.msra.mxu0 %v4175_v16  ;;  %v4144_v16 = vld [vmem:[#allocation7 + $0x8] sm:$0xf0] }
 0x237   : > { %5132 = vpow2.f32 %v2021_v19  ;;  %v4243_v19 = vor.u32 %v4912_v14, %v4240_v15  ;;  %2244 = vmatpush.bf16.msra.mxu1 %v4179_v17  ;;  %v4888_v14 = vld [vmem:[#allocation7 + $0x4] sm:$0xf] }
 0x238   : > { %v2006_v20 = vpop.xlane.xlu1 %2005  ;;  %v4147_v17 = vor.u32 %v4888_v14, %v4144_v16  ;;  %v4948_v14 = vld [vmem:[#allocation8 + $0xe4] sm:$0xf] }
 0x239   : > { %v2014_v21 = vsub.f32 %v1973_v10, %v2006_v20  ;;  %v4251_v10 = vor.u32 %v4914_v1, %v4248_v4  ;;  %v4890_v1 = vld [vmem:[#allocation7 + $0x14] sm:$0xf]  ;;  %v4151_v4 = vor.u32 %v4891_v3, %v4150_v2 }
 0x23a   : > { %v2012_v22 = vpop.xlane.xlu0 %2011 }
 0x23b   : > { %v5712_v23 = vpop.eup %5130  ;;  %v2019_v24 = vmul.f32 1.442695, %v2014_v21  ;;  %v2016_v25 = vsub.f32 %v1997_v46, %v2012_v22  ;;  %v4238_v46 = vld [vmem:[#allocation7 + $0xc0] sm:$0xf]  ;;  %2357 = vmatpush.bf16.msra.mxu3 %v4251_v10  ;;  %2245 = vmatpush.bf16.msra.mxu1 %v4171_v41  ;;  %v4216_v10 = vld [vmem:[#allocation7 + $0x98] sm:$0xf0] }
 0x23c   : > { %v2025_v27 = vsel %vm2000_vm1, %v5712_v23, 0.0  ;;  %v4239_v18 = vor.u32 %v4913_v13, %v4238_v46  ;;  %v4219_v11 = vor.u32 %v4906_v12, %v4216_v10  ;;  %v4142_v46 = vld [vmem:[#allocation7] sm:$0xf]  ;;  %v4889_v13 = vld [vmem:[#allocation7 + $0x4] sm:$0xf0] }
 0x23d   : > { %v5716_v28 = vpop.eup %5132  ;;  %5134 = vpow2.f32 %v2019_v24  ;;  %v2023_v29 = vmul.f32 1.442695, %v2016_v25  ;;  %2026 = vadd.xlane.f32.xlu0 %v2025_v27  ;;  %v4143_v15 = vor.u32 %v4889_v13, %v4142_v46  ;;  %v4950_v10 = vld [vmem:[#allocation8 + $0xec] sm:$0xf0] }
 0x23e   : > { %v2031_v30 = vsel %vm2000_vm1, %v5716_v28, 0.0  ;;  %2344 = vmatpush.bf16.msra.mxu2 %v4239_v18  ;;  %v4206_v18 = vld [vmem:[#allocation7 + $0x80] sm:$0xf]  ;;  %v4982_v13 = vld [vmem:[#allocation8 + $0x1ec] sm:$0xf0] }
 0x23f   : > { %5136 = vpow2.f32 %v2023_v29  ;;  %2032 = vadd.xlane.f32.xlu2 %v2031_v30  ;;  %2358 = vmatpush.bf16.msra.mxu3 %v4243_v19  ;;  %v4905_v19 = vld [vmem:[#allocation7 + $0x84] sm:$0xf0] }
 0x240   : > { %2246 = vmatpush.bf16.msra.mxu1 %v4163_v58 }
 0x242   : > { %2345 = vmatpush.bf16.msra.mxu2 %v4231_v50 }
 0x243   : > { %v5720_v31 = vpop.eup %5134 }
 0x244   : > { %v2028_v32 = vsel %vm2000_vm1, %v5720_v31, 0.0 }
 0x245   : > { %v5724_v33 = vpop.eup %5136  ;;  %2029 = vadd.xlane.f32.xlu1 %v2028_v32 }
 0x246   : > { %v2034_v34 = vsel %vm2000_vm1, %v5724_v33, 0.0 }
 0x247   : > { %2035 = vadd.xlane.f32.xlu2 %v2034_v34 }
 0x2b0   : > { %v2027_v60 = vpop.xlane.xlu0 %2026 }
 0x2b1   : > { %5138 = vrcp.f32 %v2027_v60  ;;  %v4909_v60 = vld [vmem:[#allocation7 + $0xa4] sm:$0xf0] }
 0x2b2   : > { %v2033_v5 = vpop.xlane.xlu2 %2032  ;;  %v4223_v62 = vor.u32 %v4909_v60, %v4222_v59 }
 0x2b3   : > { %5140 = vrcp.f32 %v2033_v5  ;;  %v4152_v5 = vld [vmem:[#allocation7 + $0x18] sm:$0xf0] }
 0x2b4   : > { %2346 = vmatpush.bf16.msra.mxu2 %v4223_v62  ;;  %v4155_v6 = vor.u32 %v4890_v1, %v4152_v5 }
 0x2b6   : > { %2247 = vmatpush.bf16.msra.mxu1 %v4155_v6  ;;  %v5353_v6 = vmov 256.0  }
 0x2b7   : > { %v5139_v21 = vpop.eup %5138 }
 0x2b8   : > { %v2030_v20 = vpop.xlane.xlu1 %2029  ;;  %v2041_v25 = vmul.f32 %v5139_v21, %v5712_v23  ;;  %v4166_v23 = vld [vmem:[#allocation7 + $0x30] sm:$0xf]  ;;  %2347 = vmatpush.bf16.msra.mxu2 %v4215_v9  ;;  %v4207_v21 = vor.u32 %v4905_v19, %v4206_v18  ;;  %v4382_v9 = vld [vmem:[#allocation8 + $0xe0] sm:$0xf]  ;;  %v4980_v18 = vld [vmem:[#allocation8 + $0x1e4] sm:$0xf] }
 0x2b9   : > { %5142 = vrcp.f32 %v2030_v20  ;;  %v5141_v24 = vpop.eup %5140  ;;  %v4904_v20 = vld [vmem:[#allocation7 + $0x84] sm:$0xf]  ;;  %v4383_v46 = vor.u32 %v4950_v10, %v4382_v9  ;;  %v4512_v19 = vld [vmem:[#allocation8 + $0x1f0] sm:$0xf0]  ;;  %v4318_v10 = vld [vmem:[#allocation8 + $0x60] sm:$0xf] }
 0x2ba   : > { %v2036_v22 = vpop.xlane.xlu2 %2035  ;;  %v2043_v27 = vmul.f32 %v5141_v24, %v5716_v28  ;;  %v2045_v30 = vpack.c.bf16 %v2041_v25, %v2041_v25  ;;  %v4895_v28 = vld [vmem:[#allocation7 + $0x34] sm:$0xf0]  ;;  %2248 = vmatpush.bf16.msra.mxu1 %v4147_v17 }
 0x2bb   : > { %5144 = vrcp.f32 %v2036_v22  ;;  %v4208_v22 = vld [vmem:[#allocation7 + $0x88] sm:$0xf0] }
 0x2bc   : > { %v2047_v35 = vpack.c.bf16 %v2043_v27, %v2043_v27  ;;  %v2051_v38 = vunpack.c.l.b16 %v2045_v30  ;;  %v4211_v24 = vor.u32 %v4904_v20, %v4208_v22  ;;  %2348 = vmatpush.bf16.msra.mxu2 %v4207_v21  ;;  %5146 = vrcp.f32 %v5353_v6  ;;  %v4366_v20 = vld [vmem:[#allocation8 + $0xc0] sm:$0xf]  ;;  %v4946_v22 = vld [vmem:[#allocation8 + $0xcc] sm:$0xf0] }
 0x2bd   : > { %v4515_v21 = vor.u32 %v4980_v18, %v4512_v19  ;;  %v4964_v19 = vld [vmem:[#allocation8 + $0x164] sm:$0xf] }
 0x2be   : > { %v2079_v40 = vunpack.c.l.b16 %v2047_v35 }
 0x2bf   : > { %v5143_v29 = vpop.eup %5142 }
 0x2c0   : > { %v2042_v32 = vmul.f32 %v5143_v29, %v5720_v31  ;;  %v4167_v31 = vor.u32 %v4895_v28, %v4166_v23  ;;  %v1498_v28 = vld [vmem:[%s5522_s15] sm:$0xff] }
 0x2c1   : > { %v5145_v34 = vpop.eup %5144  ;;  %v1501_v50 = vunpack.c.h.bf16 %v1498_v28 }
 0x2c2   : > { %v2046_v36 = vpack.c.bf16 %v2042_v32, %v2042_v32  ;;  %v2044_v37 = vmul.f32 %v5145_v34, %v5724_v33  ;;  %v4910_v33 = vld [vmem:[#allocation7 + $0xb4] sm:$0xf]  ;;  %2231 = vmatpush.bf16.msra.mxu0 %v4167_v31  ;;  %v5147_v7 = vpop.eup %5146 }
 0x2c3   : > { %v4235_v51 = vor.u32 %v4910_v33, %v4232_v54  ;;  %v1500_v33 = vunpack.c.l.bf16 %v1498_v28  ;;  %v2394_v8 = vmul.f32 256.0, %v5147_v7  ;;  %vm2398_vm2 = vweird.f32 %v5147_v7 }
 0x2c4   : > { %v2052_v26 = vunpack.c.l.b16 %v2046_v36  ;;  %v2048_v39 = vpack.c.bf16 %v2044_v37, %v2044_v37 }
 0x2c5   : > { %2359 = vmatpush.bf16.msra.mxu3 %v4235_v51  ;;  %v2395_v12 = vsub.f32 1.0, %v2394_v8  ;;  %v4968_v8 = vld [vmem:[#allocation8 + $0x184] sm:$0xf] }
 0x2c6   : > { %v2053_v42 = vpack.c.b16 %v2052_v26, %v2051_v38  ;;  %v2080_v43 = vunpack.c.l.b16 %v2048_v39  ;;  %2232 = vmatpush.bf16.msra.mxu0 %v4159_v55 }
 0x2c8   : > { %v2081_v44 = vpack.c.b16 %v2080_v43, %v2079_v40  ;;  %4134 = vmatmul.msk.bf16.vlgmr.msrb.gmra.mxu2 %vm2000_vm1, %v2053_v42  ;;  %v2373_v43 = vld [vmem:[%s5839_s6] sm:$0x3] }
 0x2c9   : > { %2360 = vmatpush.bf16.msra.mxu3 %v4227_v0  ;;  %v2375_v47 = vperm.slane %v2373_v43, 0  ;;  %v2376_v31 = vperm.slane %v2373_v43, 1  ;;  %v1503_v0 = vunpack.c.h.bf16 %v1499_v53  ;;  %v4974_v53 = vld [vmem:[#allocation8 + $0x1ac] sm:$0xf0] }
 0x2ca   : > { %4139 = vmatmul.msk.bf16.vlgmr.msrb.gmra.mxu3 %vm2000_vm1, %v2081_v44  ;;  %2233 = vmatpush.bf16.msra.mxu0 %v4151_v4 }
 0x2cd   : > { %2361 = vmatpush.bf16.msra.mxu3 %v4219_v11  ;;  %v4510_v11 = vld [vmem:[#allocation8 + $0x1e0] sm:$0xf] }
 0x2ce   : > { %2234 = vmatpush.bf16.msra.mxu0 %v4143_v15  ;;  %v4384_v15 = vld [vmem:[#allocation8 + $0xf0] sm:$0xf0]  ;;  %v4511_v16 = vor.u32 %v4982_v13, %v4510_v11  ;;  %v4934_v11 = vld [vmem:[#allocation8 + $0x6c] sm:$0xf0] }
 0x2cf   : > { %v4387_v17 = vor.u32 %v4948_v14, %v4384_v15  ;;  %v4319_v13 = vor.u32 %v4934_v11, %v4318_v10  ;;  %v4966_v14 = vld [vmem:[#allocation8 + $0x16c] sm:$0xf0]  ;;  %v4932_v15 = vld [vmem:[#allocation8 + $0x64] sm:$0xf]  ;;  %v4374_v10 = vld [vmem:[#allocation8 + $0xc8] sm:$0xf] }
 0x2d0   : > { %2874 = vmatpush.bf16.msrb.mxu1 %v4511_v16  ;;  %v4320_v16 = vld [vmem:[#allocation8 + $0x70] sm:$0xf0]  ;;  %v4947_v11 = vld [vmem:[#allocation8 + $0xd4] sm:$0xf0] }
 0x2d1   : > { %2362 = vmatpush.bf16.msra.mxu3 %v4211_v24  ;;  %v4494_v24 = vld [vmem:[#allocation8 + $0x1c0] sm:$0xf]  ;;  %2888 = vmatpush.bf16.msrb.mxu2 %v4387_v17  ;;  %v4323_v18 = vor.u32 %v4932_v15, %v4320_v16  ;;  %v4979_v15 = vld [vmem:[#allocation8 + $0x1d4] sm:$0xf0]  ;;  %v4945_v16 = vld [vmem:[#allocation8 + $0xcc] sm:$0xf] }
 0x2d2   : > { %2860 = vmatpush.bf16.msrb.mxu0 %v4383_v46  ;;  %v4446_v46 = vld [vmem:[#allocation8 + $0x160] sm:$0xf] }
 0x2d3   : > { %v4447_v17 = vor.u32 %v4966_v14, %v4446_v46  ;;  %v4502_v14 = vld [vmem:[#allocation8 + $0x1c8] sm:$0xf] }
 0x2d5   : > { %2902 = vmatpush.bf16.msrb.mxu3 %v4515_v21 }
 0x34b   : > { %v2072_v25 = vpop.f32.mrf.mxu2 }
 0x34c   : > { %v2105_v29 = vpack.c.bf16 %v2072_v25, %v2072_v25  ;;  %v4978_v25 = vld [vmem:[#allocation8 + $0x1cc] sm:$0xf0] }
 0x34d   : > { %v2100_v27 = vpop.f32.mrf.mxu3 }
 0x34e   : > { %v2107_v32 = vpack.c.bf16 %v2100_v27, %v2100_v27  ;;  %v2143_v36 = vunpack.c.l.b16 %v2105_v29  ;;  %v4367_v27 = vor.u32 %v4946_v22, %v4366_v20  ;;  %v4495_v29 = vor.u32 %v4978_v25, %v4494_v24  ;;  %v4448_v20 = vld [vmem:[#allocation8 + $0x170] sm:$0xf0]  ;;  %v4302_v22 = vld [vmem:[#allocation8 + $0x40] sm:$0xf]  ;;  %v4930_v24 = vld [vmem:[#allocation8 + $0x4c] sm:$0xf0] }
 0x34f   : > { %v4451_v21 = vor.u32 %v4964_v19, %v4448_v20  ;;  %v4430_v25 = vld [vmem:[#allocation8 + $0x140] sm:$0xf]  ;;  %v4977_v19 = vld [vmem:[#allocation8 + $0x1cc] sm:$0xf]  ;;  %v4504_v20 = vld [vmem:[#allocation8 + $0x1d8] sm:$0xf0] }
 0x350   : > { %v2257_v26 = vunpack.c.l.b16 %v2107_v32  ;;  %v4368_v32 = vld [vmem:[#allocation8 + $0xd0] sm:$0xf0]  ;;  %2861 = vmatpush.bf16.msrb.mxu0 %v4367_v27  ;;  %2875 = vmatpush.bf16.msrb.mxu1 %v4495_v29  ;;  %v4303_v27 = vor.u32 %v4930_v24, %v4302_v22  ;;  %v4962_v29 = vld [vmem:[#allocation8 + $0x14c] sm:$0xf0]  ;;  %v4507_v22 = vor.u32 %v4977_v19, %v4504_v20  ;;  %v4358_v24 = vld [vmem:[#allocation8 + $0xa8] sm:$0xf] }
 0x353   : > { %v2074_v30 = vpop.f32.mrf.mxu2 }
 0x354   : > { %v2106_v34 = vpack.c.bf16 %v2074_v30, %v2074_v30  ;;  %v4944_v30 = vld [vmem:[#allocation8 + $0xc4] sm:$0xf] }
 0x355   : > { %v2102_v35 = vpop.f32.mrf.mxu3 }
 0x356   : > { %v2144_v37 = vunpack.c.l.b16 %v2106_v34  ;;  %v2108_v38 = vpack.c.bf16 %v2102_v35, %v2102_v35  ;;  %v4976_v34 = vld [vmem:[#allocation8 + $0x1c4] sm:$0xf]  ;;  %v2396_v35 = vmul.f32 %v5147_v7, %v2395_v12  ;;  %v4464_v12 = vld [vmem:[#allocation8 + $0x190] sm:$0xf0] }
 0x357   : > { %v4467_v9 = vor.u32 %v4968_v8, %v4464_v12  ;;  %v4981_v8 = vld [vmem:[#allocation8 + $0x1ec] sm:$0xf] }
 0x358   : > { %v2145_v39 = vpack.c.b16 %v2144_v37, %v2143_v36  ;;  %v2258_v40 = vunpack.c.l.b16 %v2108_v38  ;;  %v4371_v36 = vor.u32 %v4944_v30, %v4368_v32  ;;  %v4496_v37 = vld [vmem:[#allocation8 + $0x1d0] sm:$0xf0]  ;;  %v4928_v30 = vld [vmem:[#allocation8 + $0x44] sm:$0xf] }
 0x359   : > { %v4499_v38 = vor.u32 %v4976_v34, %v4496_v37  ;;  %v4304_v32 = vld [vmem:[#allocation8 + $0x50] sm:$0xf0]  ;;  %v4431_v34 = vor.u32 %v4962_v29, %v4430_v25  ;;  %v4943_v25 = vld [vmem:[#allocation8 + $0xb4] sm:$0xf0] }
 0x35a   : > { %v2259_v42 = vpack.c.b16 %v2258_v40, %v2257_v26  ;;  %2235 = vmatmul.bf16.vlgmr.msra.gmra.mxu0 %v2145_v39  ;;  %2249 = vmatmul.bf16.vlgmr.msra.gmra.mxu1 %v2145_v39  ;;  %v2397_v26 = vadd.f32 %v5147_v7, %v2396_v35  ;;  %v4307_v35 = vor.u32 %v4928_v30, %v4304_v32  ;;  %v4432_v37 = vld [vmem:[#allocation8 + $0x150] sm:$0xf0]  ;;  %v4975_v30 = vld [vmem:[#allocation8 + $0x1b4] sm:$0xf0]  ;;  %v4941_v32 = vld [vmem:[#allocation8 + $0xac] sm:$0xf] }
 0x35b   : > { %2889 = vmatpush.bf16.msrb.mxu2 %v4371_v36  ;;  %2903 = vmatpush.bf16.msrb.mxu3 %v4499_v38  ;;  %v4960_v36 = vld [vmem:[#allocation8 + $0x144] sm:$0xf]  ;;  %v4359_v29 = vor.u32 %v4943_v25, %v4358_v24  ;;  %v4959_v24 = vld [vmem:[#allocation8 + $0x134] sm:$0xf0]  ;;  %v4925_v25 = vld [vmem:[#allocation8 + $0x2c] sm:$0xf] }
 0x35c   : > { %2349 = vmatmul.bf16.vlgmr.msra.gmra.mxu2 %v2259_v42  ;;  %2363 = vmatmul.bf16.vlgmr.msra.gmra.mxu3 %v2259_v42  ;;  %v5739_v39 = vsel %vm2398_vm2, %v5147_v7, %v2397_v26  ;;  %v4435_v38 = vor.u32 %v4960_v36, %v4432_v37  ;;  %v4286_v26 = vld [vmem:[#allocation8 + $0x20] sm:$0xf]  ;;  %v4973_v37 = vld [vmem:[#allocation8 + $0x1ac] sm:$0xf] }
 0x3d7   : > { %v2236_v44 = vpop.f32.mrf.mxu0  ;;  %v2250_v23 = vpop.f32.mrf.mxu1 }
 0x3df   : > { %v2350_v45 = vpop.f32.mrf.mxu2  ;;  %v2364_v41 = vpop.f32.mrf.mxu3 }
 0x3e0   : > { %v2369_v48 = vadd.f32 %v2350_v45, %v2236_v44  ;;  %v2370_v49 = vadd.f32 %v2364_v41, %v2250_v23  ;;  %v2238_v55 = vpop.f32.mrf.mxu0  ;;  %v2252_v56 = vpop.f32.mrf.mxu1 }
 0x3e2   : > { %v2379_v54 = vadd.f32 %v2375_v47, %v2369_v48  ;;  %v2380_v51 = vadd.f32 %v2376_v31, %v2370_v49 }
 0x3e4   : > { %v2383_v52 = vadd.f32 %v2379_v54, %v1500_v33  ;;  %v2384_v57 = vadd.f32 %v2380_v51, %v1501_v50  ;;  %v4350_v54 = vld [vmem:[#allocation8 + $0xa0] sm:$0xf]  ;;  %v4942_v51 = vld [vmem:[#allocation8 + $0xac] sm:$0xf0] }
 0x3e6   : > { %v2387_v58 = vadd.f32 %v2384_v57, %v2383_v52 }
 0x3e7   : > { %v2352_v59 = vpop.f32.mrf.mxu2  ;;  %v2366_v60 = vpop.f32.mrf.mxu3 }
 0x3e8   : > { %v2371_v61 = vadd.f32 %v2352_v59, %v2238_v55  ;;  %v2372_v62 = vadd.f32 %v2366_v60, %v2252_v56  ;;  %2388 = vadd.xlane.f32.xlu2 %v2387_v58  ;;  %v4940_v55 = vld [vmem:[#allocation8 + $0xa4] sm:$0xf]  ;;  %v4352_v56 = vld [vmem:[#allocation8 + $0xb0] sm:$0xf0] }
 0x3e9   : > { %v4355_v59 = vor.u32 %v4940_v55, %v4352_v56  ;;  %v4972_v60 = vld [vmem:[#allocation8 + $0x1a4] sm:$0xf]  ;;  %v4954_v55 = vld [vmem:[#allocation8 + $0x10c] sm:$0xf0] }
 0x3ea   : > { %v2381_v2 = vadd.f32 %v2375_v47, %v2371_v61  ;;  %v2382_v3 = vadd.f32 %v2376_v31, %v2372_v62  ;;  %v4480_v61 = vld [vmem:[#allocation8 + $0x1b0] sm:$0xf0]  ;;  %v4920_v56 = vld [vmem:[#allocation8 + $0x4] sm:$0xf] }
 0x3eb   : > { %v4483_v62 = vor.u32 %v4972_v60, %v4480_v61  ;;  %2890 = vmatpush.bf16.msrb.mxu2 %v4355_v59  ;;  %v4952_v61 = vld [vmem:[#allocation8 + $0x104] sm:$0xf] }
 0x3ec   : > { %v2385_v1 = vadd.f32 %v2381_v2, %v1502_v63  ;;  %v2386_v4 = vadd.f32 %v2382_v3, %v1503_v0  ;;  %v4334_v63 = vld [vmem:[#allocation8 + $0x80] sm:$0xf]  ;;  %v4938_v0 = vld [vmem:[#allocation8 + $0x8c] sm:$0xf0] }
 0x3ed   : > { %v4462_v2 = vld [vmem:[#allocation8 + $0x180] sm:$0xf]  ;;  %2904 = vmatpush.bf16.msrb.mxu3 %v4483_v62  ;;  %v4335_v3 = vor.u32 %v4938_v0, %v4334_v63  ;;  %v4400_v62 = vld [vmem:[#allocation8 + $0x110] sm:$0xf0]  ;;  %v4390_v63 = vld [vmem:[#allocation8 + $0xe8] sm:$0xf] }
 0x3ee   : > { %v2390_v5 = vadd.f32 %v2386_v4, %v2385_v1  ;;  %v4403_v0 = vor.u32 %v4952_v61, %v4400_v62  ;;  %v4933_v61 = vld [vmem:[#allocation8 + $0x6c] sm:$0xf]  ;;  %v4328_v62 = vld [vmem:[#allocation8 + $0x78] sm:$0xf0] }
 0x3f0   : > { %2391 = vadd.xlane.f32.xlu0 %v2390_v5  ;;  %v4336_v5 = vld [vmem:[#allocation8 + $0x90] sm:$0xf0] }
 0x3f1   : > { %2905 = vmatpush.bf16.msrb.mxu3 %v4467_v9  ;;  %v4520_v9 = vld [vmem:[#allocation8 + $0x1f8] sm:$0xf0] }
 0x3f2   : > { %v4523_v46 = vor.u32 %v4981_v8, %v4520_v9  ;;  %v4438_v8 = vld [vmem:[#allocation8 + $0x148] sm:$0xf] }
 0x3f5   : > { %2906 = vmatpush.bf16.msrb.mxu3 %v4451_v21 }
 0x3f9   : > { %2907 = vmatpush.bf16.msrb.mxu3 %v4435_v38  ;;  %v4488_v38 = vld [vmem:[#allocation8 + $0x1b8] sm:$0xf0] }
 0x45b   : > { %v2389_v40 = vpop.xlane.xlu2 %2388 }
 0x45c   : > { %v2400_v42 = vmul.f32 %v5739_v39, %v2389_v40  ;;  %v4926_v40 = vld [vmem:[#allocation8 + $0x2c] sm:$0xf0] }
 0x45e   : > { %v5742_v43 = vsub.f32 %v2383_v52, %v2400_v42  ;;  %v5744_v44 = vsub.f32 %v2384_v57, %v2400_v42  ;;  %v4478_v52 = vld [vmem:[#allocation8 + $0x1a0] sm:$0xf]  ;;  %v4351_v57 = vor.u32 %v4942_v51, %v4350_v54 }
 0x45f   : > { %v4479_v58 = vor.u32 %v4974_v53, %v4478_v52  ;;  %v4414_v42 = vld [vmem:[#allocation8 + $0x120] sm:$0xf]  ;;  %v4922_v52 = vld [vmem:[#allocation8 + $0xc] sm:$0xf0] }
 0x460   : > { %v2406_v23 = vmul.f32 %v5742_v43, %v5742_v43  ;;  %v2407_v28 = vmul.f32 %v5744_v44, %v5744_v44  ;;  %2862 = vmatpush.bf16.msrb.mxu0 %v4351_v57  ;;  %v4270_v51 = vld [vmem:[#allocation8] sm:$0xf] }
 0x461   : > { %2876 = vmatpush.bf16.msrb.mxu1 %v4479_v58  ;;  %v4398_v57 = vld [vmem:[#allocation8 + $0x100] sm:$0xf]  ;;  %v4271_v53 = vor.u32 %v4922_v52, %v4270_v51  ;;  %v4272_v58 = vld [vmem:[#allocation8 + $0x10] sm:$0xf0]  ;;  %v4472_v51 = vld [vmem:[#allocation8 + $0x198] sm:$0xf0] }
 0x462   : > { %v2410_v47 = vadd.f32 %v2407_v28, %v2406_v23  ;;  %v4287_v23 = vor.u32 %v4926_v40, %v4286_v26  ;;  %v4958_v28 = vld [vmem:[#allocation8 + $0x12c] sm:$0xf0]  ;;  %v4399_v59 = vor.u32 %v4954_v55, %v4398_v57  ;;  %v4275_v60 = vor.u32 %v4920_v56, %v4272_v58  ;;  %v4342_v26 = vld [vmem:[#allocation8 + $0x88] sm:$0xf]  ;;  %v4935_v56 = vld [vmem:[#allocation8 + $0x74] sm:$0xf0] }
 0x463   : > { %v2392_v31 = vpop.xlane.xlu0 %2391  ;;  %v4326_v55 = vld [vmem:[#allocation8 + $0x68] sm:$0xf] }
 0x464   : > { %v2401_v45 = vmul.f32 %v5739_v39, %v2392_v31  ;;  %2411 = vadd.xlane.f32.xlu1 %v2410_v47  ;;  %2863 = vmatpush.bf16.msrb.mxu0 %v4335_v3  ;;  %v4924_v47 = vld [vmem:[#allocation8 + $0x24] sm:$0xf]  ;;  %v4288_v31 = vld [vmem:[#allocation8 + $0x30] sm:$0xf0]  ;;  %v4518_v3 = vld [vmem:[#allocation8 + $0x1e8] sm:$0xf] }
 0x465   : > { %v4454_v58 = vld [vmem:[#allocation8 + $0x168] sm:$0xf] }
 0x466   : > { %v5751_v41 = vsub.f32 %v2385_v1, %v2401_v45  ;;  %v5753_v48 = vsub.f32 %v2386_v4, %v2401_v45  ;;  %v4970_v1 = vld [vmem:[#allocation8 + $0x18c] sm:$0xf0]  ;;  %v4936_v4 = vld [vmem:[#allocation8 + $0x84] sm:$0xf]  ;;  %v4415_v45 = vor.u32 %v4958_v28, %v4414_v42  ;;  %v4491_v42 = vor.u32 %v4973_v37, %v4488_v38  ;;  %v4470_v28 = vld [vmem:[#allocation8 + $0x188] sm:$0xf] }
 0x467   : > { %v4463_v6 = vor.u32 %v4970_v1, %v4462_v2  ;;  %v4339_v7 = vor.u32 %v4936_v4, %v4336_v5  ;;  %v4951_v2 = vld [vmem:[#allocation8 + $0xf4] sm:$0xf0] }
 0x468   : > { %v2408_v49 = vmul.f32 %v5751_v41, %v5751_v41  ;;  %v2409_v33 = vmul.f32 %v5753_v48, %v5753_v48  ;;  %2864 = vmatpush.bf16.msrb.mxu0 %v4319_v13  ;;  %v4983_v1 = vld [vmem:[#allocation8 + $0x1f4] sm:$0xf0]  ;;  %v4391_v4 = vor.u32 %v4951_v2, %v4390_v63  ;;  %v4375_v13 = vor.u32 %v4947_v11, %v4374_v10  ;;  %v4929_v11 = vld [vmem:[#allocation8 + $0x4c] sm:$0xf] }
 0x469   : > { %2877 = vmatpush.bf16.msrb.mxu1 %v4463_v6  ;;  %2891 = vmatpush.bf16.msrb.mxu2 %v4339_v7  ;;  %v4519_v5 = vor.u32 %v4983_v1, %v4518_v3  ;;  %v4949_v6 = vld [vmem:[#allocation8 + $0xec] sm:$0xf]  ;;  %v4392_v7 = vld [vmem:[#allocation8 + $0xf8] sm:$0xf0]  ;;  %v4331_v2 = vor.u32 %v4933_v61, %v4328_v62  ;;  %v4923_v38 = vld [vmem:[#allocation8 + $0x14] sm:$0xf0] }
 0x46a   : > { %v2413_v50 = vadd.f32 %v2409_v33, %v2408_v49  ;;  %v4291_v49 = vor.u32 %v4924_v47, %v4288_v31  ;;  %v4956_v33 = vld [vmem:[#allocation8 + $0x124] sm:$0xf]  ;;  %v4395_v12 = vor.u32 %v4949_v6, %v4392_v7  ;;  %v4971_v47 = vld [vmem:[#allocation8 + $0x194] sm:$0xf0]  ;;  %v4965_v3 = vld [vmem:[#allocation8 + $0x16c] sm:$0xf] }
 0x46b   : > { %v4456_v1 = vld [vmem:[#allocation8 + $0x178] sm:$0xf0]  ;;  %v4931_v7 = vld [vmem:[#allocation8 + $0x54] sm:$0xf0] }
 0x46c   : > { %2414 = vadd.xlane.f32.xlu2 %v2413_v50  ;;  %2865 = vmatpush.bf16.msrb.mxu0 %v4303_v27  ;;  %v4416_v50 = vld [vmem:[#allocation8 + $0x130] sm:$0xf0]  ;;  %v4486_v27 = vld [vmem:[#allocation8 + $0x1a8] sm:$0xf]  ;;  %v4459_v6 = vor.u32 %v4965_v3, %v4456_v1 }
 0x46d   : > { %2878 = vmatpush.bf16.msrb.mxu1 %v4447_v17  ;;  %2892 = vmatpush.bf16.msrb.mxu2 %v4323_v18  ;;  %v4419_v54 = vor.u32 %v4956_v33, %v4416_v50  ;;  %v4503_v17 = vor.u32 %v4979_v15, %v4502_v14  ;;  %v4376_v18 = vld [vmem:[#allocation8 + $0xd8] sm:$0xf0]  ;;  %v4969_v33 = vld [vmem:[#allocation8 + $0x18c] sm:$0xf] }
 0x46e   : > { %v4379_v21 = vor.u32 %v4945_v16, %v4376_v18  ;;  %v4294_v18 = vld [vmem:[#allocation8 + $0x28] sm:$0xf] }
 0x46f   : > { %2908 = vmatpush.bf16.msrb.mxu3 %v4419_v54  ;;  %v4471_v54 = vor.u32 %v4971_v47, %v4470_v28  ;;  %v4921_v28 = vld [vmem:[#allocation8 + $0xc] sm:$0xf]  ;;  %v4280_v47 = vld [vmem:[#allocation8 + $0x18] sm:$0xf0] }
 0x470   : > { %2866 = vmatpush.bf16.msrb.mxu0 %v4287_v23  ;;  %v4939_v23 = vld [vmem:[#allocation8 + $0x94] sm:$0xf0] }
 0x471   : > { %2879 = vmatpush.bf16.msrb.mxu1 %v4431_v34  ;;  %2893 = vmatpush.bf16.msrb.mxu2 %v4307_v35  ;;  %v4360_v34 = vld [vmem:[#allocation8 + $0xb8] sm:$0xf0]  ;;  %v4487_v35 = vor.u32 %v4975_v30, %v4486_v27  ;;  %v4343_v50 = vor.u32 %v4939_v23, %v4342_v26  ;;  %v4406_v26 = vld [vmem:[#allocation8 + $0x108] sm:$0xf] }
 0x472   : > { %v4363_v36 = vor.u32 %v4941_v32, %v4360_v34  ;;  %v4296_v27 = vld [vmem:[#allocation8 + $0x38] sm:$0xf0]  ;;  %v4957_v34 = vld [vmem:[#allocation8 + $0x12c] sm:$0xf] }
 0x473   : > { %2909 = vmatpush.bf16.msrb.mxu3 %v4403_v0  ;;  %v4299_v37 = vor.u32 %v4925_v25, %v4296_v27  ;;  %v4638_v27 = vld [vmem:[#allocation10 + $0xe0] sm:$0xf] }
 0x474   : > { %2867 = vmatpush.bf16.msrb.mxu0 %v4271_v53  ;;  %v4475_v53 = vor.u32 %v4969_v33, %v4472_v51  ;;  %v4283_v51 = vor.u32 %v4921_v28, %v4280_v47  ;;  %v5011_v28 = vld [vmem:[#allocation10 + $0xd4] sm:$0xf0] }
 0x475   : > { %2880 = vmatpush.bf16.msrb.mxu1 %v4415_v45  ;;  %2894 = vmatpush.bf16.msrb.mxu2 %v4291_v49  ;;  %v4937_v45 = vld [vmem:[#allocation8 + $0x8c] sm:$0xf]  ;;  %v4344_v49 = vld [vmem:[#allocation8 + $0x98] sm:$0xf0] }
 0x476   : > { %v4347_v57 = vor.u32 %v4937_v45, %v4344_v49  ;;  %v4408_v45 = vld [vmem:[#allocation8 + $0x118] sm:$0xf0] }
 0x477   : > { %2958 = vmatpush.bf16.msra.mxu3 %v4523_v46  ;;  %v4312_v46 = vld [vmem:[#allocation8 + $0x58] sm:$0xf0] }
 0x478   : > { %2916 = vmatpush.bf16.msra.mxu0 %v4391_v4  ;;  %v4310_v4 = vld [vmem:[#allocation8 + $0x48] sm:$0xf]  ;;  %v4315_v16 = vor.u32 %v4929_v11, %v4312_v46  ;;  %v4646_v11 = vld [vmem:[#allocation10 + $0xf0] sm:$0xf]  ;;  %v5015_v46 = vld [vmem:[#allocation10 + $0xf4] sm:$0xf0] }
 0x479   : > { %2881 = vmatpush.bf16.msrb.mxu1 %v4399_v59  ;;  %2895 = vmatpush.bf16.msrb.mxu2 %v4275_v60  ;;  %v4327_v59 = vor.u32 %v4935_v56, %v4326_v55  ;;  %v4967_v60 = vld [vmem:[#allocation8 + $0x174] sm:$0xf0]  ;;  %v4311_v9 = vor.u32 %v4931_v7, %v4310_v4  ;;  %v4647_v25 = vor.u32 %v5015_v46, %v4646_v11  ;;  %v4998_v11 = vld [vmem:[#allocation10 + $0x74] sm:$0xf]  ;;  %v4584_v46 = vld [vmem:[#allocation10 + $0x78] sm:$0xf0] }
 0x47a   : > { %v4455_v0 = vor.u32 %v4967_v60, %v4454_v58  ;;  %v2444_v60 = vld [vmem:[%s5840_s7] sm:$0x3] }
 0x47b   : > { %2959 = vmatpush.bf16.msra.mxu3 %v4507_v22  ;;  %v4422_v22 = vld [vmem:[#allocation8 + $0x128] sm:$0xf] }
 0x47c   : > { %2917 = vmatpush.bf16.msra.mxu0 %v4375_v13  ;;  %v4961_v13 = vld [vmem:[#allocation8 + $0x14c] sm:$0xf]  ;;  %v4423_v32 = vor.u32 %v4959_v24, %v4422_v22  ;;  %v4574_v22 = vld [vmem:[#allocation10 + $0x60] sm:$0xf]  ;;  %v4997_v24 = vld [vmem:[#allocation10 + $0x64] sm:$0xf0] }
 0x47d   : > { %2930 = vmatpush.bf16.msra.mxu1 %v4519_v5  ;;  %2944 = vmatpush.bf16.msra.mxu2 %v4395_v12  ;;  %v4963_v12 = vld [vmem:[#allocation8 + $0x154] sm:$0xf0] }
 0x47e   : > { %v4439_v10 = vor.u32 %v4963_v12, %v4438_v8 }
 0x47f   : > { %2960 = vmatpush.bf16.msra.mxu3 %v4491_v42 }
 0x480   : > { %2918 = vmatpush.bf16.msra.mxu0 %v4359_v29 }
 0x481   : > { %2931 = vmatpush.bf16.msra.mxu1 %v4503_v17  ;;  %2945 = vmatpush.bf16.msra.mxu2 %v4379_v21  ;;  %v4440_v17 = vld [vmem:[#allocation8 + $0x158] sm:$0xf0]  ;;  %v4927_v21 = vld [vmem:[#allocation8 + $0x34] sm:$0xf0] }
 0x482   : > { %v4443_v20 = vor.u32 %v4961_v13, %v4440_v17  ;;  %v4295_v30 = vor.u32 %v4927_v21, %v4294_v18  ;;  %v4710_v13 = vld [vmem:[#allocation10 + $0x170] sm:$0xf] }
 0x483   : > { %2961 = vmatpush.bf16.msra.mxu3 %v4475_v53  ;;  %v4774_v18 = vld [vmem:[#allocation10 + $0x1f0] sm:$0xf] }
 0x484   : > { %2919 = vmatpush.bf16.msra.mxu0 %v4343_v50 }
 0x485   : > { %2932 = vmatpush.bf16.msra.mxu1 %v4487_v35  ;;  %2946 = vmatpush.bf16.msra.mxu2 %v4363_v36  ;;  %v4424_v35 = vld [vmem:[#allocation8 + $0x138] sm:$0xf0]  ;;  %v4278_v36 = vld [vmem:[#allocation8 + $0x8] sm:$0xf] }
 0x486   : > { %v4427_v23 = vor.u32 %v4957_v34, %v4424_v35  ;;  %v4279_v33 = vor.u32 %v4923_v38, %v4278_v36  ;;  %v5029_v35 = vld [vmem:[#allocation10 + $0x164] sm:$0xf0]  ;;  %v4766_v36 = vld [vmem:[#allocation10 + $0x1e0] sm:$0xf]  ;;  %v4575_v38 = vor.u32 %v4997_v24, %v4574_v22  ;;  %v4678_v24 = vld [vmem:[#allocation10 + $0x130] sm:$0xf] }
 0x487   : > { %2962 = vmatpush.bf16.msra.mxu3 %v4459_v6 }
 0x488   : > { %2920 = vmatpush.bf16.msra.mxu0 %v4327_v59 }
 0x489   : > { %2933 = vmatpush.bf16.msra.mxu1 %v4471_v54  ;;  %2947 = vmatpush.bf16.msra.mxu2 %v4347_v57 }
 0x48b   : > { %2963 = vmatpush.bf16.msra.mxu3 %v4443_v20 }
 0x48c   : > { %2921 = vmatpush.bf16.msra.mxu0 %v4311_v9  ;;  %v4582_v9 = vld [vmem:[#allocation10 + $0x70] sm:$0xf] }
 0x48d   : > { %2934 = vmatpush.bf16.msra.mxu1 %v4455_v0  ;;  %2948 = vmatpush.bf16.msra.mxu2 %v4331_v2  ;;  %v2446_v0 = vperm.slane %v2444_v60, 0  ;;  %v2447_v2 = vperm.slane %v2444_v60, 1  ;;  %v4991_v60 = vld [vmem:[#allocation10 + $0x34] sm:$0xf0] }
 0x48f   : > { %2964 = vmatpush.bf16.msra.mxu3 %v4427_v23  ;;  %v4630_v23 = vld [vmem:[#allocation10 + $0xd0] sm:$0xf] }
 0x490   : > { %2922 = vmatpush.bf16.msra.mxu0 %v4295_v30 }
 0x491   : > { %2935 = vmatpush.bf16.msra.mxu1 %v4439_v10  ;;  %2949 = vmatpush.bf16.msra.mxu2 %v4315_v16  ;;  %v4999_v10 = vld [vmem:[#allocation10 + $0x74] sm:$0xf0] }
 0x492   : > { %v4583_v21 = vor.u32 %v4999_v10, %v4582_v9  ;;  %v5025_v10 = vld [vmem:[#allocation10 + $0x144] sm:$0xf0] }
 0x494   : > { %2923 = vmatpush.bf16.msra.mxu0 %v4279_v33 }
 0x495   : > { %2936 = vmatpush.bf16.msra.mxu1 %v4423_v32  ;;  %2950 = vmatpush.bf16.msra.mxu2 %v4299_v37  ;;  %v4702_v32 = vld [vmem:[#allocation10 + $0x160] sm:$0xf]  ;;  %v5045_v37 = vld [vmem:[#allocation10 + $0x1e4] sm:$0xf0] }
 0x496   : > { %v4703_v47 = vor.u32 %v5029_v35, %v4702_v32  ;;  %v5001_v35 = vld [vmem:[#allocation10 + $0x84] sm:$0xf0] }
 0x499   : > { %2951 = vmatpush.bf16.msra.mxu2 %v4283_v51  ;;  %v4993_v51 = vld [vmem:[#allocation10 + $0x44] sm:$0xf0] }
 0x4d7   : > { %v2412_v40 = vpop.xlane.xlu1 %2411 }
 0x4d8   : > { %v2416_v31 = vmul.f32 %v2412_v40, %v5739_v39  ;;  %v4955_v40 = vld [vmem:[#allocation8 + $0x114] sm:$0xf0] }
 0x4d9   : > { %v4407_v50 = vor.u32 %v4955_v40, %v4406_v26  ;;  %v4566_v26 = vld [vmem:[#allocation10 + $0x50] sm:$0xf] }
 0x4da   : > { %v5760_v52 = vadd.f32 1e-05, %v2416_v31  ;;  %v4953_v31 = vld [vmem:[#allocation8 + $0x10c] sm:$0xf] }
 0x4db   : > { %v4411_v55 = vor.u32 %v4953_v31, %v4408_v45  ;;  %2937 = vmatpush.bf16.msra.mxu1 %v4407_v50  ;;  %v4767_v31 = vor.u32 %v5045_v37, %v4766_v36  ;;  %v4694_v45 = vld [vmem:[#allocation10 + $0x150] sm:$0xf]  ;;  %v4558_v50 = vld [vmem:[#allocation10 + $0x40] sm:$0xf] }
 0x4dc   : > { %5148 = vrsqrt.f32 %v5760_v52  ;;  %vm2426_vm4 = vweird.f32 %v5760_v52  ;;  %v4750_v37 = vld [vmem:[#allocation10 + $0x1c0] sm:$0xf] }
 0x4dd   : > { %2965 = vmatpush.bf16.msra.mxu3 %v4411_v55 }
 0x4df   : > { %v2415_v63 = vpop.xlane.xlu2 %2414 }
 0x4e0   : > { %v2417_v5 = vmul.f32 %v2415_v63, %v5739_v39 }
 0x4e2   : > { %v5149_v14 = vpop.eup %5148  ;;  %v5764_v15 = vadd.f32 1e-05, %v2417_v5 }
 0x4e3   : > { %v2421_v19 = vmul.f32 %v5149_v14, %v5760_v52  ;;  %vm2427_vm3 = vweird.f32 %v5149_v14  ;;  %v2454_v52 = vld [vmem:[%s5841_s8] sm:$0x3] }
 0x4e4   : > { %5150 = vrsqrt.f32 %v5764_v15  ;;  %vm2428_vm5 = vmor %vm2426_vm4, %vm2427_vm3  ;;  %vm2436_vm7 = vweird.f32 %v5764_v15  ;;  %v2456_v4 = vperm.slane %v2454_v52, 0  ;;  %v2457_v5 = vperm.slane %v2454_v52, 1 }
 0x4e5   : > { %v2422_v29 = vmul.f32 %v5149_v14, %v2421_v19 }
 0x4e7   : > { %v2423_v42 = vmul.f32 0.5, %v2422_v29  ;;  %v5013_v29 = vld [vmem:[#allocation10 + $0xe4] sm:$0xf0] }
 0x4e8   : > { %v4639_v40 = vor.u32 %v5013_v29, %v4638_v27  ;;  %v4996_v29 = vld [vmem:[#allocation10 + $0x64] sm:$0xf] }
 0x4e9   : > { %v2424_v49 = vsub.f32 1.5, %v2423_v42  ;;  %v4995_v42 = vld [vmem:[#allocation10 + $0x54] sm:$0xf0] }
 0x4ea   : > { %v5151_v54 = vpop.eup %5150  ;;  %v4567_v33 = vor.u32 %v4995_v42, %v4566_v26  ;;  %v5014_v26 = vld [vmem:[#allocation10 + $0xf4] sm:$0xf]  ;;  %v4648_v42 = vld [vmem:[#allocation10 + $0xf8] sm:$0xf0] }
 0x4eb   : > { %v2425_v57 = vmul.f32 %v5149_v14, %v2424_v49  ;;  %v2431_v53 = vmul.f32 %v5151_v54, %v5764_v15  ;;  %vm2437_vm6 = vweird.f32 %v5151_v54  ;;  %v5027_v49 = vld [vmem:[#allocation10 + $0x154] sm:$0xf0] }
 0x4ec   : > { %vm2438_vm8 = vmor %vm2436_vm7, %vm2437_vm6  ;;  %v4695_v55 = vor.u32 %v5027_v49, %v4694_v45  ;;  %v4994_v45 = vld [vmem:[#allocation10 + $0x54] sm:$0xf]  ;;  %v4568_v49 = vld [vmem:[#allocation10 + $0x58] sm:$0xf0] }
 0x4ed   : > { %v2432_v56 = vmul.f32 %v5151_v54, %v2431_v53  ;;  %v2429_v58 = vsel %vm2428_vm5, %v5149_v14, %v2425_v57  ;;  %v4622_v57 = vld [vmem:[#allocation10 + $0xc0] sm:$0xf]  ;;  %v5009_v53 = vld [vmem:[#allocation10 + $0xc4] sm:$0xf0] }
 0x4ee   : > { %v2440_v62 = vmul.f32 %v2429_v58, %v5742_v43  ;;  %v2441_v63 = vmul.f32 %v2429_v58, %v5744_v44  ;;  %v4550_v58 = vld [vmem:[#allocation10 + $0x30] sm:$0xf] }
 0x4ef   : > { %v2433_v59 = vmul.f32 0.5, %v2432_v56  ;;  %v4559_v56 = vor.u32 %v4993_v51, %v4558_v50  ;;  %v4742_v50 = vld [vmem:[#allocation10 + $0x1b0] sm:$0xf] }
 0x4f0   : > { %v2450_v43 = vmul.f32 %v2446_v0, %v2440_v62  ;;  %v2451_v8 = vmul.f32 %v2447_v2, %v2441_v63  ;;  %v5007_v62 = vld [vmem:[#allocation10 + $0xb4] sm:$0xf0]  ;;  %v4551_v63 = vor.u32 %v4991_v60, %v4550_v58  ;;  %v4992_v60 = vld [vmem:[#allocation10 + $0x44] sm:$0xf] }
 0x4f1   : > { %v2434_v61 = vsub.f32 1.5, %v2433_v59  ;;  %v4623_v59 = vor.u32 %v5009_v53, %v4622_v57  ;;  %v5012_v57 = vld [vmem:[#allocation10 + $0xe4] sm:$0xf]  ;;  %v4640_v53 = vld [vmem:[#allocation10 + $0xe8] sm:$0xf0] }
 0x4f2   : > { %v5781_v14 = vadd.f32 %v2456_v4, %v2450_v43  ;;  %v5785_v16 = vadd.f32 %v2457_v5, %v2451_v8  ;;  %v4526_v8 = vld [vmem:[#allocation10] sm:$0xf]  ;;  %v5019_v58 = vld [vmem:[#allocation10 + $0x114] sm:$0xf0] }
 0x4f3   : > { %v2435_v3 = vmul.f32 %v5151_v54, %v2434_v61  ;;  %v4614_v61 = vld [vmem:[#allocation10 + $0xb0] sm:$0xf] }
 0x4f4   : > { %v4615_v52 = vor.u32 %v5007_v62, %v4614_v61  ;;  %v4560_v61 = vld [vmem:[#allocation10 + $0x48] sm:$0xf0] }
 0x4f5   : > { %v2439_v1 = vsel %vm2438_vm8, %v5151_v54, %v2435_v3  ;;  %v4631_v54 = vor.u32 %v5011_v28, %v4630_v23  ;;  %v4606_v3 = vld [vmem:[#allocation10 + $0xa0] sm:$0xf]  ;;  %v5021_v28 = vld [vmem:[#allocation10 + $0x124] sm:$0xf0]  ;;  %v4563_v62 = vor.u32 %v4992_v60, %v4560_v61  ;;  %v4600_v60 = vld [vmem:[#allocation10 + $0x98] sm:$0xf0] }
 0x4f6   : > { %v2442_v6 = vmul.f32 %v2439_v1, %v5751_v41  ;;  %v2443_v7 = vmul.f32 %v2439_v1, %v5753_v48  ;;  %v5031_v41 = vld [vmem:[#allocation10 + $0x174] sm:$0xf0]  ;;  %v5005_v1 = vld [vmem:[#allocation10 + $0xa4] sm:$0xf0]  ;;  %v4670_v23 = vld [vmem:[#allocation10 + $0x120] sm:$0xf] }
 0x4f7   : > { %v5047_v48 = vld [vmem:[#allocation10 + $0x1f4] sm:$0xf0]  ;;  %v4711_v30 = vor.u32 %v5031_v41, %v4710_v13  ;;  %v4587_v41 = vor.u32 %v4998_v11, %v4584_v46  ;;  %v5008_v46 = vld [vmem:[#allocation10 + $0xc4] sm:$0xf]  ;;  %v5042_v61 = vld [vmem:[#allocation10 + $0x1d4] sm:$0xf] }
 0x4f8   : > { %v2452_v44 = vmul.f32 %v2446_v0, %v2442_v6  ;;  %v2453_v12 = vmul.f32 %v2447_v2, %v2443_v7  ;;  %v4775_v34 = vor.u32 %v5047_v48, %v4774_v18  ;;  %v4542_v0 = vld [vmem:[#allocation10 + $0x20] sm:$0xf]  ;;  %v4989_v2 = vld [vmem:[#allocation10 + $0x24] sm:$0xf0]  ;;  %v4534_v6 = vld [vmem:[#allocation10 + $0x10] sm:$0xf] }
 0x4f9   : > { %v4987_v7 = vld [vmem:[#allocation10 + $0x14] sm:$0xf0]  ;;  %v4598_v18 = vld [vmem:[#allocation10 + $0x90] sm:$0xf] }
 0x4fa   : > { %v5783_v15 = vadd.f32 %v2456_v4, %v2452_v44  ;;  %v5787_v17 = vadd.f32 %v2457_v5, %v2453_v12  ;;  %v4543_v4 = vor.u32 %v4989_v2, %v4542_v0  ;;  %v4607_v5 = vor.u32 %v5005_v1, %v4606_v3  ;;  %v4985_v44 = vld [vmem:[#allocation10 + $0x4] sm:$0xf0]  ;;  %v4686_v12 = vld [vmem:[#allocation10 + $0x140] sm:$0xf]  ;;  %v5003_v48 = vld [vmem:[#allocation10 + $0x94] sm:$0xf0] }
 0x4fb   : > { %v4535_v43 = vor.u32 %v4987_v7, %v4534_v6  ;;  %v4527_v9 = vor.u32 %v4985_v44, %v4526_v8  ;;  %v4687_v13 = vor.u32 %v5025_v10, %v4686_v12  ;;  %v5037_v0 = vld [vmem:[#allocation10 + $0x1a4] sm:$0xf0]  ;;  %v5010_v2 = vld [vmem:[#allocation10 + $0xd4] sm:$0xf]  ;;  %v4632_v3 = vld [vmem:[#allocation10 + $0xd8] sm:$0xf0] }
 0x4fc   : > { %v2464_v19 = vpack.c.bf16 %v5783_v15, %v5781_v14  ;;  %v2465_v20 = vpack.c.bf16 %v5787_v17, %v5785_v16  ;;  %v4635_v1 = vor.u32 %v5010_v2, %v4632_v3  ;;  %v4990_v7 = vld [vmem:[#allocation10 + $0x34] sm:$0xf]  ;;  %v4712_v12 = vld [vmem:[#allocation10 + $0x178] sm:$0xf0]  ;;  %v5035_v11 = vld [vmem:[#allocation10 + $0x194] sm:$0xf0] }
 0x4fd   : > { %v5030_v44 = vld [vmem:[#allocation10 + $0x174] sm:$0xf] }
 0x4fe   : > { %2868 = vmatmul.bf16.vlgmr.msrb.gmra.mxu0 %v2464_v19  ;;  %2882 = vmatmul.bf16.vlgmr.msrb.gmra.mxu1 %v2465_v20  ;;  %v4715_v10 = vor.u32 %v5030_v44, %v4712_v12  ;;  %v5022_v3 = vld [vmem:[#allocation10 + $0x134] sm:$0xf]  ;;  %v4752_v44 = vld [vmem:[#allocation10 + $0x1c8] sm:$0xf0] }
 0x4ff   : > { %2896 = vmatmul.bf16.vlgmr.msrb.gmra.mxu2 %v2464_v19  ;;  %2910 = vmatmul.bf16.vlgmr.msrb.gmra.mxu3 %v2465_v20 }
 0x500   : > { %3374 = vmatpush.bf16.msrb.mxu0 %v4583_v21  ;;  %3388 = vmatpush.bf16.msrb.mxu1 %v4647_v25  ;;  %v5043_v21 = vld [vmem:[#allocation10 + $0x1d4] sm:$0xf0] }
 0x501   : > { %3402 = vmatpush.bf16.msrb.mxu2 %v4711_v30  ;;  %3416 = vmatpush.bf16.msrb.mxu3 %v4775_v34  ;;  %v5023_v25 = vld [vmem:[#allocation10 + $0x134] sm:$0xf0]  ;;  %v4576_v30 = vld [vmem:[#allocation10 + $0x68] sm:$0xf0]  ;;  %v4590_v34 = vld [vmem:[#allocation10 + $0x80] sm:$0xf] }
 0x502   : > { %v4679_v27 = vor.u32 %v5023_v25, %v4678_v24  ;;  %v4579_v32 = vor.u32 %v4996_v29, %v4576_v30  ;;  %v4591_v36 = vor.u32 %v5001_v35, %v4590_v34  ;;  %v4718_v24 = vld [vmem:[#allocation10 + $0x180] sm:$0xf]  ;;  %v5033_v25 = vld [vmem:[#allocation10 + $0x184] sm:$0xf0]  ;;  %v5006_v30 = vld [vmem:[#allocation10 + $0xb4] sm:$0xf] }
 0x503   : > { %v4719_v29 = vor.u32 %v5033_v25, %v4718_v24  ;;  %v5046_v35 = vld [vmem:[#allocation10 + $0x1f4] sm:$0xf]  ;;  %v4664_v25 = vld [vmem:[#allocation10 + $0x118] sm:$0xf0] }
 0x504   : > { %3375 = vmatpush.bf16.msrb.mxu0 %v4575_v38  ;;  %3389 = vmatpush.bf16.msrb.mxu1 %v4639_v40  ;;  %v5041_v38 = vld [vmem:[#allocation10 + $0x1c4] sm:$0xf0]  ;;  %v5018_v24 = vld [vmem:[#allocation10 + $0x114] sm:$0xf] }
 0x505   : > { %3403 = vmatpush.bf16.msrb.mxu2 %v4703_v47  ;;  %3417 = vmatpush.bf16.msrb.mxu3 %v4767_v31  ;;  %v4751_v40 = vor.u32 %v5041_v38, %v4750_v37  ;;  %v4651_v47 = vor.u32 %v5014_v26, %v4648_v42  ;;  %v4671_v31 = vor.u32 %v5021_v28, %v4670_v23  ;;  %v4986_v38 = vld [vmem:[#allocation10 + $0x14] sm:$0xf]  ;;  %v4536_v26 = vld [vmem:[#allocation10 + $0x18] sm:$0xf0] }
 0x506   : > { %v4539_v42 = vor.u32 %v4986_v38, %v4536_v26  ;;  %v4696_v23 = vld [vmem:[#allocation10 + $0x158] sm:$0xf0]  ;;  %v5034_v26 = vld [vmem:[#allocation10 + $0x194] sm:$0xf] }
 0x508   : > { %3376 = vmatpush.bf16.msrb.mxu0 %v4567_v33  ;;  %3390 = vmatpush.bf16.msrb.mxu1 %v4631_v54  ;;  %v4571_v33 = vor.u32 %v4994_v45, %v4568_v49  ;;  %v5039_v54 = vld [vmem:[#allocation10 + $0x1b4] sm:$0xf0]  ;;  %v5044_v45 = vld [vmem:[#allocation10 + $0x1e4] sm:$0xf] }
 0x509   : > { %3404 = vmatpush.bf16.msrb.mxu2 %v4695_v55  ;;  %v4743_v51 = vor.u32 %v5039_v54, %v4742_v50  ;;  %v4643_v55 = vor.u32 %v5012_v57, %v4640_v53  ;;  %v4984_v54 = vld [vmem:[#allocation10 + $0x4] sm:$0xf]  ;;  %v5796_v53 = vld [vmem:[%s5843_s10] sm:$0xf] }
 0x50a   : > { %v5024_v57 = vld [vmem:[#allocation10 + $0x144] sm:$0xf] }
 0x50c   : > { %3377 = vmatpush.bf16.msrb.mxu0 %v4559_v56  ;;  %3391 = vmatpush.bf16.msrb.mxu1 %v4623_v59  ;;  %v4662_v56 = vld [vmem:[#allocation10 + $0x110] sm:$0xf] }
 0x50d   : > { %3405 = vmatpush.bf16.msrb.mxu2 %v4687_v13  ;;  %v4663_v59 = vor.u32 %v5019_v58, %v4662_v56  ;;  %v4624_v13 = vld [vmem:[#allocation10 + $0xc8] sm:$0xf0] }
 0x50e   : > { %2924 = vmatmul.bf16.vlgmr.msra.gmra.mxu0 %v2464_v19  ;;  %2938 = vmatmul.bf16.vlgmr.msra.gmra.mxu1 %v2465_v20  ;;  %v4688_v56 = vld [vmem:[#allocation10 + $0x148] sm:$0xf0] }
 0x50f   : > { %2952 = vmatmul.bf16.vlgmr.msra.gmra.mxu2 %v2464_v19  ;;  %2966 = vmatmul.bf16.vlgmr.msra.gmra.mxu3 %v2465_v20  ;;  %v4758_v19 = vld [vmem:[#allocation10 + $0x1d0] sm:$0xf]  ;;  %v4599_v20 = vor.u32 %v5003_v48, %v4598_v18  ;;  %v4627_v18 = vor.u32 %v5008_v46, %v4624_v13  ;;  %v4988_v48 = vld [vmem:[#allocation10 + $0x24] sm:$0xf]  ;;  %v4691_v58 = vor.u32 %v5024_v57, %v4688_v56  ;;  %v5038_v13 = vld [vmem:[#allocation10 + $0x1b4] sm:$0xf] }
 0x510   : > { %3378 = vmatpush.bf16.msrb.mxu0 %v4551_v63  ;;  %3392 = vmatpush.bf16.msrb.mxu1 %v4615_v52  ;;  %v4759_v22 = vor.u32 %v5043_v21, %v4758_v19  ;;  %v4734_v63 = vld [vmem:[#allocation10 + $0x1a0] sm:$0xf]  ;;  %v4544_v19 = vld [vmem:[#allocation10 + $0x28] sm:$0xf0]  ;;  %v5032_v56 = vld [vmem:[#allocation10 + $0x184] sm:$0xf] }
 0x511   : > { %3406 = vmatpush.bf16.msrb.mxu2 %v4679_v27  ;;  %v4735_v52 = vor.u32 %v5037_v0, %v4734_v63  ;;  %v4547_v21 = vor.u32 %v4988_v48, %v4544_v19  ;;  %v4760_v63 = vld [vmem:[#allocation10 + $0x1d8] sm:$0xf0] }
 0x512   : > { %3418 = vmatpush.bf16.msrb.mxu3 %v4759_v22  ;;  %v4704_v22 = vld [vmem:[#allocation10 + $0x168] sm:$0xf0]  ;;  %v4763_v2 = vor.u32 %v5042_v61, %v4760_v63 }
 0x514   : > { %3379 = vmatpush.bf16.msrb.mxu0 %v4543_v4  ;;  %3393 = vmatpush.bf16.msrb.mxu1 %v4607_v5  ;;  %v4654_v4 = vld [vmem:[#allocation10 + $0x100] sm:$0xf]  ;;  %v5017_v5 = vld [vmem:[#allocation10 + $0x104] sm:$0xf0] }
 0x515   : > { %3407 = vmatpush.bf16.msrb.mxu2 %v4671_v31  ;;  %v4655_v6 = vor.u32 %v5017_v5, %v4654_v4  ;;  %v4608_v31 = vld [vmem:[#allocation10 + $0xa8] sm:$0xf0]  ;;  %v2532_v4 = vperm.slane %v5796_v53, 0 }
 0x516   : > { %3419 = vmatpush.bf16.msrb.mxu3 %v4751_v40  ;;  %v5026_v40 = vld [vmem:[#allocation10 + $0x154] sm:$0xf] }
 0x517   : > { %v4699_v28 = vor.u32 %v5026_v40, %v4696_v23  ;;  %v4728_v40 = vld [vmem:[#allocation10 + $0x198] sm:$0xf0] }
 0x518   : > { %3380 = vmatpush.bf16.msrb.mxu0 %v4535_v43  ;;  %3394 = vmatpush.bf16.msrb.mxu1 %v4599_v20  ;;  %v4552_v43 = vld [vmem:[#allocation10 + $0x38] sm:$0xf0]  ;;  %v5028_v20 = vld [vmem:[#allocation10 + $0x164] sm:$0xf] }
 0x519   : > { %3408 = vmatpush.bf16.msrb.mxu2 %v4663_v59  ;;  %v4555_v8 = vor.u32 %v4990_v7, %v4552_v43  ;;  %v4707_v27 = vor.u32 %v5028_v20, %v4704_v22  ;;  %v5002_v59 = vld [vmem:[#allocation10 + $0x94] sm:$0xf]  ;;  %v4592_v7 = vld [vmem:[#allocation10 + $0x88] sm:$0xf0]  ;;  %v5040_v43 = vld [vmem:[#allocation10 + $0x1c4] sm:$0xf] }
 0x51a   : > { %3420 = vmatpush.bf16.msrb.mxu3 %v4743_v51  ;;  %v4528_v51 = vld [vmem:[#allocation10 + $0x8] sm:$0xf0]  ;;  %v4755_v12 = vor.u32 %v5040_v43, %v4752_v44 }
 0x51c   : > { %3381 = vmatpush.bf16.msrb.mxu0 %v4527_v9  ;;  %3395 = vmatpush.bf16.msrb.mxu1 %v4591_v36  ;;  %v4726_v9 = vld [vmem:[#allocation10 + $0x190] sm:$0xf]  ;;  %v4776_v36 = vld [vmem:[#allocation10 + $0x1f8] sm:$0xf0] }
 0x51d   : > { %3409 = vmatpush.bf16.msrb.mxu2 %v4655_v6  ;;  %v4779_v37 = vor.u32 %v5046_v35, %v4776_v36  ;;  %v5000_v6 = vld [vmem:[#allocation10 + $0x84] sm:$0xf]  ;;  %v4656_v36 = vld [vmem:[#allocation10 + $0x108] sm:$0xf0] }
 0x51e   : > { %3421 = vmatpush.bf16.msrb.mxu3 %v4735_v52  ;;  %v5016_v35 = vld [vmem:[#allocation10 + $0x104] sm:$0xf] }
 0x51f   : > { %v4659_v23 = vor.u32 %v5016_v35, %v4656_v36 }
 0x520   : > { %3430 = vmatpush.bf16.msra.mxu0 %v4587_v41  ;;  %3444 = vmatpush.bf16.msra.mxu1 %v4651_v47  ;;  %v4727_v41 = vor.u32 %v5035_v11, %v4726_v9  ;;  %v5004_v47 = vld [vmem:[#allocation10 + $0xa4] sm:$0xf] }
 0x521   : > { %3458 = vmatpush.bf16.msra.mxu2 %v4715_v10  ;;  %v4611_v49 = vor.u32 %v5004_v47, %v4608_v31  ;;  %v5020_v9 = vld [vmem:[#allocation10 + $0x124] sm:$0xf]  ;;  %v4672_v10 = vld [vmem:[#allocation10 + $0x128] sm:$0xf0]  ;;  %v4731_v31 = vor.u32 %v5034_v26, %v4728_v40 }
 0x522   : > { %3422 = vmatpush.bf16.msrb.mxu3 %v4727_v41  ;;  %v4675_v46 = vor.u32 %v5020_v9, %v4672_v10  ;;  %v4744_v41 = vld [vmem:[#allocation10 + $0x1b8] sm:$0xf0] }
 0x523   : > { %v4747_v20 = vor.u32 %v5038_v13, %v4744_v41 }
 0x524   : > { %3431 = vmatpush.bf16.msra.mxu0 %v4579_v32  ;;  %3445 = vmatpush.bf16.msra.mxu1 %v4643_v55  ;;  %v4616_v32 = vld [vmem:[#allocation10 + $0xb8] sm:$0xf0]  ;;  %v4531_v55 = vor.u32 %v4984_v54, %v4528_v51 }
 0x525   : > { %v4619_v34 = vor.u32 %v5006_v30, %v4616_v32  ;;  %3459 = vmatpush.bf16.msra.mxu2 %v4707_v27  ;;  %v5036_v27 = vld [vmem:[#allocation10 + $0x1a4] sm:$0xf]  ;;  %v4667_v32 = vor.u32 %v5018_v24, %v4664_v25 }
 0x526   : > { %3423 = vmatpush.bf16.msrb.mxu3 %v4719_v29 }
 0x528   : > { %3432 = vmatpush.bf16.msra.mxu0 %v4571_v33  ;;  %3446 = vmatpush.bf16.msra.mxu1 %v4635_v1  ;;  %v4768_v33 = vld [vmem:[#allocation10 + $0x1e8] sm:$0xf0]  ;;  %v4680_v1 = vld [vmem:[#allocation10 + $0x138] sm:$0xf0] }
 0x529   : > { %3460 = vmatpush.bf16.msra.mxu2 %v4699_v28  ;;  %v4771_v50 = vor.u32 %v5044_v45, %v4768_v33  ;;  %v4683_v5 = vor.u32 %v5022_v3, %v4680_v1  ;;  %v2535_v3 = vperm.slane %v5796_v53, 3 }
 0x52a   : > { %3472 = vmatpush.bf16.msra.mxu3 %v4779_v37 }
 0x52c   : > { %3433 = vmatpush.bf16.msra.mxu0 %v4563_v62  ;;  %3447 = vmatpush.bf16.msra.mxu1 %v4627_v18  ;;  %v4603_v62 = vor.u32 %v5002_v59, %v4600_v60  ;;  %v2533_v18 = vperm.slane %v5796_v53, 1 }
 0x52d   : > { %3461 = vmatpush.bf16.msra.mxu2 %v4691_v58  ;;  %v4720_v58 = vld [vmem:[#allocation10 + $0x188] sm:$0xf0] }
 0x52e   : > { %3473 = vmatpush.bf16.msra.mxu3 %v4771_v50  ;;  %v4723_v60 = vor.u32 %v5032_v56, %v4720_v58 }
 0x530   : > { %3434 = vmatpush.bf16.msra.mxu0 %v4555_v8  ;;  %3448 = vmatpush.bf16.msra.mxu1 %v4619_v34  ;;  %v4595_v8 = vor.u32 %v5000_v6, %v4592_v7  ;;  %v4736_v34 = vld [vmem:[#allocation10 + $0x1a8] sm:$0xf0] }
 0x531   : > { %3462 = vmatpush.bf16.msra.mxu2 %v4683_v5  ;;  %v4739_v37 = vor.u32 %v5036_v27, %v4736_v34  ;;  %v3048_v27 = vld [vmem:[%s5845_s12] sm:$0x3] }
 0x532   : > { %3474 = vmatpush.bf16.msra.mxu3 %v4763_v2 }
 0x534   : > { %3435 = vmatpush.bf16.msra.mxu0 %v4547_v21  ;;  %3449 = vmatpush.bf16.msra.mxu1 %v4611_v49 }
 0x535   : > { %3463 = vmatpush.bf16.msra.mxu2 %v4675_v46 }
 0x536   : > { %3475 = vmatpush.bf16.msra.mxu3 %v4755_v12 }
 0x538   : > { %3436 = vmatpush.bf16.msra.mxu0 %v4539_v42  ;;  %3450 = vmatpush.bf16.msra.mxu1 %v4603_v62 }
 0x539   : > { %3464 = vmatpush.bf16.msra.mxu2 %v4667_v32  ;;  %v3051_v32 = vperm.slane %v3048_v27, 1 }
 0x53a   : > { %3476 = vmatpush.bf16.msra.mxu3 %v4747_v20 }
 0x53c   : > { %3437 = vmatpush.bf16.msra.mxu0 %v4531_v55  ;;  %3451 = vmatpush.bf16.msra.mxu1 %v4595_v8  ;;  %v2534_v55 = vperm.slane %v5796_v53, 2 }
 0x53d   : > { %3465 = vmatpush.bf16.msra.mxu2 %v4659_v23 }
 0x53e   : > { %3477 = vmatpush.bf16.msra.mxu3 %v4739_v37 }
 0x542   : > { %3478 = vmatpush.bf16.msra.mxu3 %v4731_v31 }
 0x546   : > { %3479 = vmatpush.bf16.msra.mxu3 %v4723_v60 }
 0x57b   : > { %v2869_v0 = vpop.f32.mrf.mxu0  ;;  %v2883_v52 = vpop.f32.mrf.mxu1 }
 0x57c   : > { %v2870_v11 = vadd.f32 %v2869_v0, %v2532_v4 }
 0x57e   : > { %v2884_v29 = vadd.f32 %v2883_v52, %v2870_v11 }
 0x580   : > { %v2972_v28 = vmax.f32 %v2884_v29, 0.0  ;;  %v3050_v29 = vperm.slane %v3048_v27, 0 }
 0x582   : > { %v2897_v48 = vpop.f32.mrf.mxu2  ;;  %v2911_v19 = vpop.f32.mrf.mxu3 }
 0x583   : > { %v2871_v21 = vpop.f32.mrf.mxu0  ;;  %v2885_v22 = vpop.f32.mrf.mxu1  ;;  %v2898_v42 = vadd.f32 %v2897_v48, %v2533_v18 }
 0x584   : > { %v2872_v30 = vadd.f32 %v2871_v21, %v2532_v4 }
 0x585   : > { %v2912_v50 = vadd.f32 %v2911_v19, %v2898_v42 }
 0x586   : > { %v2886_v38 = vadd.f32 %v2885_v22, %v2872_v30 }
 0x587   : > { %v2973_v61 = vmax.f32 %v2912_v50, 0.0 }
 0x588   : > { %v2976_v47 = vmax.f32 %v2886_v38, 0.0 }
 0x58a   : > { %v2980_v45 = vpack.c.bf16 %v2976_v47, %v2972_v28  ;;  %v2899_v49 = vpop.f32.mrf.mxu2  ;;  %v2913_v33 = vpop.f32.mrf.mxu3 }
 0x58b   : > { %v2900_v54 = vadd.f32 %v2899_v49, %v2533_v18  ;;  %v2925_v51 = vpop.f32.mrf.mxu0  ;;  %v2939_v57 = vpop.f32.mrf.mxu1 }
 0x58c   : > { %3382 = vmatmul.bf16.vlgmr.msrb.gmra.mxu0 %v2980_v45  ;;  %v2926_v63 = vadd.f32 %v2925_v51, %v2534_v55 }
 0x58d   : > { %v2914_v59 = vadd.f32 %v2913_v33, %v2900_v54 }
 0x58e   : > { %v2940_v4 = vadd.f32 %v2939_v57, %v2926_v63 }
 0x58f   : > { %v2977_v62 = vmax.f32 %v2914_v59, 0.0 }
 0x590   : > { %v2974_v8 = vmax.f32 %v2940_v4, 0.0 }
 0x591   : > { %v2981_v0 = vpack.c.bf16 %v2977_v62, %v2973_v61 }
 0x592   : > { %v2953_v52 = vpop.f32.mrf.mxu2  ;;  %v2967_v2 = vpop.f32.mrf.mxu3 }
 0x593   : > { %3396 = vmatmul.bf16.vlgmr.msrb.gmra.mxu1 %v2981_v0  ;;  %v2927_v1 = vpop.f32.mrf.mxu0  ;;  %v2941_v6 = vpop.f32.mrf.mxu1  ;;  %v2954_v43 = vadd.f32 %v2953_v52, %v2535_v3 }
 0x594   : > { %v2928_v5 = vadd.f32 %v2927_v1, %v2534_v55 }
 0x595   : > { %v2968_v10 = vadd.f32 %v2967_v2, %v2954_v43 }
 0x596   : > { %v2942_v7 = vadd.f32 %v2941_v6, %v2928_v5 }
 0x597   : > { %v2975_v41 = vmax.f32 %v2968_v10, 0.0 }
 0x598   : > { %v2978_v44 = vmax.f32 %v2942_v7, 0.0 }
 0x59a   : > { %v2982_v12 = vpack.c.bf16 %v2978_v44, %v2974_v8  ;;  %v2955_v9 = vpop.f32.mrf.mxu2  ;;  %v2969_v46 = vpop.f32.mrf.mxu3 }
 0x59b   : > { %v2956_v11 = vadd.f32 %v2955_v9, %v2535_v3 }
 0x59c   : > { %3410 = vmatmul.bf16.vlgmr.msrb.gmra.mxu2 %v2982_v12  ;;  %3438 = vmatmul.bf16.vlgmr.msra.gmra.mxu0 %v2980_v45 }
 0x59d   : > { %v2970_v13 = vadd.f32 %v2969_v46, %v2956_v11 }
 0x59f   : > { %v2979_v18 = vmax.f32 %v2970_v13, 0.0 }
 0x5a1   : > { %v2983_v53 = vpack.c.bf16 %v2979_v18, %v2975_v41 }
 0x5a3   : > { %3424 = vmatmul.bf16.vlgmr.msrb.gmra.mxu3 %v2983_v53  ;;  %3452 = vmatmul.bf16.vlgmr.msra.gmra.mxu1 %v2981_v0 }
 0x5ac   : > { %3466 = vmatmul.bf16.vlgmr.msra.gmra.mxu2 %v2982_v12 }
 0x5b3   : > { %3480 = vmatmul.bf16.vlgmr.msra.gmra.mxu3 %v2983_v53 }
 0x609   : > { %v3383_v48 = vpop.f32.mrf.mxu0 }
 0x60a   : > { %v3384_v36 = vadd.f32 %v3383_v48, %v3050_v29 }
 0x610   : > { %v3397_v19 = vpop.f32.mrf.mxu1 }
 0x611   : > { %v3385_v21 = vpop.f32.mrf.mxu0  ;;  %v3398_v38 = vadd.f32 %v3397_v19, %v3384_v36 }
 0x612   : > { %v3386_v45 = vadd.f32 %v3385_v21, %v3050_v29 }
 0x618   : > { %v3399_v22 = vpop.f32.mrf.mxu1 }
 0x619   : > { %v3439_v30 = vpop.f32.mrf.mxu0  ;;  %v3400_v50 = vadd.f32 %v3399_v22, %v3386_v45 }
 0x61a   : > { %v3440_v26 = vadd.f32 %v3439_v30, %v3051_v32 }
 0x61f   : > { %v3411_v20 = vpop.f32.mrf.mxu2 }
 0x620   : > { %v3453_v34 = vpop.f32.mrf.mxu1  ;;  %v3412_v40 = vadd.f32 %v3411_v20, %v3398_v38  ;;  %v3540_v20 = vld [vmem:[%s5846_s13] sm:$0x3] }
 0x621   : > { %v3454_v42 = vadd.f32 %v3453_v34, %v3440_v26  ;;  %v3441_v47 = vpop.f32.mrf.mxu0  ;;  %v3542_v27 = vperm.slane %v3540_v20, 0  ;;  %v3543_v29 = vperm.slane %v3540_v20, 1 }
 0x622   : > { %v3442_v54 = vadd.f32 %v3441_v47, %v3051_v32 }
 0x626   : > { %v3425_v24 = vpop.f32.mrf.mxu3 }
 0x627   : > { %v3413_v25 = vpop.f32.mrf.mxu2  ;;  %v3426_v23 = vadd.f32 %v3425_v24, %v3412_v40  ;;  %v3550_v24 = vld [vmem:[%s5862_s17] sm:$0x3] }
 0x628   : > { %v3455_v33 = vpop.f32.mrf.mxu1  ;;  %v3414_v56 = vadd.f32 %v3413_v25, %v3400_v50  ;;  %v3552_v34 = vperm.slane %v3550_v24, 0 }
 0x629   : > { %v3486_v51 = vadd.f32 %v3426_v23, %v5781_v14  ;;  %v3456_v58 = vadd.f32 %v3455_v33, %v3442_v54 }
 0x62e   : > { %v3427_v35 = vpop.f32.mrf.mxu3 }
 0x62f   : > { %v3467_v37 = vpop.f32.mrf.mxu2  ;;  %v3428_v60 = vadd.f32 %v3427_v35, %v3414_v56  ;;  %v3553_v35 = vperm.slane %v3550_v24, 1 }
 0x630   : > { %v3468_v28 = vadd.f32 %v3467_v37, %v3454_v42 }
 0x631   : > { %v3488_v0 = vadd.f32 %v3428_v60, %v5783_v15 }
 0x636   : > { %v3481_v31 = vpop.f32.mrf.mxu3 }
 0x637   : > { %v3482_v49 = vadd.f32 %v3481_v31, %v3468_v28  ;;  %v3469_v55 = vpop.f32.mrf.mxu2 }
 0x638   : > { %v3470_v61 = vadd.f32 %v3469_v55, %v3456_v58 }
 0x639   : > { %v3487_v57 = vadd.f32 %v3482_v49, %v5785_v16 }
 0x63b   : > { %v3490_v59 = vadd.f32 %v3487_v57, %v3486_v51 }
 0x63d   : > { %3491 = vadd.xlane.f32.xlu0 %v3490_v59 }
 0x63e   : > { %v3483_v62 = vpop.f32.mrf.mxu3 }
 0x63f   : > { %v3484_v63 = vadd.f32 %v3483_v62, %v3470_v61 }
 0x641   : > { %v3489_v52 = vadd.f32 %v3484_v63, %v5787_v17 }
 0x643   : > { %v3493_v2 = vadd.f32 %v3489_v52, %v3488_v0 }
 0x645   : > { %3494 = vadd.xlane.f32.xlu1 %v3493_v2 }
 0x6b0   : > { %v3492_v3 = vpop.xlane.xlu0 %3491 }
 0x6b1   : > { %v3496_v14 = vmul.f32 %v3492_v3, %v5739_v39 }
 0x6b3   : > { %v3498_v1 = vsub.f32 %v3486_v51, %v3496_v14  ;;  %v3499_v16 = vsub.f32 %v3487_v57, %v3496_v14 }
 0x6b5   : > { %v3502_v4 = vmul.f32 %v3498_v1, %v3498_v1  ;;  %v3503_v5 = vmul.f32 %v3499_v16, %v3499_v16 }
 0x6b7   : > { %v3506_v6 = vadd.f32 %v3503_v5, %v3502_v4 }
 0x6b8   : > { %v3495_v7 = vpop.xlane.xlu1 %3494 }
 0x6b9   : > { %v3497_v43 = vmul.f32 %v3495_v7, %v5739_v39  ;;  %3507 = vadd.xlane.f32.xlu2 %v3506_v6 }
 0x6bb   : > { %v3500_v8 = vsub.f32 %v3488_v0, %v3497_v43  ;;  %v3501_v44 = vsub.f32 %v3489_v52, %v3497_v43 }
 0x6bd   : > { %v3504_v12 = vmul.f32 %v3500_v8, %v3500_v8  ;;  %v3505_v15 = vmul.f32 %v3501_v44, %v3501_v44 }
 0x6bf   : > { %v3509_v9 = vadd.f32 %v3505_v15, %v3504_v12 }
 0x6c1   : > { %3510 = vadd.xlane.f32.xlu0 %v3509_v9 }
 0x72c   : > { %v3508_v17 = vpop.xlane.xlu2 %3507 }
 0x72d   : > { %v3512_v10 = vmul.f32 %v3508_v17, %v5739_v39 }
 0x72f   : > { %v3514_v11 = vadd.f32 1e-05, %v3512_v10 }
 0x731   : > { %5152 = vrsqrt.f32 %v3514_v11  ;;  %vm3522_vm10 = vweird.f32 %v3514_v11 }
 0x734   : > { %v3511_v46 = vpop.xlane.xlu0 %3510 }
 0x735   : > { %v3513_v13 = vmul.f32 %v3511_v46, %v5739_v39 }
 0x737   : > { %v5153_v41 = vpop.eup %5152  ;;  %v3515_v18 = vadd.f32 1e-05, %v3513_v13 }
 0x738   : > { %v3517_v53 = vmul.f32 %v5153_v41, %v3514_v11  ;;  %vm3523_vm9 = vweird.f32 %v5153_v41 }
 0x739   : > { %5154 = vrsqrt.f32 %v3515_v18  ;;  %vm3524_vm11 = vmor %vm3522_vm10, %vm3523_vm9  ;;  %vm3532_vm13 = vweird.f32 %v3515_v18 }
 0x73a   : > { %v3518_v48 = vmul.f32 %v5153_v41, %v3517_v53 }
 0x73c   : > { %v3519_v19 = vmul.f32 0.5, %v3518_v48 }
 0x73e   : > { %v3520_v21 = vsub.f32 1.5, %v3519_v19 }
 0x73f   : > { %v5155_v22 = vpop.eup %5154 }
 0x740   : > { %v3521_v25 = vmul.f32 %v5153_v41, %v3520_v21  ;;  %v3527_v39 = vmul.f32 %v5155_v22, %v3515_v18  ;;  %vm3533_vm12 = vweird.f32 %v5155_v22 }
 0x741   : > { %vm3534_vm14 = vmor %vm3532_vm13, %vm3533_vm12 }
 0x742   : > { %v3525_v30 = vsel %vm3524_vm11, %v5153_v41, %v3521_v25  ;;  %v3528_v32 = vmul.f32 %v5155_v22, %v3527_v39 }
 0x743   : > { %v3536_v36 = vmul.f32 %v3525_v30, %v3498_v1  ;;  %v3537_v37 = vmul.f32 %v3525_v30, %v3499_v16 }
 0x744   : > { %v3529_v38 = vmul.f32 0.5, %v3528_v32 }
 0x745   : > { %v3546_v26 = vmul.f32 %v3542_v27, %v3536_v36  ;;  %v3547_v40 = vmul.f32 %v3543_v29, %v3537_v37 }
 0x746   : > { %v3530_v42 = vsub.f32 1.5, %v3529_v38 }
 0x747   : > { %v3556_v23 = vadd.f32 %v3552_v34, %v3546_v26  ;;  %v3557_v28 = vadd.f32 %v3553_v35, %v3547_v40 }
 0x748   : > { %v3531_v47 = vmul.f32 %v5155_v22, %v3530_v42 }
 0x749   : > { %v3560_v31 = vpack.c.bf16 %v3557_v28, %v3556_v23 }
 0x74a   : > { %v3535_v45 = vsel %vm3534_vm14, %v5155_v22, %v3531_v47 }
 0x74b   : > { %3562 = vst [vmem:[%s601_s16] sm:$0xff] %v3560_v31  ;;  %v3538_v49 = vmul.f32 %v3535_v45, %v3500_v8  ;;  %v3539_v33 = vmul.f32 %v3535_v45, %v3501_v44 }
 0x74d   : > { %v3548_v50 = vmul.f32 %v3542_v27, %v3538_v49  ;;  %v3549_v54 = vmul.f32 %v3543_v29, %v3539_v33 }
 0x74f   : > { %v3558_v51 = vadd.f32 %v3552_v34, %v3548_v50  ;;  %v3559_v57 = vadd.f32 %v3553_v35, %v3549_v54 }
 0x751   : > { %v3561_v55 = vpack.c.bf16 %v3559_v57, %v3558_v51 }
 0x753   : > { %3563 = vst [vmem:[%s601_s16 + $0x8] sm:$0xff] %v3561_v55 }
 0x754 PF: > { %s5864_s18 = sld [smem:[#allocation14_spill]] }
 0x75a   : > { %s28_s20 = sadd.s32 1, %s5864_s18   ;;  %s5865_s18 = smov %s5336_s19 }
 0x75b   : > { %p25_p8 = scmp.ge.s32.totalorder %s28_s20, 4   ;;  %s5866_s19 = smov %s5868_s9 }
 0x75d   :  { %27 = sbr.rel (!%p25_p8) target bundleno = 10 (0xa), region = 138 }
 0x762   :  { %3596 = vsyncpa [#allocation4], 1 }
 0x763   :  { %3598 = vsyncpa [#allocation4 + $0x1], 1 }
 0x764   :  { %3599 = vsyncpa [#allocation6], 1 }
 0x765   :  { %3600 = vsyncpa [#allocation9], 1 }

// kernel: encoder_forward.2
= control target key start
LH: loop header
LB: loop body
LE: loop exit
PB: predicated region body
PF: predicated region fallthrough
CT: control target
= control target key end

     0   :  { %20 = vsyncpa [#allocation4], 0  ;;  %s6552_s0 = inlined_call_operand.vmem [shape: bf16[2,16,256], index: 0, kind: input, shape index: {}]   ;;  %s6553_s1 = inlined_call_operand.vmem [shape: bf16[256,256], index: 1, kind: input, shape index: {}]   ;;  %s6554_s2 = inlined_call_operand.vmem [shape: f32[1,256], index: 2, kind: input, shape index: {}]   ;;  %s6555_s3 = inlined_call_operand.vmem [shape: bf16[256,512], index: 3, kind: input, shape index: {}]   ;;  %s6556_s4 = inlined_call_operand.vmem [shape: f32[1,512], index: 4, kind: input, shape index: {}]   ;;  %s6557_s5 = inlined_call_operand.hbm [shape: bf16[2,128,256], index: 5, kind: input, shape index: {}]   ;;  %s6558_s6 = inlined_call_operand.vmem [shape: f32[1,256], index: 6, kind: input, shape index: {}]   ;;  %s6559_s7 = inlined_call_operand.vmem [shape: f32[1,256], index: 7, kind: input, shape index: {}]   ;;  %s6560_s8 = inlined_call_operand.vmem [shape: f32[1,256], index: 8, kind: input, shape index: {}]   ;;  %s6561_s9 = inlined_call_operand.vmem [shape: bf16[256,512], index: 9, kind: input, shape index: {}]   ;;  %s6562_s10 = inlined_call_operand.vmem [shape: f32[1,512], index: 10, kind: input, shape index: {}]   ;;  %s6563_s11 = inlined_call_operand.hbm [shape: bf16[512,256], index: 11, kind: input, shape index: {}]   ;;  %s6564_s12 = inlined_call_operand.vmem [shape: f32[1,256], index: 12, kind: input, shape index: {}]   ;;  %s6565_s13 = inlined_call_operand.vmem [shape: f32[1,256], index: 13, kind: input, shape index: {}]   ;;  %s6566_s14 = inlined_call_operand.vmem [shape: f32[1,256], index: 14, kind: input, shape index: {}]   ;;  %s6567_s15 = inlined_call_operand.vmem [shape: bf16[2,16,256], index: 15, kind: output, shape index: {}]  }
   0x1   :  { %21 = vsyncpa [#allocation6], 0  ;;  %s5220_s18 = smov 0   ;;  %s5222_s19 = smov 0  }
   0x2   :  { %s5224_s20 = smov 0  }
   0x3 LB: > { %6570 = sst [smem:[#allocation9_spill]] %s5127_s19  ;;  %s3626_s21 = sadd.s32 4294967295, %s5131_s20   ;;  %s5131_s20 = sphi %s5224_s20, %s27_s20   ;;  %s5127_s19 = sphi %s5222_s19, %s6576_s19   ;;  %s5123_s18 = sphi %s5220_s18, %s6575_s18  }
   0x4   : > { %s39_s22 = sadd.s32 1, %s5127_s19  ;;  %p3628_p1 = scmp.ge.s32.totalorder %s5131_s20, 1 }
   0x5   : > { %p41_p0 = scmp.ge.s32.totalorder %s39_s22, 2  ;;  %p392_p2 = scmp.lt.s32.totalorder %s5131_s20, 3 }
   0x6   : > { %p5245_p4 = scmp.eq.s32.totalorder %s3626_s21, 0  ;;  %s415_s27 = sshll.u32 %s6557_s5, 4  ;;  %s416_s27 = int_to_ptr.hbm [resolvable:$true] %s415_s27 }
   0x7   : > { %s6578_s22 = smov (%p41_p0, %s39_s22), 0  ;;  %p5241_p3 = pnand %p3628_p1, %p392_p2 }
   0x8   : > { %6571 = sst [smem:[#allocation10_spill]] %s6578_s22  ;;  %s5133_s28 = smov [#allocation3]  }
   0x9   : > { %p4973_p5 = pneg %p5241_p3  ;;  %s417_s29 = sshll.u32 %s5133_s28, 4  ;;  %s418_s29 = int_to_ptr.vmem [resolvable:$true] %s417_s29 }
   0xa   : > { %s444_s17 = sshll.u32 %s6563_s11, 4  ;;  %s5134_s21 = smov 128   ;;  %s445_s17 = int_to_ptr.hbm [resolvable:$true] %s444_s17 }
   0xb   : > { %p4974_p6 = pnand %p5245_p4, %p4973_p5  ;;  %s5135_s22 = smov 8  }
   0xc   : > { %s5136_s19 = smov [#allocation5]   ;;  %479 = sbr.rel (%p5241_p3) target bundleno = 1856 (0x740), region = 80 }
   0xd   : > { %4976 = dma.hbm_to_vmem [thread:$0]  (!%p4974_p6), %s416_s27, 4096, %s418_s29, [#allocation4], %s5134_s21, %s5134_s21, %s5135_s22  }
   0xe   : > { %s446_s25 = sshll.u32 %s5136_s19, 4  ;;  %s447_s25 = int_to_ptr.vmem [resolvable:$true] %s446_s25 }
   0xf   : > { %4979 = dma.hbm_to_vmem [thread:$0]  (!%p4974_p6), %s445_s17, 8192, %s447_s25, [#allocation6], %s5134_s21, %s5134_s21, %s5135_s22  }
  0x11   : > { %5114 = dma.done.wait (%p5245_p4), [#allocation4], 4096  }
  0x12   : > { %5116 = vsyncadd (%p5245_p4), [#allocation4], 4294963200 }
  0x13   : > { %5118 = dma.done.wait (%p5245_p4), [#allocation6], 8192  }
  0x14   : > { %5120 = vsyncadd (%p5245_p4), [#allocation6], 4294959104  ;;  %v3761_v0 = vld [vmem:[%s6555_s3 + $0xe0] sm:$0xf]  ;;  %v4733_v1 = vld [vmem:[%s6555_s3 + $0xec] sm:$0xf0] }
  0x15   : > { %v3889_v2 = vld [vmem:[%s6555_s3 + $0x1e0] sm:$0xf]  ;;  %v3762_v3 = vor.u32 %v4733_v1, %v3761_v0  ;;  %v4765_v4 = vld [vmem:[%s6555_s3 + $0x1ec] sm:$0xf0]  ;;  %v4731_v5 = vld [vmem:[%s6555_s3 + $0xe4] sm:$0xf] }
  0x16   : > { %v3763_v6 = vld [vmem:[%s6555_s3 + $0xf0] sm:$0xf0]  ;;  %v3890_v7 = vor.u32 %v4765_v4, %v3889_v2  ;;  %v4763_v9 = vld [vmem:[%s6555_s3 + $0x1e4] sm:$0xf]  ;;  %v3745_v11 = vld [vmem:[%s6555_s3 + $0xc0] sm:$0xf] }
  0x17   : > { %v3766_v8 = vor.u32 %v4731_v5, %v3763_v6  ;;  %v3891_v10 = vld [vmem:[%s6555_s3 + $0x1f0] sm:$0xf0]  ;;  %965 = vmatpush.bf16.msra.mxu0 %v3762_v3  ;;  %v4729_v13 = vld [vmem:[%s6555_s3 + $0xcc] sm:$0xf0]  ;;  %v3873_v14 = vld [vmem:[%s6555_s3 + $0x1c0] sm:$0xf] }
  0x18   : > { %v3894_v12 = vor.u32 %v4763_v9, %v3891_v10  ;;  %v4761_v15 = vld [vmem:[%s6555_s3 + $0x1cc] sm:$0xf0]  ;;  %979 = vmatpush.bf16.msra.mxu1 %v3890_v7  ;;  %v3746_v16 = vor.u32 %v4729_v13, %v3745_v11  ;;  %v4727_v18 = vld [vmem:[%s6555_s3 + $0xc4] sm:$0xf]  ;;  %v3747_v19 = vld [vmem:[%s6555_s3 + $0xd0] sm:$0xf0] }
  0x19   : > { %993 = vmatpush.bf16.msra.mxu2 %v3766_v8  ;;  %v3874_v17 = vor.u32 %v4761_v15, %v3873_v14  ;;  %v4759_v20 = vld [vmem:[%s6555_s3 + $0x1c4] sm:$0xf]  ;;  %v3750_v21 = vor.u32 %v4727_v18, %v3747_v19  ;;  %v3875_v22 = vld [vmem:[%s6555_s3 + $0x1d0] sm:$0xf0]  ;;  %v3729_v23 = vld [vmem:[%s6555_s3 + $0xa0] sm:$0xf] }
  0x1a   : > { %1007 = vmatpush.bf16.msra.mxu3 %v3894_v12  ;;  %v4725_v24 = vld [vmem:[%s6555_s3 + $0xac] sm:$0xf0]  ;;  %v3878_v25 = vor.u32 %v4759_v20, %v3875_v22  ;;  %v3857_v26 = vld [vmem:[%s6555_s3 + $0x1a0] sm:$0xf]  ;;  %v4723_v28 = vld [vmem:[%s6555_s3 + $0xa4] sm:$0xf] }
  0x1b   : > { %v4757_v27 = vld [vmem:[%s6555_s3 + $0x1ac] sm:$0xf0]  ;;  %966 = vmatpush.bf16.msra.mxu0 %v3746_v16  ;;  %v3730_v29 = vor.u32 %v4725_v24, %v3729_v23  ;;  %v3731_v30 = vld [vmem:[%s6555_s3 + $0xb0] sm:$0xf0]  ;;  %v4755_v31 = vld [vmem:[%s6555_s3 + $0x1a4] sm:$0xf] }
  0x1c   : > { %v3859_v32 = vld [vmem:[%s6555_s3 + $0x1b0] sm:$0xf0]  ;;  %980 = vmatpush.bf16.msra.mxu1 %v3874_v17  ;;  %v3858_v33 = vor.u32 %v4757_v27, %v3857_v26  ;;  %v3734_v34 = vor.u32 %v4723_v28, %v3731_v30  ;;  %v3713_v35 = vld [vmem:[%s6555_s3 + $0x80] sm:$0xf]  ;;  %v4721_v36 = vld [vmem:[%s6555_s3 + $0x8c] sm:$0xf0] }
  0x1d   : > { %994 = vmatpush.bf16.msra.mxu2 %v3750_v21  ;;  %v3841_v37 = vld [vmem:[%s6555_s3 + $0x180] sm:$0xf]  ;;  %v3862_v38 = vor.u32 %v4755_v31, %v3859_v32  ;;  %v4753_v39 = vld [vmem:[%s6555_s3 + $0x18c] sm:$0xf0]  ;;  %v4719_v40 = vld [vmem:[%s6555_s3 + $0x84] sm:$0xf]  ;;  %v3714_v44 = vor.u32 %v4721_v36, %v3713_v35 }
  0x1e   : > { %1008 = vmatpush.bf16.msra.mxu3 %v3878_v25  ;;  %v3715_v41 = vld [vmem:[%s6555_s3 + $0x90] sm:$0xf0]  ;;  %v4751_v42 = vld [vmem:[%s6555_s3 + $0x184] sm:$0xf]  ;;  %v3842_v45 = vor.u32 %v4753_v39, %v3841_v37  ;;  %v3697_v47 = vld [vmem:[%s6555_s3 + $0x60] sm:$0xf] }
  0x1f   : > { %v3843_v43 = vld [vmem:[%s6555_s3 + $0x190] sm:$0xf0]  ;;  %967 = vmatpush.bf16.msra.mxu0 %v3730_v29  ;;  %v3718_v46 = vor.u32 %v4719_v40, %v3715_v41  ;;  %v4717_v48 = vld [vmem:[%s6555_s3 + $0x6c] sm:$0xf0]  ;;  %v3825_v49 = vld [vmem:[%s6555_s3 + $0x160] sm:$0xf] }
  0x20   : > { %981 = vmatpush.bf16.msra.mxu1 %v3858_v33  ;;  %v3846_v50 = vor.u32 %v4751_v42, %v3843_v43  ;;  %v4749_v51 = vld [vmem:[%s6555_s3 + $0x16c] sm:$0xf0]  ;;  %v4715_v52 = vld [vmem:[%s6555_s3 + $0x64] sm:$0xf]  ;;  %v3699_v53 = vld [vmem:[%s6555_s3 + $0x70] sm:$0xf0]  ;;  %v3698_v56 = vor.u32 %v4717_v48, %v3697_v47 }
  0x21   : > { %995 = vmatpush.bf16.msra.mxu2 %v3734_v34  ;;  %v4747_v54 = vld [vmem:[%s6555_s3 + $0x164] sm:$0xf]  ;;  %v3827_v55 = vld [vmem:[%s6555_s3 + $0x170] sm:$0xf0]  ;;  %p538_p7 = scmp.lt.s32.totalorder %s5123_s18, 1  ;;  %v3826_v57 = vor.u32 %v4749_v51, %v3825_v49  ;;  %v3702_v58 = vor.u32 %v4715_v52, %v3699_v53  ;;  %vm1103_vm0 = vcmask 1047556  }
  0x22   : > { %1009 = vmatpush.bf16.msra.mxu3 %v3862_v38  ;;  %v3681_v59 = vld [vmem:[%s6555_s3 + $0x40] sm:$0xf]  ;;  %v4713_v60 = vld [vmem:[%s6555_s3 + $0x4c] sm:$0xf0]  ;;  %v3830_v62 = vor.u32 %v4747_v54, %v3827_v55  ;;  %v4711_v0 = vld [vmem:[%s6555_s3 + $0x44] sm:$0xf] }
  0x23   : > { %968 = vmatpush.bf16.msra.mxu0 %v3714_v44  ;;  %v3809_v61 = vld [vmem:[%s6555_s3 + $0x140] sm:$0xf]  ;;  %v4745_v63 = vld [vmem:[%s6555_s3 + $0x14c] sm:$0xf0]  ;;  %v3683_v1 = vld [vmem:[%s6555_s3 + $0x50] sm:$0xf0]  ;;  %v3682_v4 = vor.u32 %v4713_v60, %v3681_v59 }
  0x24   : > { %982 = vmatpush.bf16.msra.mxu1 %v3842_v45  ;;  %v4743_v2 = vld [vmem:[%s6555_s3 + $0x144] sm:$0xf]  ;;  %v3811_v3 = vld [vmem:[%s6555_s3 + $0x150] sm:$0xf0]  ;;  %s6580_s18 = smov (!%p538_p7, %s5123_s18), 1  ;;  %v3810_v5 = vor.u32 %v4745_v63, %v3809_v61  ;;  %v3686_v6 = vor.u32 %v4711_v0, %v3683_v1  ;;  %vm1951_vm1 = vcmask 130048  }
  0x25   : > { %996 = vmatpush.bf16.msra.mxu2 %v3718_v46  ;;  %v3665_v7 = vld [vmem:[%s6555_s3 + $0x20] sm:$0xf]  ;;  %v4709_v8 = vld [vmem:[%s6555_s3 + $0x2c] sm:$0xf0]  ;;  %v3814_v10 = vor.u32 %v4743_v2, %v3811_v3  ;;  %v4707_v12 = vld [vmem:[%s6555_s3 + $0x24] sm:$0xf] }
  0x26   : > { %1010 = vmatpush.bf16.msra.mxu3 %v3846_v50  ;;  %v3793_v9 = vld [vmem:[%s6555_s3 + $0x120] sm:$0xf]  ;;  %v4741_v11 = vld [vmem:[%s6555_s3 + $0x12c] sm:$0xf0]  ;;  %v3667_v13 = vld [vmem:[%s6555_s3 + $0x30] sm:$0xf0]  ;;  %v3666_v16 = vor.u32 %v4709_v8, %v3665_v7 }
  0x27   : > { %969 = vmatpush.bf16.msra.mxu0 %v3698_v56  ;;  %v4739_v14 = vld [vmem:[%s6555_s3 + $0x124] sm:$0xf]  ;;  %v3795_v15 = vld [vmem:[%s6555_s3 + $0x130] sm:$0xf0]  ;;  %s6569_s16 = sshll.u32 %s6580_s18, 4  ;;  %v3794_v20 = vor.u32 %v4741_v11, %v3793_v9  ;;  %v3670_v21 = vor.u32 %v4707_v12, %v3667_v13  ;;  %s6574_s30 = sshll.u32 %s6580_s18, 4 }
  0x28   : > { %983 = vmatpush.bf16.msra.mxu1 %v3826_v57  ;;  %v3649_v17 = vld [vmem:[%s6555_s3] sm:$0xf]  ;;  %v4705_v18 = vld [vmem:[%s6555_s3 + $0xc] sm:$0xf0]  ;;  %v4703_v23 = vld [vmem:[%s6555_s3 + $0x4] sm:$0xf]  ;;  %v3798_v25 = vor.u32 %v4739_v14, %v3795_v15  ;;  %s5476_s23 = scalar_lea.vmem %s6552_s0, %s6569_s16  ;;  %s552_s16 = scalar_lea.vmem %s6567_s15, %s6574_s30 }
  0x29   : > { %997 = vmatpush.bf16.msra.mxu2 %v3702_v58  ;;  %v3777_v19 = vld [vmem:[%s6555_s3 + $0x100] sm:$0xf]  ;;  %v4737_v22 = vld [vmem:[%s6555_s3 + $0x10c] sm:$0xf0]  ;;  %v3651_v24 = vld [vmem:[%s6555_s3 + $0x10] sm:$0xf0]  ;;  %v3650_v32 = vor.u32 %v4705_v18, %v3649_v17 }
  0x2a   : > { %1011 = vmatpush.bf16.msra.mxu3 %v3830_v62  ;;  %v4735_v26 = vld [vmem:[%s6555_s3 + $0x104] sm:$0xf]  ;;  %v3779_v27 = vld [vmem:[%s6555_s3 + $0x110] sm:$0xf0]  ;;  %v3769_v28 = vld [vmem:[%s6555_s3 + $0xe8] sm:$0xf]  ;;  %v3778_v36 = vor.u32 %v4737_v22, %v3777_v19  ;;  %v3654_v37 = vor.u32 %v4703_v23, %v3651_v24 }
  0x2b   : > { %970 = vmatpush.bf16.msra.mxu0 %v3682_v4  ;;  %v4734_v29 = vld [vmem:[%s6555_s3 + $0xf4] sm:$0xf0]  ;;  %v3897_v30 = vld [vmem:[%s6555_s3 + $0x1e8] sm:$0xf]  ;;  %v4732_v33 = vld [vmem:[%s6555_s3 + $0xec] sm:$0xf]  ;;  %v3782_v41 = vor.u32 %v4735_v26, %v3779_v27 }
  0x2c   : > { %984 = vmatpush.bf16.msra.mxu1 %v3810_v5  ;;  %v4766_v31 = vld [vmem:[%s6555_s3 + $0x1f4] sm:$0xf0]  ;;  %v3771_v34 = vld [vmem:[%s6555_s3 + $0xf8] sm:$0xf0]  ;;  %v4764_v35 = vld [vmem:[%s6555_s3 + $0x1ec] sm:$0xf]  ;;  %v3770_v42 = vor.u32 %v4734_v29, %v3769_v28 }
  0x2d   : > { %998 = vmatpush.bf16.msra.mxu2 %v3686_v6  ;;  %v3899_v38 = vld [vmem:[%s6555_s3 + $0x1f8] sm:$0xf0]  ;;  %v3641_v39 = vld [vmem:[%s5476_s23] sm:$0xf]  ;;  %v4702_v40 = vld [vmem:[%s5476_s23 + $0x4] sm:$0xf0]  ;;  %v3898_v45 = vor.u32 %v4766_v31, %v3897_v30  ;;  %v3774_v46 = vor.u32 %v4732_v33, %v3771_v34 }
  0x2e   : > { %1012 = vmatpush.bf16.msra.mxu3 %v3814_v10  ;;  %v4701_v43 = vld [vmem:[%s5476_s23 + $0x4] sm:$0xf]  ;;  %v3643_v44 = vld [vmem:[%s5476_s23 + $0x8] sm:$0xf0]  ;;  %v3753_v47 = vld [vmem:[%s6555_s3 + $0xc8] sm:$0xf]  ;;  %v3902_v50 = vor.u32 %v4764_v35, %v3899_v38  ;;  %v5521_v54 = vor.u32 %v4702_v40, %v3641_v39 }
  0x2f   : > { %971 = vmatpush.bf16.msra.mxu0 %v3666_v16  ;;  %v4730_v48 = vld [vmem:[%s6555_s3 + $0xd4] sm:$0xf0]  ;;  %v3881_v49 = vld [vmem:[%s6555_s3 + $0x1c8] sm:$0xf]  ;;  %v4728_v52 = vld [vmem:[%s6555_s3 + $0xcc] sm:$0xf]  ;;  %v5529_v57 = vor.u32 %v4701_v43, %v3643_v44 }
  0x30   : > { %985 = vmatpush.bf16.msra.mxu1 %v3794_v20  ;;  %v4762_v51 = vld [vmem:[%s6555_s3 + $0x1d4] sm:$0xf0]  ;;  %v3755_v53 = vld [vmem:[%s6555_s3 + $0xd8] sm:$0xf0]  ;;  %v4760_v55 = vld [vmem:[%s6555_s3 + $0x1cc] sm:$0xf]  ;;  %v3754_v58 = vor.u32 %v4730_v48, %v3753_v47 }
  0x31   : > { %999 = vmatpush.bf16.msra.mxu2 %v3670_v21  ;;  %v3883_v56 = vld [vmem:[%s6555_s3 + $0x1d8] sm:$0xf0]  ;;  %v3882_v59 = vor.u32 %v4762_v51, %v3881_v49  ;;  %v3758_v60 = vor.u32 %v4728_v52, %v3755_v53  ;;  %v3737_v61 = vld [vmem:[%s6555_s3 + $0xa8] sm:$0xf]  ;;  %v4726_v62 = vld [vmem:[%s6555_s3 + $0xb4] sm:$0xf0] }
  0x32   : > { %1013 = vmatpush.bf16.msra.mxu3 %v3798_v25  ;;  %v3865_v63 = vld [vmem:[%s6555_s3 + $0x1a8] sm:$0xf]  ;;  %v3886_v0 = vor.u32 %v4760_v55, %v3883_v56  ;;  %v4758_v1 = vld [vmem:[%s6555_s3 + $0x1b4] sm:$0xf0]  ;;  %v4724_v2 = vld [vmem:[%s6555_s3 + $0xac] sm:$0xf]  ;;  %v3738_v6 = vor.u32 %v4726_v62, %v3737_v61 }
  0x33   : > { %972 = vmatpush.bf16.msra.mxu0 %v3650_v32  ;;  %v3739_v3 = vld [vmem:[%s6555_s3 + $0xb8] sm:$0xf0]  ;;  %v4756_v4 = vld [vmem:[%s6555_s3 + $0x1ac] sm:$0xf]  ;;  %v3866_v7 = vor.u32 %v4758_v1, %v3865_v63  ;;  %v3721_v9 = vld [vmem:[%s6555_s3 + $0x88] sm:$0xf] }
  0x34   : > { %986 = vmatpush.bf16.msra.mxu1 %v3778_v36  ;;  %v3867_v5 = vld [vmem:[%s6555_s3 + $0x1b8] sm:$0xf0]  ;;  %v3742_v8 = vor.u32 %v4724_v2, %v3739_v3  ;;  %v4722_v10 = vld [vmem:[%s6555_s3 + $0x94] sm:$0xf0]  ;;  %v3849_v11 = vld [vmem:[%s6555_s3 + $0x188] sm:$0xf] }
  0x35   : > { %1000 = vmatpush.bf16.msra.mxu2 %v3654_v37  ;;  %v3870_v12 = vor.u32 %v4756_v4, %v3867_v5  ;;  %v4754_v13 = vld [vmem:[%s6555_s3 + $0x194] sm:$0xf0]  ;;  %v4720_v14 = vld [vmem:[%s6555_s3 + $0x8c] sm:$0xf]  ;;  %v3723_v15 = vld [vmem:[%s6555_s3 + $0x98] sm:$0xf0]  ;;  %v3722_v18 = vor.u32 %v4722_v10, %v3721_v9 }
  0x36   : > { %1014 = vmatpush.bf16.msra.mxu3 %v3782_v41  ;;  %973 = vmatmul.bf16.vlgmr.msra.gmra.mxu0 %v5521_v54  ;;  %v4752_v16 = vld [vmem:[%s6555_s3 + $0x18c] sm:$0xf]  ;;  %v3851_v17 = vld [vmem:[%s6555_s3 + $0x198] sm:$0xf0]  ;;  %v3850_v19 = vor.u32 %v4754_v13, %v3849_v11  ;;  %v3726_v20 = vor.u32 %v4720_v14, %v3723_v15  ;;  %v3705_v21 = vld [vmem:[%s6555_s3 + $0x68] sm:$0xf] }
  0x37   : > { %1021 = vmatpush.bf16.msrb.mxu0 %v3770_v42  ;;  %987 = vmatmul.bf16.vlgmr.msra.gmra.mxu1 %v5529_v57  ;;  %v4718_v22 = vld [vmem:[%s6555_s3 + $0x74] sm:$0xf0]  ;;  %v3833_v23 = vld [vmem:[%s6555_s3 + $0x168] sm:$0xf]  ;;  %v3854_v24 = vor.u32 %v4752_v16, %v3851_v17  ;;  %v4716_v26 = vld [vmem:[%s6555_s3 + $0x6c] sm:$0xf] }
  0x38   : > { %1035 = vmatpush.bf16.msrb.mxu1 %v3898_v45  ;;  %1001 = vmatmul.bf16.vlgmr.msra.gmra.mxu2 %v5521_v54  ;;  %v4750_v25 = vld [vmem:[%s6555_s3 + $0x174] sm:$0xf0]  ;;  %v3707_v27 = vld [vmem:[%s6555_s3 + $0x78] sm:$0xf0]  ;;  %v4748_v28 = vld [vmem:[%s6555_s3 + $0x16c] sm:$0xf]  ;;  %v3706_v30 = vor.u32 %v4718_v22, %v3705_v21 }
  0x39   : > { %1049 = vmatpush.bf16.msrb.mxu2 %v3774_v46  ;;  %1015 = vmatmul.bf16.vlgmr.msra.gmra.mxu3 %v5529_v57  ;;  %v3835_v29 = vld [vmem:[%s6555_s3 + $0x178] sm:$0xf0]  ;;  %v3834_v31 = vor.u32 %v4750_v25, %v3833_v23  ;;  %v3710_v32 = vor.u32 %v4716_v26, %v3707_v27  ;;  %v3689_v33 = vld [vmem:[%s6555_s3 + $0x48] sm:$0xf]  ;;  %v4714_v34 = vld [vmem:[%s6555_s3 + $0x54] sm:$0xf0] }
  0x3a   : > { %1063 = vmatpush.bf16.msrb.mxu3 %v3902_v50  ;;  %v3817_v35 = vld [vmem:[%s6555_s3 + $0x148] sm:$0xf]  ;;  %v3838_v36 = vor.u32 %v4748_v28, %v3835_v29  ;;  %v4746_v37 = vld [vmem:[%s6555_s3 + $0x154] sm:$0xf0]  ;;  %v4712_v38 = vld [vmem:[%s6555_s3 + $0x4c] sm:$0xf]  ;;  %v3690_v42 = vor.u32 %v4714_v34, %v3689_v33 }
  0x3b   : > { %1022 = vmatpush.bf16.msrb.mxu0 %v3754_v58  ;;  %v3691_v39 = vld [vmem:[%s6555_s3 + $0x58] sm:$0xf0]  ;;  %v4744_v40 = vld [vmem:[%s6555_s3 + $0x14c] sm:$0xf]  ;;  %v3818_v43 = vor.u32 %v4746_v37, %v3817_v35  ;;  %v3673_v45 = vld [vmem:[%s6555_s3 + $0x28] sm:$0xf] }
  0x3c   : > { %1036 = vmatpush.bf16.msrb.mxu1 %v3882_v59  ;;  %v3819_v41 = vld [vmem:[%s6555_s3 + $0x158] sm:$0xf0]  ;;  %v3694_v44 = vor.u32 %v4712_v38, %v3691_v39  ;;  %v4710_v46 = vld [vmem:[%s6555_s3 + $0x34] sm:$0xf0]  ;;  %v3801_v47 = vld [vmem:[%s6555_s3 + $0x128] sm:$0xf] }
  0x3d   : > { %1050 = vmatpush.bf16.msrb.mxu2 %v3758_v60  ;;  %v3822_v48 = vor.u32 %v4744_v40, %v3819_v41  ;;  %v4742_v49 = vld [vmem:[%s6555_s3 + $0x134] sm:$0xf0]  ;;  %v4708_v50 = vld [vmem:[%s6555_s3 + $0x2c] sm:$0xf]  ;;  %v3675_v51 = vld [vmem:[%s6555_s3 + $0x38] sm:$0xf0]  ;;  %v3674_v55 = vor.u32 %v4710_v46, %v3673_v45 }
  0x3e   : > { %1064 = vmatpush.bf16.msrb.mxu3 %v3886_v0  ;;  %v4740_v52 = vld [vmem:[%s6555_s3 + $0x12c] sm:$0xf]  ;;  %v3803_v53 = vld [vmem:[%s6555_s3 + $0x138] sm:$0xf0]  ;;  %v3657_v56 = vld [vmem:[%s6555_s3 + $0x8] sm:$0xf]  ;;  %v3802_v59 = vor.u32 %v4742_v49, %v3801_v47  ;;  %v3678_v60 = vor.u32 %v4708_v50, %v3675_v51 }
  0x3f   : > { %1023 = vmatpush.bf16.msrb.mxu0 %v3738_v6  ;;  %v4706_v58 = vld [vmem:[%s6555_s3 + $0x14] sm:$0xf0]  ;;  %v3785_v61 = vld [vmem:[%s6555_s3 + $0x108] sm:$0xf]  ;;  %v4704_v63 = vld [vmem:[%s6555_s3 + $0xc] sm:$0xf]  ;;  %v3806_v0 = vor.u32 %v4740_v52, %v3803_v53 }
  0x40   : > { %1037 = vmatpush.bf16.msrb.mxu1 %v3866_v7  ;;  %v4738_v62 = vld [vmem:[%s6555_s3 + $0x114] sm:$0xf0]  ;;  %v3659_v1 = vld [vmem:[%s6555_s3 + $0x18] sm:$0xf0]  ;;  %v4736_v2 = vld [vmem:[%s6555_s3 + $0x10c] sm:$0xf]  ;;  %v3658_v7 = vor.u32 %v4706_v58, %v3657_v56 }
  0x41   : > { %1051 = vmatpush.bf16.msrb.mxu2 %v3742_v8  ;;  %v3787_v3 = vld [vmem:[%s6555_s3 + $0x118] sm:$0xf0]  ;;  %v3969_v4 = vld [vmem:[%s6553_s1 + $0x70] sm:$0xf]  ;;  %v4784_v5 = vld [vmem:[%s6553_s1 + $0x74] sm:$0xf0]  ;;  %v3786_v11 = vor.u32 %v4738_v62, %v3785_v61 }
  0x42   : > { %1065 = vmatpush.bf16.msrb.mxu3 %v3870_v12  ;;  %v4033_v6 = vld [vmem:[%s6553_s1 + $0xf0] sm:$0xf]  ;;  %v4800_v8 = vld [vmem:[%s6553_s1 + $0xf4] sm:$0xf0]  ;;  %v4783_v9 = vld [vmem:[%s6553_s1 + $0x74] sm:$0xf]  ;;  %v3662_v12 = vor.u32 %v4704_v63, %v3659_v1  ;;  %v3790_v15 = vor.u32 %v4736_v2, %v3787_v3  ;;  %v3970_v16 = vor.u32 %v4784_v5, %v3969_v4 }
  0x43   : > { %1024 = vmatpush.bf16.msrb.mxu0 %v3722_v18  ;;  %v3971_v10 = vld [vmem:[%s6553_s1 + $0x78] sm:$0xf0]  ;;  %v4799_v13 = vld [vmem:[%s6553_s1 + $0xf4] sm:$0xf]  ;;  %v4034_v17 = vor.u32 %v4800_v8, %v4033_v6  ;;  %v4025_v21 = vld [vmem:[%s6553_s1 + $0xe0] sm:$0xf] }
  0x44   : > { %1038 = vmatpush.bf16.msrb.mxu1 %v3850_v19  ;;  %v4035_v14 = vld [vmem:[%s6553_s1 + $0xf8] sm:$0xf0]  ;;  %v3974_v18 = vor.u32 %v4783_v9, %v3971_v10  ;;  %v3961_v19 = vld [vmem:[%s6553_s1 + $0x60] sm:$0xf]  ;;  %v4798_v23 = vld [vmem:[%s6553_s1 + $0xe4] sm:$0xf0] }
  0x45   : > { %1052 = vmatpush.bf16.msrb.mxu2 %v3726_v20  ;;  %v4782_v20 = vld [vmem:[%s6553_s1 + $0x64] sm:$0xf0]  ;;  %v4038_v22 = vor.u32 %v4799_v13, %v4035_v14  ;;  %v3963_v25 = vld [vmem:[%s6553_s1 + $0x68] sm:$0xf0]  ;;  %v4797_v26 = vld [vmem:[%s6553_s1 + $0xe4] sm:$0xf]  ;;  %v4026_v29 = vor.u32 %v4798_v23, %v4025_v21 }
  0x46   : > { %1066 = vmatpush.bf16.msrb.mxu3 %v3854_v24  ;;  %v4781_v24 = vld [vmem:[%s6553_s1 + $0x64] sm:$0xf]  ;;  %v4027_v27 = vld [vmem:[%s6553_s1 + $0xe8] sm:$0xf0]  ;;  %v3962_v28 = vor.u32 %v4782_v20, %v3961_v19  ;;  %v4017_v33 = vld [vmem:[%s6553_s1 + $0xd0] sm:$0xf] }
  0x47   : > { %1025 = vmatpush.bf16.msrb.mxu0 %v3706_v30  ;;  %v3966_v30 = vor.u32 %v4781_v24, %v3963_v25  ;;  %v4030_v34 = vor.u32 %v4797_v26, %v4027_v27  ;;  %v4796_v35 = vld [vmem:[%s6553_s1 + $0xd4] sm:$0xf0]  ;;  %v3955_v37 = vld [vmem:[%s6553_s1 + $0x58] sm:$0xf0]  ;;  %v4795_v38 = vld [vmem:[%s6553_s1 + $0xd4] sm:$0xf] }
  0x48   : > { %1039 = vmatpush.bf16.msrb.mxu1 %v3834_v31  ;;  %v3953_v31 = vld [vmem:[%s6553_s1 + $0x50] sm:$0xf]  ;;  %v4019_v39 = vld [vmem:[%s6553_s1 + $0xd8] sm:$0xf0]  ;;  %v4018_v41 = vor.u32 %v4796_v35, %v4017_v33  ;;  %v4777_v46 = vld [vmem:[%s6553_s1 + $0x44] sm:$0xf] }
  0x49   : > { %1053 = vmatpush.bf16.msrb.mxu2 %v3710_v32  ;;  %v4780_v32 = vld [vmem:[%s6553_s1 + $0x54] sm:$0xf0]  ;;  %v4022_v45 = vor.u32 %v4795_v38, %v4019_v39  ;;  %v3947_v47 = vld [vmem:[%s6553_s1 + $0x48] sm:$0xf0]  ;;  %v3937_v53 = vld [vmem:[%s6553_s1 + $0x30] sm:$0xf] }
  0x4a   : > { %1067 = vmatpush.bf16.msrb.mxu3 %v3838_v36  ;;  %v4779_v36 = vld [vmem:[%s6553_s1 + $0x54] sm:$0xf]  ;;  %v3954_v40 = vor.u32 %v4780_v32, %v3953_v31  ;;  %v4011_v49 = vld [vmem:[%s6553_s1 + $0xc8] sm:$0xf0]  ;;  %v3950_v52 = vor.u32 %v4777_v46, %v3947_v47  ;;  %v4001_v56 = vld [vmem:[%s6553_s1 + $0xb0] sm:$0xf] }
  0x4b   : > { %1026 = vmatpush.bf16.msrb.mxu0 %v3690_v42  ;;  %v3958_v42 = vor.u32 %v4779_v36, %v3955_v37  ;;  %v3939_v61 = vld [vmem:[%s6553_s1 + $0x38] sm:$0xf0]  ;;  %v4791_v62 = vld [vmem:[%s6553_s1 + $0xb4] sm:$0xf]  ;;  %v3929_v3 = vld [vmem:[%s6553_s1 + $0x20] sm:$0xf] }
  0x4c   : > { %1040 = vmatpush.bf16.msrb.mxu1 %v3818_v43  ;;  %v4778_v43 = vld [vmem:[%s6553_s1 + $0x44] sm:$0xf0]  ;;  %v4003_v63 = vld [vmem:[%s6553_s1 + $0xb8] sm:$0xf0]  ;;  %v3993_v5 = vld [vmem:[%s6553_s1 + $0xa0] sm:$0xf] }
  0x4d   : > { %1054 = vmatpush.bf16.msrb.mxu2 %v3694_v44  ;;  %v4009_v44 = vld [vmem:[%s6553_s1 + $0xc0] sm:$0xf]  ;;  %v4774_v4 = vld [vmem:[%s6553_s1 + $0x24] sm:$0xf0]  ;;  %v4006_v6 = vor.u32 %v4791_v62, %v4003_v63  ;;  %v4773_v8 = vld [vmem:[%s6553_s1 + $0x24] sm:$0xf] }
  0x4e   : > { %1068 = vmatpush.bf16.msrb.mxu3 %v3822_v48  ;;  %v4793_v48 = vld [vmem:[%s6553_s1 + $0xc4] sm:$0xf]  ;;  %v3931_v9 = vld [vmem:[%s6553_s1 + $0x28] sm:$0xf0]  ;;  %v4788_v19 = vld [vmem:[%s6553_s1 + $0x94] sm:$0xf0] }
  0x4f   : > { %1027 = vmatpush.bf16.msrb.mxu0 %v3674_v55  ;;  %v4776_v55 = vld [vmem:[%s6553_s1 + $0x34] sm:$0xf0]  ;;  %v4014_v58 = vor.u32 %v4793_v48, %v4011_v49  ;;  %v4789_v10 = vld [vmem:[%s6553_s1 + $0xa4] sm:$0xf]  ;;  %v3934_v14 = vor.u32 %v4773_v8, %v3931_v9  ;;  %v4771_v20 = vld [vmem:[%s6553_s1 + $0x14] sm:$0xf] }
  0x50   : > { %1041 = vmatpush.bf16.msrb.mxu1 %v3802_v59  ;;  %v4792_v59 = vld [vmem:[%s6553_s1 + $0xb4] sm:$0xf0]  ;;  %v3923_v21 = vld [vmem:[%s6553_s1 + $0x18] sm:$0xf0]  ;;  %v3913_v27 = vld [vmem:[%s6553_s1] sm:$0xf] }
  0x51   : > { %1055 = vmatpush.bf16.msrb.mxu2 %v3678_v60  ;;  %v4775_v60 = vld [vmem:[%s6553_s1 + $0x34] sm:$0xf]  ;;  %v4002_v1 = vor.u32 %v4792_v59, %v4001_v56  ;;  %v3987_v23 = vld [vmem:[%s6553_s1 + $0x98] sm:$0xf0]  ;;  %v3926_v26 = vor.u32 %v4771_v20, %v3923_v21  ;;  %v4786_v31 = vld [vmem:[%s6553_s1 + $0x84] sm:$0xf0] }
  0x52   : > { %1069 = vmatpush.bf16.msrb.mxu3 %v3806_v0  ;;  %v3938_v0 = vor.u32 %v4776_v55, %v3937_v53  ;;  %v3942_v2 = vor.u32 %v4775_v60, %v3939_v61  ;;  %v4769_v32 = vld [vmem:[%s6553_s1 + $0x4] sm:$0xf]  ;;  %v3915_v33 = vld [vmem:[%s6553_s1 + $0x8] sm:$0xf0]  ;;  %v3905_v37 = vld [vmem:[%s5476_s23] sm:$0xf] }
  0x53   : > { %1028 = vmatpush.bf16.msrb.mxu0 %v3658_v7  ;;  %v4790_v7 = vld [vmem:[%s6553_s1 + $0xa4] sm:$0xf0]  ;;  %v3979_v35 = vld [vmem:[%s6553_s1 + $0x88] sm:$0xf0]  ;;  %v5137_v56 = vmov 1983009808  }
  0x54   : > { %1042 = vmatpush.bf16.msrb.mxu1 %v3786_v11  ;;  %v3995_v11 = vld [vmem:[%s6553_s1 + $0xa8] sm:$0xf0]  ;;  %v3994_v13 = vor.u32 %v4790_v7, %v3993_v5  ;;  %v4768_v38 = vld [vmem:[%s5476_s23 + $0x4] sm:$0xf0] }
  0x55   : > { %1056 = vmatpush.bf16.msrb.mxu2 %v3662_v12  ;;  %v3930_v12 = vor.u32 %v4774_v4, %v3929_v3 }
  0x56   : > { %1070 = vmatpush.bf16.msrb.mxu3 %v3790_v15  ;;  %1029 = vmatmul.bf16.vlgmr.msrb.gmra.mxu0 %v5521_v54  ;;  %v3921_v15 = vld [vmem:[%s6553_s1 + $0x10] sm:$0xf] }
  0x57   : > { %1663 = vmatpush.bf16.msra.mxu0 %v3970_v16  ;;  %1043 = vmatmul.bf16.vlgmr.msrb.gmra.mxu1 %v5529_v57  ;;  %v4772_v16 = vld [vmem:[%s6553_s1 + $0x14] sm:$0xf0] }
  0x58   : > { %1677 = vmatpush.bf16.msra.mxu1 %v4034_v17  ;;  %1057 = vmatmul.bf16.vlgmr.msrb.gmra.mxu2 %v5521_v54  ;;  %v3945_v54 = vld [vmem:[%s6553_s1 + $0x40] sm:$0xf]  ;;  %v3985_v17 = vld [vmem:[%s6553_s1 + $0x90] sm:$0xf]  ;;  %v3922_v24 = vor.u32 %v4772_v16, %v3921_v15 }
  0x59   : > { %1691 = vmatpush.bf16.msra.mxu2 %v3974_v18  ;;  %1071 = vmatmul.bf16.vlgmr.msrb.gmra.mxu3 %v5529_v57  ;;  %v4794_v57 = vld [vmem:[%s6553_s1 + $0xc4] sm:$0xf0]  ;;  %v3946_v50 = vor.u32 %v4778_v43, %v3945_v54  ;;  %v3998_v18 = vor.u32 %v4789_v10, %v3995_v11  ;;  %v3986_v25 = vor.u32 %v4788_v19, %v3985_v17 }
  0x5a   : > { %1705 = vmatpush.bf16.msra.mxu3 %v4038_v22  ;;  %v4010_v51 = vor.u32 %v4794_v57, %v4009_v44  ;;  %v4787_v22 = vld [vmem:[%s6553_s1 + $0x94] sm:$0xf]  ;;  %v3906_v43 = vor.u32 %v4768_v38, %v3905_v37 }
  0x5b   : > { %1664 = vmatpush.bf16.msra.mxu0 %v3962_v28  ;;  %v4770_v28 = vld [vmem:[%s6553_s1 + $0x4] sm:$0xf0] }
  0x5c   : > { %1678 = vmatpush.bf16.msra.mxu1 %v4026_v29  ;;  %v3977_v29 = vld [vmem:[%s6553_s1 + $0x80] sm:$0xf]  ;;  %v3914_v36 = vor.u32 %v4770_v28, %v3913_v27 }
  0x5d   : > { %1692 = vmatpush.bf16.msra.mxu2 %v3966_v30  ;;  %v3990_v30 = vor.u32 %v4787_v22, %v3987_v23  ;;  %v3978_v39 = vor.u32 %v4786_v31, %v3977_v29 }
  0x5e   : > { %1706 = vmatpush.bf16.msra.mxu3 %v4030_v34  ;;  %v4785_v34 = vld [vmem:[%s6553_s1 + $0x84] sm:$0xf] }
  0x5f   : > { %1665 = vmatpush.bf16.msra.mxu0 %v3954_v40  ;;  %v3918_v40 = vor.u32 %v4769_v32, %v3915_v33  ;;  %v3982_v54 = vor.u32 %v4785_v34, %v3979_v35 }
  0x60   : > { %1679 = vmatpush.bf16.msra.mxu1 %v4018_v41  ;;  %v4767_v41 = vld [vmem:[%s5476_s23 + $0x4] sm:$0xf] }
  0x61   : > { %1693 = vmatpush.bf16.msra.mxu2 %v3958_v42  ;;  %v3907_v42 = vld [vmem:[%s5476_s23 + $0x8] sm:$0xf0] }
  0x62   : > { %1707 = vmatpush.bf16.msra.mxu3 %v4022_v45  ;;  %v3910_v44 = vor.u32 %v4767_v41, %v3907_v42  ;;  %v5882_v45 = vld [vmem:[%s6556_s4] sm:$0xf] }
  0x63   : > { %1666 = vmatpush.bf16.msra.mxu0 %v3946_v50  ;;  %v627_v57 = vperm.slane %v5882_v45, 0  ;;  %v628_v49 = vperm.slane %v5882_v45, 1  ;;  %v629_v41 = vperm.slane %v5882_v45, 2 }
  0x64   : > { %1680 = vmatpush.bf16.msra.mxu1 %v4010_v51 }
  0x65   : > { %1694 = vmatpush.bf16.msra.mxu2 %v3950_v52 }
  0x66   : > { %1708 = vmatpush.bf16.msra.mxu3 %v4014_v58  ;;  %v1099_v58 = vunpack.c.l.s4 %v5137_v56 }
  0x67   : > { %1667 = vmatpush.bf16.msra.mxu0 %v3938_v0 }
  0x68   : > { %1681 = vmatpush.bf16.msra.mxu1 %v4002_v1  ;;  %v5886_v1 = vunpack.c.0.s8 %v1099_v58 }
  0x69   : > { %1695 = vmatpush.bf16.msra.mxu2 %v3942_v2  ;;  %v5138_v2 = vmov 1934713408  }
  0x6a   : > { %1709 = vmatpush.bf16.msra.mxu3 %v4006_v6  ;;  %v1106_v3 = vunpack.c.l.s4 %v5138_v2 }
  0x6b   : > { %1668 = vmatpush.bf16.msra.mxu0 %v3930_v12 }
  0x6c   : > { %1682 = vmatpush.bf16.msra.mxu1 %v3994_v13  ;;  %v5889_v12 = vunpack.c.0.s8 %v1106_v3 }
  0x6d   : > { %1696 = vmatpush.bf16.msra.mxu2 %v3934_v14 }
  0x6e   : > { %1710 = vmatpush.bf16.msra.mxu3 %v3998_v18 }
  0x6f   : > { %1669 = vmatpush.bf16.msra.mxu0 %v3922_v24 }
  0x70   : > { %1683 = vmatpush.bf16.msra.mxu1 %v3986_v25 }
  0x71   : > { %1697 = vmatpush.bf16.msra.mxu2 %v3926_v26 }
  0x72   : > { %1711 = vmatpush.bf16.msra.mxu3 %v3990_v30 }
  0x73   : > { %1670 = vmatpush.bf16.msra.mxu0 %v3914_v36 }
  0x74   : > { %1684 = vmatpush.bf16.msra.mxu1 %v3978_v39 }
  0x75   : > { %1698 = vmatpush.bf16.msra.mxu2 %v3918_v40 }
  0x76   : > { %1712 = vmatpush.bf16.msra.mxu3 %v3982_v54  ;;  %1671 = vmatmul.bf16.vlgmr.msra.gmra.mxu0 %v3906_v43 }
  0x77   : > { %1685 = vmatmul.bf16.vlgmr.msra.gmra.mxu1 %v3910_v44 }
  0x78   : > { %1699 = vmatmul.bf16.vlgmr.msra.gmra.mxu2 %v3906_v43 }
  0x79   : > { %1713 = vmatmul.bf16.vlgmr.msra.gmra.mxu3 %v3910_v44 }
  0xb3   : > { %v974_v46 = vpop.f32.mrf.mxu0 }
  0xb4   : > { %v988_v47 = vpop.f32.mrf.mxu1  ;;  %v975_v48 = vadd.f32 %v974_v46, %v627_v57 }
  0xb6   : > { %v989_v52 = vadd.f32 %v988_v47, %v975_v48 }
  0xbb   : > { %v1002_v50 = vpop.f32.mrf.mxu2  ;;  %v976_v59 = vpop.f32.mrf.mxu0 }
  0xbc   : > { %v1003_v51 = vadd.f32 %v1002_v50, %v628_v49  ;;  %v1016_v53 = vpop.f32.mrf.mxu3  ;;  %v977_v61 = vadd.f32 %v976_v59, %v627_v57  ;;  %v990_v62 = vpop.f32.mrf.mxu1 }
  0xbe   : > { %v1017_v55 = vadd.f32 %v1016_v53, %v1003_v51  ;;  %v991_v8 = vadd.f32 %v990_v62, %v977_v61  ;;  %v630_v62 = vperm.slane %v5882_v45, 3 }
  0xc0   : > { %v1077_v60 = vpack.c.bf16 %v1017_v55, %v989_v52 }
  0xc2   : > { %v1083_v63 = vrot.slane %v1077_v60, 4  ;;  %v1088_v0 = vshrl.u32 %v1077_v60, 16 }
  0xc3   : > { %v1004_v4 = vpop.f32.mrf.mxu2 }
  0xc4   : > { %v1087_v5 = vpack.i.b16 %v1083_v63, %v1077_v60  ;;  %v1089_v6 = vshrl.u32 %v1083_v63, 16  ;;  %v1005_v7 = vadd.f32 %v1004_v4, %v628_v49  ;;  %v1018_v9 = vpop.f32.mrf.mxu3 }
  0xc6   : > { %v1090_v10 = vpack.i.b16 %v1089_v6, %v1088_v0  ;;  %v1101_v11 = vperm.slane %v1087_v5, %v5886_v1  ;;  %v1019_v13 = vadd.f32 %v1018_v9, %v1005_v7 }
  0xc8   : > { %v1102_v14 = vrot.slane %v1101_v11, 4  ;;  %v1108_v15 = vperm.slane %v1101_v11, %v5889_v12  ;;  %v1121_v16 = vperm.slane %v1090_v10, %v5886_v1  ;;  %v1078_v17 = vpack.c.bf16 %v1019_v13, %v991_v8 }
  0xca   : > { %v1104_v18 = vsel %vm1103_vm0, 0, %v1102_v14  ;;  %v1122_v19 = vrot.slane %v1121_v16, 4  ;;  %v1127_v20 = vperm.slane %v1121_v16, %v5889_v12  ;;  %v1113_v22 = vrot.slane %v1108_v15, 4 }
  0xcb   : > { %v1112_v21 = vperm.slane %v1104_v18, %v5889_v12  ;;  %v1084_v23 = vrot.slane %v1078_v17, 4  ;;  %v1094_v24 = vshrl.u32 %v1078_v17, 16 }
  0xcc   : > { %v1123_v25 = vsel %vm1103_vm0, 0, %v1122_v19  ;;  %v1132_v26 = vrot.slane %v1127_v20, 4  ;;  %v1114_v31 = vsel %vm1103_vm0, 0, %v1113_v22 }
  0xcd   : > { %v1115_v27 = vrot.slane %v1112_v21, 4  ;;  %v1131_v28 = vperm.slane %v1123_v25, %v5889_v12  ;;  %v1093_v29 = vpack.i.b16 %v1084_v23, %v1078_v17  ;;  %v1095_v30 = vshrl.u32 %v1084_v23, 16 }
  0xce   : > { %v1133_v38 = vsel %vm1103_vm0, 0, %v1132_v26 }
  0xcf   : > { %v1116_v32 = vsel %vm1103_vm0, 0, %v1115_v27  ;;  %v1134_v33 = vrot.slane %v1131_v28, 4  ;;  %v1096_v34 = vpack.i.b16 %v1095_v30, %v1094_v24  ;;  %v1174_v35 = vsel %vm1103_vm0, %v1115_v27, %v1108_v15 }
  0xd0   : > { %v1179_v36 = vrot.slane %v1116_v32, 4  ;;  %v1140_v37 = vperm.slane %v1093_v29, %v5886_v1  ;;  %v1178_v57 = vperm.slane %v1174_v35, %v5886_v1 }
  0xd1   : > { %v1135_v39 = vsel %vm1103_vm0, 0, %v1134_v33  ;;  %v1159_v40 = vperm.slane %v1096_v34, %v5886_v1  ;;  %v1191_v54 = vsel %vm1103_vm0, %v1134_v33, %v1127_v20 }
  0xd2   : > { %v1180_v42 = vsel %vm1103_vm0, %v1179_v36, %v1114_v31  ;;  %v1196_v43 = vrot.slane %v1135_v39, 4  ;;  %v1141_v44 = vrot.slane %v1140_v37, 4  ;;  %v1146_v47 = vperm.slane %v1140_v37, %v5889_v12 }
  0xd3   : > { %v1184_v46 = vperm.slane %v1180_v42, %v5886_v1  ;;  %v1160_v48 = vrot.slane %v1159_v40, 4  ;;  %v1165_v51 = vperm.slane %v1159_v40, %v5889_v12  ;;  %v1030_v52 = vpop.f32.mrf.mxu0  ;;  %v1195_v55 = vperm.slane %v1191_v54, %v5886_v1 }
  0xd4   : > { %v1197_v49 = vsel %vm1103_vm0, %v1196_v43, %v1133_v38  ;;  %v1142_v50 = vsel %vm1103_vm0, 0, %v1141_v44  ;;  %v1044_v59 = vpop.f32.mrf.mxu1  ;;  %v1151_v60 = vrot.slane %v1146_v47, 4  ;;  %v1031_v3 = vadd.f32 %v1030_v52, %v629_v41 }
  0xd5   : > { %v1185_v53 = vrot.slane %v1184_v46, 4  ;;  %v1201_v56 = vperm.slane %v1197_v49, %v5886_v1  ;;  %v1150_v58 = vperm.slane %v1142_v50, %v5889_v12  ;;  %v1161_v61 = vsel %vm1103_vm0, 0, %v1160_v48 }
  0xd6   : > { %v1169_v5 = vperm.slane %v1161_v61, %v5889_v12  ;;  %v1170_v6 = vrot.slane %v1165_v51, 4  ;;  %v1152_v45 = vsel %vm1103_vm0, 0, %v1151_v60  ;;  %v1045_v18 = vadd.f32 %v1044_v59, %v1031_v3 }
  0xd7   : > { %v1186_v63 = vsel %vm1103_vm0, %v1185_v53, %v1178_v57  ;;  %v1202_v0 = vrot.slane %v1201_v56, 4  ;;  %v1153_v2 = vrot.slane %v1150_v58, 4 }
  0xd8   : > { %v1190_v4 = vperm.slane %v1186_v63, %v5889_v12  ;;  %v1172_v13 = vrot.slane %v1169_v5, 4  ;;  %v1171_v21 = vsel %vm1103_vm0, 0, %v1170_v6 }
  0xd9   : > { %v1203_v7 = vsel %vm1103_vm0, %v1202_v0, %v1195_v55  ;;  %v1154_v8 = vsel %vm1103_vm0, 0, %v1153_v2  ;;  %v1208_v15 = vsel %vm1103_vm0, %v1153_v2, %v1146_v47 }
  0xda   : > { %v1207_v10 = vperm.slane %v1203_v7, %v5889_v12  ;;  %v1246_v11 = vshrl.u32 %v1190_v4, 16  ;;  %v1213_v16 = vrot.slane %v1154_v8, 4  ;;  %v1173_v22 = vsel %vm1103_vm0, 0, %v1172_v13 }
  0xdb   : > { %v1058_v9 = vpop.f32.mrf.mxu2  ;;  %v1032_v23 = vpop.f32.mrf.mxu0  ;;  %v1225_v25 = vsel %vm1103_vm0, %v1172_v13, %v1165_v51  ;;  %v1230_v26 = vrot.slane %v1173_v22, 4  ;;  %v1212_v29 = vperm.slane %v1208_v15, %v5886_v1  ;;  %v5952_v15 = vld [vmem:[%s6554_s2] sm:$0x3] }
  0xdc   : > { %v1072_v14 = vpop.f32.mrf.mxu3  ;;  %v1059_v17 = vadd.f32 %v1058_v9, %v630_v62  ;;  %v1244_v19 = vpack.i.b16 %v1207_v10, %v1190_v4  ;;  %v1247_v20 = vshrl.u32 %v1207_v10, 16  ;;  %v1214_v24 = vsel %vm1103_vm0, %v1213_v16, %v1152_v45  ;;  %v1046_v34 = vpop.f32.mrf.mxu1 }
  0xdd   : > { %v1218_v30 = vperm.slane %v1214_v24, %v5886_v1  ;;  %v1033_v31 = vadd.f32 %v1032_v23, %v629_v41  ;;  %v1231_v32 = vsel %vm1103_vm0, %v1230_v26, %v1171_v21  ;;  %v1229_v36 = vperm.slane %v1225_v25, %v5886_v1 }
  0xde   : > { %v1073_v27 = vadd.f32 %v1072_v14, %v1059_v17  ;;  %v1248_v28 = vpack.i.b16 %v1247_v20, %v1246_v11  ;;  %1258 = vst [vmem:[#allocation2] sm:$0xf] %v1244_v19  ;;  %v1235_v37 = vperm.slane %v1231_v32, %v5886_v1  ;;  %v1489_v26 = vperm.slane %v5952_v15, 0 }
  0xdf   : > { %v1219_v35 = vrot.slane %v1218_v30, 4  ;;  %v1047_v44 = vadd.f32 %v1046_v34, %v1033_v31 }
  0xe0   : > { %v1079_v33 = vpack.c.bf16 %v1073_v27, %v1045_v18  ;;  %1260 = vst [vmem:[#allocation2 + $0x8] sm:$0xf] %v1248_v28  ;;  %v1236_v54 = vrot.slane %v1235_v37, 4 }
  0xe1   : > { %v1220_v42 = vsel %vm1103_vm0, %v1219_v35, %v1212_v29 }
  0xe2   : > { %v1264_v38 = vrot.slane %v1079_v33, 4  ;;  %v1269_v39 = vshrl.u32 %v1079_v33, 16  ;;  %v1224_v41 = vperm.slane %v1220_v42, %v5889_v12  ;;  %v1237_v48 = vsel %vm1103_vm0, %v1236_v54, %v1229_v36 }
  0xe3   : > { %v1060_v40 = vpop.f32.mrf.mxu2  ;;  %v1241_v50 = vperm.slane %v1237_v48, %v5889_v12 }
  0xe4   : > { %v1061_v43 = vadd.f32 %v1060_v40, %v630_v62  ;;  %v1074_v57 = vpop.f32.mrf.mxu3  ;;  %v1268_v46 = vpack.i.b16 %v1264_v38, %v1079_v33  ;;  %v1270_v47 = vshrl.u32 %v1264_v38, 16  ;;  %v1254_v51 = vshrl.u32 %v1224_v41, 16 }
  0xe5   : > { %v1252_v56 = vpack.i.b16 %v1241_v50, %v1224_v41  ;;  %v1255_v58 = vshrl.u32 %v1241_v50, 16 }
  0xe6   : > { %v1075_v49 = vadd.f32 %v1074_v57, %v1061_v43  ;;  %v1271_v52 = vpack.i.b16 %v1270_v47, %v1269_v39  ;;  %v1282_v53 = vperm.slane %v1268_v46, %v5886_v1 }
  0xe7   : > { %v1256_v63 = vpack.i.b16 %v1255_v58, %v1254_v51  ;;  %1259 = vst [vmem:[#allocation2 + $0x4] sm:$0xf] %v1252_v56 }
  0xe8   : > { %v1080_v55 = vpack.c.bf16 %v1075_v49, %v1047_v44  ;;  %v1283_v59 = vrot.slane %v1282_v53, 4  ;;  %v1288_v60 = vperm.slane %v1282_v53, %v5889_v12  ;;  %v1301_v61 = vperm.slane %v1271_v52, %v5886_v1 }
  0xe9   : > { %1261 = vst [vmem:[#allocation2 + $0xc] sm:$0xf] %v1256_v63  ;;  %v1490_v44 = vperm.slane %v5952_v15, 1 }
  0xea   : > { %v1265_v62 = vrot.slane %v1080_v55, 4  ;;  %v1284_v0 = vsel %vm1103_vm0, 0, %v1283_v59  ;;  %v1293_v2 = vrot.slane %v1288_v60, 4  ;;  %v1275_v3 = vshrl.u32 %v1080_v55, 16 }
  0xeb   : > { %v1292_v4 = vperm.slane %v1284_v0, %v5889_v12  ;;  %v1302_v5 = vrot.slane %v1301_v61, 4  ;;  %v1307_v6 = vperm.slane %v1301_v61, %v5889_v12 }
  0xec   : > { %v1274_v7 = vpack.i.b16 %v1265_v62, %v1080_v55  ;;  %v1276_v8 = vshrl.u32 %v1265_v62, 16  ;;  %v1294_v16 = vsel %vm1103_vm0, 0, %v1293_v2 }
  0xed   : > { %v1295_v9 = vrot.slane %v1292_v4, 4  ;;  %v1303_v10 = vsel %vm1103_vm0, 0, %v1302_v5  ;;  %v1312_v11 = vrot.slane %v1307_v6, 4 }
  0xee   : > { %v1320_v45 = vperm.slane %v1274_v7, %v5886_v1  ;;  %v1311_v13 = vperm.slane %v1303_v10, %v5889_v12  ;;  %v1277_v14 = vpack.i.b16 %v1276_v8, %v1275_v3  ;;  %v4801_v27 = vld [vmem:[#allocation2] sm:$0xff] }
  0xef   : > { %v1296_v17 = vsel %vm1103_vm0, 0, %v1295_v9  ;;  %v1354_v18 = vsel %vm1103_vm0, %v1295_v9, %v1288_v60  ;;  %v1313_v23 = vsel %vm1103_vm0, 0, %v1312_v11  ;;  %1920 = vmatpush.bf16.xpose.msrb.mxu0 %v4801_v27 }
  0xf0   : > { %v1321_v19 = vrot.slane %v1320_v45, 4  ;;  %v1314_v20 = vrot.slane %v1311_v13, 4  ;;  %v1359_v21 = vrot.slane %v1296_v17, 4  ;;  %v1326_v22 = vperm.slane %v1320_v45, %v5889_v12  ;;  %v4802_v37 = vld [vmem:[#allocation2 + $0x8] sm:$0xff] }
  0xf1   : > { %v1339_v25 = vperm.slane %v1277_v14, %v5886_v1  ;;  %v1358_v29 = vperm.slane %v1354_v18, %v5886_v1  ;;  %1944 = vmatpush.bf16.xpose.msrb.mxu1 %v4802_v37 }
  0xf2   : > { %v1322_v24 = vsel %vm1103_vm0, 0, %v1321_v19  ;;  %v1315_v28 = vsel %vm1103_vm0, 0, %v1314_v20  ;;  %v1360_v30 = vsel %vm1103_vm0, %v1359_v21, %v1294_v16  ;;  %v1371_v33 = vsel %vm1103_vm0, %v1314_v20, %v1307_v6 }
  0xf3   : > { %v1330_v31 = vperm.slane %v1322_v24, %v5889_v12  ;;  %v1364_v32 = vperm.slane %v1360_v30, %v5886_v1  ;;  %v1376_v34 = vrot.slane %v1315_v28, 4  ;;  %v1331_v35 = vrot.slane %v1326_v22, 4  ;;  %v1672_v36 = vpop.f32.mrf.mxu0 }
  0xf4   : > { %v1340_v39 = vrot.slane %v1339_v25, 4  ;;  %v1345_v40 = vperm.slane %v1339_v25, %v5889_v12  ;;  %v1673_v43 = vadd.f32 %v1672_v36, %v1489_v26  ;;  %v1375_v57 = vperm.slane %v1371_v33, %v5886_v1  ;;  %v1686_v58 = vpop.f32.mrf.mxu1 }
  0xf5   : > { %v1333_v38 = vrot.slane %v1330_v31, 4  ;;  %v1365_v42 = vrot.slane %v1364_v32, 4  ;;  %v1377_v54 = vsel %vm1103_vm0, %v1376_v34, %v1313_v23  ;;  %v1332_v49 = vsel %vm1103_vm0, 0, %v1331_v35 }
  0xf6   : > { %v1381_v41 = vperm.slane %v1377_v54, %v5886_v1  ;;  %v1341_v47 = vsel %vm1103_vm0, 0, %v1340_v39  ;;  %v1350_v55 = vrot.slane %v1345_v40, 4  ;;  %v1687_v62 = vadd.f32 %v1686_v58, %v1673_v43 }
  0xf7   : > { %v1334_v46 = vsel %vm1103_vm0, 0, %v1333_v38  ;;  %v1366_v48 = vsel %vm1103_vm0, %v1365_v42, %v1358_v29  ;;  %v1349_v50 = vperm.slane %v1341_v47, %v5889_v12  ;;  %v1388_v56 = vsel %vm1103_vm0, %v1333_v38, %v1326_v22 }
  0xf8   : > { %v1393_v51 = vrot.slane %v1334_v46, 4  ;;  %v1370_v52 = vperm.slane %v1366_v48, %v5889_v12  ;;  %v1382_v53 = vrot.slane %v1381_v41, 4  ;;  %v1351_v8 = vsel %vm1103_vm0, 0, %v1350_v55 }
  0xf9   : > { %v1352_v60 = vrot.slane %v1349_v50, 4  ;;  %v1392_v9 = vperm.slane %v1388_v56, %v5886_v1 }
  0xfa   : > { %v1394_v61 = vsel %vm1103_vm0, %v1393_v51, %v1332_v49  ;;  %v1383_v2 = vsel %vm1103_vm0, %v1382_v53, %v1375_v57  ;;  %v1426_v5 = vshrl.u32 %v1370_v52, 16 }
  0xfb   : > { %v1700_v59 = vpop.f32.mrf.mxu2  ;;  %v1398_v3 = vperm.slane %v1394_v61, %v5886_v1  ;;  %v1387_v4 = vperm.slane %v1383_v2, %v5889_v12  ;;  %v1353_v6 = vsel %vm1103_vm0, 0, %v1352_v60  ;;  %v1405_v14 = vsel %vm1103_vm0, %v1352_v60, %v1345_v40  ;;  %v1674_v16 = vpop.f32.mrf.mxu0 }
  0xfc   : > { %v1701_v63 = vadd.f32 %v1700_v59, %v1490_v44  ;;  %v1714_v0 = vpop.f32.mrf.mxu3  ;;  %v1410_v11 = vrot.slane %v1353_v6, 4  ;;  %v1409_v22 = vperm.slane %v1405_v14, %v5886_v1  ;;  %v1675_v23 = vadd.f32 %v1674_v16, %v1489_v26  ;;  %v1688_v35 = vpop.f32.mrf.mxu1 }
  0xfd   : > { %v1399_v10 = vrot.slane %v1398_v3, 4  ;;  %v1424_v45 = vpack.i.b16 %v1387_v4, %v1370_v52  ;;  %v1427_v13 = vshrl.u32 %v1387_v4, 16 }
  0xfe   : > { %v1715_v7 = vadd.f32 %v1714_v0, %v1701_v63  ;;  %v1411_v17 = vsel %vm1103_vm0, %v1410_v11, %v1351_v8  ;;  %v1689_v38 = vadd.f32 %v1688_v35, %v1675_v23 }
  0xff   : > { %v1428_v18 = vpack.i.b16 %v1427_v13, %v1426_v5  ;;  %1439 = vst [vmem:[#allocation2 + $0x10] sm:$0xf] %v1424_v45  ;;  %v1400_v19 = vsel %vm1103_vm0, %v1399_v10, %v1392_v9  ;;  %v1415_v20 = vperm.slane %v1411_v17, %v5886_v1 }
 0x100   : > { %v1719_v15 = vpack.c.bf16 %v1715_v7, %v1687_v62  ;;  %v1404_v30 = vperm.slane %v1400_v19, %v5889_v12 }
 0x101   : > { %1441 = vst [vmem:[#allocation2 + $0x18] sm:$0xf] %v1428_v18  ;;  %v1416_v25 = vrot.slane %v1415_v20, 4 }
 0x102   : > { %v1723_v21 = vrot.slane %v1719_v15, 4  ;;  %v1728_v28 = vshrl.u32 %v1719_v15, 16  ;;  %v1434_v43 = vshrl.u32 %v1404_v30, 16 }
 0x103   : > { %v1702_v24 = vpop.f32.mrf.mxu2  ;;  %v1417_v32 = vsel %vm1103_vm0, %v1416_v25, %v1409_v22 }
 0x104   : > { %v1727_v27 = vpack.i.b16 %v1723_v21, %v1719_v15  ;;  %v1729_v29 = vshrl.u32 %v1723_v21, 16  ;;  %v1703_v31 = vadd.f32 %v1702_v24, %v1490_v44  ;;  %v1716_v36 = vpop.f32.mrf.mxu3  ;;  %v1421_v37 = vperm.slane %v1417_v32, %v5889_v12 }
 0x106   : > { %v1730_v33 = vpack.i.b16 %v1729_v29, %v1728_v28  ;;  %v1741_v34 = vperm.slane %v1727_v27, %v5886_v1  ;;  %v1717_v26 = vadd.f32 %v1716_v36, %v1703_v31  ;;  %v1432_v54 = vpack.i.b16 %v1421_v37, %v1404_v30 }
 0x107   : > { %v1435_v57 = vshrl.u32 %v1421_v37, 16 }
 0x108   : > { %v1742_v39 = vrot.slane %v1741_v34, 4  ;;  %v1748_v40 = vperm.slane %v1741_v34, %v5889_v12  ;;  %v1761_v42 = vperm.slane %v1730_v33, %v5886_v1  ;;  %v1720_v44 = vpack.c.bf16 %v1717_v26, %v1689_v38  ;;  %1440 = vst [vmem:[#allocation2 + $0x14] sm:$0xf] %v1432_v54 }
 0x109   : > { %v1436_v47 = vpack.i.b16 %v1435_v57, %v1434_v43 }
 0x10a   : > { %v1744_v41 = vsel %vm1103_vm0, 0, %v1742_v39  ;;  %v1762_v46 = vrot.slane %v1761_v42, 4  ;;  %v1767_v49 = vperm.slane %v1761_v42, %v5889_v12  ;;  %v1724_v50 = vrot.slane %v1720_v44, 4 }
 0x10b   : > { %v1752_v48 = vperm.slane %v1744_v41, %v5889_v12  ;;  %v1753_v51 = vrot.slane %v1748_v40, 4  ;;  %v1734_v53 = vshrl.u32 %v1720_v44, 16  ;;  %1442 = vst [vmem:[#allocation2 + $0x1c] sm:$0xf] %v1436_v47 }
 0x10c   : > { %v1763_v52 = vsel %vm1103_vm0, 0, %v1762_v46  ;;  %v1733_v58 = vpack.i.b16 %v1724_v50, %v1720_v44  ;;  %v1735_v59 = vshrl.u32 %v1724_v50, 16  ;;  %v1772_v61 = vrot.slane %v1767_v49, 4 }
 0x10d   : > { %v1755_v55 = vrot.slane %v1752_v48, 4  ;;  %v1771_v56 = vperm.slane %v1763_v52, %v5889_v12  ;;  %v1754_v3 = vsel %vm1103_vm0, 0, %v1753_v51 }
 0x10e   : > { %v1736_v63 = vpack.i.b16 %v1735_v59, %v1734_v53  ;;  %v1780_v2 = vperm.slane %v1733_v58, %v5886_v1  ;;  %v1773_v10 = vsel %vm1103_vm0, 0, %v1772_v61 }
 0x10f   : > { %v1756_v60 = vsel %vm1103_vm0, 0, %v1755_v55  ;;  %v1774_v62 = vrot.slane %v1771_v56, 4  ;;  %v4803_v9 = vld [vmem:[#allocation2 + $0x10] sm:$0xff]  ;;  %v1814_v23 = vsel %vm1103_vm0, %v1755_v55, %v1748_v40 }
 0x110   : > { %v1819_v0 = vrot.slane %v1756_v60, 4  ;;  %v1799_v5 = vperm.slane %v1736_v63, %v5886_v1  ;;  %v1781_v8 = vrot.slane %v1780_v2, 4  ;;  %v1786_v11 = vperm.slane %v1780_v2, %v5889_v12  ;;  %2021 = vmatpush.bf16.msrb.mxu2 %v4803_v9 }
 0x111   : > { %v1775_v4 = vsel %vm1103_vm0, 0, %v1774_v62  ;;  %v1831_v20 = vsel %vm1103_vm0, %v1774_v62, %v1767_v49  ;;  %v1818_v33 = vperm.slane %v1814_v23, %v5886_v1 }
 0x112   : > { %v1820_v6 = vsel %vm1103_vm0, %v1819_v0, %v1754_v3  ;;  %v1836_v7 = vrot.slane %v1775_v4, 4  ;;  %v1800_v45 = vrot.slane %v1799_v5, 4  ;;  %v1782_v13 = vsel %vm1103_vm0, 0, %v1781_v8  ;;  %v4804_v15 = vld [vmem:[#allocation2 + $0x18] sm:$0xff] }
 0x113   : > { %v1805_v14 = vperm.slane %v1799_v5, %v5889_v12  ;;  %v1824_v16 = vperm.slane %v1820_v6, %v5886_v1  ;;  %v1790_v18 = vperm.slane %v1782_v13, %v5889_v12  ;;  %2049 = vmatpush.bf16.msrb.mxu3 %v4804_v15  ;;  %v1791_v24 = vrot.slane %v1786_v11, 4 }
 0x114   : > { %v1837_v17 = vsel %vm1103_vm0, %v1836_v7, %v1773_v10  ;;  %v1801_v19 = vsel %vm1103_vm0, 0, %v1800_v45  ;;  %v1835_v32 = vperm.slane %v1831_v20, %v5886_v1 }
 0x115   : > { %v1809_v21 = vperm.slane %v1801_v19, %v5889_v12  ;;  %v1841_v22 = vperm.slane %v1837_v17, %v5886_v1  ;;  %v1793_v25 = vrot.slane %v1790_v18, 4  ;;  %v1810_v27 = vrot.slane %v1805_v14, 4 }
 0x116   : > { %v1825_v29 = vrot.slane %v1824_v16, 4  ;;  %v1792_v36 = vsel %vm1103_vm0, 0, %v1791_v24 }
 0x117   : > { %v1812_v28 = vrot.slane %v1809_v21, 4  ;;  %v1842_v30 = vrot.slane %v1841_v22, 4  ;;  %v1794_v31 = vsel %vm1103_vm0, 0, %v1793_v25  ;;  %v1811_v26 = vsel %vm1103_vm0, 0, %v1810_v27 }
 0x118   : > { %v1853_v35 = vrot.slane %v1794_v31, 4  ;;  %v1848_v39 = vsel %vm1103_vm0, %v1793_v25, %v1786_v11  ;;  %v1826_v42 = vsel %vm1103_vm0, %v1825_v29, %v1818_v33 }
 0x119   : > { %v1813_v34 = vsel %vm1103_vm0, 0, %v1812_v28  ;;  %v1843_v38 = vsel %vm1103_vm0, %v1842_v30, %v1835_v32  ;;  %v1865_v54 = vsel %vm1103_vm0, %v1812_v28, %v1805_v14  ;;  %v1852_v46 = vperm.slane %v1848_v39, %v5886_v1  ;;  %v4179_v39 = vld [vmem:[#allocation3 + $0xf0] sm:$0xf] }
 0x11a   : > { %v1870_v37 = vrot.slane %v1813_v34, 4  ;;  %v1854_v40 = vsel %vm1103_vm0, %v1853_v35, %v1792_v36  ;;  %v1847_v43 = vperm.slane %v1843_v38, %v5889_v12  ;;  %v1830_v47 = vperm.slane %v1826_v42, %v5889_v12  ;;  %v4115_v35 = vld [vmem:[#allocation3 + $0x70] sm:$0xf]  ;;  %v4820_v36 = vld [vmem:[#allocation3 + $0x74] sm:$0xf0] }
 0x11b   : > { %v1858_v57 = vperm.slane %v1854_v40, %v5886_v1  ;;  %v1869_v49 = vperm.slane %v1865_v54, %v5886_v1  ;;  %v4116_v38 = vor.u32 %v4820_v36, %v4115_v35  ;;  %v4836_v40 = vld [vmem:[#allocation3 + $0xf4] sm:$0xf0] }
 0x11c   : > { %v1871_v44 = vsel %vm1103_vm0, %v1870_v37, %v1811_v26  ;;  %v1886_v52 = vshrl.u32 %v1847_v43, 16  ;;  %v1884_v58 = vpack.i.b16 %v1847_v43, %v1830_v47  ;;  %v1885_v59 = vshrl.u32 %v1830_v47, 16  ;;  %v4819_v37 = vld [vmem:[#allocation3 + $0x74] sm:$0xf]  ;;  %v4117_v26 = vld [vmem:[#allocation3 + $0x78] sm:$0xf0] }
 0x11d   : > { %v1875_v41 = vperm.slane %v1871_v44, %v5886_v1  ;;  %v1859_v48 = vrot.slane %v1858_v57, 4  ;;  %v4120_v42 = vor.u32 %v4819_v37, %v4117_v26  ;;  %v4180_v54 = vor.u32 %v4836_v40, %v4179_v39  ;;  %v4835_v43 = vld [vmem:[#allocation3 + $0xf4] sm:$0xf]  ;;  %v4181_v57 = vld [vmem:[#allocation3 + $0xf8] sm:$0xf0]  ;;  %2178 = vmatpush.bf16.msra.mxu0 %v4116_v38 }
 0x11e   : > { %v1887_v61 = vpack.i.b16 %v1886_v52, %v1885_v59  ;;  %v1903_v0 = vunpack.c.l.b16 %v1884_v58  ;;  %v4107_v44 = vld [vmem:[#allocation3 + $0x60] sm:$0xf]  ;;  %v4817_v47 = vld [vmem:[#allocation3 + $0x64] sm:$0xf]  ;;  %v4834_v52 = vld [vmem:[#allocation3 + $0xe4] sm:$0xf0] }
 0x11f   : > { %v1876_v50 = vrot.slane %v1875_v41, 4  ;;  %v1860_v51 = vsel %vm1103_vm0, %v1859_v48, %v1852_v46  ;;  %v4184_v41 = vor.u32 %v4835_v43, %v4181_v57  ;;  %v4818_v46 = vld [vmem:[#allocation3 + $0x64] sm:$0xf0]  ;;  %v4109_v48 = vld [vmem:[#allocation3 + $0x68] sm:$0xf0]  ;;  %2192 = vmatpush.bf16.msra.mxu1 %v4120_v42  ;;  %2292 = vmatpush.bf16.msra.mxu2 %v4180_v54 }
 0x120   : > { %v1864_v53 = vperm.slane %v1860_v51, %v5889_v12  ;;  %v1927_v4 = vunpack.c.l.b16 %v1887_v61  ;;  %v4171_v51 = vld [vmem:[#allocation3 + $0xe0] sm:$0xf]  ;;  %v4099_v58 = vld [vmem:[#allocation3 + $0x50] sm:$0xf]  ;;  %v4816_v59 = vld [vmem:[#allocation3 + $0x54] sm:$0xf0] }
 0x121   : > { %v1877_v55 = vsel %vm1103_vm0, %v1876_v50, %v1869_v49  ;;  %v4108_v49 = vor.u32 %v4818_v46, %v4107_v44  ;;  %v4112_v50 = vor.u32 %v4817_v47, %v4109_v48  ;;  %2306 = vmatpush.bf16.msra.mxu3 %v4184_v41  ;;  %v4811_v57 = vld [vmem:[#allocation3 + $0x34] sm:$0xf]  ;;  %v4085_v44 = vld [vmem:[#allocation3 + $0x38] sm:$0xf0]  ;;  %v4147_v46 = vld [vmem:[#allocation3 + $0xb0] sm:$0xf] }
 0x122   : > { %v1881_v56 = vperm.slane %v1877_v55, %v5889_v12  ;;  %v1891_v62 = vshrl.u32 %v1864_v53, 16  ;;  %v4172_v55 = vor.u32 %v4834_v52, %v4171_v51  ;;  %v4088_v41 = vor.u32 %v4811_v57, %v4085_v44  ;;  %v4828_v47 = vld [vmem:[#allocation3 + $0xb4] sm:$0xf0]  ;;  %v4075_v51 = vld [vmem:[#allocation3 + $0x20] sm:$0xf] }
 0x123   : > { %2179 = vmatpush.bf16.msra.mxu0 %v4108_v49  ;;  %2193 = vmatpush.bf16.msra.mxu1 %v4112_v50  ;;  %v4148_v48 = vor.u32 %v4828_v47, %v4147_v46  ;;  %v4149_v49 = vld [vmem:[#allocation3 + $0xb8] sm:$0xf0]  ;;  %v4810_v52 = vld [vmem:[#allocation3 + $0x24] sm:$0xf0] }
 0x124   : > { %v1890_v60 = vpack.i.b16 %v1881_v56, %v1864_v53  ;;  %v1892_v63 = vshrl.u32 %v1881_v56, 16  ;;  %v4833_v53 = vld [vmem:[#allocation3 + $0xe4] sm:$0xf]  ;;  %v4173_v56 = vld [vmem:[#allocation3 + $0xe8] sm:$0xf0]  ;;  %2293 = vmatpush.bf16.msra.mxu2 %v4172_v55  ;;  %v4076_v55 = vor.u32 %v4810_v52, %v4075_v51 }
 0x125   : > { %v4176_v61 = vor.u32 %v4833_v53, %v4173_v56  ;;  %v4809_v53 = vld [vmem:[#allocation3 + $0x24] sm:$0xf]  ;;  %v4077_v56 = vld [vmem:[#allocation3 + $0x28] sm:$0xf0] }
 0x126   : > { %v1904_v2 = vunpack.c.l.b16 %v1890_v60  ;;  %v1893_v3 = vpack.i.b16 %v1892_v63, %v1891_v62  ;;  %v4815_v62 = vld [vmem:[#allocation3 + $0x54] sm:$0xf]  ;;  %v4101_v63 = vld [vmem:[#allocation3 + $0x58] sm:$0xf0] }
 0x127   : > { %2307 = vmatpush.bf16.msra.mxu3 %v4176_v61  ;;  %v4825_v61 = vld [vmem:[#allocation3 + $0xa4] sm:$0xf] }
 0x128   : > { %v1905_v1 = vpack.c.b16 %v1904_v2, %v1903_v0  ;;  %v1928_v5 = vunpack.c.l.b16 %v1893_v3  ;;  %v4163_v0 = vld [vmem:[#allocation3 + $0xd0] sm:$0xf]  ;;  %v4100_v2 = vor.u32 %v4816_v59, %v4099_v58  ;;  %v4832_v3 = vld [vmem:[#allocation3 + $0xd4] sm:$0xf0]  ;;  %v4080_v58 = vor.u32 %v4809_v53, %v4077_v56  ;;  %v4139_v59 = vld [vmem:[#allocation3 + $0xa0] sm:$0xf] }
 0x129   : > { %v1450_v53 = vld [vmem:[%s5476_s23 + $0x8] sm:$0xff] }
 0x12a   : > { %1921 = vmatmul.bf16.vlgmr.msrb.gmra.mxu0 %v1905_v1  ;;  %v1929_v6 = vpack.c.b16 %v1928_v5, %v1927_v4  ;;  %v4831_v1 = vld [vmem:[#allocation3 + $0xd4] sm:$0xf]  ;;  %v4165_v4 = vld [vmem:[#allocation3 + $0xd8] sm:$0xf0] }
 0x12b   : > { %2180 = vmatpush.bf16.msra.mxu0 %v4100_v2  ;;  %v4067_v2 = vld [vmem:[#allocation3 + $0x10] sm:$0xf] }
 0x12c   : > { %1945 = vmatmul.bf16.vlgmr.msrb.gmra.mxu1 %v1929_v6  ;;  %v4104_v6 = vor.u32 %v4815_v62, %v4101_v63  ;;  %v4141_v63 = vld [vmem:[#allocation3 + $0xa8] sm:$0xf0] }
 0x12e   : > { %2194 = vmatpush.bf16.msra.mxu1 %v4104_v6 }
 0x1a7   : > { %v1922_v7 = vpop.f32.mrf.mxu0 }
 0x1a8   : > { %v1952_v8 = vsel %vm1951_vm1, %v1922_v7, -inf }
 0x1a9   : > { %v1946_v12 = vpop.f32.mrf.mxu1  ;;  %1953 = vmax.xlane.f32.xlu1 %v1952_v8  ;;  %v4091_v8 = vld [vmem:[#allocation3 + $0x40] sm:$0xf] }
 0x1aa   : > { %v1958_v9 = vsel %vm1951_vm1, %v1946_v12, -inf }
 0x1ab   : > { %1959 = vmax.xlane.f32.xlu0 %v1958_v9  ;;  %v4813_v9 = vld [vmem:[#allocation3 + $0x44] sm:$0xf] }
 0x1af   : > { %v1924_v10 = vpop.f32.mrf.mxu0 }
 0x1b0   : > { %v1955_v11 = vsel %vm1951_vm1, %v1924_v10, -inf }
 0x1b1   : > { %v1948_v45 = vpop.f32.mrf.mxu1  ;;  %1956 = vmax.xlane.f32.xlu1 %v1955_v11  ;;  %v4093_v11 = vld [vmem:[#allocation3 + $0x48] sm:$0xf0] }
 0x1b2   : > { %v1961_v13 = vsel %vm1951_vm1, %v1948_v45, -inf }
 0x1b3   : > { %1962 = vmax.xlane.f32.xlu0 %v1961_v13  ;;  %v4830_v13 = vld [vmem:[#allocation3 + $0xc4] sm:$0xf0] }
 0x21c   : > { %v1954_v14 = vpop.xlane.xlu1 %1953 }
 0x21d   : > { %v1964_v15 = vsub.f32 %v1922_v7, %v1954_v14  ;;  %v4164_v7 = vor.u32 %v4832_v3, %v4163_v0  ;;  %v4829_v14 = vld [vmem:[#allocation3 + $0xc4] sm:$0xf]  ;;  %v4144_v0 = vor.u32 %v4825_v61, %v4141_v63  ;;  %v4808_v3 = vld [vmem:[#allocation3 + $0x14] sm:$0xf0]  ;;  %v1453_v63 = vunpack.c.l.bf16 %v1450_v53 }
 0x21e   : > { %v1960_v16 = vpop.xlane.xlu0 %1959 }
 0x21f   : > { %v1968_v17 = vmul.f32 1.442695, %v1964_v15  ;;  %v1966_v18 = vsub.f32 %v1946_v12, %v1960_v16  ;;  %v4814_v12 = vld [vmem:[#allocation3 + $0x44] sm:$0xf0]  ;;  %v4157_v15 = vld [vmem:[#allocation3 + $0xc8] sm:$0xf0]  ;;  %2294 = vmatpush.bf16.msra.mxu2 %v4164_v7 }
 0x220   : > { %v4092_v16 = vor.u32 %v4814_v12, %v4091_v8  ;;  %v4131_v7 = vld [vmem:[#allocation3 + $0x90] sm:$0xf]  ;;  %v4824_v8 = vld [vmem:[#allocation3 + $0x94] sm:$0xf0]  ;;  %v4823_v12 = vld [vmem:[#allocation3 + $0x94] sm:$0xf] }
 0x221   : > { %5015 = vpow2.f32 %v1968_v17  ;;  %v1972_v19 = vmul.f32 1.442695, %v1966_v18  ;;  %v4096_v17 = vor.u32 %v4813_v9, %v4093_v11  ;;  %v4132_v9 = vor.u32 %v4824_v8, %v4131_v7 }
 0x222   : > { %2181 = vmatpush.bf16.msra.mxu0 %v4092_v16  ;;  %v4061_v16 = vld [vmem:[#allocation3 + $0x8] sm:$0xf0] }
 0x223   : > { %5017 = vpow2.f32 %v1972_v19  ;;  %v4160_v19 = vor.u32 %v4829_v14, %v4157_v15  ;;  %2195 = vmatpush.bf16.msra.mxu1 %v4096_v17  ;;  %v4805_v14 = vld [vmem:[#allocation3 + $0x4] sm:$0xf] }
 0x224   : > { %v1957_v20 = vpop.xlane.xlu1 %1956  ;;  %v4064_v17 = vor.u32 %v4805_v14, %v4061_v16  ;;  %v4865_v14 = vld [vmem:[%s6561_s9 + $0xe4] sm:$0xf] }
 0x225   : > { %v1965_v21 = vsub.f32 %v1924_v10, %v1957_v20  ;;  %v4168_v10 = vor.u32 %v4831_v1, %v4165_v4  ;;  %v4807_v1 = vld [vmem:[#allocation3 + $0x14] sm:$0xf]  ;;  %v4068_v4 = vor.u32 %v4808_v3, %v4067_v2 }
 0x226   : > { %v1963_v22 = vpop.xlane.xlu0 %1962 }
 0x227   : > { %v6047_v23 = vpop.eup %5015  ;;  %v1970_v24 = vmul.f32 1.442695, %v1965_v21  ;;  %v1967_v25 = vsub.f32 %v1948_v45, %v1963_v22  ;;  %v4155_v45 = vld [vmem:[#allocation3 + $0xc0] sm:$0xf]  ;;  %2308 = vmatpush.bf16.msra.mxu3 %v4168_v10  ;;  %2196 = vmatpush.bf16.msra.mxu1 %v4088_v41  ;;  %v4133_v10 = vld [vmem:[#allocation3 + $0x98] sm:$0xf0] }
 0x228   : > { %v1976_v27 = vsel %vm1951_vm1, %v6047_v23, 0.0  ;;  %v4156_v18 = vor.u32 %v4830_v13, %v4155_v45  ;;  %v4136_v11 = vor.u32 %v4823_v12, %v4133_v10  ;;  %v4059_v45 = vld [vmem:[#allocation3] sm:$0xf]  ;;  %v4806_v13 = vld [vmem:[#allocation3 + $0x4] sm:$0xf0] }
 0x229   : > { %v6051_v28 = vpop.eup %5017  ;;  %5019 = vpow2.f32 %v1970_v24  ;;  %v1974_v29 = vmul.f32 1.442695, %v1967_v25  ;;  %1977 = vadd.xlane.f32.xlu0 %v1976_v27  ;;  %v4060_v15 = vor.u32 %v4806_v13, %v4059_v45  ;;  %v4867_v10 = vld [vmem:[%s6561_s9 + $0xec] sm:$0xf0] }
 0x22a   : > { %v1982_v30 = vsel %vm1951_vm1, %v6051_v28, 0.0  ;;  %2295 = vmatpush.bf16.msra.mxu2 %v4156_v18  ;;  %v4123_v18 = vld [vmem:[#allocation3 + $0x80] sm:$0xf]  ;;  %v4899_v13 = vld [vmem:[%s6561_s9 + $0x1ec] sm:$0xf0] }
 0x22b   : > { %5021 = vpow2.f32 %v1974_v29  ;;  %1983 = vadd.xlane.f32.xlu2 %v1982_v30  ;;  %2309 = vmatpush.bf16.msra.mxu3 %v4160_v19  ;;  %v4822_v19 = vld [vmem:[#allocation3 + $0x84] sm:$0xf0] }
 0x22c   : > { %2197 = vmatpush.bf16.msra.mxu1 %v4080_v58 }
 0x22e   : > { %2296 = vmatpush.bf16.msra.mxu2 %v4148_v48 }
 0x22f   : > { %v6055_v31 = vpop.eup %5019 }
 0x230   : > { %v1979_v32 = vsel %vm1951_vm1, %v6055_v31, 0.0 }
 0x231   : > { %v6059_v33 = vpop.eup %5021  ;;  %1980 = vadd.xlane.f32.xlu1 %v1979_v32 }
 0x232   : > { %v1985_v34 = vsel %vm1951_vm1, %v6059_v33, 0.0 }
 0x233   : > { %1986 = vadd.xlane.f32.xlu2 %v1985_v34 }
 0x29c   : > { %v1978_v60 = vpop.xlane.xlu0 %1977 }
 0x29d   : > { %5023 = vrcp.f32 %v1978_v60  ;;  %v4826_v60 = vld [vmem:[#allocation3 + $0xa4] sm:$0xf0] }
 0x29e   : > { %v1984_v5 = vpop.xlane.xlu2 %1983  ;;  %v4140_v62 = vor.u32 %v4826_v60, %v4139_v59 }
 0x29f   : > { %5025 = vrcp.f32 %v1984_v5  ;;  %v4069_v5 = vld [vmem:[#allocation3 + $0x18] sm:$0xf0] }
 0x2a0   : > { %2297 = vmatpush.bf16.msra.mxu2 %v4140_v62  ;;  %v4072_v6 = vor.u32 %v4807_v1, %v4069_v5 }
 0x2a2   : > { %2198 = vmatpush.bf16.msra.mxu1 %v4072_v6  ;;  %v5139_v6 = vmov 256.0  }
 0x2a3   : > { %v5024_v21 = vpop.eup %5023 }
 0x2a4   : > { %v1981_v20 = vpop.xlane.xlu1 %1980  ;;  %v1992_v25 = vmul.f32 %v5024_v21, %v6047_v23  ;;  %v4083_v23 = vld [vmem:[#allocation3 + $0x30] sm:$0xf]  ;;  %2298 = vmatpush.bf16.msra.mxu2 %v4132_v9  ;;  %v4124_v21 = vor.u32 %v4822_v19, %v4123_v18  ;;  %v4299_v9 = vld [vmem:[%s6561_s9 + $0xe0] sm:$0xf]  ;;  %v4897_v18 = vld [vmem:[%s6561_s9 + $0x1e4] sm:$0xf] }
 0x2a5   : > { %5027 = vrcp.f32 %v1981_v20  ;;  %v5026_v24 = vpop.eup %5025  ;;  %v4821_v20 = vld [vmem:[#allocation3 + $0x84] sm:$0xf]  ;;  %v4300_v45 = vor.u32 %v4867_v10, %v4299_v9  ;;  %v4429_v19 = vld [vmem:[%s6561_s9 + $0x1f0] sm:$0xf0]  ;;  %v4235_v10 = vld [vmem:[%s6561_s9 + $0x60] sm:$0xf] }
 0x2a6   : > { %v1987_v22 = vpop.xlane.xlu2 %1986  ;;  %v1994_v27 = vmul.f32 %v5026_v24, %v6051_v28  ;;  %v1996_v30 = vpack.c.bf16 %v1992_v25, %v1992_v25  ;;  %v4812_v28 = vld [vmem:[#allocation3 + $0x34] sm:$0xf0]  ;;  %2199 = vmatpush.bf16.msra.mxu1 %v4064_v17 }
 0x2a7   : > { %5029 = vrcp.f32 %v1987_v22  ;;  %v4125_v22 = vld [vmem:[#allocation3 + $0x88] sm:$0xf0] }
 0x2a8   : > { %v1998_v35 = vpack.c.bf16 %v1994_v27, %v1994_v27  ;;  %v2002_v38 = vunpack.c.l.b16 %v1996_v30  ;;  %v4128_v24 = vor.u32 %v4821_v20, %v4125_v22  ;;  %2299 = vmatpush.bf16.msra.mxu2 %v4124_v21  ;;  %5031 = vrcp.f32 %v5139_v6  ;;  %v4283_v20 = vld [vmem:[%s6561_s9 + $0xc0] sm:$0xf]  ;;  %v4863_v22 = vld [vmem:[%s6561_s9 + $0xcc] sm:$0xf0] }
 0x2a9   : > { %v4432_v21 = vor.u32 %v4897_v18, %v4429_v19  ;;  %v4881_v19 = vld [vmem:[%s6561_s9 + $0x164] sm:$0xf] }
 0x2aa   : > { %v2030_v40 = vunpack.c.l.b16 %v1998_v35 }
 0x2ab   : > { %v5028_v29 = vpop.eup %5027 }
 0x2ac   : > { %v1993_v32 = vmul.f32 %v5028_v29, %v6055_v31  ;;  %v4084_v31 = vor.u32 %v4812_v28, %v4083_v23  ;;  %v1449_v28 = vld [vmem:[%s5476_s23] sm:$0xff] }
 0x2ad   : > { %v5030_v34 = vpop.eup %5029  ;;  %v1452_v48 = vunpack.c.h.bf16 %v1449_v28 }
 0x2ae   : > { %v1997_v36 = vpack.c.bf16 %v1993_v32, %v1993_v32  ;;  %v1995_v37 = vmul.f32 %v5030_v34, %v6059_v33  ;;  %v4827_v33 = vld [vmem:[#allocation3 + $0xb4] sm:$0xf]  ;;  %2182 = vmatpush.bf16.msra.mxu0 %v4084_v31  ;;  %v5032_v7 = vpop.eup %5031 }
 0x2af   : > { %v4152_v50 = vor.u32 %v4827_v33, %v4149_v49  ;;  %v1451_v33 = vunpack.c.l.bf16 %v1449_v28  ;;  %v2345_v8 = vmul.f32 256.0, %v5032_v7  ;;  %vm2349_vm2 = vweird.f32 %v5032_v7 }
 0x2b0   : > { %v2003_v26 = vunpack.c.l.b16 %v1997_v36  ;;  %v1999_v39 = vpack.c.bf16 %v1995_v37, %v1995_v37 }
 0x2b1   : > { %2310 = vmatpush.bf16.msra.mxu3 %v4152_v50  ;;  %v2346_v12 = vsub.f32 1.0, %v2345_v8  ;;  %v4885_v8 = vld [vmem:[%s6561_s9 + $0x184] sm:$0xf] }
 0x2b2   : > { %v2004_v42 = vpack.c.b16 %v2003_v26, %v2002_v38  ;;  %v2031_v54 = vunpack.c.l.b16 %v1999_v39  ;;  %2183 = vmatpush.bf16.msra.mxu0 %v4076_v55 }
 0x2b4   : > { %v2032_v43 = vpack.c.b16 %v2031_v54, %v2030_v40  ;;  %4051 = vmatmul.msk.bf16.vlgmr.msrb.gmra.mxu2 %vm1951_vm1, %v2004_v42  ;;  %v2324_v54 = vld [vmem:[%s6558_s6] sm:$0x3] }
 0x2b5   : > { %2311 = vmatpush.bf16.msra.mxu3 %v4144_v0  ;;  %v2326_v57 = vperm.slane %v2324_v54, 0  ;;  %v2327_v31 = vperm.slane %v2324_v54, 1  ;;  %v1454_v0 = vunpack.c.h.bf16 %v1450_v53  ;;  %v4891_v53 = vld [vmem:[%s6561_s9 + $0x1ac] sm:$0xf0] }
 0x2b6   : > { %4056 = vmatmul.msk.bf16.vlgmr.msrb.gmra.mxu3 %vm1951_vm1, %v2032_v43  ;;  %2184 = vmatpush.bf16.msra.mxu0 %v4068_v4 }
 0x2b9   : > { %2312 = vmatpush.bf16.msra.mxu3 %v4136_v11  ;;  %v4427_v11 = vld [vmem:[%s6561_s9 + $0x1e0] sm:$0xf] }
 0x2ba   : > { %2185 = vmatpush.bf16.msra.mxu0 %v4060_v15  ;;  %v4301_v15 = vld [vmem:[%s6561_s9 + $0xf0] sm:$0xf0]  ;;  %v4428_v16 = vor.u32 %v4899_v13, %v4427_v11  ;;  %v4851_v11 = vld [vmem:[%s6561_s9 + $0x6c] sm:$0xf0] }
 0x2bb   : > { %v4304_v17 = vor.u32 %v4865_v14, %v4301_v15  ;;  %v4236_v13 = vor.u32 %v4851_v11, %v4235_v10  ;;  %v4883_v14 = vld [vmem:[%s6561_s9 + $0x16c] sm:$0xf0]  ;;  %v4849_v15 = vld [vmem:[%s6561_s9 + $0x64] sm:$0xf]  ;;  %v4291_v10 = vld [vmem:[%s6561_s9 + $0xc8] sm:$0xf] }
 0x2bc   : > { %2825 = vmatpush.bf16.msrb.mxu1 %v4428_v16  ;;  %v4237_v16 = vld [vmem:[%s6561_s9 + $0x70] sm:$0xf0]  ;;  %v4864_v11 = vld [vmem:[%s6561_s9 + $0xd4] sm:$0xf0] }
 0x2bd   : > { %2313 = vmatpush.bf16.msra.mxu3 %v4128_v24  ;;  %v4411_v24 = vld [vmem:[%s6561_s9 + $0x1c0] sm:$0xf]  ;;  %2839 = vmatpush.bf16.msrb.mxu2 %v4304_v17  ;;  %v4240_v18 = vor.u32 %v4849_v15, %v4237_v16  ;;  %v4896_v15 = vld [vmem:[%s6561_s9 + $0x1d4] sm:$0xf0]  ;;  %v4862_v16 = vld [vmem:[%s6561_s9 + $0xcc] sm:$0xf] }
 0x2be   : > { %2811 = vmatpush.bf16.msrb.mxu0 %v4300_v45  ;;  %v4363_v45 = vld [vmem:[%s6561_s9 + $0x160] sm:$0xf] }
 0x2bf   : > { %v4364_v17 = vor.u32 %v4883_v14, %v4363_v45  ;;  %v4419_v14 = vld [vmem:[%s6561_s9 + $0x1c8] sm:$0xf] }
 0x2c1   : > { %2853 = vmatpush.bf16.msrb.mxu3 %v4432_v21 }
 0x337   : > { %v2023_v25 = vpop.f32.mrf.mxu2 }
 0x338   : > { %v2056_v29 = vpack.c.bf16 %v2023_v25, %v2023_v25  ;;  %v4895_v25 = vld [vmem:[%s6561_s9 + $0x1cc] sm:$0xf0] }
 0x339   : > { %v2051_v27 = vpop.f32.mrf.mxu3 }
 0x33a   : > { %v2058_v32 = vpack.c.bf16 %v2051_v27, %v2051_v27  ;;  %v2094_v36 = vunpack.c.l.b16 %v2056_v29  ;;  %v4284_v27 = vor.u32 %v4863_v22, %v4283_v20  ;;  %v4412_v29 = vor.u32 %v4895_v25, %v4411_v24  ;;  %v4365_v20 = vld [vmem:[%s6561_s9 + $0x170] sm:$0xf0]  ;;  %v4219_v22 = vld [vmem:[%s6561_s9 + $0x40] sm:$0xf]  ;;  %v4847_v24 = vld [vmem:[%s6561_s9 + $0x4c] sm:$0xf0] }
 0x33b   : > { %v4368_v21 = vor.u32 %v4881_v19, %v4365_v20  ;;  %v4347_v25 = vld [vmem:[%s6561_s9 + $0x140] sm:$0xf]  ;;  %v4894_v19 = vld [vmem:[%s6561_s9 + $0x1cc] sm:$0xf]  ;;  %v4421_v20 = vld [vmem:[%s6561_s9 + $0x1d8] sm:$0xf0] }
 0x33c   : > { %v2208_v26 = vunpack.c.l.b16 %v2058_v32  ;;  %v4285_v32 = vld [vmem:[%s6561_s9 + $0xd0] sm:$0xf0]  ;;  %2812 = vmatpush.bf16.msrb.mxu0 %v4284_v27  ;;  %2826 = vmatpush.bf16.msrb.mxu1 %v4412_v29  ;;  %v4220_v27 = vor.u32 %v4847_v24, %v4219_v22  ;;  %v4879_v29 = vld [vmem:[%s6561_s9 + $0x14c] sm:$0xf0]  ;;  %v4424_v22 = vor.u32 %v4894_v19, %v4421_v20  ;;  %v4275_v24 = vld [vmem:[%s6561_s9 + $0xa8] sm:$0xf] }
 0x33f   : > { %v2025_v30 = vpop.f32.mrf.mxu2 }
 0x340   : > { %v2057_v34 = vpack.c.bf16 %v2025_v30, %v2025_v30  ;;  %v4861_v30 = vld [vmem:[%s6561_s9 + $0xc4] sm:$0xf] }
 0x341   : > { %v2053_v35 = vpop.f32.mrf.mxu3 }
 0x342   : > { %v2095_v37 = vunpack.c.l.b16 %v2057_v34  ;;  %v2059_v38 = vpack.c.bf16 %v2053_v35, %v2053_v35  ;;  %v4893_v34 = vld [vmem:[%s6561_s9 + $0x1c4] sm:$0xf]  ;;  %v2347_v35 = vmul.f32 %v5032_v7, %v2346_v12  ;;  %v4381_v12 = vld [vmem:[%s6561_s9 + $0x190] sm:$0xf0] }
 0x343   : > { %v4384_v9 = vor.u32 %v4885_v8, %v4381_v12  ;;  %v4898_v8 = vld [vmem:[%s6561_s9 + $0x1ec] sm:$0xf] }
 0x344   : > { %v2096_v39 = vpack.c.b16 %v2095_v37, %v2094_v36  ;;  %v2209_v40 = vunpack.c.l.b16 %v2059_v38  ;;  %v4288_v36 = vor.u32 %v4861_v30, %v4285_v32  ;;  %v4413_v37 = vld [vmem:[%s6561_s9 + $0x1d0] sm:$0xf0]  ;;  %v4845_v30 = vld [vmem:[%s6561_s9 + $0x44] sm:$0xf] }
 0x345   : > { %v4416_v38 = vor.u32 %v4893_v34, %v4413_v37  ;;  %v4221_v32 = vld [vmem:[%s6561_s9 + $0x50] sm:$0xf0]  ;;  %v4348_v34 = vor.u32 %v4879_v29, %v4347_v25  ;;  %v4860_v25 = vld [vmem:[%s6561_s9 + $0xb4] sm:$0xf0] }
 0x346   : > { %v2210_v42 = vpack.c.b16 %v2209_v40, %v2208_v26  ;;  %2186 = vmatmul.bf16.vlgmr.msra.gmra.mxu0 %v2096_v39  ;;  %2200 = vmatmul.bf16.vlgmr.msra.gmra.mxu1 %v2096_v39  ;;  %v2348_v26 = vadd.f32 %v5032_v7, %v2347_v35  ;;  %v4224_v35 = vor.u32 %v4845_v30, %v4221_v32  ;;  %v4349_v37 = vld [vmem:[%s6561_s9 + $0x150] sm:$0xf0]  ;;  %v4892_v30 = vld [vmem:[%s6561_s9 + $0x1b4] sm:$0xf0]  ;;  %v4858_v32 = vld [vmem:[%s6561_s9 + $0xac] sm:$0xf] }
 0x347   : > { %2840 = vmatpush.bf16.msrb.mxu2 %v4288_v36  ;;  %2854 = vmatpush.bf16.msrb.mxu3 %v4416_v38  ;;  %v4877_v36 = vld [vmem:[%s6561_s9 + $0x144] sm:$0xf]  ;;  %v4276_v29 = vor.u32 %v4860_v25, %v4275_v24  ;;  %v4876_v24 = vld [vmem:[%s6561_s9 + $0x134] sm:$0xf0]  ;;  %v4842_v25 = vld [vmem:[%s6561_s9 + $0x2c] sm:$0xf] }
 0x348   : > { %2300 = vmatmul.bf16.vlgmr.msra.gmra.mxu2 %v2210_v42  ;;  %2314 = vmatmul.bf16.vlgmr.msra.gmra.mxu3 %v2210_v42  ;;  %v6122_v39 = vsel %vm2349_vm2, %v5032_v7, %v2348_v26  ;;  %v4352_v38 = vor.u32 %v4877_v36, %v4349_v37  ;;  %v4203_v26 = vld [vmem:[%s6561_s9 + $0x20] sm:$0xf]  ;;  %v4890_v37 = vld [vmem:[%s6561_s9 + $0x1ac] sm:$0xf] }
 0x3c3   : > { %v2187_v43 = vpop.f32.mrf.mxu0  ;;  %v2201_v23 = vpop.f32.mrf.mxu1 }
 0x3cb   : > { %v2301_v44 = vpop.f32.mrf.mxu2  ;;  %v2315_v41 = vpop.f32.mrf.mxu3 }
 0x3cc   : > { %v2320_v46 = vadd.f32 %v2301_v44, %v2187_v43  ;;  %v2321_v47 = vadd.f32 %v2315_v41, %v2201_v23  ;;  %v2189_v55 = vpop.f32.mrf.mxu0  ;;  %v2203_v56 = vpop.f32.mrf.mxu1 }
 0x3ce   : > { %v2330_v49 = vadd.f32 %v2326_v57, %v2320_v46  ;;  %v2331_v50 = vadd.f32 %v2327_v31, %v2321_v47 }
 0x3d0   : > { %v2334_v51 = vadd.f32 %v2330_v49, %v1451_v33  ;;  %v2335_v52 = vadd.f32 %v2331_v50, %v1452_v48  ;;  %v4267_v49 = vld [vmem:[%s6561_s9 + $0xa0] sm:$0xf]  ;;  %v4859_v50 = vld [vmem:[%s6561_s9 + $0xac] sm:$0xf0] }
 0x3d2   : > { %v2338_v58 = vadd.f32 %v2335_v52, %v2334_v51 }
 0x3d3   : > { %v2303_v59 = vpop.f32.mrf.mxu2  ;;  %v2317_v60 = vpop.f32.mrf.mxu3 }
 0x3d4   : > { %v2322_v61 = vadd.f32 %v2303_v59, %v2189_v55  ;;  %v2323_v62 = vadd.f32 %v2317_v60, %v2203_v56  ;;  %2339 = vadd.xlane.f32.xlu2 %v2338_v58  ;;  %v4857_v55 = vld [vmem:[%s6561_s9 + $0xa4] sm:$0xf]  ;;  %v4269_v56 = vld [vmem:[%s6561_s9 + $0xb0] sm:$0xf0] }
 0x3d5   : > { %v4272_v59 = vor.u32 %v4857_v55, %v4269_v56  ;;  %v4889_v60 = vld [vmem:[%s6561_s9 + $0x1a4] sm:$0xf]  ;;  %v4871_v55 = vld [vmem:[%s6561_s9 + $0x10c] sm:$0xf0] }
 0x3d6   : > { %v2332_v2 = vadd.f32 %v2326_v57, %v2322_v61  ;;  %v2333_v3 = vadd.f32 %v2327_v31, %v2323_v62  ;;  %v4397_v61 = vld [vmem:[%s6561_s9 + $0x1b0] sm:$0xf0]  ;;  %v4837_v56 = vld [vmem:[%s6561_s9 + $0x4] sm:$0xf] }
 0x3d7   : > { %v4400_v62 = vor.u32 %v4889_v60, %v4397_v61  ;;  %2841 = vmatpush.bf16.msrb.mxu2 %v4272_v59  ;;  %v4869_v61 = vld [vmem:[%s6561_s9 + $0x104] sm:$0xf] }
 0x3d8   : > { %v2336_v1 = vadd.f32 %v2332_v2, %v1453_v63  ;;  %v2337_v4 = vadd.f32 %v2333_v3, %v1454_v0  ;;  %v4251_v63 = vld [vmem:[%s6561_s9 + $0x80] sm:$0xf]  ;;  %v4855_v0 = vld [vmem:[%s6561_s9 + $0x8c] sm:$0xf0] }
 0x3d9   : > { %v4379_v2 = vld [vmem:[%s6561_s9 + $0x180] sm:$0xf]  ;;  %2855 = vmatpush.bf16.msrb.mxu3 %v4400_v62  ;;  %v4252_v3 = vor.u32 %v4855_v0, %v4251_v63  ;;  %v4317_v62 = vld [vmem:[%s6561_s9 + $0x110] sm:$0xf0]  ;;  %v4307_v63 = vld [vmem:[%s6561_s9 + $0xe8] sm:$0xf] }
 0x3da   : > { %v2341_v5 = vadd.f32 %v2337_v4, %v2336_v1  ;;  %v4320_v0 = vor.u32 %v4869_v61, %v4317_v62  ;;  %v4850_v61 = vld [vmem:[%s6561_s9 + $0x6c] sm:$0xf]  ;;  %v4245_v62 = vld [vmem:[%s6561_s9 + $0x78] sm:$0xf0] }
 0x3dc   : > { %2342 = vadd.xlane.f32.xlu0 %v2341_v5  ;;  %v4253_v5 = vld [vmem:[%s6561_s9 + $0x90] sm:$0xf0] }
 0x3dd   : > { %2856 = vmatpush.bf16.msrb.mxu3 %v4384_v9  ;;  %v4437_v9 = vld [vmem:[%s6561_s9 + $0x1f8] sm:$0xf0] }
 0x3de   : > { %v4440_v45 = vor.u32 %v4898_v8, %v4437_v9  ;;  %v4355_v8 = vld [vmem:[%s6561_s9 + $0x148] sm:$0xf] }
 0x3e1   : > { %2857 = vmatpush.bf16.msrb.mxu3 %v4368_v21 }
 0x3e5   : > { %2858 = vmatpush.bf16.msrb.mxu3 %v4352_v38  ;;  %v4405_v38 = vld [vmem:[%s6561_s9 + $0x1b8] sm:$0xf0] }
 0x447   : > { %v2340_v40 = vpop.xlane.xlu2 %2339 }
 0x448   : > { %v2351_v42 = vmul.f32 %v6122_v39, %v2340_v40  ;;  %v4843_v40 = vld [vmem:[%s6561_s9 + $0x2c] sm:$0xf0] }
 0x44a   : > { %v6125_v54 = vsub.f32 %v2334_v51, %v2351_v42  ;;  %v6127_v43 = vsub.f32 %v2335_v52, %v2351_v42  ;;  %v4395_v51 = vld [vmem:[%s6561_s9 + $0x1a0] sm:$0xf]  ;;  %v4268_v52 = vor.u32 %v4859_v50, %v4267_v49 }
 0x44b   : > { %v4396_v58 = vor.u32 %v4891_v53, %v4395_v51  ;;  %v4331_v42 = vld [vmem:[%s6561_s9 + $0x120] sm:$0xf]  ;;  %v4839_v51 = vld [vmem:[%s6561_s9 + $0xc] sm:$0xf0] }
 0x44c   : > { %v2357_v23 = vmul.f32 %v6125_v54, %v6125_v54  ;;  %v2358_v28 = vmul.f32 %v6127_v43, %v6127_v43  ;;  %2813 = vmatpush.bf16.msrb.mxu0 %v4268_v52  ;;  %v4187_v50 = vld [vmem:[%s6561_s9] sm:$0xf] }
 0x44d   : > { %2827 = vmatpush.bf16.msrb.mxu1 %v4396_v58  ;;  %v4315_v52 = vld [vmem:[%s6561_s9 + $0x100] sm:$0xf]  ;;  %v4188_v53 = vor.u32 %v4839_v51, %v4187_v50  ;;  %v4189_v58 = vld [vmem:[%s6561_s9 + $0x10] sm:$0xf0]  ;;  %v4389_v50 = vld [vmem:[%s6561_s9 + $0x198] sm:$0xf0] }
 0x44e   : > { %v2361_v57 = vadd.f32 %v2358_v28, %v2357_v23  ;;  %v4204_v23 = vor.u32 %v4843_v40, %v4203_v26  ;;  %v4875_v28 = vld [vmem:[%s6561_s9 + $0x12c] sm:$0xf0]  ;;  %v4316_v59 = vor.u32 %v4871_v55, %v4315_v52  ;;  %v4192_v60 = vor.u32 %v4837_v56, %v4189_v58  ;;  %v4259_v26 = vld [vmem:[%s6561_s9 + $0x88] sm:$0xf]  ;;  %v4852_v56 = vld [vmem:[%s6561_s9 + $0x74] sm:$0xf0] }
 0x44f   : > { %v2343_v31 = vpop.xlane.xlu0 %2342  ;;  %v4243_v55 = vld [vmem:[%s6561_s9 + $0x68] sm:$0xf] }
 0x450   : > { %v2352_v44 = vmul.f32 %v6122_v39, %v2343_v31  ;;  %2362 = vadd.xlane.f32.xlu1 %v2361_v57  ;;  %2814 = vmatpush.bf16.msrb.mxu0 %v4252_v3  ;;  %v4841_v57 = vld [vmem:[%s6561_s9 + $0x24] sm:$0xf]  ;;  %v4205_v31 = vld [vmem:[%s6561_s9 + $0x30] sm:$0xf0]  ;;  %v4435_v3 = vld [vmem:[%s6561_s9 + $0x1e8] sm:$0xf] }
 0x451   : > { %v4371_v58 = vld [vmem:[%s6561_s9 + $0x168] sm:$0xf] }
 0x452   : > { %v6134_v41 = vsub.f32 %v2336_v1, %v2352_v44  ;;  %v6136_v46 = vsub.f32 %v2337_v4, %v2352_v44  ;;  %v4887_v1 = vld [vmem:[%s6561_s9 + $0x18c] sm:$0xf0]  ;;  %v4853_v4 = vld [vmem:[%s6561_s9 + $0x84] sm:$0xf]  ;;  %v4332_v44 = vor.u32 %v4875_v28, %v4331_v42  ;;  %v4408_v42 = vor.u32 %v4890_v37, %v4405_v38  ;;  %v4387_v28 = vld [vmem:[%s6561_s9 + $0x188] sm:$0xf] }
 0x453   : > { %v4380_v6 = vor.u32 %v4887_v1, %v4379_v2  ;;  %v4256_v7 = vor.u32 %v4853_v4, %v4253_v5  ;;  %v4868_v2 = vld [vmem:[%s6561_s9 + $0xf4] sm:$0xf0] }
 0x454   : > { %v2359_v47 = vmul.f32 %v6134_v41, %v6134_v41  ;;  %v2360_v33 = vmul.f32 %v6136_v46, %v6136_v46  ;;  %2815 = vmatpush.bf16.msrb.mxu0 %v4236_v13  ;;  %v4900_v1 = vld [vmem:[%s6561_s9 + $0x1f4] sm:$0xf0]  ;;  %v4308_v4 = vor.u32 %v4868_v2, %v4307_v63  ;;  %v4292_v13 = vor.u32 %v4864_v11, %v4291_v10  ;;  %v4846_v11 = vld [vmem:[%s6561_s9 + $0x4c] sm:$0xf] }
 0x455   : > { %2828 = vmatpush.bf16.msrb.mxu1 %v4380_v6  ;;  %2842 = vmatpush.bf16.msrb.mxu2 %v4256_v7  ;;  %v4436_v5 = vor.u32 %v4900_v1, %v4435_v3  ;;  %v4866_v6 = vld [vmem:[%s6561_s9 + $0xec] sm:$0xf]  ;;  %v4309_v7 = vld [vmem:[%s6561_s9 + $0xf8] sm:$0xf0]  ;;  %v4248_v2 = vor.u32 %v4850_v61, %v4245_v62  ;;  %v4840_v38 = vld [vmem:[%s6561_s9 + $0x14] sm:$0xf0] }
 0x456   : > { %v2364_v48 = vadd.f32 %v2360_v33, %v2359_v47  ;;  %v4208_v47 = vor.u32 %v4841_v57, %v4205_v31  ;;  %v4873_v33 = vld [vmem:[%s6561_s9 + $0x124] sm:$0xf]  ;;  %v4312_v12 = vor.u32 %v4866_v6, %v4309_v7  ;;  %v4888_v57 = vld [vmem:[%s6561_s9 + $0x194] sm:$0xf0]  ;;  %v4882_v3 = vld [vmem:[%s6561_s9 + $0x16c] sm:$0xf] }
 0x457   : > { %v4373_v1 = vld [vmem:[%s6561_s9 + $0x178] sm:$0xf0]  ;;  %v4848_v7 = vld [vmem:[%s6561_s9 + $0x54] sm:$0xf0] }
 0x458   : > { %2365 = vadd.xlane.f32.xlu2 %v2364_v48  ;;  %2816 = vmatpush.bf16.msrb.mxu0 %v4220_v27  ;;  %v4333_v48 = vld [vmem:[%s6561_s9 + $0x130] sm:$0xf0]  ;;  %v4403_v27 = vld [vmem:[%s6561_s9 + $0x1a8] sm:$0xf]  ;;  %v4376_v6 = vor.u32 %v4882_v3, %v4373_v1 }
 0x459   : > { %2829 = vmatpush.bf16.msrb.mxu1 %v4364_v17  ;;  %2843 = vmatpush.bf16.msrb.mxu2 %v4240_v18  ;;  %v4336_v49 = vor.u32 %v4873_v33, %v4333_v48  ;;  %v4420_v17 = vor.u32 %v4896_v15, %v4419_v14  ;;  %v4293_v18 = vld [vmem:[%s6561_s9 + $0xd8] sm:$0xf0]  ;;  %v4886_v33 = vld [vmem:[%s6561_s9 + $0x18c] sm:$0xf] }
 0x45a   : > { %v4296_v21 = vor.u32 %v4862_v16, %v4293_v18  ;;  %v4211_v18 = vld [vmem:[%s6561_s9 + $0x28] sm:$0xf] }
 0x45b   : > { %2859 = vmatpush.bf16.msrb.mxu3 %v4336_v49  ;;  %v4388_v49 = vor.u32 %v4888_v57, %v4387_v28  ;;  %v4838_v28 = vld [vmem:[%s6561_s9 + $0xc] sm:$0xf]  ;;  %v4197_v57 = vld [vmem:[%s6561_s9 + $0x18] sm:$0xf0] }
 0x45c   : > { %2817 = vmatpush.bf16.msrb.mxu0 %v4204_v23  ;;  %v4856_v23 = vld [vmem:[%s6561_s9 + $0x94] sm:$0xf0] }
 0x45d   : > { %2830 = vmatpush.bf16.msrb.mxu1 %v4348_v34  ;;  %2844 = vmatpush.bf16.msrb.mxu2 %v4224_v35  ;;  %v4277_v34 = vld [vmem:[%s6561_s9 + $0xb8] sm:$0xf0]  ;;  %v4404_v35 = vor.u32 %v4892_v30, %v4403_v27  ;;  %v4260_v48 = vor.u32 %v4856_v23, %v4259_v26  ;;  %v4323_v26 = vld [vmem:[%s6561_s9 + $0x108] sm:$0xf] }
 0x45e   : > { %v4280_v36 = vor.u32 %v4858_v32, %v4277_v34  ;;  %v4213_v27 = vld [vmem:[%s6561_s9 + $0x38] sm:$0xf0]  ;;  %v4874_v34 = vld [vmem:[%s6561_s9 + $0x12c] sm:$0xf] }
 0x45f   : > { %2860 = vmatpush.bf16.msrb.mxu3 %v4320_v0  ;;  %v4216_v37 = vor.u32 %v4842_v25, %v4213_v27  ;;  %v4555_v27 = vld [vmem:[#allocation5 + $0xe0] sm:$0xf] }
 0x460   : > { %2818 = vmatpush.bf16.msrb.mxu0 %v4188_v53  ;;  %v4392_v53 = vor.u32 %v4886_v33, %v4389_v50  ;;  %v4200_v50 = vor.u32 %v4838_v28, %v4197_v57  ;;  %v4928_v28 = vld [vmem:[#allocation5 + $0xd4] sm:$0xf0] }
 0x461   : > { %2831 = vmatpush.bf16.msrb.mxu1 %v4332_v44  ;;  %2845 = vmatpush.bf16.msrb.mxu2 %v4208_v47  ;;  %v4854_v44 = vld [vmem:[%s6561_s9 + $0x8c] sm:$0xf]  ;;  %v4261_v47 = vld [vmem:[%s6561_s9 + $0x98] sm:$0xf0] }
 0x462   : > { %v4264_v52 = vor.u32 %v4854_v44, %v4261_v47  ;;  %v4325_v44 = vld [vmem:[%s6561_s9 + $0x118] sm:$0xf0] }
 0x463   : > { %2909 = vmatpush.bf16.msra.mxu3 %v4440_v45  ;;  %v4229_v45 = vld [vmem:[%s6561_s9 + $0x58] sm:$0xf0] }
 0x464   : > { %2867 = vmatpush.bf16.msra.mxu0 %v4308_v4  ;;  %v4227_v4 = vld [vmem:[%s6561_s9 + $0x48] sm:$0xf]  ;;  %v4232_v16 = vor.u32 %v4846_v11, %v4229_v45  ;;  %v4563_v11 = vld [vmem:[#allocation5 + $0xf0] sm:$0xf]  ;;  %v4932_v45 = vld [vmem:[#allocation5 + $0xf4] sm:$0xf0] }
 0x465   : > { %2832 = vmatpush.bf16.msrb.mxu1 %v4316_v59  ;;  %2846 = vmatpush.bf16.msrb.mxu2 %v4192_v60  ;;  %v4244_v59 = vor.u32 %v4852_v56, %v4243_v55  ;;  %v4884_v60 = vld [vmem:[%s6561_s9 + $0x174] sm:$0xf0]  ;;  %v4228_v9 = vor.u32 %v4848_v7, %v4227_v4  ;;  %v4564_v25 = vor.u32 %v4932_v45, %v4563_v11  ;;  %v4915_v11 = vld [vmem:[#allocation5 + $0x74] sm:$0xf]  ;;  %v4501_v45 = vld [vmem:[#allocation5 + $0x78] sm:$0xf0] }
 0x466   : > { %v4372_v0 = vor.u32 %v4884_v60, %v4371_v58  ;;  %v2395_v60 = vld [vmem:[%s6559_s7] sm:$0x3] }
 0x467   : > { %2910 = vmatpush.bf16.msra.mxu3 %v4424_v22  ;;  %v4339_v22 = vld [vmem:[%s6561_s9 + $0x128] sm:$0xf] }
 0x468   : > { %2868 = vmatpush.bf16.msra.mxu0 %v4292_v13  ;;  %v4878_v13 = vld [vmem:[%s6561_s9 + $0x14c] sm:$0xf]  ;;  %v4340_v32 = vor.u32 %v4876_v24, %v4339_v22  ;;  %v4491_v22 = vld [vmem:[#allocation5 + $0x60] sm:$0xf]  ;;  %v4914_v24 = vld [vmem:[#allocation5 + $0x64] sm:$0xf0] }
 0x469   : > { %2881 = vmatpush.bf16.msra.mxu1 %v4436_v5  ;;  %2895 = vmatpush.bf16.msra.mxu2 %v4312_v12  ;;  %v4880_v12 = vld [vmem:[%s6561_s9 + $0x154] sm:$0xf0] }
 0x46a   : > { %v4356_v10 = vor.u32 %v4880_v12, %v4355_v8 }
 0x46b   : > { %2911 = vmatpush.bf16.msra.mxu3 %v4408_v42 }
 0x46c   : > { %2869 = vmatpush.bf16.msra.mxu0 %v4276_v29 }
 0x46d   : > { %2882 = vmatpush.bf16.msra.mxu1 %v4420_v17  ;;  %2896 = vmatpush.bf16.msra.mxu2 %v4296_v21  ;;  %v4357_v17 = vld [vmem:[%s6561_s9 + $0x158] sm:$0xf0]  ;;  %v4844_v21 = vld [vmem:[%s6561_s9 + $0x34] sm:$0xf0] }
 0x46e   : > { %v4360_v20 = vor.u32 %v4878_v13, %v4357_v17  ;;  %v4212_v30 = vor.u32 %v4844_v21, %v4211_v18  ;;  %v4627_v13 = vld [vmem:[#allocation5 + $0x170] sm:$0xf] }
 0x46f   : > { %2912 = vmatpush.bf16.msra.mxu3 %v4392_v53  ;;  %v4691_v18 = vld [vmem:[#allocation5 + $0x1f0] sm:$0xf] }
 0x470   : > { %2870 = vmatpush.bf16.msra.mxu0 %v4260_v48 }
 0x471   : > { %2883 = vmatpush.bf16.msra.mxu1 %v4404_v35  ;;  %2897 = vmatpush.bf16.msra.mxu2 %v4280_v36  ;;  %v4341_v35 = vld [vmem:[%s6561_s9 + $0x138] sm:$0xf0]  ;;  %v4195_v36 = vld [vmem:[%s6561_s9 + $0x8] sm:$0xf] }
 0x472   : > { %v4344_v23 = vor.u32 %v4874_v34, %v4341_v35  ;;  %v4196_v33 = vor.u32 %v4840_v38, %v4195_v36  ;;  %v4946_v35 = vld [vmem:[#allocation5 + $0x164] sm:$0xf0]  ;;  %v4683_v36 = vld [vmem:[#allocation5 + $0x1e0] sm:$0xf]  ;;  %v4492_v38 = vor.u32 %v4914_v24, %v4491_v22  ;;  %v4595_v24 = vld [vmem:[#allocation5 + $0x130] sm:$0xf] }
 0x473   : > { %2913 = vmatpush.bf16.msra.mxu3 %v4376_v6 }
 0x474   : > { %2871 = vmatpush.bf16.msra.mxu0 %v4244_v59 }
 0x475   : > { %2884 = vmatpush.bf16.msra.mxu1 %v4388_v49  ;;  %2898 = vmatpush.bf16.msra.mxu2 %v4264_v52 }
 0x477   : > { %2914 = vmatpush.bf16.msra.mxu3 %v4360_v20 }
 0x478   : > { %2872 = vmatpush.bf16.msra.mxu0 %v4228_v9  ;;  %v4499_v9 = vld [vmem:[#allocation5 + $0x70] sm:$0xf] }
 0x479   : > { %2885 = vmatpush.bf16.msra.mxu1 %v4372_v0  ;;  %2899 = vmatpush.bf16.msra.mxu2 %v4248_v2  ;;  %v2397_v0 = vperm.slane %v2395_v60, 0  ;;  %v2398_v2 = vperm.slane %v2395_v60, 1  ;;  %v4908_v60 = vld [vmem:[#allocation5 + $0x34] sm:$0xf0] }
 0x47b   : > { %2915 = vmatpush.bf16.msra.mxu3 %v4344_v23  ;;  %v4547_v23 = vld [vmem:[#allocation5 + $0xd0] sm:$0xf] }
 0x47c   : > { %2873 = vmatpush.bf16.msra.mxu0 %v4212_v30 }
 0x47d   : > { %2886 = vmatpush.bf16.msra.mxu1 %v4356_v10  ;;  %2900 = vmatpush.bf16.msra.mxu2 %v4232_v16  ;;  %v4916_v10 = vld [vmem:[#allocation5 + $0x74] sm:$0xf0] }
 0x47e   : > { %v4500_v21 = vor.u32 %v4916_v10, %v4499_v9  ;;  %v4942_v10 = vld [vmem:[#allocation5 + $0x144] sm:$0xf0] }
 0x480   : > { %2874 = vmatpush.bf16.msra.mxu0 %v4196_v33 }
 0x481   : > { %2887 = vmatpush.bf16.msra.mxu1 %v4340_v32  ;;  %2901 = vmatpush.bf16.msra.mxu2 %v4216_v37  ;;  %v4619_v32 = vld [vmem:[#allocation5 + $0x160] sm:$0xf]  ;;  %v4962_v37 = vld [vmem:[#allocation5 + $0x1e4] sm:$0xf0] }
 0x482   : > { %v4620_v57 = vor.u32 %v4946_v35, %v4619_v32  ;;  %v4918_v35 = vld [vmem:[#allocation5 + $0x84] sm:$0xf0] }
 0x485   : > { %2902 = vmatpush.bf16.msra.mxu2 %v4200_v50  ;;  %v4910_v50 = vld [vmem:[#allocation5 + $0x44] sm:$0xf0] }
 0x4c3   : > { %v2363_v40 = vpop.xlane.xlu1 %2362 }
 0x4c4   : > { %v2367_v31 = vmul.f32 %v2363_v40, %v6122_v39  ;;  %v4872_v40 = vld [vmem:[%s6561_s9 + $0x114] sm:$0xf0] }
 0x4c5   : > { %v4324_v48 = vor.u32 %v4872_v40, %v4323_v26  ;;  %v4483_v26 = vld [vmem:[#allocation5 + $0x50] sm:$0xf] }
 0x4c6   : > { %v6383_v51 = vadd.f32 1e-05, %v2367_v31  ;;  %v4870_v31 = vld [vmem:[%s6561_s9 + $0x10c] sm:$0xf] }
 0x4c7   : > { %v4328_v55 = vor.u32 %v4870_v31, %v4325_v44  ;;  %2888 = vmatpush.bf16.msra.mxu1 %v4324_v48  ;;  %v4684_v31 = vor.u32 %v4962_v37, %v4683_v36  ;;  %v4611_v44 = vld [vmem:[#allocation5 + $0x150] sm:$0xf]  ;;  %v4475_v48 = vld [vmem:[#allocation5 + $0x40] sm:$0xf] }
 0x4c8   : > { %5033 = vrsqrt.f32 %v6383_v51  ;;  %vm2377_vm4 = vweird.f32 %v6383_v51  ;;  %v4667_v37 = vld [vmem:[#allocation5 + $0x1c0] sm:$0xf] }
 0x4c9   : > { %2916 = vmatpush.bf16.msra.mxu3 %v4328_v55 }
 0x4cb   : > { %v2366_v63 = vpop.xlane.xlu2 %2365 }
 0x4cc   : > { %v2368_v5 = vmul.f32 %v2366_v63, %v6122_v39 }
 0x4ce   : > { %v5034_v14 = vpop.eup %5033  ;;  %v6432_v15 = vadd.f32 1e-05, %v2368_v5 }
 0x4cf   : > { %v2372_v19 = vmul.f32 %v5034_v14, %v6383_v51  ;;  %vm2378_vm3 = vweird.f32 %v5034_v14  ;;  %v2405_v51 = vld [vmem:[%s6560_s8] sm:$0x3] }
 0x4d0   : > { %5035 = vrsqrt.f32 %v6432_v15  ;;  %vm2379_vm5 = vmor %vm2377_vm4, %vm2378_vm3  ;;  %vm2387_vm7 = vweird.f32 %v6432_v15  ;;  %v2407_v4 = vperm.slane %v2405_v51, 0  ;;  %v2408_v5 = vperm.slane %v2405_v51, 1 }
 0x4d1   : > { %v2373_v29 = vmul.f32 %v5034_v14, %v2372_v19 }
 0x4d3   : > { %v2374_v42 = vmul.f32 0.5, %v2373_v29  ;;  %v4930_v29 = vld [vmem:[#allocation5 + $0xe4] sm:$0xf0] }
 0x4d4   : > { %v4556_v40 = vor.u32 %v4930_v29, %v4555_v27  ;;  %v4913_v29 = vld [vmem:[#allocation5 + $0x64] sm:$0xf] }
 0x4d5   : > { %v2375_v47 = vsub.f32 1.5, %v2374_v42  ;;  %v4912_v42 = vld [vmem:[#allocation5 + $0x54] sm:$0xf0] }
 0x4d6   : > { %v5036_v49 = vpop.eup %5035  ;;  %v4484_v33 = vor.u32 %v4912_v42, %v4483_v26  ;;  %v4931_v26 = vld [vmem:[#allocation5 + $0xf4] sm:$0xf]  ;;  %v4565_v42 = vld [vmem:[#allocation5 + $0xf8] sm:$0xf0] }
 0x4d7   : > { %v2376_v52 = vmul.f32 %v5034_v14, %v2375_v47  ;;  %v2382_v53 = vmul.f32 %v5036_v49, %v6432_v15  ;;  %vm2388_vm6 = vweird.f32 %v5036_v49  ;;  %v4944_v47 = vld [vmem:[#allocation5 + $0x154] sm:$0xf0] }
 0x4d8   : > { %vm2389_vm8 = vmor %vm2387_vm7, %vm2388_vm6  ;;  %v4612_v55 = vor.u32 %v4944_v47, %v4611_v44  ;;  %v4911_v44 = vld [vmem:[#allocation5 + $0x54] sm:$0xf]  ;;  %v4485_v47 = vld [vmem:[#allocation5 + $0x58] sm:$0xf0] }
 0x4d9   : > { %v2383_v56 = vmul.f32 %v5036_v49, %v2382_v53  ;;  %v2380_v58 = vsel %vm2379_vm5, %v5034_v14, %v2376_v52  ;;  %v4539_v52 = vld [vmem:[#allocation5 + $0xc0] sm:$0xf]  ;;  %v4926_v53 = vld [vmem:[#allocation5 + $0xc4] sm:$0xf0] }
 0x4da   : > { %v2391_v62 = vmul.f32 %v2380_v58, %v6125_v54  ;;  %v2392_v63 = vmul.f32 %v2380_v58, %v6127_v43  ;;  %v4467_v58 = vld [vmem:[#allocation5 + $0x30] sm:$0xf] }
 0x4db   : > { %v2384_v59 = vmul.f32 0.5, %v2383_v56  ;;  %v4476_v56 = vor.u32 %v4910_v50, %v4475_v48  ;;  %v4659_v48 = vld [vmem:[#allocation5 + $0x1b0] sm:$0xf] }
 0x4dc   : > { %v2401_v54 = vmul.f32 %v2397_v0, %v2391_v62  ;;  %v2402_v8 = vmul.f32 %v2398_v2, %v2392_v63  ;;  %v4924_v62 = vld [vmem:[#allocation5 + $0xb4] sm:$0xf0]  ;;  %v4468_v63 = vor.u32 %v4908_v60, %v4467_v58  ;;  %v4909_v60 = vld [vmem:[#allocation5 + $0x44] sm:$0xf] }
 0x4dd   : > { %v2385_v61 = vsub.f32 1.5, %v2384_v59  ;;  %v4540_v59 = vor.u32 %v4926_v53, %v4539_v52  ;;  %v4929_v52 = vld [vmem:[#allocation5 + $0xe4] sm:$0xf]  ;;  %v4557_v53 = vld [vmem:[#allocation5 + $0xe8] sm:$0xf0] }
 0x4de   : > { %v6500_v14 = vadd.f32 %v2407_v4, %v2401_v54  ;;  %v6504_v16 = vadd.f32 %v2408_v5, %v2402_v8  ;;  %v4443_v8 = vld [vmem:[#allocation5] sm:$0xf]  ;;  %v4936_v58 = vld [vmem:[#allocation5 + $0x114] sm:$0xf0] }
 0x4df   : > { %v2386_v3 = vmul.f32 %v5036_v49, %v2385_v61  ;;  %v4531_v61 = vld [vmem:[#allocation5 + $0xb0] sm:$0xf] }
 0x4e0   : > { %v4532_v51 = vor.u32 %v4924_v62, %v4531_v61  ;;  %v4477_v61 = vld [vmem:[#allocation5 + $0x48] sm:$0xf0] }
 0x4e1   : > { %v2390_v1 = vsel %vm2389_vm8, %v5036_v49, %v2386_v3  ;;  %v4548_v49 = vor.u32 %v4928_v28, %v4547_v23  ;;  %v4523_v3 = vld [vmem:[#allocation5 + $0xa0] sm:$0xf]  ;;  %v4938_v28 = vld [vmem:[#allocation5 + $0x124] sm:$0xf0]  ;;  %v4480_v62 = vor.u32 %v4909_v60, %v4477_v61  ;;  %v4517_v60 = vld [vmem:[#allocation5 + $0x98] sm:$0xf0] }
 0x4e2   : > { %v2393_v6 = vmul.f32 %v2390_v1, %v6134_v41  ;;  %v2394_v7 = vmul.f32 %v2390_v1, %v6136_v46  ;;  %v4948_v41 = vld [vmem:[#allocation5 + $0x174] sm:$0xf0]  ;;  %v4922_v1 = vld [vmem:[#allocation5 + $0xa4] sm:$0xf0]  ;;  %v4587_v23 = vld [vmem:[#allocation5 + $0x120] sm:$0xf] }
 0x4e3   : > { %v4964_v46 = vld [vmem:[#allocation5 + $0x1f4] sm:$0xf0]  ;;  %v4628_v30 = vor.u32 %v4948_v41, %v4627_v13  ;;  %v4504_v41 = vor.u32 %v4915_v11, %v4501_v45  ;;  %v4925_v45 = vld [vmem:[#allocation5 + $0xc4] sm:$0xf]  ;;  %v4959_v61 = vld [vmem:[#allocation5 + $0x1d4] sm:$0xf] }
 0x4e4   : > { %v2403_v43 = vmul.f32 %v2397_v0, %v2393_v6  ;;  %v2404_v12 = vmul.f32 %v2398_v2, %v2394_v7  ;;  %v4692_v34 = vor.u32 %v4964_v46, %v4691_v18  ;;  %v4459_v0 = vld [vmem:[#allocation5 + $0x20] sm:$0xf]  ;;  %v4906_v2 = vld [vmem:[#allocation5 + $0x24] sm:$0xf0]  ;;  %v4451_v6 = vld [vmem:[#allocation5 + $0x10] sm:$0xf] }
 0x4e5   : > { %v4904_v7 = vld [vmem:[#allocation5 + $0x14] sm:$0xf0]  ;;  %v4515_v18 = vld [vmem:[#allocation5 + $0x90] sm:$0xf] }
 0x4e6   : > { %v6502_v15 = vadd.f32 %v2407_v4, %v2403_v43  ;;  %v6506_v17 = vadd.f32 %v2408_v5, %v2404_v12  ;;  %v4460_v4 = vor.u32 %v4906_v2, %v4459_v0  ;;  %v4524_v5 = vor.u32 %v4922_v1, %v4523_v3  ;;  %v4902_v43 = vld [vmem:[#allocation5 + $0x4] sm:$0xf0]  ;;  %v4603_v12 = vld [vmem:[#allocation5 + $0x140] sm:$0xf]  ;;  %v4920_v46 = vld [vmem:[#allocation5 + $0x94] sm:$0xf0] }
 0x4e7   : > { %v4452_v54 = vor.u32 %v4904_v7, %v4451_v6  ;;  %v4444_v9 = vor.u32 %v4902_v43, %v4443_v8  ;;  %v4604_v13 = vor.u32 %v4942_v10, %v4603_v12  ;;  %v4954_v0 = vld [vmem:[#allocation5 + $0x1a4] sm:$0xf0]  ;;  %v4927_v2 = vld [vmem:[#allocation5 + $0xd4] sm:$0xf]  ;;  %v4549_v3 = vld [vmem:[#allocation5 + $0xd8] sm:$0xf0] }
 0x4e8   : > { %v2415_v19 = vpack.c.bf16 %v6502_v15, %v6500_v14  ;;  %v2416_v20 = vpack.c.bf16 %v6506_v17, %v6504_v16  ;;  %v4552_v1 = vor.u32 %v4927_v2, %v4549_v3  ;;  %v4907_v7 = vld [vmem:[#allocation5 + $0x34] sm:$0xf]  ;;  %v4629_v12 = vld [vmem:[#allocation5 + $0x178] sm:$0xf0]  ;;  %v4952_v11 = vld [vmem:[#allocation5 + $0x194] sm:$0xf0] }
 0x4e9   : > { %v4947_v43 = vld [vmem:[#allocation5 + $0x174] sm:$0xf] }
 0x4ea   : > { %2819 = vmatmul.bf16.vlgmr.msrb.gmra.mxu0 %v2415_v19  ;;  %2833 = vmatmul.bf16.vlgmr.msrb.gmra.mxu1 %v2416_v20  ;;  %v4632_v10 = vor.u32 %v4947_v43, %v4629_v12  ;;  %v4939_v3 = vld [vmem:[#allocation5 + $0x134] sm:$0xf]  ;;  %v4669_v43 = vld [vmem:[#allocation5 + $0x1c8] sm:$0xf0] }
 0x4eb   : > { %2847 = vmatmul.bf16.vlgmr.msrb.gmra.mxu2 %v2415_v19  ;;  %2861 = vmatmul.bf16.vlgmr.msrb.gmra.mxu3 %v2416_v20 }
 0x4ec   : > { %3325 = vmatpush.bf16.msrb.mxu0 %v4500_v21  ;;  %3339 = vmatpush.bf16.msrb.mxu1 %v4564_v25  ;;  %v4960_v21 = vld [vmem:[#allocation5 + $0x1d4] sm:$0xf0] }
 0x4ed   : > { %3353 = vmatpush.bf16.msrb.mxu2 %v4628_v30  ;;  %3367 = vmatpush.bf16.msrb.mxu3 %v4692_v34  ;;  %v4940_v25 = vld [vmem:[#allocation5 + $0x134] sm:$0xf0]  ;;  %v4493_v30 = vld [vmem:[#allocation5 + $0x68] sm:$0xf0]  ;;  %v4507_v34 = vld [vmem:[#allocation5 + $0x80] sm:$0xf] }
 0x4ee   : > { %v4596_v27 = vor.u32 %v4940_v25, %v4595_v24  ;;  %v4496_v32 = vor.u32 %v4913_v29, %v4493_v30  ;;  %v4508_v36 = vor.u32 %v4918_v35, %v4507_v34  ;;  %v4635_v24 = vld [vmem:[#allocation5 + $0x180] sm:$0xf]  ;;  %v4950_v25 = vld [vmem:[#allocation5 + $0x184] sm:$0xf0]  ;;  %v4923_v30 = vld [vmem:[#allocation5 + $0xb4] sm:$0xf] }
 0x4ef   : > { %v4636_v29 = vor.u32 %v4950_v25, %v4635_v24  ;;  %v4963_v35 = vld [vmem:[#allocation5 + $0x1f4] sm:$0xf]  ;;  %v4581_v25 = vld [vmem:[#allocation5 + $0x118] sm:$0xf0] }
 0x4f0   : > { %3326 = vmatpush.bf16.msrb.mxu0 %v4492_v38  ;;  %3340 = vmatpush.bf16.msrb.mxu1 %v4556_v40  ;;  %v4958_v38 = vld [vmem:[#allocation5 + $0x1c4] sm:$0xf0]  ;;  %v4935_v24 = vld [vmem:[#allocation5 + $0x114] sm:$0xf] }
 0x4f1   : > { %3354 = vmatpush.bf16.msrb.mxu2 %v4620_v57  ;;  %3368 = vmatpush.bf16.msrb.mxu3 %v4684_v31  ;;  %v4668_v40 = vor.u32 %v4958_v38, %v4667_v37  ;;  %v4568_v57 = vor.u32 %v4931_v26, %v4565_v42  ;;  %v4588_v31 = vor.u32 %v4938_v28, %v4587_v23  ;;  %v4903_v38 = vld [vmem:[#allocation5 + $0x14] sm:$0xf]  ;;  %v4453_v26 = vld [vmem:[#allocation5 + $0x18] sm:$0xf0] }
 0x4f2   : > { %v4456_v42 = vor.u32 %v4903_v38, %v4453_v26  ;;  %v4613_v23 = vld [vmem:[#allocation5 + $0x158] sm:$0xf0]  ;;  %v4951_v26 = vld [vmem:[#allocation5 + $0x194] sm:$0xf] }
 0x4f4   : > { %3327 = vmatpush.bf16.msrb.mxu0 %v4484_v33  ;;  %3341 = vmatpush.bf16.msrb.mxu1 %v4548_v49  ;;  %v4488_v33 = vor.u32 %v4911_v44, %v4485_v47  ;;  %v4956_v49 = vld [vmem:[#allocation5 + $0x1b4] sm:$0xf0]  ;;  %v4961_v44 = vld [vmem:[#allocation5 + $0x1e4] sm:$0xf] }
 0x4f5   : > { %3355 = vmatpush.bf16.msrb.mxu2 %v4612_v55  ;;  %v4660_v50 = vor.u32 %v4956_v49, %v4659_v48  ;;  %v4560_v55 = vor.u32 %v4929_v52, %v4557_v53  ;;  %v4901_v49 = vld [vmem:[#allocation5 + $0x4] sm:$0xf]  ;;  %v6515_v53 = vld [vmem:[%s6562_s10] sm:$0xf] }
 0x4f6   : > { %v4941_v52 = vld [vmem:[#allocation5 + $0x144] sm:$0xf] }
 0x4f8   : > { %3328 = vmatpush.bf16.msrb.mxu0 %v4476_v56  ;;  %3342 = vmatpush.bf16.msrb.mxu1 %v4540_v59  ;;  %v4579_v56 = vld [vmem:[#allocation5 + $0x110] sm:$0xf] }
 0x4f9   : > { %3356 = vmatpush.bf16.msrb.mxu2 %v4604_v13  ;;  %v4580_v59 = vor.u32 %v4936_v58, %v4579_v56  ;;  %v4541_v13 = vld [vmem:[#allocation5 + $0xc8] sm:$0xf0] }
 0x4fa   : > { %2875 = vmatmul.bf16.vlgmr.msra.gmra.mxu0 %v2415_v19  ;;  %2889 = vmatmul.bf16.vlgmr.msra.gmra.mxu1 %v2416_v20  ;;  %v4605_v56 = vld [vmem:[#allocation5 + $0x148] sm:$0xf0] }
 0x4fb   : > { %2903 = vmatmul.bf16.vlgmr.msra.gmra.mxu2 %v2415_v19  ;;  %2917 = vmatmul.bf16.vlgmr.msra.gmra.mxu3 %v2416_v20  ;;  %v4675_v19 = vld [vmem:[#allocation5 + $0x1d0] sm:$0xf]  ;;  %v4516_v20 = vor.u32 %v4920_v46, %v4515_v18  ;;  %v4544_v18 = vor.u32 %v4925_v45, %v4541_v13  ;;  %v4905_v46 = vld [vmem:[#allocation5 + $0x24] sm:$0xf]  ;;  %v4608_v58 = vor.u32 %v4941_v52, %v4605_v56  ;;  %v4955_v13 = vld [vmem:[#allocation5 + $0x1b4] sm:$0xf] }
 0x4fc   : > { %3329 = vmatpush.bf16.msrb.mxu0 %v4468_v63  ;;  %3343 = vmatpush.bf16.msrb.mxu1 %v4532_v51  ;;  %v4676_v22 = vor.u32 %v4960_v21, %v4675_v19  ;;  %v4651_v63 = vld [vmem:[#allocation5 + $0x1a0] sm:$0xf]  ;;  %v4461_v19 = vld [vmem:[#allocation5 + $0x28] sm:$0xf0]  ;;  %v4949_v56 = vld [vmem:[#allocation5 + $0x184] sm:$0xf] }
 0x4fd   : > { %3357 = vmatpush.bf16.msrb.mxu2 %v4596_v27  ;;  %v4652_v51 = vor.u32 %v4954_v0, %v4651_v63  ;;  %v4464_v21 = vor.u32 %v4905_v46, %v4461_v19  ;;  %v4677_v63 = vld [vmem:[#allocation5 + $0x1d8] sm:$0xf0] }
 0x4fe   : > { %3369 = vmatpush.bf16.msrb.mxu3 %v4676_v22  ;;  %v4621_v22 = vld [vmem:[#allocation5 + $0x168] sm:$0xf0]  ;;  %v4680_v2 = vor.u32 %v4959_v61, %v4677_v63 }
 0x500   : > { %3330 = vmatpush.bf16.msrb.mxu0 %v4460_v4  ;;  %3344 = vmatpush.bf16.msrb.mxu1 %v4524_v5  ;;  %v4571_v4 = vld [vmem:[#allocation5 + $0x100] sm:$0xf]  ;;  %v4934_v5 = vld [vmem:[#allocation5 + $0x104] sm:$0xf0] }
 0x501   : > { %3358 = vmatpush.bf16.msrb.mxu2 %v4588_v31  ;;  %v4572_v6 = vor.u32 %v4934_v5, %v4571_v4  ;;  %v4525_v31 = vld [vmem:[#allocation5 + $0xa8] sm:$0xf0]  ;;  %v2483_v4 = vperm.slane %v6515_v53, 0 }
 0x502   : > { %3370 = vmatpush.bf16.msrb.mxu3 %v4668_v40  ;;  %v4943_v40 = vld [vmem:[#allocation5 + $0x154] sm:$0xf] }
 0x503   : > { %v4616_v28 = vor.u32 %v4943_v40, %v4613_v23  ;;  %v4645_v40 = vld [vmem:[#allocation5 + $0x198] sm:$0xf0] }
 0x504   : > { %3331 = vmatpush.bf16.msrb.mxu0 %v4452_v54  ;;  %3345 = vmatpush.bf16.msrb.mxu1 %v4516_v20  ;;  %v4469_v54 = vld [vmem:[#allocation5 + $0x38] sm:$0xf0]  ;;  %v4945_v20 = vld [vmem:[#allocation5 + $0x164] sm:$0xf] }
 0x505   : > { %3359 = vmatpush.bf16.msrb.mxu2 %v4580_v59  ;;  %v4472_v8 = vor.u32 %v4907_v7, %v4469_v54  ;;  %v4624_v27 = vor.u32 %v4945_v20, %v4621_v22  ;;  %v4919_v59 = vld [vmem:[#allocation5 + $0x94] sm:$0xf]  ;;  %v4509_v7 = vld [vmem:[#allocation5 + $0x88] sm:$0xf0]  ;;  %v4957_v54 = vld [vmem:[#allocation5 + $0x1c4] sm:$0xf] }
 0x506   : > { %3371 = vmatpush.bf16.msrb.mxu3 %v4660_v50  ;;  %v4445_v50 = vld [vmem:[#allocation5 + $0x8] sm:$0xf0]  ;;  %v4672_v12 = vor.u32 %v4957_v54, %v4669_v43 }
 0x508   : > { %3332 = vmatpush.bf16.msrb.mxu0 %v4444_v9  ;;  %3346 = vmatpush.bf16.msrb.mxu1 %v4508_v36  ;;  %v4643_v9 = vld [vmem:[#allocation5 + $0x190] sm:$0xf]  ;;  %v4693_v36 = vld [vmem:[#allocation5 + $0x1f8] sm:$0xf0] }
 0x509   : > { %3360 = vmatpush.bf16.msrb.mxu2 %v4572_v6  ;;  %v4696_v37 = vor.u32 %v4963_v35, %v4693_v36  ;;  %v4917_v6 = vld [vmem:[#allocation5 + $0x84] sm:$0xf]  ;;  %v4573_v36 = vld [vmem:[#allocation5 + $0x108] sm:$0xf0] }
 0x50a   : > { %3372 = vmatpush.bf16.msrb.mxu3 %v4652_v51  ;;  %v4933_v35 = vld [vmem:[#allocation5 + $0x104] sm:$0xf] }
 0x50b   : > { %v4576_v23 = vor.u32 %v4933_v35, %v4573_v36 }
 0x50c   : > { %3381 = vmatpush.bf16.msra.mxu0 %v4504_v41  ;;  %3395 = vmatpush.bf16.msra.mxu1 %v4568_v57  ;;  %v4644_v41 = vor.u32 %v4952_v11, %v4643_v9  ;;  %v4921_v57 = vld [vmem:[#allocation5 + $0xa4] sm:$0xf] }
 0x50d   : > { %3409 = vmatpush.bf16.msra.mxu2 %v4632_v10  ;;  %v4528_v47 = vor.u32 %v4921_v57, %v4525_v31  ;;  %v4937_v9 = vld [vmem:[#allocation5 + $0x124] sm:$0xf]  ;;  %v4589_v10 = vld [vmem:[#allocation5 + $0x128] sm:$0xf0]  ;;  %v4648_v31 = vor.u32 %v4951_v26, %v4645_v40 }
 0x50e   : > { %3373 = vmatpush.bf16.msrb.mxu3 %v4644_v41  ;;  %v4592_v45 = vor.u32 %v4937_v9, %v4589_v10  ;;  %v4661_v41 = vld [vmem:[#allocation5 + $0x1b8] sm:$0xf0] }
 0x50f   : > { %v4664_v20 = vor.u32 %v4955_v13, %v4661_v41 }
 0x510   : > { %3382 = vmatpush.bf16.msra.mxu0 %v4496_v32  ;;  %3396 = vmatpush.bf16.msra.mxu1 %v4560_v55  ;;  %v4533_v32 = vld [vmem:[#allocation5 + $0xb8] sm:$0xf0]  ;;  %v4448_v55 = vor.u32 %v4901_v49, %v4445_v50 }
 0x511   : > { %v4536_v34 = vor.u32 %v4923_v30, %v4533_v32  ;;  %3410 = vmatpush.bf16.msra.mxu2 %v4624_v27  ;;  %v4953_v27 = vld [vmem:[#allocation5 + $0x1a4] sm:$0xf]  ;;  %v4584_v32 = vor.u32 %v4935_v24, %v4581_v25 }
 0x512   : > { %3374 = vmatpush.bf16.msrb.mxu3 %v4636_v29 }
 0x514   : > { %3383 = vmatpush.bf16.msra.mxu0 %v4488_v33  ;;  %3397 = vmatpush.bf16.msra.mxu1 %v4552_v1  ;;  %v4685_v33 = vld [vmem:[#allocation5 + $0x1e8] sm:$0xf0]  ;;  %v4597_v1 = vld [vmem:[#allocation5 + $0x138] sm:$0xf0] }
 0x515   : > { %3411 = vmatpush.bf16.msra.mxu2 %v4616_v28  ;;  %v4688_v48 = vor.u32 %v4961_v44, %v4685_v33  ;;  %v4600_v5 = vor.u32 %v4939_v3, %v4597_v1  ;;  %v2486_v3 = vperm.slane %v6515_v53, 3 }
 0x516   : > { %3423 = vmatpush.bf16.msra.mxu3 %v4696_v37 }
 0x518   : > { %3384 = vmatpush.bf16.msra.mxu0 %v4480_v62  ;;  %3398 = vmatpush.bf16.msra.mxu1 %v4544_v18  ;;  %v4520_v62 = vor.u32 %v4919_v59, %v4517_v60  ;;  %v2484_v18 = vperm.slane %v6515_v53, 1 }
 0x519   : > { %3412 = vmatpush.bf16.msra.mxu2 %v4608_v58  ;;  %v4637_v58 = vld [vmem:[#allocation5 + $0x188] sm:$0xf0] }
 0x51a   : > { %3424 = vmatpush.bf16.msra.mxu3 %v4688_v48  ;;  %v4640_v60 = vor.u32 %v4949_v56, %v4637_v58 }
 0x51c   : > { %3385 = vmatpush.bf16.msra.mxu0 %v4472_v8  ;;  %3399 = vmatpush.bf16.msra.mxu1 %v4536_v34  ;;  %v4512_v8 = vor.u32 %v4917_v6, %v4509_v7  ;;  %v4653_v34 = vld [vmem:[#allocation5 + $0x1a8] sm:$0xf0] }
 0x51d   : > { %3413 = vmatpush.bf16.msra.mxu2 %v4600_v5  ;;  %v4656_v37 = vor.u32 %v4953_v27, %v4653_v34  ;;  %v2999_v27 = vld [vmem:[%s6564_s12] sm:$0x3] }
 0x51e   : > { %3425 = vmatpush.bf16.msra.mxu3 %v4680_v2 }
 0x520   : > { %3386 = vmatpush.bf16.msra.mxu0 %v4464_v21  ;;  %3400 = vmatpush.bf16.msra.mxu1 %v4528_v47 }
 0x521   : > { %3414 = vmatpush.bf16.msra.mxu2 %v4592_v45 }
 0x522   : > { %3426 = vmatpush.bf16.msra.mxu3 %v4672_v12 }
 0x524   : > { %3387 = vmatpush.bf16.msra.mxu0 %v4456_v42  ;;  %3401 = vmatpush.bf16.msra.mxu1 %v4520_v62 }
 0x525   : > { %3415 = vmatpush.bf16.msra.mxu2 %v4584_v32  ;;  %v3002_v32 = vperm.slane %v2999_v27, 1 }
 0x526   : > { %3427 = vmatpush.bf16.msra.mxu3 %v4664_v20 }
 0x528   : > { %3388 = vmatpush.bf16.msra.mxu0 %v4448_v55  ;;  %3402 = vmatpush.bf16.msra.mxu1 %v4512_v8  ;;  %v2485_v55 = vperm.slane %v6515_v53, 2 }
 0x529   : > { %3416 = vmatpush.bf16.msra.mxu2 %v4576_v23 }
 0x52a   : > { %3428 = vmatpush.bf16.msra.mxu3 %v4656_v37 }
 0x52e   : > { %3429 = vmatpush.bf16.msra.mxu3 %v4648_v31 }
 0x532   : > { %3430 = vmatpush.bf16.msra.mxu3 %v4640_v60 }
 0x567   : > { %v2820_v0 = vpop.f32.mrf.mxu0  ;;  %v2834_v51 = vpop.f32.mrf.mxu1 }
 0x568   : > { %v2821_v11 = vadd.f32 %v2820_v0, %v2483_v4 }
 0x56a   : > { %v2835_v29 = vadd.f32 %v2834_v51, %v2821_v11 }
 0x56c   : > { %v2923_v28 = vmax.f32 %v2835_v29, 0.0  ;;  %v3001_v29 = vperm.slane %v2999_v27, 0 }
 0x56e   : > { %v2848_v46 = vpop.f32.mrf.mxu2  ;;  %v2862_v19 = vpop.f32.mrf.mxu3 }
 0x56f   : > { %v2822_v21 = vpop.f32.mrf.mxu0  ;;  %v2836_v22 = vpop.f32.mrf.mxu1  ;;  %v2849_v42 = vadd.f32 %v2848_v46, %v2484_v18 }
 0x570   : > { %v2823_v30 = vadd.f32 %v2822_v21, %v2483_v4 }
 0x571   : > { %v2863_v48 = vadd.f32 %v2862_v19, %v2849_v42 }
 0x572   : > { %v2837_v38 = vadd.f32 %v2836_v22, %v2823_v30 }
 0x573   : > { %v2924_v61 = vmax.f32 %v2863_v48, 0.0 }
 0x574   : > { %v2927_v57 = vmax.f32 %v2837_v38, 0.0 }
 0x576   : > { %v2931_v44 = vpack.c.bf16 %v2927_v57, %v2923_v28  ;;  %v2850_v47 = vpop.f32.mrf.mxu2  ;;  %v2864_v33 = vpop.f32.mrf.mxu3 }
 0x577   : > { %v2851_v49 = vadd.f32 %v2850_v47, %v2484_v18  ;;  %v2876_v50 = vpop.f32.mrf.mxu0  ;;  %v2890_v52 = vpop.f32.mrf.mxu1 }
 0x578   : > { %3333 = vmatmul.bf16.vlgmr.msrb.gmra.mxu0 %v2931_v44  ;;  %v2877_v63 = vadd.f32 %v2876_v50, %v2485_v55 }
 0x579   : > { %v2865_v59 = vadd.f32 %v2864_v33, %v2851_v49 }
 0x57a   : > { %v2891_v4 = vadd.f32 %v2890_v52, %v2877_v63 }
 0x57b   : > { %v2928_v62 = vmax.f32 %v2865_v59, 0.0 }
 0x57c   : > { %v2925_v8 = vmax.f32 %v2891_v4, 0.0 }
 0x57d   : > { %v2932_v0 = vpack.c.bf16 %v2928_v62, %v2924_v61 }
 0x57e   : > { %v2904_v51 = vpop.f32.mrf.mxu2  ;;  %v2918_v2 = vpop.f32.mrf.mxu3 }
 0x57f   : > { %3347 = vmatmul.bf16.vlgmr.msrb.gmra.mxu1 %v2932_v0  ;;  %v2878_v1 = vpop.f32.mrf.mxu0  ;;  %v2892_v6 = vpop.f32.mrf.mxu1  ;;  %v2905_v54 = vadd.f32 %v2904_v51, %v2486_v3 }
 0x580   : > { %v2879_v5 = vadd.f32 %v2878_v1, %v2485_v55 }
 0x581   : > { %v2919_v10 = vadd.f32 %v2918_v2, %v2905_v54 }
 0x582   : > { %v2893_v7 = vadd.f32 %v2892_v6, %v2879_v5 }
 0x583   : > { %v2926_v41 = vmax.f32 %v2919_v10, 0.0 }
 0x584   : > { %v2929_v43 = vmax.f32 %v2893_v7, 0.0 }
 0x586   : > { %v2933_v12 = vpack.c.bf16 %v2929_v43, %v2925_v8  ;;  %v2906_v9 = vpop.f32.mrf.mxu2  ;;  %v2920_v45 = vpop.f32.mrf.mxu3 }
 0x587   : > { %v2907_v11 = vadd.f32 %v2906_v9, %v2486_v3 }
 0x588   : > { %3361 = vmatmul.bf16.vlgmr.msrb.gmra.mxu2 %v2933_v12  ;;  %3389 = vmatmul.bf16.vlgmr.msra.gmra.mxu0 %v2931_v44 }
 0x589   : > { %v2921_v13 = vadd.f32 %v2920_v45, %v2907_v11 }
 0x58b   : > { %v2930_v18 = vmax.f32 %v2921_v13, 0.0 }
 0x58d   : > { %v2934_v53 = vpack.c.bf16 %v2930_v18, %v2926_v41 }
 0x58f   : > { %3375 = vmatmul.bf16.vlgmr.msrb.gmra.mxu3 %v2934_v53  ;;  %3403 = vmatmul.bf16.vlgmr.msra.gmra.mxu1 %v2932_v0 }
 0x598   : > { %3417 = vmatmul.bf16.vlgmr.msra.gmra.mxu2 %v2933_v12 }
 0x59f   : > { %3431 = vmatmul.bf16.vlgmr.msra.gmra.mxu3 %v2934_v53 }
 0x5f5   : > { %v3334_v46 = vpop.f32.mrf.mxu0 }
 0x5f6   : > { %v3335_v36 = vadd.f32 %v3334_v46, %v3001_v29 }
 0x5fc   : > { %v3348_v19 = vpop.f32.mrf.mxu1 }
 0x5fd   : > { %v3336_v21 = vpop.f32.mrf.mxu0  ;;  %v3349_v38 = vadd.f32 %v3348_v19, %v3335_v36 }
 0x5fe   : > { %v3337_v44 = vadd.f32 %v3336_v21, %v3001_v29 }
 0x604   : > { %v3350_v22 = vpop.f32.mrf.mxu1 }
 0x605   : > { %v3390_v30 = vpop.f32.mrf.mxu0  ;;  %v3351_v48 = vadd.f32 %v3350_v22, %v3337_v44 }
 0x606   : > { %v3391_v26 = vadd.f32 %v3390_v30, %v3002_v32 }
 0x60b   : > { %v3362_v20 = vpop.f32.mrf.mxu2 }
 0x60c   : > { %v3404_v34 = vpop.f32.mrf.mxu1  ;;  %v3363_v40 = vadd.f32 %v3362_v20, %v3349_v38  ;;  %v3491_v20 = vld [vmem:[%s6565_s13] sm:$0x3] }
 0x60d   : > { %v3405_v42 = vadd.f32 %v3404_v34, %v3391_v26  ;;  %v3392_v57 = vpop.f32.mrf.mxu0  ;;  %v3493_v27 = vperm.slane %v3491_v20, 0  ;;  %v3494_v29 = vperm.slane %v3491_v20, 1 }
 0x60e   : > { %v3393_v49 = vadd.f32 %v3392_v57, %v3002_v32 }
 0x612   : > { %v3376_v24 = vpop.f32.mrf.mxu3 }
 0x613   : > { %v3364_v25 = vpop.f32.mrf.mxu2  ;;  %v3377_v23 = vadd.f32 %v3376_v24, %v3363_v40  ;;  %v3501_v24 = vld [vmem:[%s6566_s14] sm:$0x3] }
 0x614   : > { %v3406_v33 = vpop.f32.mrf.mxu1  ;;  %v3365_v56 = vadd.f32 %v3364_v25, %v3351_v48  ;;  %v3503_v34 = vperm.slane %v3501_v24, 0 }
 0x615   : > { %v3437_v50 = vadd.f32 %v3377_v23, %v6500_v14  ;;  %v3407_v58 = vadd.f32 %v3406_v33, %v3393_v49 }
 0x61a   : > { %v3378_v35 = vpop.f32.mrf.mxu3 }
 0x61b   : > { %v3418_v37 = vpop.f32.mrf.mxu2  ;;  %v3379_v60 = vadd.f32 %v3378_v35, %v3365_v56  ;;  %v3504_v35 = vperm.slane %v3501_v24, 1 }
 0x61c   : > { %v3419_v28 = vadd.f32 %v3418_v37, %v3405_v42 }
 0x61d   : > { %v3439_v0 = vadd.f32 %v3379_v60, %v6502_v15 }
 0x622   : > { %v3432_v31 = vpop.f32.mrf.mxu3 }
 0x623   : > { %v3433_v47 = vadd.f32 %v3432_v31, %v3419_v28  ;;  %v3420_v55 = vpop.f32.mrf.mxu2 }
 0x624   : > { %v3421_v61 = vadd.f32 %v3420_v55, %v3407_v58 }
 0x625   : > { %v3438_v52 = vadd.f32 %v3433_v47, %v6504_v16 }
 0x627   : > { %v3441_v59 = vadd.f32 %v3438_v52, %v3437_v50 }
 0x629   : > { %3442 = vadd.xlane.f32.xlu0 %v3441_v59 }
 0x62a   : > { %v3434_v62 = vpop.f32.mrf.mxu3 }
 0x62b   : > { %v3435_v63 = vadd.f32 %v3434_v62, %v3421_v61 }
 0x62d   : > { %v3440_v51 = vadd.f32 %v3435_v63, %v6506_v17 }
 0x62f   : > { %v3444_v2 = vadd.f32 %v3440_v51, %v3439_v0 }
 0x631   : > { %3445 = vadd.xlane.f32.xlu1 %v3444_v2 }
 0x69c   : > { %v3443_v3 = vpop.xlane.xlu0 %3442 }
 0x69d   : > { %v3447_v14 = vmul.f32 %v3443_v3, %v6122_v39 }
 0x69f   : > { %v3449_v1 = vsub.f32 %v3437_v50, %v3447_v14  ;;  %v3450_v16 = vsub.f32 %v3438_v52, %v3447_v14 }
 0x6a1   : > { %v3453_v4 = vmul.f32 %v3449_v1, %v3449_v1  ;;  %v3454_v5 = vmul.f32 %v3450_v16, %v3450_v16 }
 0x6a3   : > { %v3457_v6 = vadd.f32 %v3454_v5, %v3453_v4 }
 0x6a4   : > { %v3446_v7 = vpop.xlane.xlu1 %3445 }
 0x6a5   : > { %v3448_v54 = vmul.f32 %v3446_v7, %v6122_v39  ;;  %3458 = vadd.xlane.f32.xlu2 %v3457_v6 }
 0x6a7   : > { %v3451_v8 = vsub.f32 %v3439_v0, %v3448_v54  ;;  %v3452_v43 = vsub.f32 %v3440_v51, %v3448_v54 }
 0x6a9   : > { %v3455_v12 = vmul.f32 %v3451_v8, %v3451_v8  ;;  %v3456_v15 = vmul.f32 %v3452_v43, %v3452_v43 }
 0x6ab   : > { %v3460_v9 = vadd.f32 %v3456_v15, %v3455_v12 }
 0x6ad   : > { %3461 = vadd.xlane.f32.xlu0 %v3460_v9 }
 0x718   : > { %v3459_v17 = vpop.xlane.xlu2 %3458 }
 0x719   : > { %v3463_v10 = vmul.f32 %v3459_v17, %v6122_v39 }
 0x71b   : > { %v3465_v11 = vadd.f32 1e-05, %v3463_v10 }
 0x71d   : > { %5037 = vrsqrt.f32 %v3465_v11  ;;  %vm3473_vm10 = vweird.f32 %v3465_v11 }
 0x720   : > { %v3462_v45 = vpop.xlane.xlu0 %3461 }
 0x721   : > { %v3464_v13 = vmul.f32 %v3462_v45, %v6122_v39 }
 0x723   : > { %v5038_v41 = vpop.eup %5037  ;;  %v3466_v18 = vadd.f32 1e-05, %v3464_v13 }
 0x724   : > { %v3468_v53 = vmul.f32 %v5038_v41, %v3465_v11  ;;  %vm3474_vm9 = vweird.f32 %v5038_v41 }
 0x725   : > { %5039 = vrsqrt.f32 %v3466_v18  ;;  %vm3475_vm11 = vmor %vm3473_vm10, %vm3474_vm9  ;;  %vm3483_vm13 = vweird.f32 %v3466_v18 }
 0x726   : > { %v3469_v46 = vmul.f32 %v5038_v41, %v3468_v53 }
 0x728   : > { %v3470_v19 = vmul.f32 0.5, %v3469_v46 }
 0x72a   : > { %v3471_v21 = vsub.f32 1.5, %v3470_v19 }
 0x72b   : > { %v5040_v22 = vpop.eup %5039 }
 0x72c   : > { %v3472_v25 = vmul.f32 %v5038_v41, %v3471_v21  ;;  %v3478_v39 = vmul.f32 %v5040_v22, %v3466_v18  ;;  %vm3484_vm12 = vweird.f32 %v5040_v22 }
 0x72d   : > { %vm3485_vm14 = vmor %vm3483_vm13, %vm3484_vm12 }
 0x72e   : > { %v3476_v30 = vsel %vm3475_vm11, %v5038_v41, %v3472_v25  ;;  %v3479_v32 = vmul.f32 %v5040_v22, %v3478_v39 }
 0x72f   : > { %v3487_v36 = vmul.f32 %v3476_v30, %v3449_v1  ;;  %v3488_v37 = vmul.f32 %v3476_v30, %v3450_v16 }
 0x730   : > { %v3480_v38 = vmul.f32 0.5, %v3479_v32 }
 0x731   : > { %v3497_v26 = vmul.f32 %v3493_v27, %v3487_v36  ;;  %v3498_v40 = vmul.f32 %v3494_v29, %v3488_v37 }
 0x732   : > { %v3481_v42 = vsub.f32 1.5, %v3480_v38 }
 0x733   : > { %v3507_v23 = vadd.f32 %v3503_v34, %v3497_v26  ;;  %v3508_v28 = vadd.f32 %v3504_v35, %v3498_v40 }
 0x734   : > { %v3482_v57 = vmul.f32 %v5040_v22, %v3481_v42 }
 0x735   : > { %v3511_v31 = vpack.c.bf16 %v3508_v28, %v3507_v23 }
 0x736   : > { %v3486_v44 = vsel %vm3485_vm14, %v5040_v22, %v3482_v57 }
 0x737   : > { %3513 = vst [vmem:[%s552_s16] sm:$0xff] %v3511_v31  ;;  %v3489_v47 = vmul.f32 %v3486_v44, %v3451_v8  ;;  %v3490_v33 = vmul.f32 %v3486_v44, %v3452_v43 }
 0x739   : > { %v3499_v48 = vmul.f32 %v3493_v27, %v3489_v47  ;;  %v3500_v49 = vmul.f32 %v3494_v29, %v3490_v33 }
 0x73b   : > { %v3509_v50 = vadd.f32 %v3503_v34, %v3499_v48  ;;  %v3510_v52 = vadd.f32 %v3504_v35, %v3500_v49 }
 0x73d   : > { %v3512_v55 = vpack.c.bf16 %v3510_v52, %v3509_v50 }
 0x73f   : > { %3514 = vst [vmem:[%s552_s16 + $0x8] sm:$0xff] %v3512_v55 }
 0x740 PF: > { %s27_s20 = sadd.s32 1, %s5131_s20   ;;  %s6575_s18 = sld [smem:[#allocation9_spill]] }
 0x741   : > { %p24_p8 = scmp.ge.s32.totalorder %s27_s20, 4   ;;  %s6576_s19 = sld [smem:[#allocation10_spill]] }
 0x743   :  { %26 = sbr.rel (!%p24_p8) target bundleno = 3 (0x3), region = 126 }
 0x748   :  { %3547 = vsyncpa [#allocation4], 1 }
 0x749   :  { %3549 = vsyncpa [#allocation4 + $0x1], 1 }
 0x74a   :  { %3550 = vsyncpa [#allocation6], 1 }

</bundles_post_ra>
